<compile_context>
chip_gen: v6e
topology: v6e:2x2x1
jax: 0.10.0
libtpu: 0.0.40
codegen_flags: <defaults>
</compile_context>

<pallas_src>
import functools

import jax
import jax.numpy as jnp
from jax.experimental import pallas as pl
from jax.experimental.pallas import tpu as pltpu


# Column layout of the packed per-channel parameter array `ps` (nf, 22):
_W0 = 0          # cols 0..8 : conv0 weight taps (tap index = dy*3+dx)
_B0 = 9          # conv0 bias
_B1, _B2, _B3, _B4 = 10, 11, 12, 13          # conv1..conv4 biases (b4 in rows 0:2)
_G1, _BE1 = 14, 15                           # GN1 gamma / beta
_G2, _BE2 = 16, 17
_G3, _BE3 = 18, 19
_G4, _BE4 = 20, 21
_PS_COLS = 22


# ----------------------------------------------------------------------------
# Fused Pallas kernel: all 5 layers for B images per grid step
# ----------------------------------------------------------------------------
def _cdf_kernel(x_ref, masks_ref, ps_ref, w_ref, o_ref, patch_ref, *,
                H, W, B, nf, matmul_dtype, eps=1e-5, slope=0.2):
    P = H * W
    BP = B * P
    masks = masks_ref[...]                       # (9, BP) 0/1 'same'-pad validity per tap
    ps = ps_ref[...]                             # (nf, 22) packed small params
    offsets = [(dy - 1) * W + (dx - 1) for dy in range(3) for dx in range(3)]

    def tap(x, t):
        off = offsets[t]
        if off == 0:
            return x                             # centre tap: always valid
        # roll wraps across image seams; the per-image tiled mask zeros exactly those
        return pltpu.roll(x, shift=(-off) % BP, axis=1) * masks[t:t + 1, :]

    def conv0(x1):
        # Cin == 1: nine broadcast MACs on the VPU, no im2col / matmul needed.
        acc = None
        for t in range(9):
            term = ps[:, _W0 + t:_W0 + t + 1] * tap(x1, t)       # (nf,1)*(1,BP)->(nf,BP)
            acc = term if acc is None else acc + term
        return acc + ps[:, _B0:_B0 + 1]

    def conv3x3(x, layer, bias_col, cout):
        # 3x3 'same' conv as 3 accumulated K=3*nf matmuls (one per kernel row);
        # each row-chunk is staged through a reused VMEM scratch to bound live ranges.
        acc = None
        for r in range(3):
            for c in range(3):
                patch_ref[c * nf:(c + 1) * nf, :] = tap(x, r * 3 + c).astype(matmul_dtype)
            part = jnp.dot(w_ref[layer, r], patch_ref[...],
                           preferred_element_type=jnp.float32)   # (nf, BP)
            acc = part if acc is None else acc + part
        if cout < nf:
            acc = acc[:cout, :]
        return acc + ps[:cout, bias_col:bias_col + 1]

    def gn_lrelu(x, gcol, bcol, groups):
        # GroupNorm (biased variance, PyTorch-style, stats PER IMAGE) + LeakyReLU.
        Cg = nf // groups
        n = float(Cg * P)
        parts = []
        for g in range(groups):
            xg = x[g * Cg:(g + 1) * Cg, :]                        # sublane-aligned group
            gam = ps[g * Cg:(g + 1) * Cg, gcol:gcol + 1]
            bet = ps[g * Cg:(g + 1) * Cg, bcol:bcol + 1]
            cols = []
            for b in range(B):
                xi = xg[:, b * P:(b + 1) * P]                     # lane-aligned image slice
                s1 = jnp.sum(xi)
                s2 = jnp.sum(xi * xi)
                m = s1 / n
                v = s2 / n - m * m
                cols.append((xi - m) * jax.lax.rsqrt(v + eps))
            xn = cols[0] if B == 1 else jnp.concatenate(cols, axis=1)
            parts.append(xn * gam + bet)
        y = parts[0] if groups == 1 else jnp.concatenate(parts, axis=0)
        return jnp.maximum(y, slope * y)                          # LeakyReLU as one VPU max

    x = conv0(x_ref[0])                                           # (nf, BP)
    x = gn_lrelu(x, _G1, _BE1, 2); x = conv3x3(x, 0, _B1, nf)
    x = gn_lrelu(x, _G2, _BE2, 2); x = conv3x3(x, 1, _B2, nf)
    x = gn_lrelu(x, _G3, _BE3, 2); x = conv3x3(x, 2, _B3, nf)
    x = gn_lrelu(x, _G4, _BE4, 4); x = conv3x3(x, 3, _B4, 2)      # (2, BP)
    o_ref[0] = x.astype(o_ref.dtype)


# ----------------------------------------------------------------------------
# Wrapper
# ----------------------------------------------------------------------------
def _pick_block_batch(N, max_block=8):
    """Largest divisor of N <= max_block that keeps >= 2 grid steps (v7x has 2 TCs)."""
    best = 1
    for b in range(1, max_block + 1):
        if N % b == 0 and N // b >= 2:
            best = b
    return best


def content_dependent_field(phases_nchw, params, matmul_dtype=jnp.float32,
                            block_batch=None):
    # phases: (N, 1, H, W) NCHW -> output (N, 2, H, W) NCHW
    # TODO(synk): set matmul_dtype=jnp.bfloat16 on v6e/v7x for ~2x MXU rate
    # (f32 accumulation kept); re-validate against the 2e-3 tolerance first.
    N, Cin, H, W = phases_nchw.shape
    assert Cin == 1, "latent_coords (3-channel) path not implemented"
    # TODO(synk): latent_coords support would need a generic-Cin conv0 path.
    P = H * W
    B = _pick_block_batch(N) if block_batch is None else block_batch
    assert N % B == 0
    G = N // B
    BP = B * P
    nf = params["conv1_w"].shape[0]

    # B images folded onto the lane axis (pure reshape, image-major / pixel-minor)
    x = phases_nchw.astype(jnp.float32).reshape(G, 1, BP)

    # per-tap 'same'-padding validity masks, tiled per image along lanes -> (9, BP)
    hh = jnp.arange(H)
    ww = jnp.arange(W)
    mlist = []
    for dy in range(3):
        for dx in range(3):
            vh = (hh + dy - 1 >= 0) & (hh + dy - 1 < H)
            vw = (ww + dx - 1 >= 0) & (ww + dx - 1 < W)
            mlist.append((vh[:, None] & vw[None, :]).reshape(P))
    masks = jnp.tile(jnp.stack(mlist, axis=0).astype(jnp.float32), (1, B))

    def wmat(w):   # (Cout, Cin, 3, 3) -> (Cout, 9*Cin), tap-major / channel-minor
        co, ci = w.shape[0], w.shape[1]
        return jnp.transpose(w, (0, 2, 3, 1)).reshape(co, 9 * ci).astype(jnp.float32)

    # one packed array for ALL tiny per-channel operands (conv0 W/b, biases, GN affine)
    ps = jnp.zeros((nf, _PS_COLS), jnp.float32)
    ps = ps.at[:, _W0:_W0 + 9].set(wmat(params["conv0_w"]))
    ps = ps.at[:, _B0].set(params["conv0_b"])
    ps = ps.at[:, _B1].set(params["conv1_b"])
    ps = ps.at[:, _B2].set(params["conv2_b"])
    ps = ps.at[:, _B3].set(params["conv3_b"])
    ps = ps.at[:2, _B4].set(params["conv4_b"])
    ps = ps.at[:, _G1].set(params["gn1_g"]); ps = ps.at[:, _BE1].set(params["gn1_b"])
    ps = ps.at[:, _G2].set(params["gn2_g"]); ps = ps.at[:, _BE2].set(params["gn2_b"])
    ps = ps.at[:, _G3].set(params["gn3_g"]); ps = ps.at[:, _BE3].set(params["gn3_b"])
    ps = ps.at[:, _G4].set(params["gn4_g"]); ps = ps.at[:, _BE4].set(params["gn4_b"])

    # big conv weights stacked into one operand, pre-split by kernel row:
    # (layer=4, kernel_row=3, nf, 3*nf); conv4 zero-padded to nf output rows.
    def wrows(wm):                              # (co, 9ci) -> (3, co, 3ci)
        co = wm.shape[0]
        return jnp.transpose(wm.reshape(co, 3, -1), (1, 0, 2))
    w4 = jnp.zeros((nf, 9 * nf), jnp.float32).at[:2].set(wmat(params["conv4_w"]))
    w_big = jnp.stack([wrows(wmat(params["conv1_w"])),
                       wrows(wmat(params["conv2_w"])),
                       wrows(wmat(params["conv3_w"])),
                       wrows(w4)], axis=0).astype(matmul_dtype)

    in_specs = [
        pl.BlockSpec((1, 1, BP), lambda n: (n, 0, 0)),
        pl.BlockSpec(masks.shape, lambda n: (0, 0)),
        pl.BlockSpec(ps.shape, lambda n: (0, 0)),
        pl.BlockSpec(w_big.shape, lambda n: (0, 0, 0, 0)),
    ]
    out_spec = pl.BlockSpec((1, 2, BP), lambda n: (n, 0, 0))

    flops = N * (2 * P * (9 * nf + 4 * nf * 9 * nf) + 4 * 10 * nf * P)
    bytes_acc = int(4 * N * 3 * P + 4 * (masks.size + ps.size)
                    + w_big.size * jnp.dtype(matmul_dtype).itemsize)

    kernel = functools.partial(_cdf_kernel, H=H, W=W, B=B, nf=nf,
                               matmul_dtype=matmul_dtype)
    out = pl.pallas_call(
        kernel,
        out_shape=jax.ShapeDtypeStruct((G, 2, BP), jnp.float32),
        grid=(G,),
        in_specs=in_specs,
        out_specs=out_spec,
        scratch_shapes=[pltpu.VMEM((3 * nf, BP), matmul_dtype)],   # reused patch row-chunk
        compiler_params=pltpu.CompilerParams(dimension_semantics=("parallel",)),
        cost_estimate=pl.CostEstimate(flops=flops, transcendentals=N * 10,
                                      bytes_accessed=bytes_acc),
    )(x, masks, ps, w_big)

    # (G, 2, B*P) -> NCHW
    return out.reshape(G, 2, B, P).transpose(0, 2, 1, 3).reshape(N, 2, H, W)


# ----------------------------------------------------------------------------
# Deterministic parameter construction + pure-JAX reference for checking
# ----------------------------------------------------------------------------
def make_params(key, num_features=32):
    ch = [(1, num_features), (num_features, num_features),
          (num_features, num_features), (num_features, num_features),
          (num_features, 2)]
    params = {}
    for i, (cin, cout) in enumerate(ch):
        key, kw, kb = jax.random.split(key, 3)
        bound = 1.0 / (cin * 9) ** 0.5        # PyTorch default conv init bound
        params[f"conv{i}_w"] = jax.random.uniform(
            kw, (cout, cin, 3, 3), jnp.float32, -bound, bound)
        params[f"conv{i}_b"] = jax.random.uniform(
            kb, (cout,), jnp.float32, -bound, bound)
    for i in range(1, 5):
        key, kg, kb = jax.random.split(key, 3)
        params[f"gn{i}_g"] = 1.0 + 0.1 * jax.random.normal(kg, (num_features,), jnp.float32)
        params[f"gn{i}_b"] = 0.1 * jax.random.normal(kb, (num_features,), jnp.float32)
    return params


def _ref_conv(x_nhwc, w, b):
    y = jax.lax.conv_general_dilated(
        x_nhwc, jnp.transpose(w, (2, 3, 1, 0)), (1, 1), "SAME",
        dimension_numbers=("NHWC", "HWIO", "NHWC"))
    return y + b[None, None, None, :]


def _ref_gn_lrelu(x_nhwc, gamma, beta, groups, eps=1e-5, slope=0.2):
    N, H, W, C = x_nhwc.shape
    xg = x_nhwc.reshape(N, H, W, groups, C // groups)
    m = jnp.mean(xg, axis=(1, 2, 4), keepdims=True)
    v = jnp.mean(jnp.square(xg - m), axis=(1, 2, 4), keepdims=True)
    y = ((xg - m) * jax.lax.rsqrt(v + eps)).reshape(N, H, W, C)
    y = y * gamma[None, None, None, :] + beta[None, None, None, :]
    return jnp.where(y >= 0, y, slope * y)


def reference_forward(phases_nchw, params):
    x = jnp.transpose(phases_nchw, (0, 2, 3, 1)).astype(jnp.float32)
    x = _ref_conv(x, params["conv0_w"], params["conv0_b"])
    for i in range(1, 4):
        x = _ref_gn_lrelu(x, params[f"gn{i}_g"], params[f"gn{i}_b"], 2)
        x = _ref_conv(x, params[f"conv{i}_w"], params[f"conv{i}_b"])
    x = _ref_gn_lrelu(x, params["gn4_g"], params["gn4_b"], 4)
    x = _ref_conv(x, params["conv4_w"], params["conv4_b"])
    return jnp.transpose(x, (0, 3, 1, 2))


if __name__ == "__main__":
    key = jax.random.PRNGKey(0)
    k_in, k_par = jax.random.split(key)
    phases = jax.random.normal(k_in, (4, 1, 16, 16), jnp.float32)   # NCHW
    params = make_params(k_par)

    out = jax.block_until_ready(jax.jit(content_dependent_field)(phases, params))
    assert out.shape == (4, 2, 16, 16), out.shape

    ref = jax.block_until_ready(reference_forward(phases, params))
    assert jnp.allclose(out, ref, atol=2e-3, rtol=2e-3), float(
        jnp.max(jnp.abs(out - ref)))

    print("KERNEL_OK")
</pallas_src>

<mosaic_0001>
module attributes {stable_mosaic.version = 11 : i64} {
  func.func @_cdf_kernel(%arg0: i32, %arg1: memref<1x1x512xf32, #tpu.memory_space<vmem>>, %arg2: memref<9x512xf32, #tpu.memory_space<vmem>>, %arg3: memref<32x22xf32, #tpu.memory_space<vmem>>, %arg4: memref<4x3x32x96xf32, #tpu.memory_space<vmem>>, %arg5: memref<1x2x512xf32, #tpu.memory_space<vmem>>, %arg6: memref<96x512xf32, #tpu.memory_space<vmem>>) attributes {dimension_semantics = [#tpu.dimension_semantics<parallel>], iteration_bounds = array<i64: 2>, scalar_prefetch = 0 : i64, scratch_operands = 1 : i64, tpu.core_type = #tpu.core_type<tc>, window_params = [{transform_indices = @transform_0, window_bounds = array<i64: 1, 1, 512>}, {pipeline_mode = #tpu.pipeline_mode<synchronous>, transform_indices = @transform_1, window_bounds = array<i64: 9, 512>}, {pipeline_mode = #tpu.pipeline_mode<synchronous>, transform_indices = @transform_2, window_bounds = array<i64: 32, 22>}, {pipeline_mode = #tpu.pipeline_mode<synchronous>, transform_indices = @transform_3, window_bounds = array<i64: 4, 3, 32, 96>}, {transform_indices = @transform_4, window_bounds = array<i64: 1, 2, 512>}]} {
    %c0 = arith.constant 0 : index
    %c0_0 = arith.constant 0 : index
    %0 = vector.load %arg2[%c0, %c0_0] : memref<9x512xf32, #tpu.memory_space<vmem>>, vector<9x512xf32>
    %c0_1 = arith.constant 0 : index
    %c0_2 = arith.constant 0 : index
    %1 = vector.load %arg3[%c0_1, %c0_2] : memref<32x22xf32, #tpu.memory_space<vmem>>, vector<32x22xf32>
    %c0_3 = arith.constant 0 : index
    %c0_4 = arith.constant 0 : index
    %c0_5 = arith.constant 0 : index
    %2 = vector.load %arg1[%c0_3, %c0_4, %c0_5] : memref<1x1x512xf32, #tpu.memory_space<vmem>>, vector<1x1x512xf32>
    %3 = vector.shape_cast %2 : vector<1x1x512xf32> to vector<1x512xf32>
    %4 = vector.extract_strided_slice %1 {offsets = [0, 0], sizes = [32, 1], strides = [1, 1]} : vector<32x22xf32> to vector<32x1xf32>
    %c17_i32 = arith.constant 17 : i32
    %5 = tpu.dynamic_rotate %3 by %c17_i32 dim 1 : vector<1x512xf32>, i32 -> vector<1x512xf32>
    %6 = vector.extract_strided_slice %0 {offsets = [0, 0], sizes = [1, 512], strides = [1, 1]} : vector<9x512xf32> to vector<1x512xf32>
    %7 = arith.mulf %5, %6 : vector<1x512xf32>
    %8 = vector.broadcast %4 : vector<32x1xf32> to vector<32x512xf32>
    %9 = vector.broadcast %7 : vector<1x512xf32> to vector<32x512xf32>
    %10 = arith.mulf %8, %9 : vector<32x512xf32>
    %11 = vector.extract_strided_slice %1 {offsets = [0, 1], sizes = [32, 1], strides = [1, 1]} : vector<32x22xf32> to vector<32x1xf32>
    %c16_i32 = arith.constant 16 : i32
    %12 = tpu.dynamic_rotate %3 by %c16_i32 dim 1 : vector<1x512xf32>, i32 -> vector<1x512xf32>
    %13 = vector.extract_strided_slice %0 {offsets = [1, 0], sizes = [1, 512], strides = [1, 1]} : vector<9x512xf32> to vector<1x512xf32>
    %14 = arith.mulf %12, %13 : vector<1x512xf32>
    %15 = vector.broadcast %11 : vector<32x1xf32> to vector<32x512xf32>
    %16 = vector.broadcast %14 : vector<1x512xf32> to vector<32x512xf32>
    %17 = arith.mulf %15, %16 : vector<32x512xf32>
    %18 = arith.addf %10, %17 : vector<32x512xf32>
    %19 = vector.extract_strided_slice %1 {offsets = [0, 2], sizes = [32, 1], strides = [1, 1]} : vector<32x22xf32> to vector<32x1xf32>
    %c15_i32 = arith.constant 15 : i32
    %20 = tpu.dynamic_rotate %3 by %c15_i32 dim 1 : vector<1x512xf32>, i32 -> vector<1x512xf32>
    %21 = vector.extract_strided_slice %0 {offsets = [2, 0], sizes = [1, 512], strides = [1, 1]} : vector<9x512xf32> to vector<1x512xf32>
    %22 = arith.mulf %20, %21 : vector<1x512xf32>
    %23 = vector.broadcast %19 : vector<32x1xf32> to vector<32x512xf32>
    %24 = vector.broadcast %22 : vector<1x512xf32> to vector<32x512xf32>
    %25 = arith.mulf %23, %24 : vector<32x512xf32>
    %26 = arith.addf %18, %25 : vector<32x512xf32>
    %27 = vector.extract_strided_slice %1 {offsets = [0, 3], sizes = [32, 1], strides = [1, 1]} : vector<32x22xf32> to vector<32x1xf32>
    %c1_i32 = arith.constant 1 : i32
    %28 = tpu.dynamic_rotate %3 by %c1_i32 dim 1 : vector<1x512xf32>, i32 -> vector<1x512xf32>
    %29 = vector.extract_strided_slice %0 {offsets = [3, 0], sizes = [1, 512], strides = [1, 1]} : vector<9x512xf32> to vector<1x512xf32>
    %30 = arith.mulf %28, %29 : vector<1x512xf32>
    %31 = vector.broadcast %27 : vector<32x1xf32> to vector<32x512xf32>
    %32 = vector.broadcast %30 : vector<1x512xf32> to vector<32x512xf32>
    %33 = arith.mulf %31, %32 : vector<32x512xf32>
    %34 = arith.addf %26, %33 : vector<32x512xf32>
    %35 = vector.extract_strided_slice %1 {offsets = [0, 4], sizes = [32, 1], strides = [1, 1]} : vector<32x22xf32> to vector<32x1xf32>
    %36 = vector.broadcast %35 : vector<32x1xf32> to vector<32x512xf32>
    %37 = vector.broadcast %3 : vector<1x512xf32> to vector<32x512xf32>
    %38 = arith.mulf %36, %37 : vector<32x512xf32>
    %39 = arith.addf %34, %38 : vector<32x512xf32>
    %40 = vector.extract_strided_slice %1 {offsets = [0, 5], sizes = [32, 1], strides = [1, 1]} : vector<32x22xf32> to vector<32x1xf32>
    %c511_i32 = arith.constant 511 : i32
    %41 = tpu.dynamic_rotate %3 by %c511_i32 dim 1 : vector<1x512xf32>, i32 -> vector<1x512xf32>
    %42 = vector.extract_strided_slice %0 {offsets = [5, 0], sizes = [1, 512], strides = [1, 1]} : vector<9x512xf32> to vector<1x512xf32>
    %43 = arith.mulf %41, %42 : vector<1x512xf32>
    %44 = vector.broadcast %40 : vector<32x1xf32> to vector<32x512xf32>
    %45 = vector.broadcast %43 : vector<1x512xf32> to vector<32x512xf32>
    %46 = arith.mulf %44, %45 : vector<32x512xf32>
    %47 = arith.addf %39, %46 : vector<32x512xf32>
    %48 = vector.extract_strided_slice %1 {offsets = [0, 6], sizes = [32, 1], strides = [1, 1]} : vector<32x22xf32> to vector<32x1xf32>
    %c497_i32 = arith.constant 497 : i32
    %49 = tpu.dynamic_rotate %3 by %c497_i32 dim 1 : vector<1x512xf32>, i32 -> vector<1x512xf32>
    %50 = vector.extract_strided_slice %0 {offsets = [6, 0], sizes = [1, 512], strides = [1, 1]} : vector<9x512xf32> to vector<1x512xf32>
    %51 = arith.mulf %49, %50 : vector<1x512xf32>
    %52 = vector.broadcast %48 : vector<32x1xf32> to vector<32x512xf32>
    %53 = vector.broadcast %51 : vector<1x512xf32> to vector<32x512xf32>
    %54 = arith.mulf %52, %53 : vector<32x512xf32>
    %55 = arith.addf %47, %54 : vector<32x512xf32>
    %56 = vector.extract_strided_slice %1 {offsets = [0, 7], sizes = [32, 1], strides = [1, 1]} : vector<32x22xf32> to vector<32x1xf32>
    %c496_i32 = arith.constant 496 : i32
    %57 = tpu.dynamic_rotate %3 by %c496_i32 dim 1 : vector<1x512xf32>, i32 -> vector<1x512xf32>
    %58 = vector.extract_strided_slice %0 {offsets = [7, 0], sizes = [1, 512], strides = [1, 1]} : vector<9x512xf32> to vector<1x512xf32>
    %59 = arith.mulf %57, %58 : vector<1x512xf32>
    %60 = vector.broadcast %56 : vector<32x1xf32> to vector<32x512xf32>
    %61 = vector.broadcast %59 : vector<1x512xf32> to vector<32x512xf32>
    %62 = arith.mulf %60, %61 : vector<32x512xf32>
    %63 = arith.addf %55, %62 : vector<32x512xf32>
    %64 = vector.extract_strided_slice %1 {offsets = [0, 8], sizes = [32, 1], strides = [1, 1]} : vector<32x22xf32> to vector<32x1xf32>
    %c495_i32 = arith.constant 495 : i32
    %65 = tpu.dynamic_rotate %3 by %c495_i32 dim 1 : vector<1x512xf32>, i32 -> vector<1x512xf32>
    %66 = vector.extract_strided_slice %0 {offsets = [8, 0], sizes = [1, 512], strides = [1, 1]} : vector<9x512xf32> to vector<1x512xf32>
    %67 = arith.mulf %65, %66 : vector<1x512xf32>
    %68 = vector.broadcast %64 : vector<32x1xf32> to vector<32x512xf32>
    %69 = vector.broadcast %67 : vector<1x512xf32> to vector<32x512xf32>
    %70 = arith.mulf %68, %69 : vector<32x512xf32>
    %71 = arith.addf %63, %70 : vector<32x512xf32>
    %72 = vector.extract_strided_slice %1 {offsets = [0, 9], sizes = [32, 1], strides = [1, 1]} : vector<32x22xf32> to vector<32x1xf32>
    %73 = vector.broadcast %72 : vector<32x1xf32> to vector<32x512xf32>
    %74 = arith.addf %71, %73 : vector<32x512xf32>
    %75 = vector.extract_strided_slice %74 {offsets = [0, 0], sizes = [16, 512], strides = [1, 1]} : vector<32x512xf32> to vector<16x512xf32>
    %76 = vector.extract_strided_slice %1 {offsets = [0, 14], sizes = [16, 1], strides = [1, 1]} : vector<32x22xf32> to vector<16x1xf32>
    %77 = vector.extract_strided_slice %1 {offsets = [0, 15], sizes = [16, 1], strides = [1, 1]} : vector<32x22xf32> to vector<16x1xf32>
    %78 = vector.extract_strided_slice %75 {offsets = [0, 0], sizes = [16, 256], strides = [1, 1]} : vector<16x512xf32> to vector<16x256xf32>
    %79 = vector.shape_cast %78 : vector<16x256xf32> to vector<1x16x256xf32>
    %cst = arith.constant dense<0.000000e+00> : vector<1xf32>
    %80 = vector.multi_reduction <add>, %79, %cst [1, 2] : vector<1x16x256xf32> to vector<1xf32>
    %81 = vector.shape_cast %80 : vector<1xf32> to vector<1x1x1xf32>
    %82 = vector.extract %81[0, 0, 0] : f32 from vector<1x1x1xf32>
    %83 = arith.mulf %78, %78 : vector<16x256xf32>
    %84 = vector.shape_cast %83 : vector<16x256xf32> to vector<1x16x256xf32>
    %cst_6 = arith.constant dense<0.000000e+00> : vector<1xf32>
    %85 = vector.multi_reduction <add>, %84, %cst_6 [1, 2] : vector<1x16x256xf32> to vector<1xf32>
    %86 = vector.shape_cast %85 : vector<1xf32> to vector<1x1x1xf32>
    %87 = vector.extract %86[0, 0, 0] : f32 from vector<1x1x1xf32>
    %cst_7 = arith.constant 4.096000e+03 : f32
    %88 = arith.divf %82, %cst_7 : f32
    %cst_8 = arith.constant 4.096000e+03 : f32
    %89 = arith.divf %87, %cst_8 : f32
    %90 = arith.mulf %88, %88 : f32
    %91 = arith.subf %89, %90 : f32
    %92 = vector.broadcast %88 : f32 to vector<16x256xf32>
    %93 = arith.subf %78, %92 : vector<16x256xf32>
    %cst_9 = arith.constant 9.99999974E-6 : f32
    %94 = arith.addf %91, %cst_9 : f32
    %95 = math.rsqrt %94 : f32
    %96 = vector.broadcast %95 : f32 to vector<16x256xf32>
    %97 = arith.mulf %93, %96 : vector<16x256xf32>
    %98 = vector.extract_strided_slice %75 {offsets = [0, 256], sizes = [16, 256], strides = [1, 1]} : vector<16x512xf32> to vector<16x256xf32>
    %99 = vector.shape_cast %98 : vector<16x256xf32> to vector<1x16x256xf32>
    %cst_10 = arith.constant dense<0.000000e+00> : vector<1xf32>
    %100 = vector.multi_reduction <add>, %99, %cst_10 [1, 2] : vector<1x16x256xf32> to vector<1xf32>
    %101 = vector.shape_cast %100 : vector<1xf32> to vector<1x1x1xf32>
    %102 = vector.extract %101[0, 0, 0] : f32 from vector<1x1x1xf32>
    %103 = arith.mulf %98, %98 : vector<16x256xf32>
    %104 = vector.shape_cast %103 : vector<16x256xf32> to vector<1x16x256xf32>
    %cst_11 = arith.constant dense<0.000000e+00> : vector<1xf32>
    %105 = vector.multi_reduction <add>, %104, %cst_11 [1, 2] : vector<1x16x256xf32> to vector<1xf32>
    %106 = vector.shape_cast %105 : vector<1xf32> to vector<1x1x1xf32>
    %107 = vector.extract %106[0, 0, 0] : f32 from vector<1x1x1xf32>
    %cst_12 = arith.constant 4.096000e+03 : f32
    %108 = arith.divf %102, %cst_12 : f32
    %cst_13 = arith.constant 4.096000e+03 : f32
    %109 = arith.divf %107, %cst_13 : f32
    %110 = arith.mulf %108, %108 : f32
    %111 = arith.subf %109, %110 : f32
    %112 = vector.broadcast %108 : f32 to vector<16x256xf32>
    %113 = arith.subf %98, %112 : vector<16x256xf32>
    %cst_14 = arith.constant 9.99999974E-6 : f32
    %114 = arith.addf %111, %cst_14 : f32
    %115 = math.rsqrt %114 : f32
    %116 = vector.broadcast %115 : f32 to vector<16x256xf32>
    %117 = arith.mulf %113, %116 : vector<16x256xf32>
    %118 = tpu.concatenate %97, %117 in 1 : vector<16x256xf32>, vector<16x256xf32> -> vector<16x512xf32>
    %119 = vector.broadcast %76 : vector<16x1xf32> to vector<16x512xf32>
    %120 = arith.mulf %118, %119 : vector<16x512xf32>
    %121 = vector.broadcast %77 : vector<16x1xf32> to vector<16x512xf32>
    %122 = arith.addf %120, %121 : vector<16x512xf32>
    %123 = vector.extract_strided_slice %74 {offsets = [16, 0], sizes = [16, 512], strides = [1, 1]} : vector<32x512xf32> to vector<16x512xf32>
    %124 = vector.extract_strided_slice %1 {offsets = [16, 14], sizes = [16, 1], strides = [1, 1]} : vector<32x22xf32> to vector<16x1xf32>
    %125 = vector.extract_strided_slice %1 {offsets = [16, 15], sizes = [16, 1], strides = [1, 1]} : vector<32x22xf32> to vector<16x1xf32>
    %126 = vector.extract_strided_slice %123 {offsets = [0, 0], sizes = [16, 256], strides = [1, 1]} : vector<16x512xf32> to vector<16x256xf32>
    %127 = vector.shape_cast %126 : vector<16x256xf32> to vector<1x16x256xf32>
    %cst_15 = arith.constant dense<0.000000e+00> : vector<1xf32>
    %128 = vector.multi_reduction <add>, %127, %cst_15 [1, 2] : vector<1x16x256xf32> to vector<1xf32>
    %129 = vector.shape_cast %128 : vector<1xf32> to vector<1x1x1xf32>
    %130 = vector.extract %129[0, 0, 0] : f32 from vector<1x1x1xf32>
    %131 = arith.mulf %126, %126 : vector<16x256xf32>
    %132 = vector.shape_cast %131 : vector<16x256xf32> to vector<1x16x256xf32>
    %cst_16 = arith.constant dense<0.000000e+00> : vector<1xf32>
    %133 = vector.multi_reduction <add>, %132, %cst_16 [1, 2] : vector<1x16x256xf32> to vector<1xf32>
    %134 = vector.shape_cast %133 : vector<1xf32> to vector<1x1x1xf32>
    %135 = vector.extract %134[0, 0, 0] : f32 from vector<1x1x1xf32>
    %cst_17 = arith.constant 4.096000e+03 : f32
    %136 = arith.divf %130, %cst_17 : f32
    %cst_18 = arith.constant 4.096000e+03 : f32
    %137 = arith.divf %135, %cst_18 : f32
    %138 = arith.mulf %136, %136 : f32
    %139 = arith.subf %137, %138 : f32
    %140 = vector.broadcast %136 : f32 to vector<16x256xf32>
    %141 = arith.subf %126, %140 : vector<16x256xf32>
    %cst_19 = arith.constant 9.99999974E-6 : f32
    %142 = arith.addf %139, %cst_19 : f32
    %143 = math.rsqrt %142 : f32
    %144 = vector.broadcast %143 : f32 to vector<16x256xf32>
    %145 = arith.mulf %141, %144 : vector<16x256xf32>
    %146 = vector.extract_strided_slice %123 {offsets = [0, 256], sizes = [16, 256], strides = [1, 1]} : vector<16x512xf32> to vector<16x256xf32>
    %147 = vector.shape_cast %146 : vector<16x256xf32> to vector<1x16x256xf32>
    %cst_20 = arith.constant dense<0.000000e+00> : vector<1xf32>
    %148 = vector.multi_reduction <add>, %147, %cst_20 [1, 2] : vector<1x16x256xf32> to vector<1xf32>
    %149 = vector.shape_cast %148 : vector<1xf32> to vector<1x1x1xf32>
    %150 = vector.extract %149[0, 0, 0] : f32 from vector<1x1x1xf32>
    %151 = arith.mulf %146, %146 : vector<16x256xf32>
    %152 = vector.shape_cast %151 : vector<16x256xf32> to vector<1x16x256xf32>
    %cst_21 = arith.constant dense<0.000000e+00> : vector<1xf32>
    %153 = vector.multi_reduction <add>, %152, %cst_21 [1, 2] : vector<1x16x256xf32> to vector<1xf32>
    %154 = vector.shape_cast %153 : vector<1xf32> to vector<1x1x1xf32>
    %155 = vector.extract %154[0, 0, 0] : f32 from vector<1x1x1xf32>
    %cst_22 = arith.constant 4.096000e+03 : f32
    %156 = arith.divf %150, %cst_22 : f32
    %cst_23 = arith.constant 4.096000e+03 : f32
    %157 = arith.divf %155, %cst_23 : f32
    %158 = arith.mulf %156, %156 : f32
    %159 = arith.subf %157, %158 : f32
    %160 = vector.broadcast %156 : f32 to vector<16x256xf32>
    %161 = arith.subf %146, %160 : vector<16x256xf32>
    %cst_24 = arith.constant 9.99999974E-6 : f32
    %162 = arith.addf %159, %cst_24 : f32
    %163 = math.rsqrt %162 : f32
    %164 = vector.broadcast %163 : f32 to vector<16x256xf32>
    %165 = arith.mulf %161, %164 : vector<16x256xf32>
    %166 = tpu.concatenate %145, %165 in 1 : vector<16x256xf32>, vector<16x256xf32> -> vector<16x512xf32>
    %167 = vector.broadcast %124 : vector<16x1xf32> to vector<16x512xf32>
    %168 = arith.mulf %166, %167 : vector<16x512xf32>
    %169 = vector.broadcast %125 : vector<16x1xf32> to vector<16x512xf32>
    %170 = arith.addf %168, %169 : vector<16x512xf32>
    %171 = tpu.concatenate %122, %170 in 0 : vector<16x512xf32>, vector<16x512xf32> -> vector<32x512xf32>
    %cst_25 = arith.constant 2.000000e-01 : f32
    %172 = vector.broadcast %cst_25 : f32 to vector<32x512xf32>
    %173 = arith.mulf %172, %171 : vector<32x512xf32>
    %174 = arith.maximumf %171, %173 : vector<32x512xf32>
    %c17_i32_26 = arith.constant 17 : i32
    %175 = tpu.dynamic_rotate %174 by %c17_i32_26 dim 1 : vector<32x512xf32>, i32 -> vector<32x512xf32>
    %176 = vector.extract_strided_slice %0 {offsets = [0, 0], sizes = [1, 512], strides = [1, 1]} : vector<9x512xf32> to vector<1x512xf32>
    %177 = vector.broadcast %176 : vector<1x512xf32> to vector<32x512xf32>
    %178 = arith.mulf %175, %177 : vector<32x512xf32>
    %c0_27 = arith.constant 0 : index
    %c0_28 = arith.constant 0 : index
    %179 = vector.load %arg6[%c0_27, %c0_28] : memref<96x512xf32, #tpu.memory_space<vmem>>, vector<32x512xf32>
    tpu.vector_store %arg6[%c0_27, %c0_28], %178 {strides = array<i32>} : memref<96x512xf32, #tpu.memory_space<vmem>>, vector<32x512xf32>,
    %c16_i32_29 = arith.constant 16 : i32
    %180 = tpu.dynamic_rotate %174 by %c16_i32_29 dim 1 : vector<32x512xf32>, i32 -> vector<32x512xf32>
    %181 = vector.extract_strided_slice %0 {offsets = [1, 0], sizes = [1, 512], strides = [1, 1]} : vector<9x512xf32> to vector<1x512xf32>
    %182 = vector.broadcast %181 : vector<1x512xf32> to vector<32x512xf32>
    %183 = arith.mulf %180, %182 : vector<32x512xf32>
    %c32 = arith.constant 32 : index
    %c0_30 = arith.constant 0 : index
    %184 = vector.load %arg6[%c32, %c0_30] : memref<96x512xf32, #tpu.memory_space<vmem>>, vector<32x512xf32>
    tpu.vector_store %arg6[%c32, %c0_30], %183 {strides = array<i32>} : memref<96x512xf32, #tpu.memory_space<vmem>>, vector<32x512xf32>,
    %c15_i32_31 = arith.constant 15 : i32
    %185 = tpu.dynamic_rotate %174 by %c15_i32_31 dim 1 : vector<32x512xf32>, i32 -> vector<32x512xf32>
    %186 = vector.extract_strided_slice %0 {offsets = [2, 0], sizes = [1, 512], strides = [1, 1]} : vector<9x512xf32> to vector<1x512xf32>
    %187 = vector.broadcast %186 : vector<1x512xf32> to vector<32x512xf32>
    %188 = arith.mulf %185, %187 : vector<32x512xf32>
    %c64 = arith.constant 64 : index
    %c0_32 = arith.constant 0 : index
    %189 = vector.load %arg6[%c64, %c0_32] : memref<96x512xf32, #tpu.memory_space<vmem>>, vector<32x512xf32>
    tpu.vector_store %arg6[%c64, %c0_32], %188 {strides = array<i32>} : memref<96x512xf32, #tpu.memory_space<vmem>>, vector<32x512xf32>,
    %c0_33 = arith.constant 0 : index
    %c0_34 = arith.constant 0 : index
    %c0_35 = arith.constant 0 : index
    %c0_36 = arith.constant 0 : index
    %190 = vector.load %arg4[%c0_33, %c0_34, %c0_35, %c0_36] : memref<4x3x32x96xf32, #tpu.memory_space<vmem>>, vector<1x1x32x96xf32>
    %191 = vector.shape_cast %190 : vector<1x1x32x96xf32> to vector<32x96xf32>
    %c0_37 = arith.constant 0 : index
    %c0_38 = arith.constant 0 : index
    %192 = vector.load %arg6[%c0_37, %c0_38] : memref<96x512xf32, #tpu.memory_space<vmem>>, vector<96x512xf32>
    %cst_39 = arith.constant dense<0.000000e+00> : vector<32x512xf32>
    %193 = tpu.matmul %191, %192, %cst_39 {dimension_numbers = #tpu.dot_dimension_numbers<[1], [0], [0], [1], [0, 0, 1, 1], [], []>} : vector<32x96xf32>, vector<96x512xf32>, vector<32x512xf32> -> vector<32x512xf32>
    %c1_i32_40 = arith.constant 1 : i32
    %194 = tpu.dynamic_rotate %174 by %c1_i32_40 dim 1 : vector<32x512xf32>, i32 -> vector<32x512xf32>
    %195 = vector.extract_strided_slice %0 {offsets = [3, 0], sizes = [1, 512], strides = [1, 1]} : vector<9x512xf32> to vector<1x512xf32>
    %196 = vector.broadcast %195 : vector<1x512xf32> to vector<32x512xf32>
    %197 = arith.mulf %194, %196 : vector<32x512xf32>
    %c0_41 = arith.constant 0 : index
    %c0_42 = arith.constant 0 : index
    %198 = vector.load %arg6[%c0_41, %c0_42] : memref<96x512xf32, #tpu.memory_space<vmem>>, vector<32x512xf32>
    tpu.vector_store %arg6[%c0_41, %c0_42], %197 {strides = array<i32>} : memref<96x512xf32, #tpu.memory_space<vmem>>, vector<32x512xf32>,
    %c32_43 = arith.constant 32 : index
    %c0_44 = arith.constant 0 : index
    %199 = vector.load %arg6[%c32_43, %c0_44] : memref<96x512xf32, #tpu.memory_space<vmem>>, vector<32x512xf32>
    tpu.vector_store %arg6[%c32_43, %c0_44], %174 {strides = array<i32>} : memref<96x512xf32, #tpu.memory_space<vmem>>, vector<32x512xf32>,
    %c511_i32_45 = arith.constant 511 : i32
    %200 = tpu.dynamic_rotate %174 by %c511_i32_45 dim 1 : vector<32x512xf32>, i32 -> vector<32x512xf32>
    %201 = vector.extract_strided_slice %0 {offsets = [5, 0], sizes = [1, 512], strides = [1, 1]} : vector<9x512xf32> to vector<1x512xf32>
    %202 = vector.broadcast %201 : vector<1x512xf32> to vector<32x512xf32>
    %203 = arith.mulf %200, %202 : vector<32x512xf32>
    %c64_46 = arith.constant 64 : index
    %c0_47 = arith.constant 0 : index
    %204 = vector.load %arg6[%c64_46, %c0_47] : memref<96x512xf32, #tpu.memory_space<vmem>>, vector<32x512xf32>
    tpu.vector_store %arg6[%c64_46, %c0_47], %203 {strides = array<i32>} : memref<96x512xf32, #tpu.memory_space<vmem>>, vector<32x512xf32>,
    %c0_48 = arith.constant 0 : index
    %c1 = arith.constant 1 : index
    %c0_49 = arith.constant 0 : index
    %c0_50 = arith.constant 0 : index
    %205 = vector.load %arg4[%c0_48, %c1, %c0_49, %c0_50] : memref<4x3x32x96xf32, #tpu.memory_space<vmem>>, vector<1x1x32x96xf32>
    %206 = vector.shape_cast %205 : vector<1x1x32x96xf32> to vector<32x96xf32>
    %c0_51 = arith.constant 0 : index
    %c0_52 = arith.constant 0 : index
    %207 = vector.load %arg6[%c0_51, %c0_52] : memref<96x512xf32, #tpu.memory_space<vmem>>, vector<96x512xf32>
    %cst_53 = arith.constant dense<0.000000e+00> : vector<32x512xf32>
    %208 = tpu.matmul %206, %207, %cst_53 {dimension_numbers = #tpu.dot_dimension_numbers<[1], [0], [0], [1], [0, 0, 1, 1], [], []>} : vector<32x96xf32>, vector<96x512xf32>, vector<32x512xf32> -> vector<32x512xf32>
    %209 = arith.addf %193, %208 : vector<32x512xf32>
    %c497_i32_54 = arith.constant 497 : i32
    %210 = tpu.dynamic_rotate %174 by %c497_i32_54 dim 1 : vector<32x512xf32>, i32 -> vector<32x512xf32>
    %211 = vector.extract_strided_slice %0 {offsets = [6, 0], sizes = [1, 512], strides = [1, 1]} : vector<9x512xf32> to vector<1x512xf32>
    %212 = vector.broadcast %211 : vector<1x512xf32> to vector<32x512xf32>
    %213 = arith.mulf %210, %212 : vector<32x512xf32>
    %c0_55 = arith.constant 0 : index
    %c0_56 = arith.constant 0 : index
    %214 = vector.load %arg6[%c0_55, %c0_56] : memref<96x512xf32, #tpu.memory_space<vmem>>, vector<32x512xf32>
    tpu.vector_store %arg6[%c0_55, %c0_56], %213 {strides = array<i32>} : memref<96x512xf32, #tpu.memory_space<vmem>>, vector<32x512xf32>,
    %c496_i32_57 = arith.constant 496 : i32
    %215 = tpu.dynamic_rotate %174 by %c496_i32_57 dim 1 : vector<32x512xf32>, i32 -> vector<32x512xf32>
    %216 = vector.extract_strided_slice %0 {offsets = [7, 0], sizes = [1, 512], strides = [1, 1]} : vector<9x512xf32> to vector<1x512xf32>
    %217 = vector.broadcast %216 : vector<1x512xf32> to vector<32x512xf32>
    %218 = arith.mulf %215, %217 : vector<32x512xf32>
    %c32_58 = arith.constant 32 : index
    %c0_59 = arith.constant 0 : index
    %219 = vector.load %arg6[%c32_58, %c0_59] : memref<96x512xf32, #tpu.memory_space<vmem>>, vector<32x512xf32>
    tpu.vector_store %arg6[%c32_58, %c0_59], %218 {strides = array<i32>} : memref<96x512xf32, #tpu.memory_space<vmem>>, vector<32x512xf32>,
    %c495_i32_60 = arith.constant 495 : i32
    %220 = tpu.dynamic_rotate %174 by %c495_i32_60 dim 1 : vector<32x512xf32>, i32 -> vector<32x512xf32>
    %221 = vector.extract_strided_slice %0 {offsets = [8, 0], sizes = [1, 512], strides = [1, 1]} : vector<9x512xf32> to vector<1x512xf32>
    %222 = vector.broadcast %221 : vector<1x512xf32> to vector<32x512xf32>
    %223 = arith.mulf %220, %222 : vector<32x512xf32>
    %c64_61 = arith.constant 64 : index
    %c0_62 = arith.constant 0 : index
    %224 = vector.load %arg6[%c64_61, %c0_62] : memref<96x512xf32, #tpu.memory_space<vmem>>, vector<32x512xf32>
    tpu.vector_store %arg6[%c64_61, %c0_62], %223 {strides = array<i32>} : memref<96x512xf32, #tpu.memory_space<vmem>>, vector<32x512xf32>,
    %c0_63 = arith.constant 0 : index
    %c2 = arith.constant 2 : index
    %c0_64 = arith.constant 0 : index
    %c0_65 = arith.constant 0 : index
    %225 = vector.load %arg4[%c0_63, %c2, %c0_64, %c0_65] : memref<4x3x32x96xf32, #tpu.memory_space<vmem>>, vector<1x1x32x96xf32>
    %226 = vector.shape_cast %225 : vector<1x1x32x96xf32> to vector<32x96xf32>
    %c0_66 = arith.constant 0 : index
    %c0_67 = arith.constant 0 : index
    %227 = vector.load %arg6[%c0_66, %c0_67] : memref<96x512xf32, #tpu.memory_space<vmem>>, vector<96x512xf32>
    %cst_68 = arith.constant dense<0.000000e+00> : vector<32x512xf32>
    %228 = tpu.matmul %226, %227, %cst_68 {dimension_numbers = #tpu.dot_dimension_numbers<[1], [0], [0], [1], [0, 0, 1, 1], [], []>} : vector<32x96xf32>, vector<96x512xf32>, vector<32x512xf32> -> vector<32x512xf32>
    %229 = arith.addf %209, %228 : vector<32x512xf32>
    %230 = vector.extract_strided_slice %1 {offsets = [0, 10], sizes = [32, 1], strides = [1, 1]} : vector<32x22xf32> to vector<32x1xf32>
    %231 = vector.broadcast %230 : vector<32x1xf32> to vector<32x512xf32>
    %232 = arith.addf %229, %231 : vector<32x512xf32>
    %233 = vector.extract_strided_slice %232 {offsets = [0, 0], sizes = [16, 512], strides = [1, 1]} : vector<32x512xf32> to vector<16x512xf32>
    %234 = vector.extract_strided_slice %1 {offsets = [0, 16], sizes = [16, 1], strides = [1, 1]} : vector<32x22xf32> to vector<16x1xf32>
    %235 = vector.extract_strided_slice %1 {offsets = [0, 17], sizes = [16, 1], strides = [1, 1]} : vector<32x22xf32> to vector<16x1xf32>
    %236 = vector.extract_strided_slice %233 {offsets = [0, 0], sizes = [16, 256], strides = [1, 1]} : vector<16x512xf32> to vector<16x256xf32>
    %237 = vector.shape_cast %236 : vector<16x256xf32> to vector<1x16x256xf32>
    %cst_69 = arith.constant dense<0.000000e+00> : vector<1xf32>
    %238 = vector.multi_reduction <add>, %237, %cst_69 [1, 2] : vector<1x16x256xf32> to vector<1xf32>
    %239 = vector.shape_cast %238 : vector<1xf32> to vector<1x1x1xf32>
    %240 = vector.extract %239[0, 0, 0] : f32 from vector<1x1x1xf32>
    %241 = arith.mulf %236, %236 : vector<16x256xf32>
    %242 = vector.shape_cast %241 : vector<16x256xf32> to vector<1x16x256xf32>
    %cst_70 = arith.constant dense<0.000000e+00> : vector<1xf32>
    %243 = vector.multi_reduction <add>, %242, %cst_70 [1, 2] : vector<1x16x256xf32> to vector<1xf32>
    %244 = vector.shape_cast %243 : vector<1xf32> to vector<1x1x1xf32>
    %245 = vector.extract %244[0, 0, 0] : f32 from vector<1x1x1xf32>
    %cst_71 = arith.constant 4.096000e+03 : f32
    %246 = arith.divf %240, %cst_71 : f32
    %cst_72 = arith.constant 4.096000e+03 : f32
    %247 = arith.divf %245, %cst_72 : f32
    %248 = arith.mulf %246, %246 : f32
    %249 = arith.subf %247, %248 : f32
    %250 = vector.broadcast %246 : f32 to vector<16x256xf32>
    %251 = arith.subf %236, %250 : vector<16x256xf32>
    %cst_73 = arith.constant 9.99999974E-6 : f32
    %252 = arith.addf %249, %cst_73 : f32
    %253 = math.rsqrt %252 : f32
    %254 = vector.broadcast %253 : f32 to vector<16x256xf32>
    %255 = arith.mulf %251, %254 : vector<16x256xf32>
    %256 = vector.extract_strided_slice %233 {offsets = [0, 256], sizes = [16, 256], strides = [1, 1]} : vector<16x512xf32> to vector<16x256xf32>
    %257 = vector.shape_cast %256 : vector<16x256xf32> to vector<1x16x256xf32>
    %cst_74 = arith.constant dense<0.000000e+00> : vector<1xf32>
    %258 = vector.multi_reduction <add>, %257, %cst_74 [1, 2] : vector<1x16x256xf32> to vector<1xf32>
    %259 = vector.shape_cast %258 : vector<1xf32> to vector<1x1x1xf32>
    %260 = vector.extract %259[0, 0, 0] : f32 from vector<1x1x1xf32>
    %261 = arith.mulf %256, %256 : vector<16x256xf32>
    %262 = vector.shape_cast %261 : vector<16x256xf32> to vector<1x16x256xf32>
    %cst_75 = arith.constant dense<0.000000e+00> : vector<1xf32>
    %263 = vector.multi_reduction <add>, %262, %cst_75 [1, 2] : vector<1x16x256xf32> to vector<1xf32>
    %264 = vector.shape_cast %263 : vector<1xf32> to vector<1x1x1xf32>
    %265 = vector.extract %264[0, 0, 0] : f32 from vector<1x1x1xf32>
    %cst_76 = arith.constant 4.096000e+03 : f32
    %266 = arith.divf %260, %cst_76 : f32
    %cst_77 = arith.constant 4.096000e+03 : f32
    %267 = arith.divf %265, %cst_77 : f32
    %268 = arith.mulf %266, %266 : f32
    %269 = arith.subf %267, %268 : f32
    %270 = vector.broadcast %266 : f32 to vector<16x256xf32>
    %271 = arith.subf %256, %270 : vector<16x256xf32>
    %cst_78 = arith.constant 9.99999974E-6 : f32
    %272 = arith.addf %269, %cst_78 : f32
    %273 = math.rsqrt %272 : f32
    %274 = vector.broadcast %273 : f32 to vector<16x256xf32>
    %275 = arith.mulf %271, %274 : vector<16x256xf32>
    %276 = tpu.concatenate %255, %275 in 1 : vector<16x256xf32>, vector<16x256xf32> -> vector<16x512xf32>
    %277 = vector.broadcast %234 : vector<16x1xf32> to vector<16x512xf32>
    %278 = arith.mulf %276, %277 : vector<16x512xf32>
    %279 = vector.broadcast %235 : vector<16x1xf32> to vector<16x512xf32>
    %280 = arith.addf %278, %279 : vector<16x512xf32>
    %281 = vector.extract_strided_slice %232 {offsets = [16, 0], sizes = [16, 512], strides = [1, 1]} : vector<32x512xf32> to vector<16x512xf32>
    %282 = vector.extract_strided_slice %1 {offsets = [16, 16], sizes = [16, 1], strides = [1, 1]} : vector<32x22xf32> to vector<16x1xf32>
    %283 = vector.extract_strided_slice %1 {offsets = [16, 17], sizes = [16, 1], strides = [1, 1]} : vector<32x22xf32> to vector<16x1xf32>
    %284 = vector.extract_strided_slice %281 {offsets = [0, 0], sizes = [16, 256], strides = [1, 1]} : vector<16x512xf32> to vector<16x256xf32>
    %285 = vector.shape_cast %284 : vector<16x256xf32> to vector<1x16x256xf32>
    %cst_79 = arith.constant dense<0.000000e+00> : vector<1xf32>
    %286 = vector.multi_reduction <add>, %285, %cst_79 [1, 2] : vector<1x16x256xf32> to vector<1xf32>
    %287 = vector.shape_cast %286 : vector<1xf32> to vector<1x1x1xf32>
    %288 = vector.extract %287[0, 0, 0] : f32 from vector<1x1x1xf32>
    %289 = arith.mulf %284, %284 : vector<16x256xf32>
    %290 = vector.shape_cast %289 : vector<16x256xf32> to vector<1x16x256xf32>
    %cst_80 = arith.constant dense<0.000000e+00> : vector<1xf32>
    %291 = vector.multi_reduction <add>, %290, %cst_80 [1, 2] : vector<1x16x256xf32> to vector<1xf32>
    %292 = vector.shape_cast %291 : vector<1xf32> to vector<1x1x1xf32>
    %293 = vector.extract %292[0, 0, 0] : f32 from vector<1x1x1xf32>
    %cst_81 = arith.constant 4.096000e+03 : f32
    %294 = arith.divf %288, %cst_81 : f32
    %cst_82 = arith.constant 4.096000e+03 : f32
    %295 = arith.divf %293, %cst_82 : f32
    %296 = arith.mulf %294, %294 : f32
    %297 = arith.subf %295, %296 : f32
    %298 = vector.broadcast %294 : f32 to vector<16x256xf32>
    %299 = arith.subf %284, %298 : vector<16x256xf32>
    %cst_83 = arith.constant 9.99999974E-6 : f32
    %300 = arith.addf %297, %cst_83 : f32
    %301 = math.rsqrt %300 : f32
    %302 = vector.broadcast %301 : f32 to vector<16x256xf32>
    %303 = arith.mulf %299, %302 : vector<16x256xf32>
    %304 = vector.extract_strided_slice %281 {offsets = [0, 256], sizes = [16, 256], strides = [1, 1]} : vector<16x512xf32> to vector<16x256xf32>
    %305 = vector.shape_cast %304 : vector<16x256xf32> to vector<1x16x256xf32>
    %cst_84 = arith.constant dense<0.000000e+00> : vector<1xf32>
    %306 = vector.multi_reduction <add>, %305, %cst_84 [1, 2] : vector<1x16x256xf32> to vector<1xf32>
    %307 = vector.shape_cast %306 : vector<1xf32> to vector<1x1x1xf32>
    %308 = vector.extract %307[0, 0, 0] : f32 from vector<1x1x1xf32>
    %309 = arith.mulf %304, %304 : vector<16x256xf32>
    %310 = vector.shape_cast %309 : vector<16x256xf32> to vector<1x16x256xf32>
    %cst_85 = arith.constant dense<0.000000e+00> : vector<1xf32>
    %311 = vector.multi_reduction <add>, %310, %cst_85 [1, 2] : vector<1x16x256xf32> to vector<1xf32>
    %312 = vector.shape_cast %311 : vector<1xf32> to vector<1x1x1xf32>
    %313 = vector.extract %312[0, 0, 0] : f32 from vector<1x1x1xf32>
    %cst_86 = arith.constant 4.096000e+03 : f32
    %314 = arith.divf %308, %cst_86 : f32
    %cst_87 = arith.constant 4.096000e+03 : f32
    %315 = arith.divf %313, %cst_87 : f32
    %316 = arith.mulf %314, %314 : f32
    %317 = arith.subf %315, %316 : f32
    %318 = vector.broadcast %314 : f32 to vector<16x256xf32>
    %319 = arith.subf %304, %318 : vector<16x256xf32>
    %cst_88 = arith.constant 9.99999974E-6 : f32
    %320 = arith.addf %317, %cst_88 : f32
    %321 = math.rsqrt %320 : f32
    %322 = vector.broadcast %321 : f32 to vector<16x256xf32>
    %323 = arith.mulf %319, %322 : vector<16x256xf32>
    %324 = tpu.concatenate %303, %323 in 1 : vector<16x256xf32>, vector<16x256xf32> -> vector<16x512xf32>
    %325 = vector.broadcast %282 : vector<16x1xf32> to vector<16x512xf32>
    %326 = arith.mulf %324, %325 : vector<16x512xf32>
    %327 = vector.broadcast %283 : vector<16x1xf32> to vector<16x512xf32>
    %328 = arith.addf %326, %327 : vector<16x512xf32>
    %329 = tpu.concatenate %280, %328 in 0 : vector<16x512xf32>, vector<16x512xf32> -> vector<32x512xf32>
    %cst_89 = arith.constant 2.000000e-01 : f32
    %330 = vector.broadcast %cst_89 : f32 to vector<32x512xf32>
    %331 = arith.mulf %330, %329 : vector<32x512xf32>
    %332 = arith.maximumf %329, %331 : vector<32x512xf32>
    %c17_i32_90 = arith.constant 17 : i32
    %333 = tpu.dynamic_rotate %332 by %c17_i32_90 dim 1 : vector<32x512xf32>, i32 -> vector<32x512xf32>
    %334 = vector.extract_strided_slice %0 {offsets = [0, 0], sizes = [1, 512], strides = [1, 1]} : vector<9x512xf32> to vector<1x512xf32>
    %335 = vector.broadcast %334 : vector<1x512xf32> to vector<32x512xf32>
    %336 = arith.mulf %333, %335 : vector<32x512xf32>
    %c0_91 = arith.constant 0 : index
    %c0_92 = arith.constant 0 : index
    %337 = vector.load %arg6[%c0_91, %c0_92] : memref<96x512xf32, #tpu.memory_space<vmem>>, vector<32x512xf32>
    tpu.vector_store %arg6[%c0_91, %c0_92], %336 {strides = array<i32>} : memref<96x512xf32, #tpu.memory_space<vmem>>, vector<32x512xf32>,
    %c16_i32_93 = arith.constant 16 : i32
    %338 = tpu.dynamic_rotate %332 by %c16_i32_93 dim 1 : vector<32x512xf32>, i32 -> vector<32x512xf32>
    %339 = vector.extract_strided_slice %0 {offsets = [1, 0], sizes = [1, 512], strides = [1, 1]} : vector<9x512xf32> to vector<1x512xf32>
    %340 = vector.broadcast %339 : vector<1x512xf32> to vector<32x512xf32>
    %341 = arith.mulf %338, %340 : vector<32x512xf32>
    %c32_94 = arith.constant 32 : index
    %c0_95 = arith.constant 0 : index
    %342 = vector.load %arg6[%c32_94, %c0_95] : memref<96x512xf32, #tpu.memory_space<vmem>>, vector<32x512xf32>
    tpu.vector_store %arg6[%c32_94, %c0_95], %341 {strides = array<i32>} : memref<96x512xf32, #tpu.memory_space<vmem>>, vector<32x512xf32>,
    %c15_i32_96 = arith.constant 15 : i32
    %343 = tpu.dynamic_rotate %332 by %c15_i32_96 dim 1 : vector<32x512xf32>, i32 -> vector<32x512xf32>
    %344 = vector.extract_strided_slice %0 {offsets = [2, 0], sizes = [1, 512], strides = [1, 1]} : vector<9x512xf32> to vector<1x512xf32>
    %345 = vector.broadcast %344 : vector<1x512xf32> to vector<32x512xf32>
    %346 = arith.mulf %343, %345 : vector<32x512xf32>
    %c64_97 = arith.constant 64 : index
    %c0_98 = arith.constant 0 : index
    %347 = vector.load %arg6[%c64_97, %c0_98] : memref<96x512xf32, #tpu.memory_space<vmem>>, vector<32x512xf32>
    tpu.vector_store %arg6[%c64_97, %c0_98], %346 {strides = array<i32>} : memref<96x512xf32, #tpu.memory_space<vmem>>, vector<32x512xf32>,
    %c1_99 = arith.constant 1 : index
    %c0_100 = arith.constant 0 : index
    %c0_101 = arith.constant 0 : index
    %c0_102 = arith.constant 0 : index
    %348 = vector.load %arg4[%c1_99, %c0_100, %c0_101, %c0_102] : memref<4x3x32x96xf32, #tpu.memory_space<vmem>>, vector<1x1x32x96xf32>
    %349 = vector.shape_cast %348 : vector<1x1x32x96xf32> to vector<32x96xf32>
    %c0_103 = arith.constant 0 : index
    %c0_104 = arith.constant 0 : index
    %350 = vector.load %arg6[%c0_103, %c0_104] : memref<96x512xf32, #tpu.memory_space<vmem>>, vector<96x512xf32>
    %cst_105 = arith.constant dense<0.000000e+00> : vector<32x512xf32>
    %351 = tpu.matmul %349, %350, %cst_105 {dimension_numbers = #tpu.dot_dimension_numbers<[1], [0], [0], [1], [0, 0, 1, 1], [], []>} : vector<32x96xf32>, vector<96x512xf32>, vector<32x512xf32> -> vector<32x512xf32>
    %c1_i32_106 = arith.constant 1 : i32
    %352 = tpu.dynamic_rotate %332 by %c1_i32_106 dim 1 : vector<32x512xf32>, i32 -> vector<32x512xf32>
    %353 = vector.extract_strided_slice %0 {offsets = [3, 0], sizes = [1, 512], strides = [1, 1]} : vector<9x512xf32> to vector<1x512xf32>
    %354 = vector.broadcast %353 : vector<1x512xf32> to vector<32x512xf32>
    %355 = arith.mulf %352, %354 : vector<32x512xf32>
    %c0_107 = arith.constant 0 : index
    %c0_108 = arith.constant 0 : index
    %356 = vector.load %arg6[%c0_107, %c0_108] : memref<96x512xf32, #tpu.memory_space<vmem>>, vector<32x512xf32>
    tpu.vector_store %arg6[%c0_107, %c0_108], %355 {strides = array<i32>} : memref<96x512xf32, #tpu.memory_space<vmem>>, vector<32x512xf32>,
    %c32_109 = arith.constant 32 : index
    %c0_110 = arith.constant 0 : index
    %357 = vector.load %arg6[%c32_109, %c0_110] : memref<96x512xf32, #tpu.memory_space<vmem>>, vector<32x512xf32>
    tpu.vector_store %arg6[%c32_109, %c0_110], %332 {strides = array<i32>} : memref<96x512xf32, #tpu.memory_space<vmem>>, vector<32x512xf32>,
    %c511_i32_111 = arith.constant 511 : i32
    %358 = tpu.dynamic_rotate %332 by %c511_i32_111 dim 1 : vector<32x512xf32>, i32 -> vector<32x512xf32>
    %359 = vector.extract_strided_slice %0 {offsets = [5, 0], sizes = [1, 512], strides = [1, 1]} : vector<9x512xf32> to vector<1x512xf32>
    %360 = vector.broadcast %359 : vector<1x512xf32> to vector<32x512xf32>
    %361 = arith.mulf %358, %360 : vector<32x512xf32>
    %c64_112 = arith.constant 64 : index
    %c0_113 = arith.constant 0 : index
    %362 = vector.load %arg6[%c64_112, %c0_113] : memref<96x512xf32, #tpu.memory_space<vmem>>, vector<32x512xf32>
    tpu.vector_store %arg6[%c64_112, %c0_113], %361 {strides = array<i32>} : memref<96x512xf32, #tpu.memory_space<vmem>>, vector<32x512xf32>,
    %c1_114 = arith.constant 1 : index
    %c1_115 = arith.constant 1 : index
    %c0_116 = arith.constant 0 : index
    %c0_117 = arith.constant 0 : index
    %363 = vector.load %arg4[%c1_114, %c1_115, %c0_116, %c0_117] : memref<4x3x32x96xf32, #tpu.memory_space<vmem>>, vector<1x1x32x96xf32>
    %364 = vector.shape_cast %363 : vector<1x1x32x96xf32> to vector<32x96xf32>
    %c0_118 = arith.constant 0 : index
    %c0_119 = arith.constant 0 : index
    %365 = vector.load %arg6[%c0_118, %c0_119] : memref<96x512xf32, #tpu.memory_space<vmem>>, vector<96x512xf32>
    %cst_120 = arith.constant dense<0.000000e+00> : vector<32x512xf32>
    %366 = tpu.matmul %364, %365, %cst_120 {dimension_numbers = #tpu.dot_dimension_numbers<[1], [0], [0], [1], [0, 0, 1, 1], [], []>} : vector<32x96xf32>, vector<96x512xf32>, vector<32x512xf32> -> vector<32x512xf32>
    %367 = arith.addf %351, %366 : vector<32x512xf32>
    %c497_i32_121 = arith.constant 497 : i32
    %368 = tpu.dynamic_rotate %332 by %c497_i32_121 dim 1 : vector<32x512xf32>, i32 -> vector<32x512xf32>
    %369 = vector.extract_strided_slice %0 {offsets = [6, 0], sizes = [1, 512], strides = [1, 1]} : vector<9x512xf32> to vector<1x512xf32>
    %370 = vector.broadcast %369 : vector<1x512xf32> to vector<32x512xf32>
    %371 = arith.mulf %368, %370 : vector<32x512xf32>
    %c0_122 = arith.constant 0 : index
    %c0_123 = arith.constant 0 : index
    %372 = vector.load %arg6[%c0_122, %c0_123] : memref<96x512xf32, #tpu.memory_space<vmem>>, vector<32x512xf32>
    tpu.vector_store %arg6[%c0_122, %c0_123], %371 {strides = array<i32>} : memref<96x512xf32, #tpu.memory_space<vmem>>, vector<32x512xf32>,
    %c496_i32_124 = arith.constant 496 : i32
    %373 = tpu.dynamic_rotate %332 by %c496_i32_124 dim 1 : vector<32x512xf32>, i32 -> vector<32x512xf32>
    %374 = vector.extract_strided_slice %0 {offsets = [7, 0], sizes = [1, 512], strides = [1, 1]} : vector<9x512xf32> to vector<1x512xf32>
    %375 = vector.broadcast %374 : vector<1x512xf32> to vector<32x512xf32>
    %376 = arith.mulf %373, %375 : vector<32x512xf32>
    %c32_125 = arith.constant 32 : index
    %c0_126 = arith.constant 0 : index
    %377 = vector.load %arg6[%c32_125, %c0_126] : memref<96x512xf32, #tpu.memory_space<vmem>>, vector<32x512xf32>
    tpu.vector_store %arg6[%c32_125, %c0_126], %376 {strides = array<i32>} : memref<96x512xf32, #tpu.memory_space<vmem>>, vector<32x512xf32>,
    %c495_i32_127 = arith.constant 495 : i32
    %378 = tpu.dynamic_rotate %332 by %c495_i32_127 dim 1 : vector<32x512xf32>, i32 -> vector<32x512xf32>
    %379 = vector.extract_strided_slice %0 {offsets = [8, 0], sizes = [1, 512], strides = [1, 1]} : vector<9x512xf32> to vector<1x512xf32>
    %380 = vector.broadcast %379 : vector<1x512xf32> to vector<32x512xf32>
    %381 = arith.mulf %378, %380 : vector<32x512xf32>
    %c64_128 = arith.constant 64 : index
    %c0_129 = arith.constant 0 : index
    %382 = vector.load %arg6[%c64_128, %c0_129] : memref<96x512xf32, #tpu.memory_space<vmem>>, vector<32x512xf32>
    tpu.vector_store %arg6[%c64_128, %c0_129], %381 {strides = array<i32>} : memref<96x512xf32, #tpu.memory_space<vmem>>, vector<32x512xf32>,
    %c1_130 = arith.constant 1 : index
    %c2_131 = arith.constant 2 : index
    %c0_132 = arith.constant 0 : index
    %c0_133 = arith.constant 0 : index
    %383 = vector.load %arg4[%c1_130, %c2_131, %c0_132, %c0_133] : memref<4x3x32x96xf32, #tpu.memory_space<vmem>>, vector<1x1x32x96xf32>
    %384 = vector.shape_cast %383 : vector<1x1x32x96xf32> to vector<32x96xf32>
    %c0_134 = arith.constant 0 : index
    %c0_135 = arith.constant 0 : index
    %385 = vector.load %arg6[%c0_134, %c0_135] : memref<96x512xf32, #tpu.memory_space<vmem>>, vector<96x512xf32>
    %cst_136 = arith.constant dense<0.000000e+00> : vector<32x512xf32>
    %386 = tpu.matmul %384, %385, %cst_136 {dimension_numbers = #tpu.dot_dimension_numbers<[1], [0], [0], [1], [0, 0, 1, 1], [], []>} : vector<32x96xf32>, vector<96x512xf32>, vector<32x512xf32> -> vector<32x512xf32>
    %387 = arith.addf %367, %386 : vector<32x512xf32>
    %388 = vector.extract_strided_slice %1 {offsets = [0, 11], sizes = [32, 1], strides = [1, 1]} : vector<32x22xf32> to vector<32x1xf32>
    %389 = vector.broadcast %388 : vector<32x1xf32> to vector<32x512xf32>
    %390 = arith.addf %387, %389 : vector<32x512xf32>
    %391 = vector.extract_strided_slice %390 {offsets = [0, 0], sizes = [16, 512], strides = [1, 1]} : vector<32x512xf32> to vector<16x512xf32>
    %392 = vector.extract_strided_slice %1 {offsets = [0, 18], sizes = [16, 1], strides = [1, 1]} : vector<32x22xf32> to vector<16x1xf32>
    %393 = vector.extract_strided_slice %1 {offsets = [0, 19], sizes = [16, 1], strides = [1, 1]} : vector<32x22xf32> to vector<16x1xf32>
    %394 = vector.extract_strided_slice %391 {offsets = [0, 0], sizes = [16, 256], strides = [1, 1]} : vector<16x512xf32> to vector<16x256xf32>
    %395 = vector.shape_cast %394 : vector<16x256xf32> to vector<1x16x256xf32>
    %cst_137 = arith.constant dense<0.000000e+00> : vector<1xf32>
    %396 = vector.multi_reduction <add>, %395, %cst_137 [1, 2] : vector<1x16x256xf32> to vector<1xf32>
    %397 = vector.shape_cast %396 : vector<1xf32> to vector<1x1x1xf32>
    %398 = vector.extract %397[0, 0, 0] : f32 from vector<1x1x1xf32>
    %399 = arith.mulf %394, %394 : vector<16x256xf32>
    %400 = vector.shape_cast %399 : vector<16x256xf32> to vector<1x16x256xf32>
    %cst_138 = arith.constant dense<0.000000e+00> : vector<1xf32>
    %401 = vector.multi_reduction <add>, %400, %cst_138 [1, 2] : vector<1x16x256xf32> to vector<1xf32>
    %402 = vector.shape_cast %401 : vector<1xf32> to vector<1x1x1xf32>
    %403 = vector.extract %402[0, 0, 0] : f32 from vector<1x1x1xf32>
    %cst_139 = arith.constant 4.096000e+03 : f32
    %404 = arith.divf %398, %cst_139 : f32
    %cst_140 = arith.constant 4.096000e+03 : f32
    %405 = arith.divf %403, %cst_140 : f32
    %406 = arith.mulf %404, %404 : f32
    %407 = arith.subf %405, %406 : f32
    %408 = vector.broadcast %404 : f32 to vector<16x256xf32>
    %409 = arith.subf %394, %408 : vector<16x256xf32>
    %cst_141 = arith.constant 9.99999974E-6 : f32
    %410 = arith.addf %407, %cst_141 : f32
    %411 = math.rsqrt %410 : f32
    %412 = vector.broadcast %411 : f32 to vector<16x256xf32>
    %413 = arith.mulf %409, %412 : vector<16x256xf32>
    %414 = vector.extract_strided_slice %391 {offsets = [0, 256], sizes = [16, 256], strides = [1, 1]} : vector<16x512xf32> to vector<16x256xf32>
    %415 = vector.shape_cast %414 : vector<16x256xf32> to vector<1x16x256xf32>
    %cst_142 = arith.constant dense<0.000000e+00> : vector<1xf32>
    %416 = vector.multi_reduction <add>, %415, %cst_142 [1, 2] : vector<1x16x256xf32> to vector<1xf32>
    %417 = vector.shape_cast %416 : vector<1xf32> to vector<1x1x1xf32>
    %418 = vector.extract %417[0, 0, 0] : f32 from vector<1x1x1xf32>
    %419 = arith.mulf %414, %414 : vector<16x256xf32>
    %420 = vector.shape_cast %419 : vector<16x256xf32> to vector<1x16x256xf32>
    %cst_143 = arith.constant dense<0.000000e+00> : vector<1xf32>
    %421 = vector.multi_reduction <add>, %420, %cst_143 [1, 2] : vector<1x16x256xf32> to vector<1xf32>
    %422 = vector.shape_cast %421 : vector<1xf32> to vector<1x1x1xf32>
    %423 = vector.extract %422[0, 0, 0] : f32 from vector<1x1x1xf32>
    %cst_144 = arith.constant 4.096000e+03 : f32
    %424 = arith.divf %418, %cst_144 : f32
    %cst_145 = arith.constant 4.096000e+03 : f32
    %425 = arith.divf %423, %cst_145 : f32
    %426 = arith.mulf %424, %424 : f32
    %427 = arith.subf %425, %426 : f32
    %428 = vector.broadcast %424 : f32 to vector<16x256xf32>
    %429 = arith.subf %414, %428 : vector<16x256xf32>
    %cst_146 = arith.constant 9.99999974E-6 : f32
    %430 = arith.addf %427, %cst_146 : f32
    %431 = math.rsqrt %430 : f32
    %432 = vector.broadcast %431 : f32 to vector<16x256xf32>
    %433 = arith.mulf %429, %432 : vector<16x256xf32>
    %434 = tpu.concatenate %413, %433 in 1 : vector<16x256xf32>, vector<16x256xf32> -> vector<16x512xf32>
    %435 = vector.broadcast %392 : vector<16x1xf32> to vector<16x512xf32>
    %436 = arith.mulf %434, %435 : vector<16x512xf32>
    %437 = vector.broadcast %393 : vector<16x1xf32> to vector<16x512xf32>
    %438 = arith.addf %436, %437 : vector<16x512xf32>
    %439 = vector.extract_strided_slice %390 {offsets = [16, 0], sizes = [16, 512], strides = [1, 1]} : vector<32x512xf32> to vector<16x512xf32>
    %440 = vector.extract_strided_slice %1 {offsets = [16, 18], sizes = [16, 1], strides = [1, 1]} : vector<32x22xf32> to vector<16x1xf32>
    %441 = vector.extract_strided_slice %1 {offsets = [16, 19], sizes = [16, 1], strides = [1, 1]} : vector<32x22xf32> to vector<16x1xf32>
    %442 = vector.extract_strided_slice %439 {offsets = [0, 0], sizes = [16, 256], strides = [1, 1]} : vector<16x512xf32> to vector<16x256xf32>
    %443 = vector.shape_cast %442 : vector<16x256xf32> to vector<1x16x256xf32>
    %cst_147 = arith.constant dense<0.000000e+00> : vector<1xf32>
    %444 = vector.multi_reduction <add>, %443, %cst_147 [1, 2] : vector<1x16x256xf32> to vector<1xf32>
    %445 = vector.shape_cast %444 : vector<1xf32> to vector<1x1x1xf32>
    %446 = vector.extract %445[0, 0, 0] : f32 from vector<1x1x1xf32>
    %447 = arith.mulf %442, %442 : vector<16x256xf32>
    %448 = vector.shape_cast %447 : vector<16x256xf32> to vector<1x16x256xf32>
    %cst_148 = arith.constant dense<0.000000e+00> : vector<1xf32>
    %449 = vector.multi_reduction <add>, %448, %cst_148 [1, 2] : vector<1x16x256xf32> to vector<1xf32>
    %450 = vector.shape_cast %449 : vector<1xf32> to vector<1x1x1xf32>
    %451 = vector.extract %450[0, 0, 0] : f32 from vector<1x1x1xf32>
    %cst_149 = arith.constant 4.096000e+03 : f32
    %452 = arith.divf %446, %cst_149 : f32
    %cst_150 = arith.constant 4.096000e+03 : f32
    %453 = arith.divf %451, %cst_150 : f32
    %454 = arith.mulf %452, %452 : f32
    %455 = arith.subf %453, %454 : f32
    %456 = vector.broadcast %452 : f32 to vector<16x256xf32>
    %457 = arith.subf %442, %456 : vector<16x256xf32>
    %cst_151 = arith.constant 9.99999974E-6 : f32
    %458 = arith.addf %455, %cst_151 : f32
    %459 = math.rsqrt %458 : f32
    %460 = vector.broadcast %459 : f32 to vector<16x256xf32>
    %461 = arith.mulf %457, %460 : vector<16x256xf32>
    %462 = vector.extract_strided_slice %439 {offsets = [0, 256], sizes = [16, 256], strides = [1, 1]} : vector<16x512xf32> to vector<16x256xf32>
    %463 = vector.shape_cast %462 : vector<16x256xf32> to vector<1x16x256xf32>
    %cst_152 = arith.constant dense<0.000000e+00> : vector<1xf32>
    %464 = vector.multi_reduction <add>, %463, %cst_152 [1, 2] : vector<1x16x256xf32> to vector<1xf32>
    %465 = vector.shape_cast %464 : vector<1xf32> to vector<1x1x1xf32>
    %466 = vector.extract %465[0, 0, 0] : f32 from vector<1x1x1xf32>
    %467 = arith.mulf %462, %462 : vector<16x256xf32>
    %468 = vector.shape_cast %467 : vector<16x256xf32> to vector<1x16x256xf32>
    %cst_153 = arith.constant dense<0.000000e+00> : vector<1xf32>
    %469 = vector.multi_reduction <add>, %468, %cst_153 [1, 2] : vector<1x16x256xf32> to vector<1xf32>
    %470 = vector.shape_cast %469 : vector<1xf32> to vector<1x1x1xf32>
    %471 = vector.extract %470[0, 0, 0] : f32 from vector<1x1x1xf32>
    %cst_154 = arith.constant 4.096000e+03 : f32
    %472 = arith.divf %466, %cst_154 : f32
    %cst_155 = arith.constant 4.096000e+03 : f32
    %473 = arith.divf %471, %cst_155 : f32
    %474 = arith.mulf %472, %472 : f32
    %475 = arith.subf %473, %474 : f32
    %476 = vector.broadcast %472 : f32 to vector<16x256xf32>
    %477 = arith.subf %462, %476 : vector<16x256xf32>
    %cst_156 = arith.constant 9.99999974E-6 : f32
    %478 = arith.addf %475, %cst_156 : f32
    %479 = math.rsqrt %478 : f32
    %480 = vector.broadcast %479 : f32 to vector<16x256xf32>
    %481 = arith.mulf %477, %480 : vector<16x256xf32>
    %482 = tpu.concatenate %461, %481 in 1 : vector<16x256xf32>, vector<16x256xf32> -> vector<16x512xf32>
    %483 = vector.broadcast %440 : vector<16x1xf32> to vector<16x512xf32>
    %484 = arith.mulf %482, %483 : vector<16x512xf32>
    %485 = vector.broadcast %441 : vector<16x1xf32> to vector<16x512xf32>
    %486 = arith.addf %484, %485 : vector<16x512xf32>
    %487 = tpu.concatenate %438, %486 in 0 : vector<16x512xf32>, vector<16x512xf32> -> vector<32x512xf32>
    %cst_157 = arith.constant 2.000000e-01 : f32
    %488 = vector.broadcast %cst_157 : f32 to vector<32x512xf32>
    %489 = arith.mulf %488, %487 : vector<32x512xf32>
    %490 = arith.maximumf %487, %489 : vector<32x512xf32>
    %c17_i32_158 = arith.constant 17 : i32
    %491 = tpu.dynamic_rotate %490 by %c17_i32_158 dim 1 : vector<32x512xf32>, i32 -> vector<32x512xf32>
    %492 = vector.extract_strided_slice %0 {offsets = [0, 0], sizes = [1, 512], strides = [1, 1]} : vector<9x512xf32> to vector<1x512xf32>
    %493 = vector.broadcast %492 : vector<1x512xf32> to vector<32x512xf32>
    %494 = arith.mulf %491, %493 : vector<32x512xf32>
    %c0_159 = arith.constant 0 : index
    %c0_160 = arith.constant 0 : index
    %495 = vector.load %arg6[%c0_159, %c0_160] : memref<96x512xf32, #tpu.memory_space<vmem>>, vector<32x512xf32>
    tpu.vector_store %arg6[%c0_159, %c0_160], %494 {strides = array<i32>} : memref<96x512xf32, #tpu.memory_space<vmem>>, vector<32x512xf32>,
    %c16_i32_161 = arith.constant 16 : i32
    %496 = tpu.dynamic_rotate %490 by %c16_i32_161 dim 1 : vector<32x512xf32>, i32 -> vector<32x512xf32>
    %497 = vector.extract_strided_slice %0 {offsets = [1, 0], sizes = [1, 512], strides = [1, 1]} : vector<9x512xf32> to vector<1x512xf32>
    %498 = vector.broadcast %497 : vector<1x512xf32> to vector<32x512xf32>
    %499 = arith.mulf %496, %498 : vector<32x512xf32>
    %c32_162 = arith.constant 32 : index
    %c0_163 = arith.constant 0 : index
    %500 = vector.load %arg6[%c32_162, %c0_163] : memref<96x512xf32, #tpu.memory_space<vmem>>, vector<32x512xf32>
    tpu.vector_store %arg6[%c32_162, %c0_163], %499 {strides = array<i32>} : memref<96x512xf32, #tpu.memory_space<vmem>>, vector<32x512xf32>,
    %c15_i32_164 = arith.constant 15 : i32
    %501 = tpu.dynamic_rotate %490 by %c15_i32_164 dim 1 : vector<32x512xf32>, i32 -> vector<32x512xf32>
    %502 = vector.extract_strided_slice %0 {offsets = [2, 0], sizes = [1, 512], strides = [1, 1]} : vector<9x512xf32> to vector<1x512xf32>
    %503 = vector.broadcast %502 : vector<1x512xf32> to vector<32x512xf32>
    %504 = arith.mulf %501, %503 : vector<32x512xf32>
    %c64_165 = arith.constant 64 : index
    %c0_166 = arith.constant 0 : index
    %505 = vector.load %arg6[%c64_165, %c0_166] : memref<96x512xf32, #tpu.memory_space<vmem>>, vector<32x512xf32>
    tpu.vector_store %arg6[%c64_165, %c0_166], %504 {strides = array<i32>} : memref<96x512xf32, #tpu.memory_space<vmem>>, vector<32x512xf32>,
    %c2_167 = arith.constant 2 : index
    %c0_168 = arith.constant 0 : index
    %c0_169 = arith.constant 0 : index
    %c0_170 = arith.constant 0 : index
    %506 = vector.load %arg4[%c2_167, %c0_168, %c0_169, %c0_170] : memref<4x3x32x96xf32, #tpu.memory_space<vmem>>, vector<1x1x32x96xf32>
    %507 = vector.shape_cast %506 : vector<1x1x32x96xf32> to vector<32x96xf32>
    %c0_171 = arith.constant 0 : index
    %c0_172 = arith.constant 0 : index
    %508 = vector.load %arg6[%c0_171, %c0_172] : memref<96x512xf32, #tpu.memory_space<vmem>>, vector<96x512xf32>
    %cst_173 = arith.constant dense<0.000000e+00> : vector<32x512xf32>
    %509 = tpu.matmul %507, %508, %cst_173 {dimension_numbers = #tpu.dot_dimension_numbers<[1], [0], [0], [1], [0, 0, 1, 1], [], []>} : vector<32x96xf32>, vector<96x512xf32>, vector<32x512xf32> -> vector<32x512xf32>
    %c1_i32_174 = arith.constant 1 : i32
    %510 = tpu.dynamic_rotate %490 by %c1_i32_174 dim 1 : vector<32x512xf32>, i32 -> vector<32x512xf32>
    %511 = vector.extract_strided_slice %0 {offsets = [3, 0], sizes = [1, 512], strides = [1, 1]} : vector<9x512xf32> to vector<1x512xf32>
    %512 = vector.broadcast %511 : vector<1x512xf32> to vector<32x512xf32>
    %513 = arith.mulf %510, %512 : vector<32x512xf32>
    %c0_175 = arith.constant 0 : index
    %c0_176 = arith.constant 0 : index
    %514 = vector.load %arg6[%c0_175, %c0_176] : memref<96x512xf32, #tpu.memory_space<vmem>>, vector<32x512xf32>
    tpu.vector_store %arg6[%c0_175, %c0_176], %513 {strides = array<i32>} : memref<96x512xf32, #tpu.memory_space<vmem>>, vector<32x512xf32>,
    %c32_177 = arith.constant 32 : index
    %c0_178 = arith.constant 0 : index
    %515 = vector.load %arg6[%c32_177, %c0_178] : memref<96x512xf32, #tpu.memory_space<vmem>>, vector<32x512xf32>
    tpu.vector_store %arg6[%c32_177, %c0_178], %490 {strides = array<i32>} : memref<96x512xf32, #tpu.memory_space<vmem>>, vector<32x512xf32>,
    %c511_i32_179 = arith.constant 511 : i32
    %516 = tpu.dynamic_rotate %490 by %c511_i32_179 dim 1 : vector<32x512xf32>, i32 -> vector<32x512xf32>
    %517 = vector.extract_strided_slice %0 {offsets = [5, 0], sizes = [1, 512], strides = [1, 1]} : vector<9x512xf32> to vector<1x512xf32>
    %518 = vector.broadcast %517 : vector<1x512xf32> to vector<32x512xf32>
    %519 = arith.mulf %516, %518 : vector<32x512xf32>
    %c64_180 = arith.constant 64 : index
    %c0_181 = arith.constant 0 : index
    %520 = vector.load %arg6[%c64_180, %c0_181] : memref<96x512xf32, #tpu.memory_space<vmem>>, vector<32x512xf32>
    tpu.vector_store %arg6[%c64_180, %c0_181], %519 {strides = array<i32>} : memref<96x512xf32, #tpu.memory_space<vmem>>, vector<32x512xf32>,
    %c2_182 = arith.constant 2 : index
    %c1_183 = arith.constant 1 : index
    %c0_184 = arith.constant 0 : index
    %c0_185 = arith.constant 0 : index
    %521 = vector.load %arg4[%c2_182, %c1_183, %c0_184, %c0_185] : memref<4x3x32x96xf32, #tpu.memory_space<vmem>>, vector<1x1x32x96xf32>
    %522 = vector.shape_cast %521 : vector<1x1x32x96xf32> to vector<32x96xf32>
    %c0_186 = arith.constant 0 : index
    %c0_187 = arith.constant 0 : index
    %523 = vector.load %arg6[%c0_186, %c0_187] : memref<96x512xf32, #tpu.memory_space<vmem>>, vector<96x512xf32>
    %cst_188 = arith.constant dense<0.000000e+00> : vector<32x512xf32>
    %524 = tpu.matmul %522, %523, %cst_188 {dimension_numbers = #tpu.dot_dimension_numbers<[1], [0], [0], [1], [0, 0, 1, 1], [], []>} : vector<32x96xf32>, vector<96x512xf32>, vector<32x512xf32> -> vector<32x512xf32>
    %525 = arith.addf %509, %524 : vector<32x512xf32>
    %c497_i32_189 = arith.constant 497 : i32
    %526 = tpu.dynamic_rotate %490 by %c497_i32_189 dim 1 : vector<32x512xf32>, i32 -> vector<32x512xf32>
    %527 = vector.extract_strided_slice %0 {offsets = [6, 0], sizes = [1, 512], strides = [1, 1]} : vector<9x512xf32> to vector<1x512xf32>
    %528 = vector.broadcast %527 : vector<1x512xf32> to vector<32x512xf32>
    %529 = arith.mulf %526, %528 : vector<32x512xf32>
    %c0_190 = arith.constant 0 : index
    %c0_191 = arith.constant 0 : index
    %530 = vector.load %arg6[%c0_190, %c0_191] : memref<96x512xf32, #tpu.memory_space<vmem>>, vector<32x512xf32>
    tpu.vector_store %arg6[%c0_190, %c0_191], %529 {strides = array<i32>} : memref<96x512xf32, #tpu.memory_space<vmem>>, vector<32x512xf32>,
    %c496_i32_192 = arith.constant 496 : i32
    %531 = tpu.dynamic_rotate %490 by %c496_i32_192 dim 1 : vector<32x512xf32>, i32 -> vector<32x512xf32>
    %532 = vector.extract_strided_slice %0 {offsets = [7, 0], sizes = [1, 512], strides = [1, 1]} : vector<9x512xf32> to vector<1x512xf32>
    %533 = vector.broadcast %532 : vector<1x512xf32> to vector<32x512xf32>
    %534 = arith.mulf %531, %533 : vector<32x512xf32>
    %c32_193 = arith.constant 32 : index
    %c0_194 = arith.constant 0 : index
    %535 = vector.load %arg6[%c32_193, %c0_194] : memref<96x512xf32, #tpu.memory_space<vmem>>, vector<32x512xf32>
    tpu.vector_store %arg6[%c32_193, %c0_194], %534 {strides = array<i32>} : memref<96x512xf32, #tpu.memory_space<vmem>>, vector<32x512xf32>,
    %c495_i32_195 = arith.constant 495 : i32
    %536 = tpu.dynamic_rotate %490 by %c495_i32_195 dim 1 : vector<32x512xf32>, i32 -> vector<32x512xf32>
    %537 = vector.extract_strided_slice %0 {offsets = [8, 0], sizes = [1, 512], strides = [1, 1]} : vector<9x512xf32> to vector<1x512xf32>
    %538 = vector.broadcast %537 : vector<1x512xf32> to vector<32x512xf32>
    %539 = arith.mulf %536, %538 : vector<32x512xf32>
    %c64_196 = arith.constant 64 : index
    %c0_197 = arith.constant 0 : index
    %540 = vector.load %arg6[%c64_196, %c0_197] : memref<96x512xf32, #tpu.memory_space<vmem>>, vector<32x512xf32>
    tpu.vector_store %arg6[%c64_196, %c0_197], %539 {strides = array<i32>} : memref<96x512xf32, #tpu.memory_space<vmem>>, vector<32x512xf32>,
    %c2_198 = arith.constant 2 : index
    %c2_199 = arith.constant 2 : index
    %c0_200 = arith.constant 0 : index
    %c0_201 = arith.constant 0 : index
    %541 = vector.load %arg4[%c2_198, %c2_199, %c0_200, %c0_201] : memref<4x3x32x96xf32, #tpu.memory_space<vmem>>, vector<1x1x32x96xf32>
    %542 = vector.shape_cast %541 : vector<1x1x32x96xf32> to vector<32x96xf32>
    %c0_202 = arith.constant 0 : index
    %c0_203 = arith.constant 0 : index
    %543 = vector.load %arg6[%c0_202, %c0_203] : memref<96x512xf32, #tpu.memory_space<vmem>>, vector<96x512xf32>
    %cst_204 = arith.constant dense<0.000000e+00> : vector<32x512xf32>
    %544 = tpu.matmul %542, %543, %cst_204 {dimension_numbers = #tpu.dot_dimension_numbers<[1], [0], [0], [1], [0, 0, 1, 1], [], []>} : vector<32x96xf32>, vector<96x512xf32>, vector<32x512xf32> -> vector<32x512xf32>
    %545 = arith.addf %525, %544 : vector<32x512xf32>
    %546 = vector.extract_strided_slice %1 {offsets = [0, 12], sizes = [32, 1], strides = [1, 1]} : vector<32x22xf32> to vector<32x1xf32>
    %547 = vector.broadcast %546 : vector<32x1xf32> to vector<32x512xf32>
    %548 = arith.addf %545, %547 : vector<32x512xf32>
    %549 = vector.extract_strided_slice %548 {offsets = [0, 0], sizes = [8, 512], strides = [1, 1]} : vector<32x512xf32> to vector<8x512xf32>
    %550 = vector.extract_strided_slice %1 {offsets = [0, 20], sizes = [8, 1], strides = [1, 1]} : vector<32x22xf32> to vector<8x1xf32>
    %551 = vector.extract_strided_slice %1 {offsets = [0, 21], sizes = [8, 1], strides = [1, 1]} : vector<32x22xf32> to vector<8x1xf32>
    %552 = vector.extract_strided_slice %549 {offsets = [0, 0], sizes = [8, 256], strides = [1, 1]} : vector<8x512xf32> to vector<8x256xf32>
    %553 = vector.shape_cast %552 : vector<8x256xf32> to vector<1x8x256xf32>
    %cst_205 = arith.constant dense<0.000000e+00> : vector<1xf32>
    %554 = vector.multi_reduction <add>, %553, %cst_205 [1, 2] : vector<1x8x256xf32> to vector<1xf32>
    %555 = vector.shape_cast %554 : vector<1xf32> to vector<1x1x1xf32>
    %556 = vector.extract %555[0, 0, 0] : f32 from vector<1x1x1xf32>
    %557 = arith.mulf %552, %552 : vector<8x256xf32>
    %558 = vector.shape_cast %557 : vector<8x256xf32> to vector<1x8x256xf32>
    %cst_206 = arith.constant dense<0.000000e+00> : vector<1xf32>
    %559 = vector.multi_reduction <add>, %558, %cst_206 [1, 2] : vector<1x8x256xf32> to vector<1xf32>
    %560 = vector.shape_cast %559 : vector<1xf32> to vector<1x1x1xf32>
    %561 = vector.extract %560[0, 0, 0] : f32 from vector<1x1x1xf32>
    %cst_207 = arith.constant 2.048000e+03 : f32
    %562 = arith.divf %556, %cst_207 : f32
    %cst_208 = arith.constant 2.048000e+03 : f32
    %563 = arith.divf %561, %cst_208 : f32
    %564 = arith.mulf %562, %562 : f32
    %565 = arith.subf %563, %564 : f32
    %566 = vector.broadcast %562 : f32 to vector<8x256xf32>
    %567 = arith.subf %552, %566 : vector<8x256xf32>
    %cst_209 = arith.constant 9.99999974E-6 : f32
    %568 = arith.addf %565, %cst_209 : f32
    %569 = math.rsqrt %568 : f32
    %570 = vector.broadcast %569 : f32 to vector<8x256xf32>
    %571 = arith.mulf %567, %570 : vector<8x256xf32>
    %572 = vector.extract_strided_slice %549 {offsets = [0, 256], sizes = [8, 256], strides = [1, 1]} : vector<8x512xf32> to vector<8x256xf32>
    %573 = vector.shape_cast %572 : vector<8x256xf32> to vector<1x8x256xf32>
    %cst_210 = arith.constant dense<0.000000e+00> : vector<1xf32>
    %574 = vector.multi_reduction <add>, %573, %cst_210 [1, 2] : vector<1x8x256xf32> to vector<1xf32>
    %575 = vector.shape_cast %574 : vector<1xf32> to vector<1x1x1xf32>
    %576 = vector.extract %575[0, 0, 0] : f32 from vector<1x1x1xf32>
    %577 = arith.mulf %572, %572 : vector<8x256xf32>
    %578 = vector.shape_cast %577 : vector<8x256xf32> to vector<1x8x256xf32>
    %cst_211 = arith.constant dense<0.000000e+00> : vector<1xf32>
    %579 = vector.multi_reduction <add>, %578, %cst_211 [1, 2] : vector<1x8x256xf32> to vector<1xf32>
    %580 = vector.shape_cast %579 : vector<1xf32> to vector<1x1x1xf32>
    %581 = vector.extract %580[0, 0, 0] : f32 from vector<1x1x1xf32>
    %cst_212 = arith.constant 2.048000e+03 : f32
    %582 = arith.divf %576, %cst_212 : f32
    %cst_213 = arith.constant 2.048000e+03 : f32
    %583 = arith.divf %581, %cst_213 : f32
    %584 = arith.mulf %582, %582 : f32
    %585 = arith.subf %583, %584 : f32
    %586 = vector.broadcast %582 : f32 to vector<8x256xf32>
    %587 = arith.subf %572, %586 : vector<8x256xf32>
    %cst_214 = arith.constant 9.99999974E-6 : f32
    %588 = arith.addf %585, %cst_214 : f32
    %589 = math.rsqrt %588 : f32
    %590 = vector.broadcast %589 : f32 to vector<8x256xf32>
    %591 = arith.mulf %587, %590 : vector<8x256xf32>
    %592 = tpu.concatenate %571, %591 in 1 : vector<8x256xf32>, vector<8x256xf32> -> vector<8x512xf32>
    %593 = vector.broadcast %550 : vector<8x1xf32> to vector<8x512xf32>
    %594 = arith.mulf %592, %593 : vector<8x512xf32>
    %595 = vector.broadcast %551 : vector<8x1xf32> to vector<8x512xf32>
    %596 = arith.addf %594, %595 : vector<8x512xf32>
    %597 = vector.extract_strided_slice %548 {offsets = [8, 0], sizes = [8, 512], strides = [1, 1]} : vector<32x512xf32> to vector<8x512xf32>
    %598 = vector.extract_strided_slice %1 {offsets = [8, 20], sizes = [8, 1], strides = [1, 1]} : vector<32x22xf32> to vector<8x1xf32>
    %599 = vector.extract_strided_slice %1 {offsets = [8, 21], sizes = [8, 1], strides = [1, 1]} : vector<32x22xf32> to vector<8x1xf32>
    %600 = vector.extract_strided_slice %597 {offsets = [0, 0], sizes = [8, 256], strides = [1, 1]} : vector<8x512xf32> to vector<8x256xf32>
    %601 = vector.shape_cast %600 : vector<8x256xf32> to vector<1x8x256xf32>
    %cst_215 = arith.constant dense<0.000000e+00> : vector<1xf32>
    %602 = vector.multi_reduction <add>, %601, %cst_215 [1, 2] : vector<1x8x256xf32> to vector<1xf32>
    %603 = vector.shape_cast %602 : vector<1xf32> to vector<1x1x1xf32>
    %604 = vector.extract %603[0, 0, 0] : f32 from vector<1x1x1xf32>
    %605 = arith.mulf %600, %600 : vector<8x256xf32>
    %606 = vector.shape_cast %605 : vector<8x256xf32> to vector<1x8x256xf32>
    %cst_216 = arith.constant dense<0.000000e+00> : vector<1xf32>
    %607 = vector.multi_reduction <add>, %606, %cst_216 [1, 2] : vector<1x8x256xf32> to vector<1xf32>
    %608 = vector.shape_cast %607 : vector<1xf32> to vector<1x1x1xf32>
    %609 = vector.extract %608[0, 0, 0] : f32 from vector<1x1x1xf32>
    %cst_217 = arith.constant 2.048000e+03 : f32
    %610 = arith.divf %604, %cst_217 : f32
    %cst_218 = arith.constant 2.048000e+03 : f32
    %611 = arith.divf %609, %cst_218 : f32
    %612 = arith.mulf %610, %610 : f32
    %613 = arith.subf %611, %612 : f32
    %614 = vector.broadcast %610 : f32 to vector<8x256xf32>
    %615 = arith.subf %600, %614 : vector<8x256xf32>
    %cst_219 = arith.constant 9.99999974E-6 : f32
    %616 = arith.addf %613, %cst_219 : f32
    %617 = math.rsqrt %616 : f32
    %618 = vector.broadcast %617 : f32 to vector<8x256xf32>
    %619 = arith.mulf %615, %618 : vector<8x256xf32>
    %620 = vector.extract_strided_slice %597 {offsets = [0, 256], sizes = [8, 256], strides = [1, 1]} : vector<8x512xf32> to vector<8x256xf32>
    %621 = vector.shape_cast %620 : vector<8x256xf32> to vector<1x8x256xf32>
    %cst_220 = arith.constant dense<0.000000e+00> : vector<1xf32>
    %622 = vector.multi_reduction <add>, %621, %cst_220 [1, 2] : vector<1x8x256xf32> to vector<1xf32>
    %623 = vector.shape_cast %622 : vector<1xf32> to vector<1x1x1xf32>
    %624 = vector.extract %623[0, 0, 0] : f32 from vector<1x1x1xf32>
    %625 = arith.mulf %620, %620 : vector<8x256xf32>
    %626 = vector.shape_cast %625 : vector<8x256xf32> to vector<1x8x256xf32>
    %cst_221 = arith.constant dense<0.000000e+00> : vector<1xf32>
    %627 = vector.multi_reduction <add>, %626, %cst_221 [1, 2] : vector<1x8x256xf32> to vector<1xf32>
    %628 = vector.shape_cast %627 : vector<1xf32> to vector<1x1x1xf32>
    %629 = vector.extract %628[0, 0, 0] : f32 from vector<1x1x1xf32>
    %cst_222 = arith.constant 2.048000e+03 : f32
    %630 = arith.divf %624, %cst_222 : f32
    %cst_223 = arith.constant 2.048000e+03 : f32
    %631 = arith.divf %629, %cst_223 : f32
    %632 = arith.mulf %630, %630 : f32
    %633 = arith.subf %631, %632 : f32
    %634 = vector.broadcast %630 : f32 to vector<8x256xf32>
    %635 = arith.subf %620, %634 : vector<8x256xf32>
    %cst_224 = arith.constant 9.99999974E-6 : f32
    %636 = arith.addf %633, %cst_224 : f32
    %637 = math.rsqrt %636 : f32
    %638 = vector.broadcast %637 : f32 to vector<8x256xf32>
    %639 = arith.mulf %635, %638 : vector<8x256xf32>
    %640 = tpu.concatenate %619, %639 in 1 : vector<8x256xf32>, vector<8x256xf32> -> vector<8x512xf32>
    %641 = vector.broadcast %598 : vector<8x1xf32> to vector<8x512xf32>
    %642 = arith.mulf %640, %641 : vector<8x512xf32>
    %643 = vector.broadcast %599 : vector<8x1xf32> to vector<8x512xf32>
    %644 = arith.addf %642, %643 : vector<8x512xf32>
    %645 = vector.extract_strided_slice %548 {offsets = [16, 0], sizes = [8, 512], strides = [1, 1]} : vector<32x512xf32> to vector<8x512xf32>
    %646 = vector.extract_strided_slice %1 {offsets = [16, 20], sizes = [8, 1], strides = [1, 1]} : vector<32x22xf32> to vector<8x1xf32>
    %647 = vector.extract_strided_slice %1 {offsets = [16, 21], sizes = [8, 1], strides = [1, 1]} : vector<32x22xf32> to vector<8x1xf32>
    %648 = vector.extract_strided_slice %645 {offsets = [0, 0], sizes = [8, 256], strides = [1, 1]} : vector<8x512xf32> to vector<8x256xf32>
    %649 = vector.shape_cast %648 : vector<8x256xf32> to vector<1x8x256xf32>
    %cst_225 = arith.constant dense<0.000000e+00> : vector<1xf32>
    %650 = vector.multi_reduction <add>, %649, %cst_225 [1, 2] : vector<1x8x256xf32> to vector<1xf32>
    %651 = vector.shape_cast %650 : vector<1xf32> to vector<1x1x1xf32>
    %652 = vector.extract %651[0, 0, 0] : f32 from vector<1x1x1xf32>
    %653 = arith.mulf %648, %648 : vector<8x256xf32>
    %654 = vector.shape_cast %653 : vector<8x256xf32> to vector<1x8x256xf32>
    %cst_226 = arith.constant dense<0.000000e+00> : vector<1xf32>
    %655 = vector.multi_reduction <add>, %654, %cst_226 [1, 2] : vector<1x8x256xf32> to vector<1xf32>
    %656 = vector.shape_cast %655 : vector<1xf32> to vector<1x1x1xf32>
    %657 = vector.extract %656[0, 0, 0] : f32 from vector<1x1x1xf32>
    %cst_227 = arith.constant 2.048000e+03 : f32
    %658 = arith.divf %652, %cst_227 : f32
    %cst_228 = arith.constant 2.048000e+03 : f32
    %659 = arith.divf %657, %cst_228 : f32
    %660 = arith.mulf %658, %658 : f32
    %661 = arith.subf %659, %660 : f32
    %662 = vector.broadcast %658 : f32 to vector<8x256xf32>
    %663 = arith.subf %648, %662 : vector<8x256xf32>
    %cst_229 = arith.constant 9.99999974E-6 : f32
    %664 = arith.addf %661, %cst_229 : f32
    %665 = math.rsqrt %664 : f32
    %666 = vector.broadcast %665 : f32 to vector<8x256xf32>
    %667 = arith.mulf %663, %666 : vector<8x256xf32>
    %668 = vector.extract_strided_slice %645 {offsets = [0, 256], sizes = [8, 256], strides = [1, 1]} : vector<8x512xf32> to vector<8x256xf32>
    %669 = vector.shape_cast %668 : vector<8x256xf32> to vector<1x8x256xf32>
    %cst_230 = arith.constant dense<0.000000e+00> : vector<1xf32>
    %670 = vector.multi_reduction <add>, %669, %cst_230 [1, 2] : vector<1x8x256xf32> to vector<1xf32>
    %671 = vector.shape_cast %670 : vector<1xf32> to vector<1x1x1xf32>
    %672 = vector.extract %671[0, 0, 0] : f32 from vector<1x1x1xf32>
    %673 = arith.mulf %668, %668 : vector<8x256xf32>
    %674 = vector.shape_cast %673 : vector<8x256xf32> to vector<1x8x256xf32>
    %cst_231 = arith.constant dense<0.000000e+00> : vector<1xf32>
    %675 = vector.multi_reduction <add>, %674, %cst_231 [1, 2] : vector<1x8x256xf32> to vector<1xf32>
    %676 = vector.shape_cast %675 : vector<1xf32> to vector<1x1x1xf32>
    %677 = vector.extract %676[0, 0, 0] : f32 from vector<1x1x1xf32>
    %cst_232 = arith.constant 2.048000e+03 : f32
    %678 = arith.divf %672, %cst_232 : f32
    %cst_233 = arith.constant 2.048000e+03 : f32
    %679 = arith.divf %677, %cst_233 : f32
    %680 = arith.mulf %678, %678 : f32
    %681 = arith.subf %679, %680 : f32
    %682 = vector.broadcast %678 : f32 to vector<8x256xf32>
    %683 = arith.subf %668, %682 : vector<8x256xf32>
    %cst_234 = arith.constant 9.99999974E-6 : f32
    %684 = arith.addf %681, %cst_234 : f32
    %685 = math.rsqrt %684 : f32
    %686 = vector.broadcast %685 : f32 to vector<8x256xf32>
    %687 = arith.mulf %683, %686 : vector<8x256xf32>
    %688 = tpu.concatenate %667, %687 in 1 : vector<8x256xf32>, vector<8x256xf32> -> vector<8x512xf32>
    %689 = vector.broadcast %646 : vector<8x1xf32> to vector<8x512xf32>
    %690 = arith.mulf %688, %689 : vector<8x512xf32>
    %691 = vector.broadcast %647 : vector<8x1xf32> to vector<8x512xf32>
    %692 = arith.addf %690, %691 : vector<8x512xf32>
    %693 = vector.extract_strided_slice %548 {offsets = [24, 0], sizes = [8, 512], strides = [1, 1]} : vector<32x512xf32> to vector<8x512xf32>
    %694 = vector.extract_strided_slice %1 {offsets = [24, 20], sizes = [8, 1], strides = [1, 1]} : vector<32x22xf32> to vector<8x1xf32>
    %695 = vector.extract_strided_slice %1 {offsets = [24, 21], sizes = [8, 1], strides = [1, 1]} : vector<32x22xf32> to vector<8x1xf32>
    %696 = vector.extract_strided_slice %693 {offsets = [0, 0], sizes = [8, 256], strides = [1, 1]} : vector<8x512xf32> to vector<8x256xf32>
    %697 = vector.shape_cast %696 : vector<8x256xf32> to vector<1x8x256xf32>
    %cst_235 = arith.constant dense<0.000000e+00> : vector<1xf32>
    %698 = vector.multi_reduction <add>, %697, %cst_235 [1, 2] : vector<1x8x256xf32> to vector<1xf32>
    %699 = vector.shape_cast %698 : vector<1xf32> to vector<1x1x1xf32>
    %700 = vector.extract %699[0, 0, 0] : f32 from vector<1x1x1xf32>
    %701 = arith.mulf %696, %696 : vector<8x256xf32>
    %702 = vector.shape_cast %701 : vector<8x256xf32> to vector<1x8x256xf32>
    %cst_236 = arith.constant dense<0.000000e+00> : vector<1xf32>
    %703 = vector.multi_reduction <add>, %702, %cst_236 [1, 2] : vector<1x8x256xf32> to vector<1xf32>
    %704 = vector.shape_cast %703 : vector<1xf32> to vector<1x1x1xf32>
    %705 = vector.extract %704[0, 0, 0] : f32 from vector<1x1x1xf32>
    %cst_237 = arith.constant 2.048000e+03 : f32
    %706 = arith.divf %700, %cst_237 : f32
    %cst_238 = arith.constant 2.048000e+03 : f32
    %707 = arith.divf %705, %cst_238 : f32
    %708 = arith.mulf %706, %706 : f32
    %709 = arith.subf %707, %708 : f32
    %710 = vector.broadcast %706 : f32 to vector<8x256xf32>
    %711 = arith.subf %696, %710 : vector<8x256xf32>
    %cst_239 = arith.constant 9.99999974E-6 : f32
    %712 = arith.addf %709, %cst_239 : f32
    %713 = math.rsqrt %712 : f32
    %714 = vector.broadcast %713 : f32 to vector<8x256xf32>
    %715 = arith.mulf %711, %714 : vector<8x256xf32>
    %716 = vector.extract_strided_slice %693 {offsets = [0, 256], sizes = [8, 256], strides = [1, 1]} : vector<8x512xf32> to vector<8x256xf32>
    %717 = vector.shape_cast %716 : vector<8x256xf32> to vector<1x8x256xf32>
    %cst_240 = arith.constant dense<0.000000e+00> : vector<1xf32>
    %718 = vector.multi_reduction <add>, %717, %cst_240 [1, 2] : vector<1x8x256xf32> to vector<1xf32>
    %719 = vector.shape_cast %718 : vector<1xf32> to vector<1x1x1xf32>
    %720 = vector.extract %719[0, 0, 0] : f32 from vector<1x1x1xf32>
    %721 = arith.mulf %716, %716 : vector<8x256xf32>
    %722 = vector.shape_cast %721 : vector<8x256xf32> to vector<1x8x256xf32>
    %cst_241 = arith.constant dense<0.000000e+00> : vector<1xf32>
    %723 = vector.multi_reduction <add>, %722, %cst_241 [1, 2] : vector<1x8x256xf32> to vector<1xf32>
    %724 = vector.shape_cast %723 : vector<1xf32> to vector<1x1x1xf32>
    %725 = vector.extract %724[0, 0, 0] : f32 from vector<1x1x1xf32>
    %cst_242 = arith.constant 2.048000e+03 : f32
    %726 = arith.divf %720, %cst_242 : f32
    %cst_243 = arith.constant 2.048000e+03 : f32
    %727 = arith.divf %725, %cst_243 : f32
    %728 = arith.mulf %726, %726 : f32
    %729 = arith.subf %727, %728 : f32
    %730 = vector.broadcast %726 : f32 to vector<8x256xf32>
    %731 = arith.subf %716, %730 : vector<8x256xf32>
    %cst_244 = arith.constant 9.99999974E-6 : f32
    %732 = arith.addf %729, %cst_244 : f32
    %733 = math.rsqrt %732 : f32
    %734 = vector.broadcast %733 : f32 to vector<8x256xf32>
    %735 = arith.mulf %731, %734 : vector<8x256xf32>
    %736 = tpu.concatenate %715, %735 in 1 : vector<8x256xf32>, vector<8x256xf32> -> vector<8x512xf32>
    %737 = vector.broadcast %694 : vector<8x1xf32> to vector<8x512xf32>
    %738 = arith.mulf %736, %737 : vector<8x512xf32>
    %739 = vector.broadcast %695 : vector<8x1xf32> to vector<8x512xf32>
    %740 = arith.addf %738, %739 : vector<8x512xf32>
    %741 = tpu.concatenate %596, %644, %692, %740 in 0 : vector<8x512xf32>, vector<8x512xf32>, vector<8x512xf32>, vector<8x512xf32> -> vector<32x512xf32>
    %cst_245 = arith.constant 2.000000e-01 : f32
    %742 = vector.broadcast %cst_245 : f32 to vector<32x512xf32>
    %743 = arith.mulf %742, %741 : vector<32x512xf32>
    %744 = arith.maximumf %741, %743 : vector<32x512xf32>
    %c17_i32_246 = arith.constant 17 : i32
    %745 = tpu.dynamic_rotate %744 by %c17_i32_246 dim 1 : vector<32x512xf32>, i32 -> vector<32x512xf32>
    %746 = vector.extract_strided_slice %0 {offsets = [0, 0], sizes = [1, 512], strides = [1, 1]} : vector<9x512xf32> to vector<1x512xf32>
    %747 = vector.broadcast %746 : vector<1x512xf32> to vector<32x512xf32>
    %748 = arith.mulf %745, %747 : vector<32x512xf32>
    %c0_247 = arith.constant 0 : index
    %c0_248 = arith.constant 0 : index
    %749 = vector.load %arg6[%c0_247, %c0_248] : memref<96x512xf32, #tpu.memory_space<vmem>>, vector<32x512xf32>
    tpu.vector_store %arg6[%c0_247, %c0_248], %748 {strides = array<i32>} : memref<96x512xf32, #tpu.memory_space<vmem>>, vector<32x512xf32>,
    %c16_i32_249 = arith.constant 16 : i32
    %750 = tpu.dynamic_rotate %744 by %c16_i32_249 dim 1 : vector<32x512xf32>, i32 -> vector<32x512xf32>
    %751 = vector.extract_strided_slice %0 {offsets = [1, 0], sizes = [1, 512], strides = [1, 1]} : vector<9x512xf32> to vector<1x512xf32>
    %752 = vector.broadcast %751 : vector<1x512xf32> to vector<32x512xf32>
    %753 = arith.mulf %750, %752 : vector<32x512xf32>
    %c32_250 = arith.constant 32 : index
    %c0_251 = arith.constant 0 : index
    %754 = vector.load %arg6[%c32_250, %c0_251] : memref<96x512xf32, #tpu.memory_space<vmem>>, vector<32x512xf32>
    tpu.vector_store %arg6[%c32_250, %c0_251], %753 {strides = array<i32>} : memref<96x512xf32, #tpu.memory_space<vmem>>, vector<32x512xf32>,
    %c15_i32_252 = arith.constant 15 : i32
    %755 = tpu.dynamic_rotate %744 by %c15_i32_252 dim 1 : vector<32x512xf32>, i32 -> vector<32x512xf32>
    %756 = vector.extract_strided_slice %0 {offsets = [2, 0], sizes = [1, 512], strides = [1, 1]} : vector<9x512xf32> to vector<1x512xf32>
    %757 = vector.broadcast %756 : vector<1x512xf32> to vector<32x512xf32>
    %758 = arith.mulf %755, %757 : vector<32x512xf32>
    %c64_253 = arith.constant 64 : index
    %c0_254 = arith.constant 0 : index
    %759 = vector.load %arg6[%c64_253, %c0_254] : memref<96x512xf32, #tpu.memory_space<vmem>>, vector<32x512xf32>
    tpu.vector_store %arg6[%c64_253, %c0_254], %758 {strides = array<i32>} : memref<96x512xf32, #tpu.memory_space<vmem>>, vector<32x512xf32>,
    %c3 = arith.constant 3 : index
    %c0_255 = arith.constant 0 : index
    %c0_256 = arith.constant 0 : index
    %c0_257 = arith.constant 0 : index
    %760 = vector.load %arg4[%c3, %c0_255, %c0_256, %c0_257] : memref<4x3x32x96xf32, #tpu.memory_space<vmem>>, vector<1x1x32x96xf32>
    %761 = vector.shape_cast %760 : vector<1x1x32x96xf32> to vector<32x96xf32>
    %c0_258 = arith.constant 0 : index
    %c0_259 = arith.constant 0 : index
    %762 = vector.load %arg6[%c0_258, %c0_259] : memref<96x512xf32, #tpu.memory_space<vmem>>, vector<96x512xf32>
    %cst_260 = arith.constant dense<0.000000e+00> : vector<32x512xf32>
    %763 = tpu.matmul %761, %762, %cst_260 {dimension_numbers = #tpu.dot_dimension_numbers<[1], [0], [0], [1], [0, 0, 1, 1], [], []>} : vector<32x96xf32>, vector<96x512xf32>, vector<32x512xf32> -> vector<32x512xf32>
    %c1_i32_261 = arith.constant 1 : i32
    %764 = tpu.dynamic_rotate %744 by %c1_i32_261 dim 1 : vector<32x512xf32>, i32 -> vector<32x512xf32>
    %765 = vector.extract_strided_slice %0 {offsets = [3, 0], sizes = [1, 512], strides = [1, 1]} : vector<9x512xf32> to vector<1x512xf32>
    %766 = vector.broadcast %765 : vector<1x512xf32> to vector<32x512xf32>
    %767 = arith.mulf %764, %766 : vector<32x512xf32>
    %c0_262 = arith.constant 0 : index
    %c0_263 = arith.constant 0 : index
    %768 = vector.load %arg6[%c0_262, %c0_263] : memref<96x512xf32, #tpu.memory_space<vmem>>, vector<32x512xf32>
    tpu.vector_store %arg6[%c0_262, %c0_263], %767 {strides = array<i32>} : memref<96x512xf32, #tpu.memory_space<vmem>>, vector<32x512xf32>,
    %c32_264 = arith.constant 32 : index
    %c0_265 = arith.constant 0 : index
    %769 = vector.load %arg6[%c32_264, %c0_265] : memref<96x512xf32, #tpu.memory_space<vmem>>, vector<32x512xf32>
    tpu.vector_store %arg6[%c32_264, %c0_265], %744 {strides = array<i32>} : memref<96x512xf32, #tpu.memory_space<vmem>>, vector<32x512xf32>,
    %c511_i32_266 = arith.constant 511 : i32
    %770 = tpu.dynamic_rotate %744 by %c511_i32_266 dim 1 : vector<32x512xf32>, i32 -> vector<32x512xf32>
    %771 = vector.extract_strided_slice %0 {offsets = [5, 0], sizes = [1, 512], strides = [1, 1]} : vector<9x512xf32> to vector<1x512xf32>
    %772 = vector.broadcast %771 : vector<1x512xf32> to vector<32x512xf32>
    %773 = arith.mulf %770, %772 : vector<32x512xf32>
    %c64_267 = arith.constant 64 : index
    %c0_268 = arith.constant 0 : index
    %774 = vector.load %arg6[%c64_267, %c0_268] : memref<96x512xf32, #tpu.memory_space<vmem>>, vector<32x512xf32>
    tpu.vector_store %arg6[%c64_267, %c0_268], %773 {strides = array<i32>} : memref<96x512xf32, #tpu.memory_space<vmem>>, vector<32x512xf32>,
    %c3_269 = arith.constant 3 : index
    %c1_270 = arith.constant 1 : index
    %c0_271 = arith.constant 0 : index
    %c0_272 = arith.constant 0 : index
    %775 = vector.load %arg4[%c3_269, %c1_270, %c0_271, %c0_272] : memref<4x3x32x96xf32, #tpu.memory_space<vmem>>, vector<1x1x32x96xf32>
    %776 = vector.shape_cast %775 : vector<1x1x32x96xf32> to vector<32x96xf32>
    %c0_273 = arith.constant 0 : index
    %c0_274 = arith.constant 0 : index
    %777 = vector.load %arg6[%c0_273, %c0_274] : memref<96x512xf32, #tpu.memory_space<vmem>>, vector<96x512xf32>
    %cst_275 = arith.constant dense<0.000000e+00> : vector<32x512xf32>
    %778 = tpu.matmul %776, %777, %cst_275 {dimension_numbers = #tpu.dot_dimension_numbers<[1], [0], [0], [1], [0, 0, 1, 1], [], []>} : vector<32x96xf32>, vector<96x512xf32>, vector<32x512xf32> -> vector<32x512xf32>
    %779 = arith.addf %763, %778 : vector<32x512xf32>
    %c497_i32_276 = arith.constant 497 : i32
    %780 = tpu.dynamic_rotate %744 by %c497_i32_276 dim 1 : vector<32x512xf32>, i32 -> vector<32x512xf32>
    %781 = vector.extract_strided_slice %0 {offsets = [6, 0], sizes = [1, 512], strides = [1, 1]} : vector<9x512xf32> to vector<1x512xf32>
    %782 = vector.broadcast %781 : vector<1x512xf32> to vector<32x512xf32>
    %783 = arith.mulf %780, %782 : vector<32x512xf32>
    %c0_277 = arith.constant 0 : index
    %c0_278 = arith.constant 0 : index
    %784 = vector.load %arg6[%c0_277, %c0_278] : memref<96x512xf32, #tpu.memory_space<vmem>>, vector<32x512xf32>
    tpu.vector_store %arg6[%c0_277, %c0_278], %783 {strides = array<i32>} : memref<96x512xf32, #tpu.memory_space<vmem>>, vector<32x512xf32>,
    %c496_i32_279 = arith.constant 496 : i32
    %785 = tpu.dynamic_rotate %744 by %c496_i32_279 dim 1 : vector<32x512xf32>, i32 -> vector<32x512xf32>
    %786 = vector.extract_strided_slice %0 {offsets = [7, 0], sizes = [1, 512], strides = [1, 1]} : vector<9x512xf32> to vector<1x512xf32>
    %787 = vector.broadcast %786 : vector<1x512xf32> to vector<32x512xf32>
    %788 = arith.mulf %785, %787 : vector<32x512xf32>
    %c32_280 = arith.constant 32 : index
    %c0_281 = arith.constant 0 : index
    %789 = vector.load %arg6[%c32_280, %c0_281] : memref<96x512xf32, #tpu.memory_space<vmem>>, vector<32x512xf32>
    tpu.vector_store %arg6[%c32_280, %c0_281], %788 {strides = array<i32>} : memref<96x512xf32, #tpu.memory_space<vmem>>, vector<32x512xf32>,
    %c495_i32_282 = arith.constant 495 : i32
    %790 = tpu.dynamic_rotate %744 by %c495_i32_282 dim 1 : vector<32x512xf32>, i32 -> vector<32x512xf32>
    %791 = vector.extract_strided_slice %0 {offsets = [8, 0], sizes = [1, 512], strides = [1, 1]} : vector<9x512xf32> to vector<1x512xf32>
    %792 = vector.broadcast %791 : vector<1x512xf32> to vector<32x512xf32>
    %793 = arith.mulf %790, %792 : vector<32x512xf32>
    %c64_283 = arith.constant 64 : index
    %c0_284 = arith.constant 0 : index
    %794 = vector.load %arg6[%c64_283, %c0_284] : memref<96x512xf32, #tpu.memory_space<vmem>>, vector<32x512xf32>
    tpu.vector_store %arg6[%c64_283, %c0_284], %793 {strides = array<i32>} : memref<96x512xf32, #tpu.memory_space<vmem>>, vector<32x512xf32>,
    %c3_285 = arith.constant 3 : index
    %c2_286 = arith.constant 2 : index
    %c0_287 = arith.constant 0 : index
    %c0_288 = arith.constant 0 : index
    %795 = vector.load %arg4[%c3_285, %c2_286, %c0_287, %c0_288] : memref<4x3x32x96xf32, #tpu.memory_space<vmem>>, vector<1x1x32x96xf32>
    %796 = vector.shape_cast %795 : vector<1x1x32x96xf32> to vector<32x96xf32>
    %c0_289 = arith.constant 0 : index
    %c0_290 = arith.constant 0 : index
    %797 = vector.load %arg6[%c0_289, %c0_290] : memref<96x512xf32, #tpu.memory_space<vmem>>, vector<96x512xf32>
    %cst_291 = arith.constant dense<0.000000e+00> : vector<32x512xf32>
    %798 = tpu.matmul %796, %797, %cst_291 {dimension_numbers = #tpu.dot_dimension_numbers<[1], [0], [0], [1], [0, 0, 1, 1], [], []>} : vector<32x96xf32>, vector<96x512xf32>, vector<32x512xf32> -> vector<32x512xf32>
    %799 = arith.addf %779, %798 : vector<32x512xf32>
    %800 = vector.extract_strided_slice %799 {offsets = [0, 0], sizes = [2, 512], strides = [1, 1]} : vector<32x512xf32> to vector<2x512xf32>
    %801 = vector.extract_strided_slice %1 {offsets = [0, 13], sizes = [2, 1], strides = [1, 1]} : vector<32x22xf32> to vector<2x1xf32>
    %802 = vector.broadcast %801 : vector<2x1xf32> to vector<2x512xf32>
    %803 = arith.addf %800, %802 : vector<2x512xf32>
    %c0_292 = arith.constant 0 : index
    %c0_293 = arith.constant 0 : index
    %c0_294 = arith.constant 0 : index
    %804 = vector.load %arg5[%c0_292, %c0_293, %c0_294] : memref<1x2x512xf32, #tpu.memory_space<vmem>>, vector<1x2x512xf32>
    %805 = vector.shape_cast %804 : vector<1x2x512xf32> to vector<2x512xf32>
    %806 = vector.shape_cast %803 : vector<2x512xf32> to vector<1x2x512xf32>
    tpu.vector_store %arg5[%c0_292, %c0_293, %c0_294], %806 {strides = array<i32>} : memref<1x2x512xf32, #tpu.memory_space<vmem>>, vector<1x2x512xf32>,
    return
  }
  func.func @transform_0(%arg0: i32) -> (i32, i32, i32) {
    %c0_i32 = arith.constant 0 : i32
    %c0_i32_0 = arith.constant 0 : i32
    %c0_i32_1 = arith.constant 0 : i32
    return %arg0, %c0_i32, %c0_i32_0 : i32, i32, i32
  }
  func.func @transform_1(%arg0: i32) -> (i32, i32) {
    %c0_i32 = arith.constant 0 : i32
    %c0_i32_0 = arith.constant 0 : i32
    %c0_i32_1 = arith.constant 0 : i32
    return %c0_i32, %c0_i32_0 : i32, i32
  }
  func.func @transform_2(%arg0: i32) -> (i32, i32) {
    %c0_i32 = arith.constant 0 : i32
    %c0_i32_0 = arith.constant 0 : i32
    %c0_i32_1 = arith.constant 0 : i32
    return %c0_i32, %c0_i32_0 : i32, i32
  }
  func.func @transform_3(%arg0: i32) -> (i32, i32, i32, i32) {
    %c0_i32 = arith.constant 0 : i32
    %c0_i32_0 = arith.constant 0 : i32
    %c0_i32_1 = arith.constant 0 : i32
    %c0_i32_2 = arith.constant 0 : i32
    %c0_i32_3 = arith.constant 0 : i32
    return %c0_i32, %c0_i32_0, %c0_i32_1, %c0_i32_2 : i32, i32, i32, i32
  }
  func.func @transform_4(%arg0: i32) -> (i32, i32, i32) {
    %c0_i32 = arith.constant 0 : i32
    %c0_i32_0 = arith.constant 0 : i32
    %c0_i32_1 = arith.constant 0 : i32
    return %arg0, %c0_i32, %c0_i32_0 : i32, i32, i32
  }
}

</mosaic_0001>

<bundles_post_ra>
// kernel: content_dependent_field.1
= control target key start
LH: loop header
LB: loop body
LE: loop exit
PB: predicated region body
PF: predicated region fallthrough
CT: control target
= control target key end

     0   :  { %s8678_s15 = smov 0   ;;  %s15410_s0 = inlined_call_operand.vmem [shape: f32[2,1,512], index: 0, kind: input, shape index: {}]   ;;  %s15411_s1 = inlined_call_operand.vmem [shape: f32[9,512], index: 1, kind: input, shape index: {}]   ;;  %s15412_s2 = inlined_call_operand.vmem [shape: f32[32,22], index: 2, kind: input, shape index: {}]   ;;  %s15413_s3 = inlined_call_operand.vmem [shape: f32[4,3,32,96], index: 3, kind: input, shape index: {}]   ;;  %s15414_s4 = inlined_call_operand.vmem [shape: f32[2,2,512], index: 4, kind: output, shape index: {}]  }
   0x1 LB: > { %s8169_s16 = sadd.s32 4294967295, %s8619_s15   ;;  %p8173_p0 = scmp.ge.s32.totalorder %s8619_s15, 1  ;;  %s8619_s15 = sphi %s8678_s15, %s14_s15  }
   0x2   : > { %p161_p1 = scmp.lt.s32.totalorder %s8619_s15, 3 }
   0x4   : > { %p162_p2 = pnand %p8173_p0, %p161_p1 }
   0x6   : > { %165 = sbr.rel (%p162_p2) target bundleno = 4445 (0x115d), region = 36 }
   0xb   : > { %v8689_v0 = vld [vmem:[%s15412_s2] sm:$0xff]  ;;  %p186_p3 = scmp.lt.s32.totalorder %s8169_s16, 1  ;;  %v209_v1 = vlaneseq  ;;  %v15429_v2 = vmov 0   ;;  %v15426_v8 = vmov 1   ;;  %s8623_s23 = smov 17   ;;  %v8736_v12 = vld [vmem:[%s15412_s2 + $0x8] sm:$0xff] }
   0xc   : > { %8480 = vset.pattern.permute.xlu1 %v15429_v2  ;;  %8482 = vset.pattern.permute.xlu0 %v15429_v2  ;;  %s8624_s24 = smov 16   ;;  %s8625_s27 = smov 15   ;;  %v15423_v13 = vmov 2   ;;  %v15418_v14 = vmov 3   ;;  %v15427_v16 = vmov 4   ;;  %v15424_v18 = vmov 5  }
   0xd   : > { %250 = vperm.xlu1 %8480, %v8689_v0   ;;  %s16493_s16 = smov (!%p186_p3, %s8169_s16), 1  ;;  %v8697_v3 = vshrl.u32 %v209_v1, 7  ;;  %s8627_s28 = smov 1   ;;  %v15415_v19 = vmov 6   ;;  %v15421_v20 = vmov 7   ;;  %v15419_v21 = vmov 8  }
   0xe   : > { %s8174_s19 = sshll.u32 %s16493_s16, 2  ;;  %s8630_s29 = smov 127   ;;  %v15416_v22 = vmov 9   ;;  %v8878_v49 = vand.u32 127, %v209_v1  ;;  %v8883_v50 = vld [vmem:[%s15411_s1] sm:$0xff]  ;;  %v8899_v55 = vld [vmem:[%s15411_s1 + $0x8] sm:$0xff] }
   0xf   : > { %15818 = vst [vmem:[#allocation3_spill] sm:$0xff] %v8697_v3  ;;  %v8701_v4 = vsub.s32 0, %v8697_v3  ;;  %v8704_v5 = vsub.s32 3, %v8697_v3  ;;  %s189_s22 = scalar_lea.vmem %s15410_s0, %s8174_s19  ;;  %v8710_v7 = vsub.s32 1, %v8697_v3  ;;  %v8762_v15 = vsub.s32 2, %v8697_v3  ;;  %s8632_s30 = smov 113  }
  0x10   : > { %v207_v6 = vld [vmem:[%s189_s22] sm:$0xf]  ;;  %s8634_s5 = smov 112   ;;  %s8636_s6 = smov 111   ;;  %15825 = vst [vmem:[#allocation10_spill] sm:$0xff] %v8878_v49  ;;  %vm308_vm0 = vcmp.lt.s32.totalorder %v8878_v49, 16 }
  0x11   : > { %15819 = vst [vmem:[#allocation4_spill] sm:$0xff] %v8701_v4  ;;  %15820 = vst [vmem:[#allocation5_spill] sm:$0xff] %v8704_v5  ;;  %8481 = vset.pattern.permute.xlu1 %v15426_v8  ;;  %v8714_v9 = vrot.slane %v207_v6, %v8704_v5  ;;  %v8717_v10 = vrot.slane %v207_v6, %v8701_v4  ;;  %v8724_v11 = vrot.slane %v207_v6, %v8710_v7  ;;  %vm1896_vm8 = vcmask 785408  }
  0x12   : > { %15821 = vst [vmem:[#allocation6_spill] sm:$0xff] %v8710_v7  ;;  %15823 = vst [vmem:[#allocation8_spill] sm:$0xff] %v8762_v15  ;;  %v8768_v17 = vrot.slane %v207_v6, %v8762_v15  ;;  %v317_v52 = vrot.slane %v8883_v50, 1  ;;  %vm239_vm1 = vcmp.lt.s32.totalorder %v8878_v49, 17  ;;  %vm401_vm2 = vcmp.lt.s32.totalorder %v8878_v49, 15 }
  0x13   : > { %15822 = vst [vmem:[#allocation7_spill] sm:$0xff] %v8714_v9  ;;  %235 = vrot.lane.b32.xlu1 %v8714_v9, %s8623_s23  ;;  %229 = vrot.lane.b32.xlu0 %v8717_v10, %s8623_s23  ;;  %v318_v57 = vrot.slane %v8899_v55, 1  ;;  %v406_v61 = vrot.slane %v8883_v50, 2  ;;  %v407_v62 = vrot.slane %v8899_v55, 2  ;;  %vm490_vm3 = vcmp.lt.s32.totalorder %v8878_v49, 1 }
  0x14   : > { %vm627_vm4 = vcmp.lt.s32.totalorder %v8878_v49, 127  ;;  %vm716_vm5 = vcmp.lt.s32.totalorder %v8878_v49, 113  ;;  %vm805_vm6 = vcmp.lt.s32.totalorder %v8878_v49, 112  ;;  %vm894_vm7 = vcmp.lt.s32.totalorder %v8878_v49, 111 }
  0x17   : > { %302 = vrot.lane.b32.xlu1 %v8724_v11, %s8624_s24  ;;  %231 = vrot.lane.b32.xlu0 %v8724_v11, %s8623_s23 }
  0x1b   : > { %330 = vperm.xlu1 %8481, %v8689_v0   ;;  %300 = vrot.lane.b32.xlu0 %v8717_v10, %s8624_s24 }
  0x1f   : > { %334 = vperm.xlu1 %8481, %v8736_v12   ;;  %306 = vrot.lane.b32.xlu0 %v8714_v9, %s8624_s24 }
  0x23   : > { %393 = vrot.lane.b32.xlu1 %v8717_v10, %s8625_s27  ;;  %255 = vperm.xlu0 %8482, %v8736_v12  }
  0x24   : > { %8484 = vset.pattern.permute.xlu1 %v15423_v13 }
  0x27   : > { %399 = vrot.lane.b32.xlu1 %v8714_v9, %s8625_s27  ;;  %395 = vrot.lane.b32.xlu0 %v8724_v11, %s8625_s27 }
  0x28   : > { %8483 = vset.pattern.permute.xlu0 %v15423_v13 }
  0x2b   : > { %423 = vperm.xlu1 %8484, %v8736_v12   ;;  %419 = vperm.xlu0 %8483, %v8689_v0  }
  0x2f   : > { %482 = vrot.lane.b32.xlu1 %v8717_v10, %s8627_s28  ;;  %484 = vrot.lane.b32.xlu0 %v8724_v11, %s8627_s28 }
  0x30   : > { %8485 = vset.pattern.permute.xlu0 %v15418_v14  ;;  %8486 = vset.pattern.permute.xlu1 %v15418_v14 }
  0x33   : > { %488 = vrot.lane.b32.xlu1 %v8714_v9, %s8627_s28  ;;  %508 = vperm.xlu0 %8485, %v8689_v0  }
  0x37   : > { %512 = vperm.xlu1 %8486, %v8736_v12   ;;  %8488 = vset.pattern.permute.xlu0 %v15427_v16 }
  0x38   : > { %576 = vperm.xlu0 %8488, %v8736_v12  }
  0x3b   : > { %8487 = vset.pattern.permute.xlu1 %v15427_v16 }
  0x3c   : > { %572 = vperm.xlu1 %8487, %v8689_v0   ;;  %623 = vrot.lane.b32.xlu0 %v8768_v17, %s8630_s29 }
  0x3d   : > { %8490 = vset.pattern.permute.xlu0 %v15424_v18 }
  0x40   : > { %619 = vrot.lane.b32.xlu1 %v8717_v10, %s8630_s29  ;;  %649 = vperm.xlu0 %8490, %v8736_v12  }
  0x41   : > { %8489 = vset.pattern.permute.xlu1 %v15424_v18 }
  0x44   : > { %621 = vrot.lane.b32.xlu1 %v8724_v11, %s8630_s29  ;;  %712 = vrot.lane.b32.xlu0 %v8768_v17, %s8632_s30 }
  0x45   : > { %8492 = vset.pattern.permute.xlu0 %v15415_v19 }
  0x48   : > { %645 = vperm.xlu1 %8489, %v8689_v0   ;;  %738 = vperm.xlu0 %8492, %v8736_v12  }
  0x4c   : > { %708 = vrot.lane.b32.xlu1 %v8717_v10, %s8632_s30  ;;  %801 = vrot.lane.b32.xlu0 %v8768_v17, %s8634_s5 }
  0x4d   : > { %8494 = vset.pattern.permute.xlu0 %v15421_v20  ;;  %8491 = vset.pattern.permute.xlu1 %v15415_v19 }
  0x50   : > { %710 = vrot.lane.b32.xlu1 %v8724_v11, %s8632_s30  ;;  %827 = vperm.xlu0 %8494, %v8736_v12  }
  0x54   : > { %734 = vperm.xlu1 %8491, %v8689_v0   ;;  %890 = vrot.lane.b32.xlu0 %v8768_v17, %s8636_s6 }
  0x55   : > { %8496 = vset.pattern.permute.xlu0 %v15419_v21 }
  0x58   : > { %797 = vrot.lane.b32.xlu1 %v8717_v10, %s8634_s5  ;;  %908 = vperm.xlu0 %8496, %v8736_v12  }
  0x59   : > { %8493 = vset.pattern.permute.xlu1 %v15421_v20  ;;  %v721_v20 = vrot.slane %v8883_v50, 6 }
  0x5c   : > { %799 = vrot.lane.b32.xlu1 %v8724_v11, %s8634_s5  ;;  %233 = vrot.lane.b32.xlu0 %v8768_v17, %s8623_s23 }
  0x5d   : > { %8498 = vset.pattern.permute.xlu0 %v15429_v2 }
  0x60   : > { %823 = vperm.xlu1 %8493, %v8689_v0   ;;  %397 = vrot.lane.b32.xlu0 %v8768_v17, %s8625_s27 }
  0x64   : > { %886 = vrot.lane.b32.xlu1 %v8717_v10, %s8636_s6  ;;  %625 = vrot.lane.b32.xlu0 %v8714_v9, %s8630_s29 }
  0x65   : > { %8495 = vset.pattern.permute.xlu1 %v15419_v21 }
  0x68   : > { %888 = vrot.lane.b32.xlu1 %v8724_v11, %s8636_s6  ;;  %803 = vrot.lane.b32.xlu0 %v8714_v9, %s8634_s5 }
  0x6c   : > { %904 = vperm.xlu1 %8495, %v8689_v0  }
  0x70   : > { %8497 = vset.pattern.permute.xlu1 %v15416_v22 }
  0x71   : > { %968 = vperm.xlu1 %8497, %v8689_v0  }
  0x75   : > { %972 = vperm.xlu1 %8497, %v8736_v12  }
  0x79   : > { %304 = vrot.lane.b32.xlu1 %v8768_v17, %s8624_s24 }
  0x7a   : > { %8499 = vset.pattern.permute.xlu1 %v15426_v8  ;;  %v811_v8 = vrot.slane %v8899_v55, 7 }
  0x7d   : > { %486 = vrot.lane.b32.xlu1 %v8768_v17, %s8627_s28 }
  0x81   : > { %714 = vrot.lane.b32.xlu1 %v8714_v9, %s8632_s30 }
  0x85   : > { %892 = vrot.lane.b32.xlu1 %v8714_v9, %s8636_s6  ;;  %v230_v24 = vpop.permute.xlu0 %229 }
  0x88   : > { %v8833_v23 = vpop.permute.xlu1 %250 }
  0x89   : > { %v8837_v26 = vpop.permute.xlu0 %231 }
  0x8a   : > { %v242_v59 = vsel %vm239_vm1, %v230_v24, %v8837_v26 }
  0x8c   : > { %v8835_v25 = vpop.permute.xlu1 %235 }
  0x8d   : > { %v301_v28 = vpop.permute.xlu0 %300  ;;  %v243_v56 = vsel %vm239_vm1, %v8835_v25, %v230_v24  ;;  %v245_v24 = vmul.f32 %v242_v59, %v8899_v55  ;;  %v632_v59 = vrot.slane %v8883_v50, 5 }
  0x8e   : > { %v244_v1 = vmul.f32 %v243_v56, %v8883_v50 }
  0x90   : > { %v8839_v27 = vpop.permute.xlu1 %302 }
  0x91   : > { %v8843_v30 = vpop.permute.xlu0 %306  ;;  %v311_v60 = vsel %vm308_vm0, %v301_v28, %v8839_v27 }
  0x92   : > { %v312_v53 = vsel %vm308_vm0, %v8843_v30, %v301_v28  ;;  %v326_v28 = vmul.f32 %v318_v57, %v311_v60  ;;  %v496_v57 = vrot.slane %v8899_v55, 3 }
  0x93   : > { %v325_v58 = vmul.f32 %v317_v52, %v312_v53  ;;  %v495_v53 = vrot.slane %v8883_v50, 3 }
  0x95   : > { %v8925_v52 = vrot.slane %v325_v58, %v8701_v4 }
  0x96   : > { %v8841_v29 = vpop.permute.xlu1 %330 }
  0x97   : > { %15827 = vst [vmem:[#allocation12_spill] sm:$0xff] %v8925_v52 }
  0x9a   : > { %v8845_v31 = vpop.permute.xlu1 %334 }
  0x9b   : > { %v365_v7 = vmul.f32 %v8925_v52, %v8845_v31 }
  0x9e   : > { %v394_v32 = vpop.permute.xlu1 %393  ;;  %v8847_v33 = vpop.permute.xlu0 %255 }
  0xa2   : > { %v8849_v34 = vpop.permute.xlu1 %399  ;;  %v8851_v35 = vpop.permute.xlu0 %395 }
  0xa3   : > { %v405_v6 = vsel %vm401_vm2, %v8849_v34, %v394_v32  ;;  %v404_v12 = vsel %vm401_vm2, %v394_v32, %v8851_v35  ;;  %v8935_v32 = vrot.slane %v244_v1, %v8701_v4  ;;  %v361_v1 = vmul.f32 %v8925_v52, %v8841_v29 }
  0xa4   : > { %v414_v19 = vmul.f32 %v406_v61, %v405_v6  ;;  %v415_v56 = vmul.f32 %v407_v62, %v404_v12  ;;  %v8947_v61 = vrot.slane %v245_v24, %v8701_v4  ;;  %v8950_v62 = vrot.slane %v326_v28, %v8701_v4 }
  0xa5   : > { %15828 = vst [vmem:[#allocation13_spill] sm:$0xff] %v8935_v32  ;;  %v284_v24 = vmul.f32 %v8935_v32, %v8833_v23 }
  0xa6   : > { %v8853_v36 = vpop.permute.xlu1 %423  ;;  %v8855_v37 = vpop.permute.xlu0 %419  ;;  %15829 = vst [vmem:[#allocation14_spill] sm:$0xff] %v8947_v61  ;;  %15830 = vst [vmem:[#allocation15_spill] sm:$0xff] %v8950_v62  ;;  %v8955_v12 = vrot.slane %v414_v19, %v8701_v4  ;;  %v8958_v21 = vrot.slane %v415_v56, %v8701_v4  ;;  %v362_v28 = vmul.f32 %v8950_v62, %v8841_v29  ;;  %v810_v56 = vrot.slane %v8883_v50, 7 }
  0xa7   : > { %15824 = vst [vmem:[#allocation9_spill] sm:$0xff] %v8853_v36  ;;  %v288_v19 = vmul.f32 %v8935_v32, %v8847_v33  ;;  %v285_v16 = vmul.f32 %v8947_v61, %v8833_v23  ;;  %v377_v2 = vadd.f32 %v361_v1, %v284_v24 }
  0xa8   : > { %15831 = vst [vmem:[#allocation16_spill] sm:$0xff] %v8955_v12  ;;  %15832 = vst [vmem:[#allocation17_spill] sm:$0xff] %v8958_v21  ;;  %v454_v15 = vmul.f32 %v8955_v12, %v8853_v36  ;;  %v455_v50 = vmul.f32 %v8958_v21, %v8853_v36  ;;  %v451_v32 = vmul.f32 %v8958_v21, %v8855_v37 }
  0xa9   : > { %v378_v5 = vadd.f32 %v362_v28, %v285_v16  ;;  %v381_v52 = vadd.f32 %v365_v7, %v288_v19 }
  0xaa   : > { %v483_v38 = vpop.permute.xlu1 %482  ;;  %v8857_v39 = vpop.permute.xlu0 %484 }
  0xab   : > { %v493_v58 = vsel %vm490_vm3, %v483_v38, %v8857_v39  ;;  %v470_v7 = vadd.f32 %v454_v15, %v381_v52 }
  0xac   : > { %v504_v18 = vmul.f32 %v496_v57, %v493_v58  ;;  %v366_v58 = vmul.f32 %v8950_v62, %v8845_v31 }
  0xae   : > { %v8859_v40 = vpop.permute.xlu1 %488  ;;  %v8863_v42 = vpop.permute.xlu0 %508  ;;  %v8997_v3 = vrot.slane %v504_v18, %v8701_v4 }
  0xaf   : > { %v494_v22 = vsel %vm490_vm3, %v8859_v40, %v483_v38  ;;  %v633_v38 = vrot.slane %v8899_v55, 5 }
  0xb0   : > { %v503_v6 = vmul.f32 %v495_v53, %v494_v22  ;;  %v722_v22 = vrot.slane %v8899_v55, 6  ;;  %v289_v53 = vmul.f32 %v8947_v61, %v8847_v33  ;;  %15834 = vst [vmem:[#allocation19_spill] sm:$0xff] %v8997_v3 }
  0xb2   : > { %v8861_v41 = vpop.permute.xlu1 %512  ;;  %v8980_v57 = vrot.slane %v503_v6, %v8701_v4  ;;  %v450_v6 = vmul.f32 %v8955_v12, %v8855_v37  ;;  %v382_v61 = vadd.f32 %v366_v58, %v289_v53 }
  0xb3   : > { %v8867_v44 = vpop.permute.xlu0 %576  ;;  %v544_v18 = vmul.f32 %v8997_v3, %v8861_v41 }
  0xb4   : > { %15833 = vst [vmem:[#allocation18_spill] sm:$0xff] %v8980_v57  ;;  %v543_v28 = vmul.f32 %v8980_v57, %v8861_v41  ;;  %v471_v19 = vadd.f32 %v455_v50, %v382_v61  ;;  %v466_v9 = vadd.f32 %v450_v6, %v377_v2  ;;  %v539_v15 = vmul.f32 %v8980_v57, %v8863_v42 }
  0xb5   : > { %v592_v52 = vmul.f32 %v8867_v44, %v8724_v11 }
  0xb6   : > { %v559_v2 = vadd.f32 %v543_v28, %v470_v7  ;;  %v555_v28 = vadd.f32 %v539_v15, %v466_v9  ;;  %v200_v9 = vld [vmem:[%s15411_s1 + $0x28] sm:$0x1] }
  0xb7   : > { %v8865_v43 = vpop.permute.xlu1 %572  ;;  %v8871_v46 = vpop.permute.xlu0 %623 }
  0xbb   : > { %v8869_v45 = vpop.permute.xlu1 %619  ;;  %v8885_v51 = vpop.permute.xlu0 %649 }
  0xbf   : > { %v8873_v47 = vpop.permute.xlu1 %621  ;;  %v8913_v63 = vpop.permute.xlu0 %712 }
  0xc0   : > { %v630_v55 = vsel %vm627_vm4, %v8869_v45, %v8873_v47  ;;  %v629_v62 = vsel %vm627_vm4, %v8873_v47, %v8871_v46 }
  0xc1   : > { %v640_v12 = vmul.f32 %v632_v59, %v630_v55  ;;  %v641_v53 = vmul.f32 %v633_v38, %v629_v62  ;;  %v560_v38 = vadd.f32 %v544_v18, %v471_v19  ;;  %v467_v55 = vadd.f32 %v451_v32, %v378_v5 }
  0xc3   : > { %v8875_v48 = vpop.permute.xlu1 %645  ;;  %v8944_v60 = vpop.permute.xlu0 %738  ;;  %v9039_v6 = vrot.slane %v641_v53, %v8701_v4 }
  0xc5   : > { %15836 = vst [vmem:[#allocation21_spill] sm:$0xff] %v9039_v6  ;;  %v677_v19 = vmul.f32 %v9039_v6, %v8875_v48  ;;  %v681_v15 = vmul.f32 %v9039_v6, %v8885_v51 }
  0xc7   : > { %v8892_v54 = vpop.permute.xlu1 %708  ;;  %v8992_v1 = vpop.permute.xlu0 %801 }
  0xc8   : > { %15826 = vst [vmem:[#allocation11_spill] sm:$0xff] %v8892_v54 }
  0xcb   : > { %v711_v0 = vpop.permute.xlu1 %710  ;;  %v9031_v62 = vpop.permute.xlu0 %827 }
  0xcc   : > { %v719_v16 = vsel %vm716_vm5, %v8892_v54, %v711_v0  ;;  %v718_v47 = vsel %vm716_vm5, %v711_v0, %v8913_v63  ;;  %v540_v54 = vmul.f32 %v8997_v3, %v8863_v42  ;;  %v591_v0 = vmul.f32 %v8867_v44, %v8717_v10 }
  0xcd   : > { %v729_v36 = vmul.f32 %v721_v20, %v719_v16  ;;  %v730_v61 = vmul.f32 %v722_v22, %v718_v47  ;;  %v9034_v20 = vrot.slane %v640_v12, %v8701_v4  ;;  %v588_v12 = vmul.f32 %v8865_v43, %v8724_v11 }
  0xce   : > { %v556_v18 = vadd.f32 %v540_v54, %v467_v55  ;;  %v607_v32 = vadd.f32 %v591_v0, %v559_v2 }
  0xcf   : > { %v8931_v14 = vpop.permute.xlu1 %734  ;;  %15835 = vst [vmem:[#allocation20_spill] sm:$0xff] %v9034_v20  ;;  %v9045_v22 = vrot.slane %v729_v36, %v8701_v4  ;;  %v9050_v5 = vrot.slane %v730_v61, %v8701_v4  ;;  %v199_v36 = vld [vmem:[%s15411_s1 + $0x20] sm:$0x1]  ;;  %v680_v7 = vmul.f32 %v9034_v20, %v8885_v51  ;;  %v9067_v53 = vpop.permute.xlu0 %890 }
  0xd0   : > { %v604_v2 = vadd.f32 %v588_v12, %v556_v18 }
  0xd1   : > { %15837 = vst [vmem:[#allocation22_spill] sm:$0xff] %v9045_v22  ;;  %15838 = vst [vmem:[#allocation23_spill] sm:$0xff] %v9050_v5  ;;  %v765_v0 = vmul.f32 %v9045_v22, %v8931_v14  ;;  %v770_v6 = vmul.f32 %v9050_v5, %v8944_v60  ;;  %v696_v12 = vadd.f32 %v680_v7, %v607_v32 }
  0xd3   : > { %v8962_v13 = vpop.permute.xlu1 %797 }
  0xd7   : > { %v800_v24 = vpop.permute.xlu1 %799 }
  0xd8   : > { %v808_v58 = vsel %vm805_vm6, %v8962_v13, %v800_v24  ;;  %v807_v59 = vsel %vm805_vm6, %v800_v24, %v8992_v1  ;;  %v587_v24 = vmul.f32 %v8865_v43, %v8717_v10 }
  0xd9   : > { %v818_v50 = vmul.f32 %v810_v56, %v808_v58  ;;  %v819_v16 = vmul.f32 %v811_v8, %v807_v59  ;;  %v608_v56 = vadd.f32 %v592_v52, %v560_v38  ;;  %v676_v8 = vmul.f32 %v9034_v20, %v8875_v48 }
  0xda   : > { %v603_v54 = vadd.f32 %v587_v24, %v555_v28  ;;  %v766_v38 = vmul.f32 %v9050_v5, %v8931_v14  ;;  %v693_v20 = vadd.f32 %v677_v19, %v604_v2  ;;  %v15853_v5 = vmov 2  }
  0xdb   : > { %v9018_v21 = vpop.permute.xlu1 %823  ;;  %v9055_v47 = vrot.slane %v818_v50, %v8701_v4  ;;  %v9070_v58 = vrot.slane %v819_v16, %v8701_v4  ;;  %v769_v16 = vmul.f32 %v9045_v22, %v8944_v60 }
  0xdc   : > { %v692_v24 = vadd.f32 %v676_v8, %v603_v54  ;;  %v782_v54 = vadd.f32 %v766_v38, %v693_v20 }
  0xdd   : > { %15839 = vst [vmem:[#allocation24_spill] sm:$0xff] %v9055_v47  ;;  %15840 = vst [vmem:[#allocation25_spill] sm:$0xff] %v9070_v58  ;;  %v854_v28 = vmul.f32 %v9055_v47, %v9018_v21  ;;  %v859_v19 = vmul.f32 %v9070_v58, %v9031_v62  ;;  %v785_v7 = vadd.f32 %v769_v16, %v696_v12 }
  0xde   : > { %v781_v57 = vadd.f32 %v765_v0, %v692_v24 }
  0xdf   : > { %v9041_v3 = vpop.permute.xlu1 %886 }
  0xe0   : > { %v870_v2 = vadd.f32 %v854_v28, %v781_v57 }
  0xe3   : > { %v889_v59 = vpop.permute.xlu1 %888 }
  0xe4   : > { %v896_v52 = vsel %vm894_vm7, %v889_v59, %v9067_v53  ;;  %v897_v61 = vsel %vm894_vm7, %v9041_v3, %v889_v59  ;;  %v855_v59 = vmul.f32 %v9070_v58, %v9018_v21 }
  0xe5   : > { %v899_v50 = vmul.f32 %v897_v61, %v199_v36  ;;  %v900_v55 = vmul.f32 %v896_v52, %v200_v9  ;;  %v697_v9 = vadd.f32 %v681_v15, %v608_v56  ;;  %v858_v52 = vmul.f32 %v9055_v47, %v9031_v62  ;;  %v9104_v61 = vpop.permute.xlu0 %908 }
  0xe7   : > { %v9092_v18 = vpop.permute.xlu1 %904  ;;  %v9095_v36 = vrot.slane %v899_v50, %v8701_v4  ;;  %v9098_v8 = vrot.slane %v900_v55, %v8701_v4  ;;  %v786_v0 = vadd.f32 %v770_v6, %v697_v9  ;;  %v871_v50 = vadd.f32 %v855_v59, %v782_v54 }
  0xe8   : > { %v874_v57 = vadd.f32 %v858_v52, %v785_v7 }
  0xe9   : > { %15841 = vst [vmem:[#allocation26_spill] sm:$0xff] %v9095_v36  ;;  %15842 = vst [vmem:[#allocation27_spill] sm:$0xff] %v9098_v8  ;;  %v935_v32 = vmul.f32 %v9095_v36, %v9092_v18  ;;  %v936_v55 = vmul.f32 %v9098_v8, %v9092_v18  ;;  %v939_v20 = vmul.f32 %v9095_v36, %v9104_v61 }
  0xea   : > { %v940_v56 = vmul.f32 %v9098_v8, %v9104_v61  ;;  %v875_v28 = vadd.f32 %v859_v19, %v786_v0 }
  0xeb   : > { %v951_v38 = vadd.f32 %v935_v32, %v870_v2  ;;  %v952_v24 = vadd.f32 %v936_v55, %v871_v50  ;;  %v955_v16 = vadd.f32 %v939_v20, %v874_v57  ;;  %v9145_v57 = vld [vmem:[%s15411_s1 + $0x10] sm:$0xff] }
  0xec   : > { %v9114_v15 = vpop.permute.xlu1 %968  ;;  %v956_v59 = vadd.f32 %v940_v56, %v875_v28  ;;  %v9150_v28 = vld [vmem:[%s15411_s1 + $0x18] sm:$0xff] }
  0xed   : > { %v9117_v58 = vadd.f32 %v9114_v15, %v951_v38  ;;  %v9120_v6 = vadd.f32 %v9114_v15, %v952_v24  ;;  %v234_v38 = vpop.permute.xlu0 %233  ;;  %v813_v8 = vrot.slane %v9150_v28, 7 }
  0xef   : > { %15843 = vst [vmem:[#allocation28_spill] sm:$0xff] %v9117_v58  ;;  %15844 = vst [vmem:[#allocation29_spill] sm:$0xff] %v9120_v6  ;;  %v1011_v9 = vmul.f32 %v9117_v58, %v9117_v58  ;;  %v999_v52 = vadd.f32 %v9120_v6, %v9117_v58  ;;  %v1012_v19 = vmul.f32 %v9120_v6, %v9120_v6 }
  0xf0   : > { %v9122_v12 = vpop.permute.xlu1 %972 }
  0xf1   : > { %v9127_v54 = vadd.f32 %v9122_v12, %v955_v16  ;;  %v9130_v2 = vadd.f32 %v9122_v12, %v956_v59  ;;  %v1015_v0 = vadd.f32 %v1012_v19, %v1011_v9  ;;  %v319_v16 = vrot.slane %v9145_v57, 1 }
  0xf2   : > { %v320_v59 = vrot.slane %v9150_v28, 1  ;;  %v240_v19 = vsel %vm239_vm1, %v234_v38, %v8835_v25  ;;  %v409_v25 = vrot.slane %v9150_v28, 2 }
  0xf3   : > { %15845 = vst [vmem:[#allocation30_spill] sm:$0xff] %v9127_v54  ;;  %15846 = vst [vmem:[#allocation31_spill] sm:$0xff] %v9130_v2  ;;  %v1000_v32 = vadd.f32 %v999_v52, %v9127_v54  ;;  %v1013_v7 = vmul.f32 %v9127_v54, %v9127_v54  ;;  %v1014_v55 = vmul.f32 %v9130_v2, %v9130_v2 }
  0xf4   : > { %v305_v24 = vpop.permute.xlu1 %304 }
  0xf5   : > { %v1001_v50 = vadd.f32 %v1000_v32, %v9130_v2  ;;  %v1016_v20 = vadd.f32 %v1015_v0, %v1013_v7  ;;  %v309_v9 = vsel %vm308_vm0, %v305_v24, %v8843_v30  ;;  %v310_v52 = vsel %vm308_vm0, %v8839_v27, %v305_v24  ;;  %v398_v7 = vpop.permute.xlu0 %397 }
  0xf6   : > { %v241_v32 = vsel %vm239_vm1, %v8837_v26, %v234_v38  ;;  %v327_v0 = vmul.f32 %v319_v16, %v310_v52  ;;  %v247_v27 = vmul.f32 %v240_v19, %v9150_v28  ;;  %v402_v26 = vsel %vm401_vm2, %v398_v7, %v8849_v34  ;;  %v9199_v52 = vld [vmem:[%s15412_s2 + $0x18] sm:$0xff] }
  0xf7   : > { %1002 = vadd.xlane.f32.xlu0 %v1001_v50  ;;  %v1017_v56 = vadd.f32 %v1016_v20, %v1014_v55  ;;  %v328_v50 = vmul.f32 %v320_v59, %v309_v9  ;;  %v9169_v55 = vld [vmem:[%s15412_s2 + $0x10] sm:$0xff]  ;;  %v246_v30 = vmul.f32 %v241_v32, %v9145_v57  ;;  %v408_v20 = vrot.slane %v9145_v57, 2  ;;  %15848 = vst [vmem:[#allocation33_spill] sm:$0xff] %v9199_v52 }
  0xf8   : > { %15847 = vst [vmem:[#allocation32_spill] sm:$0xff] %v9169_v55  ;;  %v403_v38 = vsel %vm401_vm2, %v8851_v35, %v398_v7  ;;  %v9183_v24 = vrot.slane %v327_v0, %v8701_v4  ;;  %v497_v59 = vrot.slane %v9145_v57, 3  ;;  %v498_v9 = vrot.slane %v9150_v28, 3 }
  0xf9   : > { %1018 = vadd.xlane.f32.xlu1 %v1017_v56  ;;  %v487_v56 = vpop.permute.xlu1 %486  ;;  %v9186_v16 = vrot.slane %v328_v50, %v8701_v4  ;;  %v9202_v19 = vrot.slane %v246_v30, %v8701_v4  ;;  %v9205_v32 = vrot.slane %v247_v27, %v8701_v4  ;;  %v416_v7 = vmul.f32 %v408_v20, %v403_v38  ;;  %v626_v38 = vpop.permute.xlu0 %625 }
  0xfa   : > { %v491_v34 = vsel %vm490_vm3, %v487_v56, %v8859_v40  ;;  %v492_v35 = vsel %vm490_vm3, %v8857_v39, %v487_v56  ;;  %v417_v0 = vmul.f32 %v409_v25, %v402_v26  ;;  %v15849_v40 = vmov 0  }
  0xfb   : > { %v363_v39 = vmul.f32 %v9183_v24, %v8841_v29  ;;  %v364_v50 = vmul.f32 %v9186_v16, %v8841_v29  ;;  %v505_v56 = vmul.f32 %v497_v59, %v492_v35  ;;  %v506_v2 = vmul.f32 %v498_v9, %v491_v34 }
  0xfc   : > { %v286_v30 = vmul.f32 %v9202_v19, %v8833_v23  ;;  %v287_v27 = vmul.f32 %v9205_v32, %v8833_v23  ;;  %v9219_v20 = vrot.slane %v416_v7, %v8701_v4  ;;  %v9222_v25 = vrot.slane %v417_v0, %v8701_v4 }
  0xfd   : > { %v15850_v26 = vmov 4   ;;  %v9227_v9 = vrot.slane %v505_v56, %v8701_v4  ;;  %v9230_v34 = vrot.slane %v506_v2, %v8701_v4  ;;  %v15851_v23 = vmov 1   ;;  %v804_v36 = vpop.permute.xlu0 %803 }
  0xfe   : > { %v379_v29 = vadd.f32 %v363_v39, %v286_v30  ;;  %v380_v59 = vadd.f32 %v364_v50, %v287_v27  ;;  %v634_v35 = vrot.slane %v9145_v57, 5  ;;  %v367_v7 = vmul.f32 %v9183_v24, %v8845_v31 }
  0xff   : > { %v452_v0 = vmul.f32 %v9219_v20, %v8855_v37  ;;  %v635_v39 = vrot.slane %v9150_v28, 5  ;;  %v628_v2 = vsel %vm627_vm4, %v8871_v46, %v626_v38  ;;  %v290_v50 = vmul.f32 %v9202_v19, %v8847_v33  ;;  %v715_v46 = vpop.permute.xlu1 %714 }
 0x100   : > { %v631_v56 = vsel %vm627_vm4, %v626_v38, %v8869_v45  ;;  %v812_v30 = vrot.slane %v9145_v57, 7  ;;  %v15852_v27 = vmov 5   ;;  %v542_v6 = vmul.f32 %v9230_v34, %v8863_v42 }
 0x101   : > { %v642_v58 = vmul.f32 %v634_v35, %v628_v2  ;;  %v368_v45 = vmul.f32 %v9186_v16, %v8845_v31  ;;  %v383_v38 = vadd.f32 %v367_v7, %v290_v50  ;;  %v291_v35 = vmul.f32 %v9205_v32, %v8847_v33 }
 0x102   : > { %v717_v31 = vsel %vm716_vm5, %v8913_v63, %v715_v46  ;;  %v15856_v50 = vmov 7  }
 0x103   : > { %v384_v63 = vadd.f32 %v368_v45, %v291_v35  ;;  %v893_v45 = vpop.permute.xlu1 %892 }
 0x10a   : > { %338 = vperm.xlu1 %8499, %v9169_v55  }
 0x10d   : > { %260 = vperm.xlu0 %8498, %v9169_v55  }
 0x10e   : > { %8500 = vset.pattern.permute.xlu1 %v15849_v40  ;;  %v453_v40 = vmul.f32 %v9222_v25, %v8855_v37  ;;  %v541_v37 = vmul.f32 %v9227_v9, %v8863_v42  ;;  %v724_v42 = vrot.slane %v9150_v28, 6  ;;  %v809_v28 = vsel %vm805_vm6, %v804_v36, %v8962_v13 }
 0x10f   : > { %265 = vperm.xlu1 %8500, %v9199_v52  }
 0x110   : > { %v469_v54 = vadd.f32 %v453_v40, %v380_v59  ;;  %v643_v59 = vmul.f32 %v635_v39, %v631_v56  ;;  %v15854_v40 = vld [vmem:[#allocation9_spill] sm:$0xff]  ;;  %v9284_v56 = vrot.slane %v642_v58, %v8701_v4 }
 0x111   : > { %8504 = vset.pattern.permute.xlu0 %v15850_v26  ;;  %v456_v2 = vmul.f32 %v9219_v20, %v15854_v40  ;;  %v457_v58 = vmul.f32 %v9222_v25, %v15854_v40 }
 0x112   : > { %580 = vperm.xlu0 %8504, %v9169_v55   ;;  %v558_v39 = vadd.f32 %v542_v6, %v469_v54  ;;  %v9292_v47 = vrot.slane %v643_v59, %v8701_v4  ;;  %v821_v54 = vmul.f32 %v813_v8, %v809_v28 }
 0x113   : > { %8501 = vset.pattern.permute.xlu1 %v15851_v23  ;;  %v468_v23 = vadd.f32 %v452_v0, %v379_v29  ;;  %v589_v29 = vmul.f32 %v8865_v43, %v8768_v17  ;;  %v723_v0 = vrot.slane %v9145_v57, 6  ;;  %v806_v57 = vsel %vm805_vm6, %v8992_v1, %v804_v36 }
 0x114   : > { %342 = vperm.xlu1 %8501, %v9199_v52   ;;  %v472_v22 = vadd.f32 %v456_v2, %v383_v38  ;;  %v820_v6 = vmul.f32 %v812_v30, %v806_v57  ;;  %v678_v38 = vmul.f32 %v9284_v56, %v8875_v48  ;;  %v473_v35 = vadd.f32 %v457_v58, %v384_v63 }
 0x115   : > { %v557_v33 = vadd.f32 %v541_v37, %v468_v23  ;;  %v731_v13 = vmul.f32 %v723_v0, %v717_v31  ;;  %v15858_v0 = vmov 8   ;;  %v15859_v30 = vmov 3  }
 0x116   : > { %8507 = vset.pattern.permute.xlu0 %v15852_v27  ;;  %v898_v2 = vsel %vm894_vm7, %v893_v45, %v9041_v3  ;;  %v9328_v57 = vrot.slane %v820_v6, %v8701_v4  ;;  %v9331_v28 = vrot.slane %v821_v54, %v8701_v4 }
 0x117   : > { %657 = vperm.xlu0 %8507, %v9199_v52   ;;  %v605_v23 = vadd.f32 %v589_v29, %v557_v33  ;;  %v9305_v40 = vrot.slane %v731_v13, %v8701_v4  ;;  %v593_v29 = vmul.f32 %v8867_v44, %v8768_v17 }
 0x118   : > { %8502 = vset.pattern.permute.xlu1 %v15853_v5  ;;  %v15855_v5 = vld [vmem:[#allocation11_spill] sm:$0xff]  ;;  %v856_v54 = vmul.f32 %v9328_v57, %v9018_v21 }
 0x119   : > { %427 = vperm.xlu1 %8502, %v9169_v55   ;;  %v720_v7 = vsel %vm716_vm5, %v715_v46, %v15855_v5  ;;  %v545_v46 = vmul.f32 %v9227_v9, %v8861_v41  ;;  %v15857_v5 = vld [vmem:[#allocation7_spill] sm:$0xff]  ;;  %v694_v31 = vadd.f32 %v678_v38, %v605_v23  ;;  %v767_v63 = vmul.f32 %v9305_v40, %v8931_v14 }
 0x11a   : > { %v590_v1 = vmul.f32 %v8865_v43, %v15857_v5  ;;  %v732_v36 = vmul.f32 %v724_v42, %v720_v7  ;;  %v546_v43 = vmul.f32 %v9230_v34, %v8861_v41  ;;  %v679_v42 = vmul.f32 %v9292_v47, %v8875_v48  ;;  %v201_v41 = vld [vmem:[%s15411_s1 + $0x30] sm:$0x1]  ;;  %v202_v48 = vld [vmem:[%s15411_s1 + $0x38] sm:$0x1] }
 0x11b   : > { %8509 = vset.pattern.permute.xlu0 %v15856_v50  ;;  %v561_v59 = vadd.f32 %v545_v46, %v472_v22  ;;  %v895_v22 = vsel %vm894_vm7, %v9067_v53, %v893_v45  ;;  %v902_v3 = vmul.f32 %v898_v2, %v202_v48  ;;  %v594_v13 = vmul.f32 %v8867_v44, %v15857_v5 }
 0x11c   : > { %831 = vperm.xlu0 %8509, %v9169_v55   ;;  %v606_v37 = vadd.f32 %v590_v1, %v558_v39  ;;  %v9308_v8 = vrot.slane %v732_v36, %v8701_v4  ;;  %v562_v33 = vadd.f32 %v546_v43, %v473_v35  ;;  %v901_v46 = vmul.f32 %v895_v22, %v201_v41 }
 0x11d   : > { %431 = vperm.xlu1 %8502, %v9199_v52   ;;  %v609_v39 = vadd.f32 %v593_v29, %v561_v59  ;;  %v15860_v1 = vmov 9   ;;  %v682_v36 = vmul.f32 %v9284_v56, %v8885_v51  ;;  %v783_v58 = vadd.f32 %v767_v63, %v694_v31 }
 0x11e   : > { %v695_v7 = vadd.f32 %v679_v42, %v606_v37  ;;  %v768_v53 = vmul.f32 %v9308_v8, %v8931_v14  ;;  %v857_v14 = vmul.f32 %v9331_v28, %v9018_v21  ;;  %v9349_v23 = vrot.slane %v901_v46, %v8701_v4 }
 0x11f   : > { %v9352_v37 = vrot.slane %v902_v3, %v8701_v4  ;;  %v610_v45 = vadd.f32 %v594_v13, %v562_v33  ;;  %v698_v38 = vadd.f32 %v682_v36, %v609_v39  ;;  %v683_v44 = vmul.f32 %v9292_v47, %v8885_v51 }
 0x120   : > { %8512 = vset.pattern.permute.xlu0 %v15858_v0  ;;  %v784_v6 = vadd.f32 %v768_v53, %v695_v7  ;;  %v771_v35 = vmul.f32 %v9305_v40, %v8944_v60  ;;  %v872_v43 = vadd.f32 %v856_v54, %v783_v58  ;;  %v937_v59 = vmul.f32 %v9349_v23, %v9092_v18 }
 0x121   : > { %8503 = vset.pattern.permute.xlu1 %v15859_v30  ;;  %916 = vperm.xlu0 %8512, %v9199_v52   ;;  %v938_v42 = vmul.f32 %v9352_v37, %v9092_v18  ;;  %v699_v30 = vadd.f32 %v683_v44, %v610_v45  ;;  %v772_v51 = vmul.f32 %v9308_v8, %v8944_v60  ;;  %v15863_v60 = vmov 6  }
 0x122   : > { %516 = vperm.xlu1 %8503, %v9169_v55   ;;  %v873_v21 = vadd.f32 %v857_v14, %v784_v6  ;;  %v787_v29 = vadd.f32 %v771_v35, %v698_v38  ;;  %v953_v41 = vadd.f32 %v937_v59, %v872_v43  ;;  %v861_v31 = vmul.f32 %v9331_v28, %v9031_v62 }
 0x123   : > { %v788_v22 = vadd.f32 %v772_v51, %v699_v30  ;;  %v941_v18 = vmul.f32 %v9349_v23, %v9104_v61  ;;  %v942_v63 = vmul.f32 %v9352_v37, %v9104_v61 }
 0x124   : > { %v954_v48 = vadd.f32 %v938_v42, %v873_v21  ;;  %v9375_v7 = vadd.f32 %v9114_v15, %v953_v41 }
 0x125   : > { %8513 = vset.pattern.permute.xlu0 %v15860_v1 }
 0x126   : > { %520 = vperm.xlu1 %8503, %v9199_v52   ;;  %976 = vperm.xlu0 %8513, %v9169_v55   ;;  %15861 = vst [vmem:[#allocation9_spill] sm:$0xff] %v9375_v7  ;;  %v9378_v33 = vadd.f32 %v9114_v15, %v954_v48 }
 0x128   : > { %15862 = vst [vmem:[#allocation11_spill] sm:$0xff] %v9378_v33  ;;  %v1062_v53 = vmul.f32 %v9378_v33, %v9378_v33 }
 0x12a   : > { %8505 = vset.pattern.permute.xlu1 %v15850_v26  ;;  %v860_v26 = vmul.f32 %v9328_v57, %v9031_v62  ;;  %v1061_v62 = vmul.f32 %v9375_v7, %v9375_v7 }
 0x12b   : > { %584 = vperm.xlu1 %8505, %v9199_v52  }
 0x12c   : > { %v876_v2 = vadd.f32 %v860_v26, %v787_v29  ;;  %v1065_v3 = vadd.f32 %v1062_v53, %v1061_v62  ;;  %v8639_v26 = vmov 14  }
 0x12d   : > { %8515 = vset.pattern.permute.xlu0 %v8639_v26 }
 0x12e   : > { %v957_v39 = vadd.f32 %v941_v18, %v876_v2 }
 0x12f   : > { %8506 = vset.pattern.permute.xlu1 %v15852_v27  ;;  %v877_v27 = vadd.f32 %v861_v31, %v788_v22 }
 0x130   : > { %653 = vperm.xlu1 %8506, %v9169_v55   ;;  %v9390_v15 = vadd.f32 %v9122_v12, %v957_v39 }
 0x131   : > { %v958_v46 = vadd.f32 %v942_v63, %v877_v27 }
 0x132   : > { %15864 = vst [vmem:[#allocation7_spill] sm:$0xff] %v9390_v15  ;;  %v1063_v61 = vmul.f32 %v9390_v15, %v9390_v15 }
 0x133   : > { %v9394_v13 = vadd.f32 %v9122_v12, %v958_v46  ;;  %v1049_v12 = vadd.f32 %v9378_v33, %v9375_v7  ;;  %v15866_v46 = vld [vmem:[#allocation13_spill] sm:$0xff]  ;;  %v15877_v33 = vld [vmem:[#allocation24_spill] sm:$0xff] }
 0x134   : > { %8508 = vset.pattern.permute.xlu1 %v15863_v60  ;;  %v1066_v36 = vadd.f32 %v1065_v3, %v1063_v61  ;;  %v15867_v61 = vld [vmem:[#allocation14_spill] sm:$0xff] }
 0x135   : > { %742 = vperm.xlu1 %8508, %v9169_v55   ;;  %15865 = vst [vmem:[#allocation34_spill] sm:$0xff] %v9394_v13  ;;  %v1064_v58 = vmul.f32 %v9394_v13, %v9394_v13 }
 0x137   : > { %v1067_v6 = vadd.f32 %v1066_v36, %v1064_v58 }
 0x139   : > { %746 = vperm.xlu1 %8508, %v9199_v52  }
 0x13d   : > { %8510 = vset.pattern.permute.xlu1 %v15856_v50  ;;  %v1050_v50 = vadd.f32 %v1049_v12, %v9390_v15  ;;  %v15868_v12 = vld [vmem:[#allocation12_spill] sm:$0xff] }
 0x13e   : > { %835 = vperm.xlu1 %8510, %v9199_v52  }
 0x13f   : > { %v1051_v54 = vadd.f32 %v1050_v50, %v9394_v13 }
 0x142   : > { %8511 = vset.pattern.permute.xlu1 %v15858_v0 }
 0x143   : > { %912 = vperm.xlu1 %8511, %v9169_v55  }
 0x145   : > { %1068 = vadd.xlane.f32.xlu0 %v1067_v6 }
 0x147   : > { %8514 = vset.pattern.permute.xlu1 %v15860_v1 }
 0x167   : > { %1052 = vadd.xlane.f32.xlu1 %v1051_v54  ;;  %v15869_v54 = vld [vmem:[#allocation15_spill] sm:$0xff] }
 0x178   : > { %980 = vperm.xlu1 %8514, %v9199_v52  }
 0x17c   : > { %8516 = vset.pattern.permute.xlu1 %v8639_v26 }
 0x180   : > { %v1003_v14 = vpop.xlane.xlu0 %1002 }
 0x181   : > { %v1004_v45 = vrot.slane %v1003_v14, 4 }
 0x182   : > { %v1019_v38 = vpop.xlane.xlu1 %1018 }
 0x183   : > { %v1005_v0 = vadd.f32 %v1004_v45, %v1003_v14  ;;  %v1020_v44 = vrot.slane %v1019_v38, 4 }
 0x185   : > { %v1021_v35 = vadd.f32 %v1020_v44, %v1019_v38  ;;  %v1006_v43 = vrot.slane %v1005_v0, 2 }
 0x186   : > { %v339_v41 = vpop.permute.xlu1 %338 }
 0x187   : > { %v1007_v21 = vadd.f32 %v1006_v43, %v1005_v0  ;;  %v1022_v59 = vrot.slane %v1021_v35, 2  ;;  %v369_v50 = vmul.f32 %v15868_v12, %v339_v41  ;;  %v370_v14 = vmul.f32 %v15869_v54, %v339_v41 }
 0x188   : > { %v261_v39 = vpop.permute.xlu0 %260  ;;  %v371_v45 = vmul.f32 %v9183_v24, %v339_v41  ;;  %v372_v38 = vmul.f32 %v9186_v16, %v339_v41  ;;  %v15870_v41 = vld [vmem:[#allocation16_spill] sm:$0xff] }
 0x189   : > { %v1008_v1 = vrot.slane %v1007_v21, 1  ;;  %v1023_v42 = vadd.f32 %v1022_v59, %v1021_v35  ;;  %v292_v3 = vmul.f32 %v15866_v46, %v261_v39  ;;  %v293_v36 = vmul.f32 %v15867_v61, %v261_v39 }
 0x18a   : > { %v266_v48 = vpop.permute.xlu1 %265  ;;  %v294_v58 = vmul.f32 %v9202_v19, %v261_v39  ;;  %v295_v6 = vmul.f32 %v9205_v32, %v261_v39 }
 0x18b   : > { %v1009_v30 = vadd.f32 %v1008_v1, %v1007_v21  ;;  %v1024_v29 = vrot.slane %v1023_v42, 1  ;;  %v385_v0 = vadd.f32 %v369_v50, %v292_v3  ;;  %v386_v44 = vadd.f32 %v370_v14, %v293_v36 }
 0x18c   : > { %v387_v43 = vadd.f32 %v371_v45, %v294_v58  ;;  %v388_v21 = vadd.f32 %v372_v38, %v295_v6  ;;  %v297_v26 = vmul.f32 %v15867_v61, %v266_v48  ;;  %v299_v3 = vmul.f32 %v9205_v32, %v266_v48  ;;  %v15873_v45 = vld [vmem:[#allocation19_spill] sm:$0xff] }
 0x18d   : > { %8320 = vpush %v1009_v30  ;;  %v1025_v51 = vadd.f32 %v1024_v29, %v1023_v42  ;;  %v581_v62 = vpop.permute.xlu0 %580  ;;  %v296_v29 = vmul.f32 %v15866_v46, %v266_v48  ;;  %v15871_v46 = vld [vmem:[#allocation17_spill] sm:$0xff] }
 0x18e   : > { %v595_v36 = vmul.f32 %v581_v62, %v8717_v10  ;;  %v596_v58 = vmul.f32 %v581_v62, %v8724_v11  ;;  %v598_v6 = vmul.f32 %v581_v62, %v15857_v5 }
 0x18f   : > { %8322 = vpush %v1025_v51  ;;  %v343_v22 = vpop.permute.xlu1 %342 }
 0x190   : > { %v373_v35 = vmul.f32 %v15868_v12, %v343_v22  ;;  %v374_v59 = vmul.f32 %v15869_v54, %v343_v22  ;;  %v375_v1 = vmul.f32 %v9183_v24, %v343_v22  ;;  %v376_v51 = vmul.f32 %v9186_v16, %v343_v22  ;;  %v15872_v22 = vld [vmem:[#allocation18_spill] sm:$0xff] }
 0x191   : > { %v597_v24 = vmul.f32 %v581_v62, %v8768_v17 }
 0x192   : > { %v658_v42 = vpop.permute.xlu0 %657  ;;  %v389_v12 = vadd.f32 %v373_v35, %v296_v29  ;;  %v390_v61 = vadd.f32 %v374_v59, %v297_v26  ;;  %v15874_v26 = vld [vmem:[#allocation20_spill] sm:$0xff] }
 0x193   : > { %v9467_v13 = vmul.f32 %v9292_v47, %v658_v42 }
 0x194   : > { %v428_v2 = vpop.permute.xlu1 %427 }
 0x195   : > { %v458_v39 = vmul.f32 %v15870_v41, %v428_v2  ;;  %v459_v50 = vmul.f32 %v15871_v46, %v428_v2  ;;  %v460_v16 = vmul.f32 %v9219_v20, %v428_v2  ;;  %v461_v32 = vmul.f32 %v9222_v25, %v428_v2 }
 0x197   : > { %v9447_v4 = vpop.permute.xlu0 %831  ;;  %v475_v2 = vadd.f32 %v459_v50, %v386_v44  ;;  %v477_v7 = vadd.f32 %v461_v32, %v388_v21  ;;  %v15879_v32 = vld [vmem:[#allocation23_spill] sm:$0xff] }
 0x198   : > { %v432_v31 = vpop.permute.xlu1 %431  ;;  %v862_v44 = vmul.f32 %v15877_v33, %v9447_v4 }
 0x199   : > { %v462_v49 = vmul.f32 %v15870_v41, %v432_v31  ;;  %v463_v62 = vmul.f32 %v15871_v46, %v432_v31  ;;  %v464_v35 = vmul.f32 %v9219_v20, %v432_v31  ;;  %v9464_v41 = vmul.f32 %v9284_v56, %v658_v42 }
 0x19a   : > { %v476_v20 = vadd.f32 %v460_v16, %v387_v43 }
 0x19b   : > { %15876 = vst [vmem:[#allocation13_spill] sm:$0xff] %v9464_v41 }
 0x19c   : > { %v9475_v16 = vpop.permute.xlu0 %916 }
 0x19d   : > { %v517_v18 = vpop.permute.xlu1 %516 }
 0x19e   : > { %v547_v14 = vmul.f32 %v15872_v22, %v517_v18  ;;  %v548_v38 = vmul.f32 %v15873_v45, %v517_v18  ;;  %v549_v59 = vmul.f32 %v9227_v9, %v517_v18 }
 0x1a0   : > { %v564_v50 = vadd.f32 %v548_v38, %v475_v2  ;;  %v565_v15 = vadd.f32 %v549_v59, %v476_v20 }
 0x1a1   : > { %v9409_v60 = vpop.permute.xlu1 %520 }
 0x1a2   : > { %v551_v41 = vmul.f32 %v15872_v22, %v9409_v60  ;;  %v552_v43 = vmul.f32 %v15873_v45, %v9409_v60  ;;  %v553_v21 = vmul.f32 %v9227_v9, %v9409_v60 }
 0x1a6   : > { %v9415_v27 = vpop.permute.xlu1 %584 }
 0x1a7   : > { %v599_v9 = vmul.f32 %v9415_v27, %v8717_v10  ;;  %v601_v10 = vmul.f32 %v9415_v27, %v8768_v17  ;;  %v864_v17 = vmul.f32 %v9328_v57, %v9447_v4 }
 0x1ab   : > { %v9417_v53 = vpop.permute.xlu1 %653 }
 0x1ac   : > { %v686_v22 = vmul.f32 %v9284_v56, %v9417_v53 }
 0x1b0   : > { %v9430_v30 = vpop.permute.xlu1 %742 }
 0x1b1   : > { %v775_v56 = vmul.f32 %v9305_v40, %v9430_v30 }
 0x1be   : > { %s8321_s11 = spop %8320 }
 0x1bf   : > { %s9411_s12 = smul.f32 0.00024414063, %s8321_s11 }
 0x1c0   : > { %s8323_s13 = spop %8322 }
 0x1c1   : > { %s1033_s14 = smul.f32 %s9411_s12, %s9411_s12 }
 0x1c2   : > { %s1032_s17 = smul.f32 0.00024414063, %s8323_s13 }
 0x1c4   : > { %s1034_s18 = ssub.f32 %s1032_s17, %s1033_s14 }
 0x1c6   : > { %s1040_s19 = sadd.f32 1e-05, %s1034_s18 }
 0x1c8   : > { %v1041_v63 = vstv %s1040_s19 }
 0x1c9   : > { %8547 = vrsqrt.f32 %v1041_v63  ;;  %v298_v63 = vmul.f32 %v9202_v19, %v266_v48  ;;  %v392_v19 = vadd.f32 %v376_v51, %v299_v3  ;;  %v474_v48 = vadd.f32 %v458_v39, %v385_v0 }
 0x1ca   : > { %v9456_v51 = vmul.f32 %v15874_v26, %v658_v42  ;;  %v465_v0 = vmul.f32 %v9222_v25, %v432_v31  ;;  %v550_v39 = vmul.f32 %v9230_v34, %v517_v18  ;;  %v478_v25 = vadd.f32 %v462_v49, %v389_v12 }
 0x1cb   : > { %v391_v54 = vadd.f32 %v375_v1, %v298_v63  ;;  %v9453_v1 = vpop.permute.xlu1 %746  ;;  %v15875_v63 = vld [vmem:[#allocation21_spill] sm:$0xff]  ;;  %v563_v46 = vadd.f32 %v547_v14, %v474_v48  ;;  %v479_v31 = vadd.f32 %v463_v62, %v390_v61  ;;  %v684_v12 = vmul.f32 %v15874_v26, %v9417_v53 }
 0x1cc   : > { %v9461_v3 = vmul.f32 %v15875_v63, %v658_v42  ;;  %v481_v52 = vadd.f32 %v465_v0, %v392_v19  ;;  %v566_v55 = vadd.f32 %v550_v39, %v477_v7  ;;  %v554_v42 = vmul.f32 %v9230_v34, %v9409_v60 }
 0x1cd   : > { %v480_v18 = vadd.f32 %v464_v35, %v391_v54  ;;  %v611_v49 = vadd.f32 %v595_v36, %v563_v46  ;;  %v612_v7 = vadd.f32 %v596_v58, %v564_v50  ;;  %v685_v54 = vmul.f32 %v15875_v63, %v9417_v53  ;;  %v15878_v36 = vld [vmem:[#allocation22_spill] sm:$0xff] }
 0x1ce   : > { %v687_v14 = vmul.f32 %v9292_v47, %v9417_v53  ;;  %v600_v34 = vmul.f32 %v9415_v27, %v8724_v11  ;;  %v613_v60 = vadd.f32 %v597_v24, %v565_v15  ;;  %v773_v19 = vmul.f32 %v15878_v36, %v9430_v30  ;;  %v977_v15 = vpop.permute.xlu0 %976 }
 0x1cf   : > { %v836_v61 = vpop.permute.xlu1 %835  ;;  %v614_v58 = vadd.f32 %v598_v6, %v566_v55  ;;  %v774_v48 = vmul.f32 %v15879_v32, %v9430_v30  ;;  %v776_v47 = vmul.f32 %v9308_v8, %v9430_v30  ;;  %v567_v53 = vadd.f32 %v551_v41, %v478_v25  ;;  %v15880_v30 = vld [vmem:[#allocation25_spill] sm:$0xff]  ;;  %v15882_v25 = vld [vmem:[#allocation27_spill] sm:$0xff] }
 0x1d0   : > { %v568_v45 = vadd.f32 %v552_v43, %v479_v31  ;;  %v700_v11 = vadd.f32 %v684_v12, %v611_v49  ;;  %v569_v24 = vadd.f32 %v553_v21, %v480_v18  ;;  %v701_v38 = vadd.f32 %v685_v54, %v612_v7 }
 0x1d1   : > { %v702_v62 = vadd.f32 %v686_v22, %v613_v60  ;;  %v703_v55 = vadd.f32 %v687_v14, %v614_v58  ;;  %v602_v6 = vmul.f32 %v9415_v27, %v15857_v5  ;;  %v615_v35 = vadd.f32 %v599_v9, %v567_v53  ;;  %v15881_v5 = vld [vmem:[#allocation26_spill] sm:$0xff] }
 0x1d2   : > { %v616_v59 = vadd.f32 %v600_v34, %v568_v45  ;;  %v863_v2 = vmul.f32 %v15880_v30, %v9447_v4  ;;  %v790_v0 = vadd.f32 %v774_v48, %v701_v38  ;;  %v865_v41 = vmul.f32 %v9331_v28, %v9447_v4  ;;  %v1069_v50 = vpop.xlane.xlu0 %1068 }
 0x1d3   : > { %v913_v26 = vpop.permute.xlu1 %912  ;;  %v791_v39 = vadd.f32 %v775_v56, %v702_v62  ;;  %v792_v63 = vadd.f32 %v776_v47, %v703_v55  ;;  %v570_v20 = vadd.f32 %v554_v42, %v481_v52  ;;  %v617_v46 = vadd.f32 %v601_v10, %v569_v24 }
 0x1d4   : > { %v943_v27 = vmul.f32 %v15881_v5, %v913_v26  ;;  %v944_v31 = vmul.f32 %v15882_v25, %v913_v26  ;;  %v945_v18 = vmul.f32 %v9349_v23, %v913_v26  ;;  %v946_v43 = vmul.f32 %v9352_v37, %v913_v26 }
 0x1d5   : > { %v618_v21 = vadd.f32 %v602_v6, %v570_v20  ;;  %v704_v49 = vadd.f32 %v9456_v51, %v615_v35  ;;  %v705_v12 = vadd.f32 %v9461_v3, %v616_v59  ;;  %v879_v54 = vadd.f32 %v863_v2, %v790_v0 }
 0x1d6   : > { %v8548_v29 = vpop.eup %8547  ;;  %v880_v22 = vadd.f32 %v864_v17, %v791_v39  ;;  %v881_v4 = vadd.f32 %v865_v41, %v792_v63  ;;  %v1070_v52 = vrot.slane %v1069_v50, 4  ;;  %v777_v42 = vmul.f32 %v15878_v36, %v9453_v1 }
 0x1d7   : > { %8324 = vpush %v8548_v29  ;;  %v789_v29 = vadd.f32 %v773_v19, %v700_v11  ;;  %v778_v14 = vmul.f32 %v15879_v32, %v9453_v1  ;;  %v779_v9 = vmul.f32 %v9305_v40, %v9453_v1  ;;  %v780_v34 = vmul.f32 %v9308_v8, %v9453_v1  ;;  %v15883_v19 = vld [vmem:[#allocation13_spill] sm:$0xff] }
 0x1d8   : > { %v960_v60 = vadd.f32 %v944_v31, %v879_v54  ;;  %v961_v3 = vadd.f32 %v945_v18, %v880_v22  ;;  %v706_v58 = vadd.f32 %v15883_v19, %v617_v46  ;;  %v707_v48 = vadd.f32 %v9467_v13, %v618_v21 }
 0x1d9   : > { %v878_v7 = vadd.f32 %v862_v44, %v789_v29  ;;  %v962_v44 = vadd.f32 %v946_v43, %v881_v4  ;;  %v866_v56 = vmul.f32 %v15877_v33, %v836_v61  ;;  %v868_v36 = vmul.f32 %v9328_v57, %v836_v61 }
 0x1da   : > { %v867_v32 = vmul.f32 %v15880_v30, %v836_v61  ;;  %v869_v47 = vmul.f32 %v9331_v28, %v836_v61  ;;  %v1071_v40 = vadd.f32 %v1070_v52, %v1069_v50  ;;  %v793_v53 = vadd.f32 %v777_v42, %v704_v49 }
 0x1db   : > { %v959_v51 = vadd.f32 %v943_v27, %v878_v7  ;;  %v794_v45 = vadd.f32 %v778_v14, %v705_v12  ;;  %v795_v8 = vadd.f32 %v779_v9, %v706_v58  ;;  %v796_v1 = vadd.f32 %v780_v34, %v707_v48  ;;  %v15884_v58 = vld [vmem:[#allocation28_spill] sm:$0xff] }
 0x1dc   : > { %v9533_v11 = vadd.f32 %v977_v15, %v960_v60  ;;  %v9535_v24 = vadd.f32 %v977_v15, %v961_v3  ;;  %v9537_v13 = vadd.f32 %v977_v15, %v962_v44  ;;  %v882_v33 = vadd.f32 %v866_v56, %v793_v53  ;;  %v15885_v56 = vld [vmem:[#allocation29_spill] sm:$0xff] }
 0x1dd   : > { %v9531_v10 = vadd.f32 %v977_v15, %v959_v51  ;;  %v884_v38 = vadd.f32 %v868_v36, %v795_v8  ;;  %v947_v57 = vmul.f32 %v15881_v5, %v9475_v16  ;;  %v885_v62 = vadd.f32 %v869_v47, %v796_v1 }
 0x1de   : > { %v883_v61 = vadd.f32 %v867_v32, %v794_v45  ;;  %v1072_v55 = vrot.slane %v1071_v40, 2  ;;  %v948_v6 = vmul.f32 %v15882_v25, %v9475_v16  ;;  %v949_v35 = vmul.f32 %v9349_v23, %v9475_v16  ;;  %v15886_v32 = vld [vmem:[#allocation30_spill] sm:$0xff] }
 0x1df   : > { %v950_v59 = vmul.f32 %v9352_v37, %v9475_v16  ;;  %v1193_v29 = vmul.f32 %v9535_v24, %v9535_v24  ;;  %v1194_v26 = vmul.f32 %v9537_v13, %v9537_v13  ;;  %v1143_v30 = vmul.f32 %v9531_v10, %v9531_v10 }
 0x1e0   : > { %v1144_v2 = vmul.f32 %v9533_v11, %v9533_v11  ;;  %v965_v39 = vadd.f32 %v949_v35, %v884_v38  ;;  %v963_v63 = vadd.f32 %v947_v57, %v882_v33  ;;  %v964_v17 = vadd.f32 %v948_v6, %v883_v61  ;;  %v15888_v57 = vld [vmem:[#allocation32_spill] sm:$0xff]  ;;  %v15889_v61 = vld [vmem:[#allocation33_spill] sm:$0xff] }
 0x1e1   : > { %v966_v41 = vadd.f32 %v950_v59, %v885_v62  ;;  %v1073_v37 = vadd.f32 %v1072_v55, %v1071_v40  ;;  %v1131_v46 = vadd.f32 %v9533_v11, %v9531_v10  ;;  %v1197_v25 = vadd.f32 %v1194_v26, %v1193_v29  ;;  %v15887_v40 = vld [vmem:[#allocation31_spill] sm:$0xff]  ;;  %v9588_v62 = vld [vmem:[%s15412_s2 + $0x8] sm:$0xff] }
 0x1e2   : > { %v1147_v31 = vadd.f32 %v1144_v2, %v1143_v30  ;;  %v1181_v34 = vadd.f32 %v9537_v13, %v9535_v24  ;;  %v1035_v19 = vstv %s9411_s12  ;;  %v8640_v55 = vmov 15  }
 0x1e3   : > { %v1074_v7 = vrot.slane %v1073_v37, 1  ;;  %v1036_v48 = vsub.f32 %v15884_v58, %v1035_v19  ;;  %v1037_v36 = vsub.f32 %v15885_v56, %v1035_v19  ;;  %v1038_v47 = vsub.f32 %v15886_v32, %v1035_v19 }
 0x1e4   : > { %v1039_v53 = vsub.f32 %v15887_v40, %v1035_v19  ;;  %v15890_v40 = vld [vmem:[#allocation7_spill] sm:$0xff] }
 0x1e5   : > { %v1075_v51 = vadd.f32 %v1074_v7, %v1073_v37 }
 0x1f0   : > { %v1053_v28 = vpop.xlane.xlu1 %1052 }
 0x1f1   : > { %v1054_v15 = vrot.slane %v1053_v28, 4 }
 0x1f3   : > { %v1055_v0 = vadd.f32 %v1054_v15, %v1053_v28  ;;  %v9594_v28 = vld [vmem:[%s15412_s2] sm:$0xff] }
 0x1f4   : > { %v981_v23 = vpop.permute.xlu1 %980 }
 0x1f5   : > { %v9555_v16 = vadd.f32 %v981_v23, %v965_v39  ;;  %v9557_v20 = vadd.f32 %v981_v23, %v963_v63  ;;  %v1056_v50 = vrot.slane %v1055_v0, 2  ;;  %v9561_v5 = vadd.f32 %v981_v23, %v964_v17 }
 0x1f6   : > { %v9563_v27 = vadd.f32 %v981_v23, %v966_v41 }
 0x1f7   : > { %v1132_v18 = vadd.f32 %v1131_v46, %v9557_v20  ;;  %v1057_v43 = vadd.f32 %v1056_v50, %v1055_v0  ;;  %v1195_v21 = vmul.f32 %v9555_v16, %v9555_v16  ;;  %v1145_v49 = vmul.f32 %v9557_v20, %v9557_v20 }
 0x1f8   : > { %v1196_v12 = vmul.f32 %v9563_v27, %v9563_v27  ;;  %v1146_v9 = vmul.f32 %v9561_v5, %v9561_v5  ;;  %v1182_v3 = vadd.f32 %v1181_v34, %v9555_v16 }
 0x1f9   : > { %v1133_v54 = vadd.f32 %v1132_v18, %v9561_v5  ;;  %v1058_v22 = vrot.slane %v1057_v43, 1  ;;  %v1198_v4 = vadd.f32 %v1197_v25, %v1195_v21  ;;  %v1148_v52 = vadd.f32 %v1147_v31, %v1145_v49 }
 0x1fa   : > { %v1183_v44 = vadd.f32 %v1182_v3, %v9563_v27 }
 0x1fb   : > { %1134 = vadd.xlane.f32.xlu0 %v1133_v54  ;;  %v1059_v42 = vadd.f32 %v1058_v22, %v1057_v43  ;;  %v1199_v14 = vadd.f32 %v1198_v4, %v1196_v12  ;;  %v1149_v60 = vadd.f32 %v1148_v52, %v1146_v9 }
 0x1fd   : > { %8326 = vpush %v1059_v42  ;;  %1200 = vadd.xlane.f32.xlu1 %v1199_v14 }
 0x1fe   : > { %8328 = vpush %v1075_v51 }
 0x1ff   : > { %1150 = vadd.xlane.f32.xlu0 %v1149_v60 }
 0x203   : > { %1184 = vadd.xlane.f32.xlu0 %v1183_v44 }
 0x208   : > { %s8325_s20 = spop %8324 }
 0x209   : > { %v1044_v45 = vstv %s8325_s20 }
 0x20a   : > { %v1045_v8 = vmul.f32 %v1044_v45, %v1036_v48  ;;  %v1046_v1 = vmul.f32 %v1044_v45, %v1037_v36  ;;  %v1047_v33 = vmul.f32 %v1044_v45, %v1038_v47  ;;  %v1048_v38 = vmul.f32 %v1044_v45, %v1039_v53 }
 0x20e   : > { %1232 = vperm.xlu1 %8516, %v15888_v57  }
 0x212   : > { %1104 = vperm.xlu1 %8516, %v9588_v62  }
 0x216   : > { %1100 = vperm.xlu1 %8516, %v9594_v28  }
 0x219   : > { %1236 = vperm.xlu0 %8515, %v15889_v61  }
 0x21a   : > { %8518 = vset.pattern.permute.xlu1 %v8640_v55 }
 0x21b   : > { %1116 = vperm.xlu1 %8518, %v9594_v28  }
 0x21d   : > { %8517 = vset.pattern.permute.xlu0 %v8640_v55 }
 0x21e   : > { %1252 = vperm.xlu0 %8517, %v15889_v61  }
 0x222   : > { %1248 = vperm.xlu0 %8517, %v15888_v57  }
 0x226   : > { %1120 = vperm.xlu0 %8517, %v9588_v62  }
 0x22e   : > { %s8327_s7 = spop %8326 }
 0x22f   : > { %s9602_s8 = smul.f32 0.00024414063, %s8327_s7  ;;  %s8329_s9 = spop %8328 }
 0x230   : > { %s1082_s10 = smul.f32 0.00024414063, %s8329_s9 }
 0x231   : > { %s1083_s11 = smul.f32 %s9602_s8, %s9602_s8  ;;  %v1085_v32 = vstv %s9602_s8 }
 0x232   : > { %v1088_v53 = vsub.f32 %v15890_v40, %v1085_v32 }
 0x233   : > { %s1084_s12 = ssub.f32 %s1082_s10, %s1083_s11 }
 0x235   : > { %s1090_s13 = sadd.f32 1e-05, %s1084_s12 }
 0x237   : > { %v1091_v6 = vstv %s1090_s13 }
 0x238   : > { %8549 = vrsqrt.f32 %v1091_v6 }
 0x245   : > { %v8550_v35 = vpop.eup %8549 }
 0x246   : > { %8330 = vpush %v8550_v35  ;;  %v15892_v35 = vld [vmem:[#allocation9_spill] sm:$0xff] }
 0x277   : > { %s8331_s14 = spop %8330 }
 0x278   : > { %v1094_v47 = vstv %s8331_s14 }
 0x279   : > { %v1097_v45 = vmul.f32 %v1094_v47, %v1088_v53 }
 0x284   : > { %v1135_v59 = vpop.xlane.xlu0 %1134 }
 0x285   : > { %v1136_v15 = vrot.slane %v1135_v59, 4 }
 0x286   : > { %v9606_v29 = vpop.xlane.xlu1 %1200 }
 0x287   : > { %v1137_v26 = vadd.f32 %v1136_v15, %v1135_v59  ;;  %v1086_v59 = vsub.f32 %v15892_v35, %v1085_v32 }
 0x288   : > { %v1151_v30 = vpop.xlane.xlu0 %1150 }
 0x289   : > { %v1152_v2 = vrot.slane %v1151_v30, 4  ;;  %v1138_v0 = vrot.slane %v1137_v26, 2 }
 0x28a   : > { %v9608_v39 = vpop.permute.xlu1 %1232 }
 0x28b   : > { %v1153_v63 = vadd.f32 %v1152_v2, %v1151_v30  ;;  %v1139_v23 = vadd.f32 %v1138_v0, %v1137_v26  ;;  %v1202_v26 = vrot.slane %v9606_v29, 4  ;;  %v1095_v30 = vmul.f32 %v1094_v47, %v1086_v59 }
 0x28c   : > { %v9612_v46 = vpop.xlane.xlu0 %1184 }
 0x28d   : > { %v1140_v17 = vrot.slane %v1139_v23, 1  ;;  %v1154_v41 = vrot.slane %v1153_v63, 2  ;;  %v1186_v15 = vrot.slane %v9612_v46, 4 }
 0x28e   : > { %v9610_v37 = vpop.permute.xlu1 %1104 }
 0x28f   : > { %v1141_v50 = vadd.f32 %v1140_v17, %v1139_v23  ;;  %v1155_v25 = vadd.f32 %v1154_v41, %v1153_v63  ;;  %v1111_v51 = vmul.f32 %v9610_v37, %v1047_v33  ;;  %v1112_v60 = vmul.f32 %v9610_v37, %v1048_v38  ;;  %v15894_v63 = vld [vmem:[#allocation34_spill] sm:$0xff] }
 0x290   : > { %v1113_v33 = vmul.f32 %v9610_v37, %v1097_v45  ;;  %v1089_v23 = vsub.f32 %v15894_v63, %v1085_v32  ;;  %v1187_v17 = vadd.f32 %v1186_v15, %v9612_v46 }
 0x291   : > { %8332 = vpush %v1141_v50  ;;  %v1156_v18 = vrot.slane %v1155_v25, 1  ;;  %v1203_v50 = vadd.f32 %v1202_v26, %v9606_v29 }
 0x292   : > { %v9614_v31 = vpop.permute.xlu1 %1100 }
 0x293   : > { %v1157_v43 = vadd.f32 %v1156_v18, %v1155_v25  ;;  %v1107_v49 = vmul.f32 %v9614_v31, %v1045_v8  ;;  %v1108_v12 = vmul.f32 %v9614_v31, %v1046_v1  ;;  %v15891_v8 = vld [vmem:[#allocation11_spill] sm:$0xff]  ;;  %v1109_v41 = vmul.f32 %v9614_v31, %v1095_v30 }
 0x294   : > { %v9616_v21 = vpop.permute.xlu0 %1236  ;;  %v1087_v1 = vsub.f32 %v15891_v8, %v1085_v32  ;;  %v1098_v25 = vmul.f32 %v1094_v47, %v1089_v23 }
 0x295   : > { %8334 = vpush %v1157_v43 }
 0x296   : > { %v9620_v7 = vpop.permute.xlu1 %1116  ;;  %v1096_v38 = vmul.f32 %v1094_v47, %v1087_v1  ;;  %v1114_v46 = vmul.f32 %v9610_v37, %v1098_v25 }
 0x297   : > { %v1123_v54 = vadd.f32 %v9620_v7, %v1107_v49  ;;  %v1124_v22 = vadd.f32 %v9620_v7, %v1108_v12  ;;  %v1125_v18 = vadd.f32 %v9620_v7, %v1109_v41  ;;  %v1204_v12 = vrot.slane %v1203_v50, 2 }
 0x298   : > { %v1110_v61 = vmul.f32 %v9614_v31, %v1096_v38  ;;  %v1188_v31 = vrot.slane %v1187_v17, 2 }
 0x299   : > { %v1264_v4 = vmul.f32 0.2, %v1124_v22  ;;  %v9624_v52 = vpop.permute.xlu0 %1252  ;;  %v1263_v42 = vmul.f32 0.2, %v1123_v54 }
 0x29a   : > { %v1126_v55 = vadd.f32 %v9620_v7, %v1110_v61  ;;  %v1189_v7 = vadd.f32 %v1188_v31, %v1187_v17 }
 0x29b   : > { %v9626_v14 = vmax.f32 %v1124_v22, %v1264_v4  ;;  %v9632_v34 = vmax.f32 %v1123_v54, %v1263_v42  ;;  %v1265_v54 = vmul.f32 0.2, %v1125_v18  ;;  %v1205_v22 = vadd.f32 %v1204_v12, %v1203_v50 }
 0x29c   : > { %v1266_v2 = vmul.f32 0.2, %v1126_v55  ;;  %v1190_v42 = vrot.slane %v1189_v7, 1 }
 0x29d   : > { %1755 = vrot.lane.b32.xlu1 %v9626_v14, %s8630_s29  ;;  %v9630_v9 = vpop.permute.xlu0 %1248  ;;  %v9719_v37 = vmax.f32 %v1125_v18, %v1265_v54 }
 0x29e   : > { %v9707_v43 = vmax.f32 %v1126_v55, %v1266_v2 }
 0x29f   : > { %15895 = vst [vmem:[#allocation12_spill] sm:$0xff] %v9719_v37 }
 0x2a1   : > { %1747 = vrot.lane.b32.xlu1 %v9632_v34, %s8630_s29  ;;  %v9638_v3 = vpop.permute.xlu0 %1120 }
 0x2a2   : > { %v1127_v44 = vadd.f32 %v9638_v3, %v1111_v51  ;;  %v1128_v19 = vadd.f32 %v9638_v3, %v1112_v60  ;;  %v1129_v57 = vadd.f32 %v9638_v3, %v1113_v33  ;;  %v1130_v29 = vadd.f32 %v9638_v3, %v1114_v46 }
 0x2a3   : > { %v1206_v51 = vrot.slane %v1205_v22, 1 }
 0x2a4   : > { %v1268_v58 = vmul.f32 0.2, %v1128_v19  ;;  %v1267_v48 = vmul.f32 0.2, %v1127_v44  ;;  %v1269_v6 = vmul.f32 0.2, %v1129_v57 }
 0x2a5   : > { %v1270_v4 = vmul.f32 0.2, %v1130_v29 }
 0x2a6   : > { %v9642_v56 = vmax.f32 %v1128_v19, %v1268_v58  ;;  %v9648_v36 = vmax.f32 %v1127_v44, %v1267_v48  ;;  %v9696_v0 = vmax.f32 %v1129_v57, %v1269_v6  ;;  %v1191_v44 = vadd.f32 %v1190_v42, %v1189_v7 }
 0x2a7   : > { %v9725_v60 = vmax.f32 %v1130_v29, %v1270_v4  ;;  %v1207_v19 = vadd.f32 %v1206_v51, %v1205_v22 }
 0x2a8   : > { %1645 = vrot.lane.b32.xlu1 %v9642_v56, %s8627_s28  ;;  %1757 = vrot.lane.b32.xlu0 %v9642_v56, %s8630_s29  ;;  %15893 = vst [vmem:[#allocation14_spill] sm:$0xff] %v9696_v0 }
 0x2ac   : > { %1635 = vrot.lane.b32.xlu1 %v9632_v34, %s8627_s28  ;;  %1749 = vrot.lane.b32.xlu0 %v9648_v36, %s8630_s29 }
 0x2b0   : > { %1497 = vrot.lane.b32.xlu1 %v9642_v56, %s8625_s27  ;;  %1637 = vrot.lane.b32.xlu0 %v9648_v36, %s8627_s28 }
 0x2b4   : > { %1487 = vrot.lane.b32.xlu1 %v9632_v34, %s8625_s27  ;;  %1643 = vrot.lane.b32.xlu0 %v9626_v14, %s8627_s28 }
 0x2b8   : > { %1401 = vrot.lane.b32.xlu1 %v9642_v56, %s8624_s24  ;;  %1489 = vrot.lane.b32.xlu0 %v9648_v36, %s8625_s27 }
 0x2bc   : > { %1391 = vrot.lane.b32.xlu1 %v9632_v34, %s8624_s24  ;;  %1495 = vrot.lane.b32.xlu0 %v9626_v14, %s8625_s27 }
 0x2c0   : > { %1305 = vrot.lane.b32.xlu1 %v9642_v56, %s8623_s23  ;;  %1393 = vrot.lane.b32.xlu0 %v9648_v36, %s8624_s24 }
 0x2c2   : > { %s8333_s17 = spop %8332 }
 0x2c3   : > { %s9680_s18 = smul.f32 0.00024414063, %s8333_s17 }
 0x2c4   : > { %1295 = vrot.lane.b32.xlu1 %v9632_v34, %s8623_s23  ;;  %1399 = vrot.lane.b32.xlu0 %v9626_v14, %s8624_s24 }
 0x2c5   : > { %s1165_s19 = smul.f32 %s9680_s18, %s9680_s18  ;;  %v1167_v58 = vstv %s9680_s18 }
 0x2c6   : > { %s8335_s20 = spop %8334  ;;  %v1168_v48 = vsub.f32 %v9531_v10, %v1167_v58  ;;  %v1169_v32 = vsub.f32 %v9533_v11, %v1167_v58  ;;  %v1170_v47 = vsub.f32 %v9557_v20, %v1167_v58  ;;  %v1171_v40 = vsub.f32 %v9561_v5, %v1167_v58 }
 0x2c7   : > { %s1164_s21 = smul.f32 0.00024414063, %s8335_s20 }
 0x2c8   : > { %2477 = vrot.lane.b32.xlu1 %v9626_v14, %s8636_s6  ;;  %1297 = vrot.lane.b32.xlu0 %v9648_v36, %s8623_s23 }
 0x2c9   : > { %s1166_s22 = ssub.f32 %s1164_s21, %s1165_s19 }
 0x2cb   : > { %s1172_s25 = sadd.f32 1e-05, %s1166_s22 }
 0x2cc   : > { %1765 = vrot.lane.b32.xlu1 %v9696_v0, %s8630_s29  ;;  %1303 = vrot.lane.b32.xlu0 %v9626_v14, %s8623_s23 }
 0x2cd   : > { %v1173_v49 = vstv %s1172_s25 }
 0x2ce   : > { %8551 = vrsqrt.f32 %v1173_v49 }
 0x2d0   : > { %1659 = vrot.lane.b32.xlu1 %v9707_v43, %s8627_s28  ;;  %2479 = vrot.lane.b32.xlu0 %v9642_v56, %s8636_s6 }
 0x2d4   : > { %1511 = vrot.lane.b32.xlu1 %v9707_v43, %s8625_s27  ;;  %2471 = vrot.lane.b32.xlu0 %v9648_v36, %s8636_s6 }
 0x2d8   : > { %1415 = vrot.lane.b32.xlu1 %v9707_v43, %s8624_s24  ;;  %1763 = vrot.lane.b32.xlu0 %v9719_v37, %s8630_s29 }
 0x2db   : > { %v8552_v3 = vpop.eup %8551 }
 0x2dc   : > { %1319 = vrot.lane.b32.xlu1 %v9707_v43, %s8623_s23  ;;  %1661 = vrot.lane.b32.xlu0 %v9725_v60, %s8627_s28  ;;  %8336 = vpush %v8552_v3 }
 0x2dd   : > { %8338 = vpush %v1191_v44 }
 0x2de   : > { %8340 = vpush %v1207_v19 }
 0x2e0   : > { %2487 = vrot.lane.b32.xlu1 %v9696_v0, %s8636_s6  ;;  %1513 = vrot.lane.b32.xlu0 %v9725_v60, %s8625_s27 }
 0x2e4   : > { %1417 = vrot.lane.b32.xlu0 %v9725_v60, %s8624_s24 }
 0x2e8   : > { %1321 = vrot.lane.b32.xlu0 %v9725_v60, %s8623_s23 }
 0x2ec   : > { %2485 = vrot.lane.b32.xlu0 %v9719_v37, %s8636_s6 }
 0x30d   : > { %s8337_s26 = spop %8336 }
 0x30e   : > { %v1176_v53 = vstv %s8337_s26  ;;  %s8339_s7 = spop %8338 }
 0x30f   : > { %v1177_v45 = vmul.f32 %v1176_v53, %v1168_v48  ;;  %v1178_v8 = vmul.f32 %v1176_v53, %v1169_v32  ;;  %v1179_v1 = vmul.f32 %v1176_v53, %v1170_v47  ;;  %v1180_v33 = vmul.f32 %v1176_v53, %v1171_v40  ;;  %s9746_s8 = smul.f32 0.00024414063, %s8339_s7  ;;  %s8341_s9 = spop %8340  ;;  %v9792_v25 = vpop.permute.xlu1 %1755 }
 0x310   : > { %s1214_s10 = smul.f32 0.00024414063, %s8341_s9 }
 0x311   : > { %v1239_v10 = vmul.f32 %v9608_v39, %v1177_v45  ;;  %v1240_v11 = vmul.f32 %v9608_v39, %v1178_v8  ;;  %v1243_v20 = vmul.f32 %v9616_v21, %v1179_v1  ;;  %v1244_v5 = vmul.f32 %v9616_v21, %v1180_v33  ;;  %s1215_s11 = smul.f32 %s9746_s8, %s9746_s8 }
 0x312   : > { %v1217_v3 = vstv %s9746_s8 }
 0x313   : > { %v1255_v38 = vadd.f32 %v9630_v9, %v1239_v10  ;;  %v1256_v57 = vadd.f32 %v9630_v9, %v1240_v11  ;;  %v1260_v61 = vadd.f32 %v9624_v52, %v1244_v5  ;;  %s1216_s12 = ssub.f32 %s1214_s10, %s1215_s11  ;;  %v1259_v55 = vadd.f32 %v9624_v52, %v1243_v20  ;;  %v9802_v49 = vpop.permute.xlu1 %1747 }
 0x314   : > { %v1218_v58 = vsub.f32 %v9535_v24, %v1217_v3  ;;  %v1220_v48 = vsub.f32 %v9555_v16, %v1217_v3  ;;  %v1221_v24 = vsub.f32 %v9563_v27, %v1217_v3 }
 0x315   : > { %v1272_v6 = vmul.f32 0.2, %v1256_v57  ;;  %v1276_v35 = vmul.f32 0.2, %v1260_v61  ;;  %s1222_s13 = sadd.f32 1e-05, %s1216_s12 }
 0x316   : > { %v1271_v59 = vmul.f32 0.2, %v1255_v38  ;;  %v1275_v26 = vmul.f32 0.2, %v1259_v55 }
 0x317   : > { %v9758_v15 = vmax.f32 %v1256_v57, %v1272_v6  ;;  %v9760_v30 = vmax.f32 %v1260_v61, %v1276_v35  ;;  %v1223_v2 = vstv %s1222_s13 }
 0x318   : > { %8553 = vrsqrt.f32 %v1223_v2  ;;  %v9766_v63 = vmax.f32 %v1255_v38, %v1271_v59  ;;  %v9768_v23 = vmax.f32 %v1259_v55, %v1275_v26  ;;  %v1219_v55 = vsub.f32 %v9537_v13, %v1217_v3 }
 0x319   : > { %1759 = vrot.lane.b32.xlu1 %v9758_v15, %s8630_s29  ;;  %1761 = vrot.lane.b32.xlu0 %v9760_v30, %s8630_s29 }
 0x31a   : > { %v9780_v41 = vpop.permute.xlu0 %1757  ;;  %v9808_v46 = vpop.permute.xlu1 %1645 }
 0x31d   : > { %1751 = vrot.lane.b32.xlu1 %v9766_v63, %s8630_s29  ;;  %1753 = vrot.lane.b32.xlu0 %v9768_v23, %s8630_s29 }
 0x31e   : > { %v9788_v50 = vpop.permute.xlu0 %1749  ;;  %v9818_v12 = vpop.permute.xlu1 %1635 }
 0x31f   : > { %15896 = vst [vmem:[#allocation15_spill] sm:$0xff] %v9788_v50 }
 0x321   : > { %1649 = vrot.lane.b32.xlu1 %v9760_v30, %s8627_s28  ;;  %1641 = vrot.lane.b32.xlu0 %v9768_v23, %s8627_s28 }
 0x322   : > { %v9798_v18 = vpop.permute.xlu0 %1637  ;;  %v9828_v29 = vpop.permute.xlu1 %1497 }
 0x325   : > { %1639 = vrot.lane.b32.xlu1 %v9766_v63, %s8627_s28  ;;  %v8554_v17 = vpop.eup %8553  ;;  %1647 = vrot.lane.b32.xlu0 %v9758_v15, %s8627_s28 }
 0x326   : > { %8342 = vpush %v8554_v17  ;;  %v9810_v31 = vpop.permute.xlu0 %1643  ;;  %v9836_v22 = vpop.permute.xlu1 %1487 }
 0x329   : > { %1501 = vrot.lane.b32.xlu1 %v9760_v30, %s8625_s27  ;;  %1493 = vrot.lane.b32.xlu0 %v9768_v23, %s8625_s27 }
 0x32a   : > { %v9820_v54 = vpop.permute.xlu0 %1489  ;;  %v9840_v42 = vpop.permute.xlu1 %1401 }
 0x32b   : > { %15897 = vst [vmem:[#allocation16_spill] sm:$0xff] %v9840_v42 }
 0x32d   : > { %1491 = vrot.lane.b32.xlu1 %v9766_v63, %s8625_s27  ;;  %1499 = vrot.lane.b32.xlu0 %v9758_v15, %s8625_s27 }
 0x32e   : > { %v9830_v7 = vpop.permute.xlu0 %1495  ;;  %v9845_v44 = vpop.permute.xlu1 %1391 }
 0x32f   : > { %15899 = vst [vmem:[#allocation18_spill] sm:$0xff] %v9845_v44 }
 0x331   : > { %1405 = vrot.lane.b32.xlu1 %v9760_v30, %s8624_s24  ;;  %1397 = vrot.lane.b32.xlu0 %v9768_v23, %s8624_s24 }
 0x332   : > { %v9838_v4 = vpop.permute.xlu0 %1393  ;;  %v9851_v53 = vpop.permute.xlu1 %1305 }
 0x333   : > { %15901 = vst [vmem:[#allocation20_spill] sm:$0xff] %v9851_v53 }
 0x335   : > { %1395 = vrot.lane.b32.xlu1 %v9766_v63, %s8624_s24  ;;  %1403 = vrot.lane.b32.xlu0 %v9758_v15, %s8624_s24 }
 0x336   : > { %v9842_v51 = vpop.permute.xlu0 %1399  ;;  %v9860_v20 = vpop.permute.xlu1 %1295 }
 0x337   : > { %15898 = vst [vmem:[#allocation17_spill] sm:$0xff] %v9842_v51  ;;  %15903 = vst [vmem:[#allocation24_spill] sm:$0xff] %v9860_v20 }
 0x339   : > { %1309 = vrot.lane.b32.xlu1 %v9760_v30, %s8623_s23  ;;  %1301 = vrot.lane.b32.xlu0 %v9768_v23, %s8623_s23 }
 0x33a   : > { %v9847_v19 = vpop.permute.xlu0 %1297  ;;  %v9874_v35 = vpop.permute.xlu1 %2477 }
 0x33b   : > { %15900 = vst [vmem:[#allocation19_spill] sm:$0xff] %v9847_v19  ;;  %15907 = vst [vmem:[#allocation26_spill] sm:$0xff] %v9874_v35 }
 0x33d   : > { %1299 = vrot.lane.b32.xlu1 %v9766_v63, %s8623_s23  ;;  %1307 = vrot.lane.b32.xlu0 %v9758_v15, %s8623_s23 }
 0x33e   : > { %v9853_v45 = vpop.permute.xlu0 %1303 }
 0x33f   : > { %15902 = vst [vmem:[#allocation21_spill] sm:$0xff] %v9853_v45 }
 0x341   : > { %2481 = vrot.lane.b32.xlu1 %v9758_v15, %s8636_s6  ;;  %2483 = vrot.lane.b32.xlu0 %v9760_v30, %s8636_s6 }
 0x342   : > { %v9862_v5 = vpop.permute.xlu0 %2479 }
 0x343   : > { %15904 = vst [vmem:[#allocation22_spill] sm:$0xff] %v9862_v5 }
 0x345   : > { %2473 = vrot.lane.b32.xlu1 %v9766_v63, %s8636_s6  ;;  %2475 = vrot.lane.b32.xlu0 %v9768_v23, %s8636_s6 }
 0x346   : > { %v9876_v59 = vpop.permute.xlu0 %2471 }
 0x347   : > { %15908 = vst [vmem:[#allocation27_spill] sm:$0xff] %v9876_v59 }
 0x34a   : > { %v9890_v2 = vpop.permute.xlu0 %1763 }
 0x34b   : > { %15910 = vst [vmem:[#allocation28_spill] sm:$0xff] %v9890_v2 }
 0x357   : > { %s8343_s14 = spop %8342 }
 0x358   : > { %v1226_v32 = vstv %s8343_s14 }
 0x359   : > { %v1227_v47 = vmul.f32 %v1226_v32, %v1218_v58  ;;  %v1229_v40 = vmul.f32 %v1226_v32, %v1220_v48  ;;  %v1230_v38 = vmul.f32 %v1226_v32, %v1221_v24  ;;  %v1228_v27 = vmul.f32 %v1226_v32, %v1219_v55  ;;  %v9901_v48 = vpop.permute.xlu0 %1661 }
 0x35b   : > { %v1241_v8 = vmul.f32 %v9608_v39, %v1227_v47  ;;  %v1245_v1 = vmul.f32 %v9616_v21, %v1229_v40  ;;  %v1246_v6 = vmul.f32 %v9616_v21, %v1230_v38  ;;  %v1242_v13 = vmul.f32 %v9608_v39, %v1228_v27  ;;  %v9888_v21 = vpop.permute.xlu1 %1765 }
 0x35c   : > { %15909 = vst [vmem:[#allocation13_spill] sm:$0xff] %v9888_v21 }
 0x35d   : > { %v1257_v33 = vadd.f32 %v9630_v9, %v1241_v8  ;;  %v1261_v10 = vadd.f32 %v9624_v52, %v1245_v1  ;;  %v1262_v26 = vadd.f32 %v9624_v52, %v1246_v6  ;;  %v1258_v17 = vadd.f32 %v9630_v9, %v1242_v13  ;;  %v9917_v40 = vpop.permute.xlu0 %1513 }
 0x35e   : > { %v15491_v9 = vmov 0.0  }
 0x35f   : > { %v1273_v11 = vmul.f32 0.2, %v1257_v33  ;;  %v1277_v16 = vmul.f32 0.2, %v1261_v10  ;;  %v1278_v3 = vmul.f32 0.2, %v1262_v26  ;;  %v9899_v58 = vpop.permute.xlu1 %1659  ;;  %1973 = vmatprep.mubr.f32.mxu0 %v15491_v9  ;;  %2062 = vmatprep.mubr.f32.mxu1 %v15491_v9 }
 0x360   : > { %v1274_v39 = vmul.f32 0.2, %v1258_v17 }
 0x361   : > { %v9864_v57 = vmax.f32 %v1257_v33, %v1273_v11  ;;  %v9866_v61 = vmax.f32 %v1261_v10, %v1277_v16  ;;  %v9897_v52 = vmax.f32 %v1262_v26, %v1278_v3  ;;  %v9925_v1 = vpop.permute.xlu0 %1417 }
 0x362   : > { %v9909_v32 = vmax.f32 %v1258_v17, %v1274_v39  ;;  %15912 = vst [vmem:[#allocation30_spill] sm:$0xff] %v9925_v1 }
 0x363   : > { %15905 = vst [vmem:[#allocation23_spill] sm:$0xff] %v9864_v57  ;;  %15906 = vst [vmem:[#allocation25_spill] sm:$0xff] %v9866_v61  ;;  %1769 = vrot.lane.b32.xlu1 %v9866_v61, %s8630_s29  ;;  %1767 = vrot.lane.b32.xlu0 %v9864_v57, %s8630_s29  ;;  %v9915_v47 = vpop.permute.xlu1 %1511 }
 0x365   : > { %v9937_v10 = vpop.permute.xlu0 %1321 }
 0x366   : > { %15914 = vst [vmem:[#allocation32_spill] sm:$0xff] %v9937_v10 }
 0x367   : > { %2469 = vrot.lane.b32.xlu1 %v9632_v34, %s8636_s6  ;;  %2387 = vrot.lane.b32.xlu0 %v9760_v30, %s8634_s5  ;;  %v9923_v8 = vpop.permute.xlu1 %1415 }
 0x368   : > { %15911 = vst [vmem:[#allocation29_spill] sm:$0xff] %v9923_v8 }
 0x369   : > { %v9945_v11 = vpop.permute.xlu0 %2485 }
 0x36a   : > { %15916 = vst [vmem:[#allocation7_spill] sm:$0xff] %v9945_v11 }
 0x36b   : > { %2385 = vrot.lane.b32.xlu1 %v9758_v15, %s8634_s5  ;;  %2379 = vrot.lane.b32.xlu0 %v9768_v23, %s8634_s5  ;;  %v9935_v33 = vpop.permute.xlu1 %1319 }
 0x36c   : > { %15913 = vst [vmem:[#allocation31_spill] sm:$0xff] %v9935_v33 }
 0x36f   : > { %2377 = vrot.lane.b32.xlu1 %v9766_v63, %s8634_s5  ;;  %2383 = vrot.lane.b32.xlu0 %v9642_v56, %s8634_s5  ;;  %v9943_v24 = vpop.permute.xlu1 %2487 }
 0x370   : > { %15915 = vst [vmem:[#allocation33_spill] sm:$0xff] %v9943_v24 }
 0x373   : > { %2391 = vrot.lane.b32.xlu1 %v9696_v0, %s8634_s5  ;;  %1665 = vrot.lane.b32.xlu0 %v9897_v52, %s8627_s28 }
 0x377   : > { %1663 = vrot.lane.b32.xlu1 %v9909_v32, %s8627_s28  ;;  %2375 = vrot.lane.b32.xlu0 %v9648_v36, %s8634_s5 }
 0x37b   : > { %2381 = vrot.lane.b32.xlu1 %v9626_v14, %s8634_s5  ;;  %1517 = vrot.lane.b32.xlu0 %v9897_v52, %s8625_s27 }
 0x37f   : > { %1515 = vrot.lane.b32.xlu1 %v9909_v32, %s8625_s27  ;;  %2389 = vrot.lane.b32.xlu0 %v9719_v37, %s8634_s5 }
 0x383   : > { %2373 = vrot.lane.b32.xlu1 %v9632_v34, %s8634_s5  ;;  %1421 = vrot.lane.b32.xlu0 %v9897_v52, %s8624_s24 }
 0x387   : > { %1419 = vrot.lane.b32.xlu1 %v9909_v32, %s8624_s24  ;;  %2291 = vrot.lane.b32.xlu0 %v9760_v30, %s8632_s30 }
 0x38b   : > { %2289 = vrot.lane.b32.xlu1 %v9758_v15, %s8632_s30  ;;  %1325 = vrot.lane.b32.xlu0 %v9897_v52, %s8623_s23  ;;  %v9951_v16 = vpop.permute.xlu1 %1759  ;;  %v9953_v38 = vpop.permute.xlu0 %1761 }
 0x38f   : > { %1323 = vrot.lane.b32.xlu1 %v9909_v32, %s8623_s23  ;;  %2283 = vrot.lane.b32.xlu0 %v9768_v23, %s8632_s30  ;;  %v9963_v55 = vpop.permute.xlu1 %1751  ;;  %v9965_v27 = vpop.permute.xlu0 %1753 }
 0x390   : > { %15917 = vst [vmem:[#allocation11_spill] sm:$0xff] %v9965_v27 }
 0x393   : > { %2491 = vrot.lane.b32.xlu1 %v9866_v61, %s8636_s6  ;;  %2489 = vrot.lane.b32.xlu0 %v9864_v57, %s8636_s6  ;;  %v9971_v6 = vpop.permute.xlu1 %1649  ;;  %v9973_v13 = vpop.permute.xlu0 %1641 }
 0x397   : > { %2281 = vrot.lane.b32.xlu1 %v9766_v63, %s8632_s30  ;;  %2287 = vrot.lane.b32.xlu0 %v9642_v56, %s8632_s30  ;;  %v9983_v26 = vpop.permute.xlu1 %1639  ;;  %v9985_v17 = vpop.permute.xlu0 %1647 }
 0x39b   : > { %2395 = vrot.lane.b32.xlu1 %v9866_v61, %s8634_s5  ;;  %2393 = vrot.lane.b32.xlu0 %v9864_v57, %s8634_s5  ;;  %v9991_v3 = vpop.permute.xlu1 %1501  ;;  %v9993_v39 = vpop.permute.xlu0 %1493 }
 0x39f   : > { %2295 = vrot.lane.b32.xlu1 %v9696_v0, %s8632_s30  ;;  %2279 = vrot.lane.b32.xlu0 %v9648_v36, %s8632_s30  ;;  %v10003_v9 = vpop.permute.xlu1 %1491  ;;  %v10005_v35 = vpop.permute.xlu0 %1499 }
 0x3a3   : > { %2299 = vrot.lane.b32.xlu1 %v9866_v61, %s8632_s30  ;;  %2297 = vrot.lane.b32.xlu0 %v9864_v57, %s8632_s30  ;;  %v10011_v11 = vpop.permute.xlu1 %1405  ;;  %v10013_v59 = vpop.permute.xlu0 %1397 }
 0x3a4   : > { %15918 = vst [vmem:[#allocation9_spill] sm:$0xff] %v10011_v11 }
 0x3a7   : > { %2285 = vrot.lane.b32.xlu1 %v9626_v14, %s8632_s30  ;;  %2293 = vrot.lane.b32.xlu0 %v9719_v37, %s8632_s30  ;;  %v10023_v5 = vpop.permute.xlu1 %1395  ;;  %v10025_v24 = vpop.permute.xlu0 %1403 }
 0x3a8   : > { %15919 = vst [vmem:[#allocation34_spill] sm:$0xff] %v10025_v24 }
 0x3ab   : > { %2277 = vrot.lane.b32.xlu1 %v9632_v34, %s8632_s30  ;;  %1777 = vrot.lane.b32.xlu0 %v9897_v52, %s8630_s29  ;;  %v10031_v33 = vpop.permute.xlu1 %1309  ;;  %v10033_v20 = vpop.permute.xlu0 %1301 }
 0x3ac   : > { %15920 = vst [vmem:[#allocation35_spill] sm:$0xff] %v10031_v33  ;;  %15921 = vst [vmem:[#allocation36_spill] sm:$0xff] %v10033_v20  ;;  %v15928_v20 = vld [vmem:[#allocation3_spill] sm:$0xff] }
 0x3af   : > { %1775 = vrot.lane.b32.xlu1 %v9909_v32, %s8630_s29  ;;  %1773 = vrot.lane.b32.xlu0 %v9725_v60, %s8630_s29  ;;  %v10043_v45 = vpop.permute.xlu1 %1299  ;;  %v10045_v10 = vpop.permute.xlu0 %1307 }
 0x3b0   : > { %15922 = vst [vmem:[#allocation37_spill] sm:$0xff] %v10043_v45  ;;  %15923 = vst [vmem:[#allocation38_spill] sm:$0xff] %v10045_v10 }
 0x3b3   : > { %1771 = vrot.lane.b32.xlu1 %v9707_v43, %s8630_s29  ;;  %1657 = vrot.lane.b32.xlu0 %v9866_v61, %s8627_s28  ;;  %v10051_v19 = vpop.permute.xlu1 %2481  ;;  %v10053_v53 = vpop.permute.xlu0 %2483 }
 0x3b4   : > { %15924 = vst [vmem:[#allocation39_spill] sm:$0xff] %v10051_v19  ;;  %15925 = vst [vmem:[#allocation40_spill] sm:$0xff] %v10053_v53  ;;  %v10068_v19 = vsub.s32 5, %v15928_v20 }
 0x3b6   : > { %15929 = vst [vmem:[#allocation43_spill] sm:$0xff] %v10068_v19 }
 0x3b7   : > { %1655 = vrot.lane.b32.xlu1 %v9864_v57, %s8627_s28  ;;  %1653 = vrot.lane.b32.xlu0 %v9696_v0, %s8627_s28  ;;  %v10063_v45 = vpop.permute.xlu1 %2473  ;;  %v10065_v10 = vpop.permute.xlu0 %2475 }
 0x3b8   : > { %15926 = vst [vmem:[#allocation41_spill] sm:$0xff] %v10063_v45  ;;  %15927 = vst [vmem:[#allocation42_spill] sm:$0xff] %v10065_v10  ;;  %v10094_v10 = vld [vmem:[%s15411_s1] sm:$0xff] }
 0x3b9   : > { %v10098_v53 = vrot.slane %v10094_v10, %v10068_v19 }
 0x3bb   : > { %1651 = vrot.lane.b32.xlu1 %v9719_v37, %s8627_s28  ;;  %1509 = vrot.lane.b32.xlu0 %v9866_v61, %s8625_s27  ;;  %15934 = vst [vmem:[#allocation10_spill] sm:$0xff] %v10098_v53 }
 0x3bf   : > { %1507 = vrot.lane.b32.xlu1 %v9864_v57, %s8625_s27  ;;  %1505 = vrot.lane.b32.xlu0 %v9696_v0, %s8625_s27 }
 0x3c3   : > { %1503 = vrot.lane.b32.xlu1 %v9719_v37, %s8625_s27  ;;  %1413 = vrot.lane.b32.xlu0 %v9866_v61, %s8624_s24 }
 0x3c7   : > { %1411 = vrot.lane.b32.xlu1 %v9864_v57, %s8624_s24  ;;  %1409 = vrot.lane.b32.xlu0 %v9696_v0, %s8624_s24 }
 0x3cb   : > { %1407 = vrot.lane.b32.xlu1 %v9719_v37, %s8624_s24  ;;  %1317 = vrot.lane.b32.xlu0 %v9866_v61, %s8623_s23 }
 0x3cf   : > { %1315 = vrot.lane.b32.xlu1 %v9864_v57, %s8623_s23  ;;  %1313 = vrot.lane.b32.xlu0 %v9696_v0, %s8623_s23  ;;  %v10077_v57 = vld [vmem:[%s15411_s1 + $0x8] sm:$0xff] }
 0x3d0   : > { %v10081_v0 = vrot.slane %v10077_v57, %v10068_v19  ;;  %v1789_v19 = vsel %vm627_vm4, %v9963_v55, %v9951_v16 }
 0x3d2   : > { %15930 = vst [vmem:[#allocation44_spill] sm:$0xff] %v10081_v0 }
 0x3d3   : > { %1311 = vrot.lane.b32.xlu1 %v9719_v37, %s8623_s23  ;;  %2499 = vrot.lane.b32.xlu0 %v9897_v52, %s8636_s6  ;;  %v1790_v37 = vsel %vm627_vm4, %v9965_v27, %v9953_v38 }
 0x3d5   : > { %v10083_v61 = vpop.permute.xlu1 %1769  ;;  %v10085_v45 = vpop.permute.xlu0 %1767 }
 0x3d6   : > { %15931 = vst [vmem:[#allocation45_spill] sm:$0xff] %v10083_v61  ;;  %15932 = vst [vmem:[#allocation46_spill] sm:$0xff] %v10085_v45  ;;  %v1786_v33 = vsel %vm627_vm4, %v9953_v38, %v10083_v61  ;;  %v1785_v8 = vsel %vm627_vm4, %v9951_v16, %v10085_v45  ;;  %v1823_v38 = vmul.f32 %v10098_v53, %v1790_v37 }
 0x3d7   : > { %2497 = vrot.lane.b32.xlu1 %v9909_v32, %s8636_s6  ;;  %2495 = vrot.lane.b32.xlu0 %v9725_v60, %s8636_s6  ;;  %v1824_v27 = vmul.f32 %v10081_v0, %v1786_v33  ;;  %v1784_v45 = vsel %vm627_vm4, %v9780_v41, %v9888_v21  ;;  %v1788_v33 = vsel %vm627_vm4, %v9788_v50, %v9780_v41 }
 0x3d8   : > { %v1820_v16 = vmul.f32 %v10081_v0, %v1785_v8  ;;  %v1783_v37 = vsel %vm627_vm4, %v9792_v25, %v9890_v2  ;;  %v1787_v41 = vsel %vm627_vm4, %v9802_v49, %v9792_v25  ;;  %v1816_v8 = vmul.f32 %v10081_v0, %v1784_v45 }
 0x3d9   : > { %v10122_v61 = vpop.permute.xlu1 %2469  ;;  %1917 = vmatprep.subr.mxu0 %v1824_v27  ;;  %v10124_v44 = vpop.permute.xlu0 %2387  ;;  %v1819_v27 = vmul.f32 %v10098_v53, %v1789_v19  ;;  %v1815_v21 = vmul.f32 %v10098_v53, %v1788_v33  ;;  %v1812_v50 = vmul.f32 %v10081_v0, %v1783_v37  ;;  %v1811_v19 = vmul.f32 %v10098_v53, %v1787_v41  ;;  %v15946_v53 = vld [vmem:[#allocation6_spill] sm:$0xff] }
 0x3da   : > { %1918 = vmatpush1.msra.mxu0 %v1823_v38  ;;  %v1678_v33 = vsel %vm490_vm3, %v9973_v13, %v9971_v6  ;;  %v1680_v41 = vsel %vm490_vm3, %v9901_v48, %v9798_v18  ;;  %v10313_v0 = vrot.slane %v10077_v57, %v15946_v53 }
 0x3db   : > { %2493 = vrot.lane.b32.xlu1 %v9707_v43, %s8636_s6  ;;  %2403 = vrot.lane.b32.xlu0 %v9897_v52, %s8634_s5 }
 0x3dc   : > { %1919 = vmatprep.subr.mxu0 %v1820_v16  ;;  %15947 = vst [vmem:[#allocation6_spill] sm:$0xff] %v10313_v0 }
 0x3dd   : > { %1920 = vmatpush1.msra.mxu0 %v1819_v27  ;;  %v10145_v38 = vpop.permute.xlu1 %2385  ;;  %v10147_v2 = vpop.permute.xlu0 %2379 }
 0x3de   : > { %15935 = vst [vmem:[#allocation47_spill] sm:$0xff] %v10147_v2  ;;  %1921 = vmatprep.subr.mxu0 %v1816_v8 }
 0x3df   : > { %1922 = vmatpush1.msra.mxu0 %v1815_v21  ;;  %2401 = vrot.lane.b32.xlu1 %v9909_v32, %s8634_s5  ;;  %v15936_v21 = vld [vmem:[#allocation5_spill] sm:$0xff] }
 0x3e0   : > { %2399 = vrot.lane.b32.xlu0 %v9725_v60, %s8634_s5  ;;  %1923 = vmatprep.subr.mxu0 %v1812_v50  ;;  %v10169_v50 = vrot.slane %v10094_v10, %v15936_v21  ;;  %v10182_v16 = vrot.slane %v10077_v57, %v15936_v21 }
 0x3e1   : > { %1924 = vmatpush1.msra.mxu0 %v1811_v19  ;;  %v10156_v25 = vpop.permute.xlu1 %2377  ;;  %v10158_v45 = vpop.permute.xlu0 %2383  ;;  %v8642_v19 = vmov 10  }
 0x3e2   : > { %1925 = vmatprep.subr.mxu0 %v9760_v30  ;;  %15937 = vst [vmem:[#allocation5_spill] sm:$0xff] %v10169_v50  ;;  %15938 = vst [vmem:[#allocation48_spill] sm:$0xff] %v10182_v16  ;;  %8519 = vset.pattern.permute.xlu0 %v8642_v19 }
 0x3e3   : > { %1926 = vmatpush1.msra.mxu0 %v9768_v23  ;;  %2397 = vrot.lane.b32.xlu1 %v9707_v43, %s8634_s5 }
 0x3e4   : > { %2307 = vrot.lane.b32.xlu0 %v9897_v52, %s8632_s30  ;;  %1927 = vmatprep.subr.mxu0 %v9758_v15 }
 0x3e5   : > { %1928 = vmatpush1.msra.mxu0 %v9766_v63  ;;  %v10176_v30 = vpop.permute.xlu1 %2391  ;;  %v10178_v23 = vpop.permute.xlu0 %1665  ;;  %v1677_v63 = vsel %vm490_vm3, %v9983_v26, %v9985_v17  ;;  %8520 = vset.pattern.permute.xlu1 %v8642_v19 }
 0x3e6   : > { %1929 = vmatprep.subr.mxu0 %v9642_v56  ;;  %v1682_v15 = vsel %vm490_vm3, %v10178_v23, %v9973_v13  ;;  %v1712_v56 = vmul.f32 %v10182_v16, %v1678_v33  ;;  %v1676_v13 = vsel %vm490_vm3, %v9798_v18, %v9808_v46  ;;  %v1708_v8 = vmul.f32 %v10182_v16, %v1677_v63 }
 0x3e7   : > { %1930 = vmatpush1.msra.mxu0 %v9648_v36  ;;  %2305 = vrot.lane.b32.xlu1 %v9909_v32, %s8632_s30  ;;  %v1711_v37 = vmul.f32 %v10169_v50, %v1682_v15  ;;  %v1704_v33 = vmul.f32 %v10182_v16, %v1676_v13  ;;  %v1530_v15 = vsel %vm401_vm2, %v9993_v39, %v9991_v3 }
 0x3e8   : > { %2303 = vrot.lane.b32.xlu0 %v9725_v60, %s8632_s30  ;;  %1931 = vmatprep.subr.mxu0 %v9626_v14 }
 0x3e9   : > { %1932 = vmatpush1.msra.mxu0 %v9632_v34  ;;  %v10206_v36 = vpop.permute.xlu1 %1663  ;;  %v10208_v27 = vpop.permute.xlu0 %2375  ;;  %v1675_v34 = vsel %vm490_vm3, %v9818_v12, %v9810_v31 }
 0x3ea   : > { %v1681_v14 = vsel %vm490_vm3, %v10206_v36, %v9983_v26  ;;  %1933 = vmatprep.subr.mxu0 %v1712_v56  ;;  %v1679_v26 = vsel %vm490_vm3, %v9899_v58, %v9818_v12  ;;  %v1703_v56 = vmul.f32 %v10169_v50, %v1680_v41  ;;  %v1700_v13 = vmul.f32 %v10182_v16, %v1675_v34 }
 0x3eb   : > { %1934 = vmatpush1.msra.mxu0 %v1711_v37  ;;  %2301 = vrot.lane.b32.xlu1 %v9707_v43, %s8632_s30  ;;  %v1707_v18 = vmul.f32 %v10169_v50, %v1681_v14  ;;  %v15939_v14 = vld [vmem:[#allocation8_spill] sm:$0xff]  ;;  %v1529_v41 = vsel %vm401_vm2, %v10003_v9, %v10005_v35  ;;  %v1699_v19 = vmul.f32 %v10169_v50, %v1679_v26 }
 0x3ec   : > { %1935 = vmatprep.subr.mxu0 %v1708_v8  ;;  %2825 = vperm.xlu0 %8519, %v9594_v28   ;;  %v10243_v12 = vrot.slane %v10077_v57, %v15939_v14  ;;  %v10252_v8 = vrot.slane %v10094_v10, %v15939_v14  ;;  %v1528_v34 = vsel %vm401_vm2, %v9820_v54, %v9828_v29 }
 0x3ed   : > { %v10236_v63 = vpop.permute.xlu1 %2381  ;;  %1936 = vmatpush1.msra.mxu0 %v1707_v18  ;;  %v10238_v37 = vpop.permute.xlu0 %1517  ;;  %v10262_v18 = vld [vmem:[%s15413_s3 + $0x20] sm:$0xff] }
 0x3ee   : > { %15940 = vst [vmem:[#allocation8_spill] sm:$0xff] %v10243_v12  ;;  %v1534_v28 = vsel %vm401_vm2, %v10238_v37, %v9993_v39  ;;  %1937 = vmatprep.subr.mxu0 %v1704_v33  ;;  %15941 = vst [vmem:[#allocation49_spill] sm:$0xff] %v10252_v8  ;;  %v1564_v39 = vmul.f32 %v10243_v12, %v1530_v15 }
 0x3ef   : > { %1938 = vmatpush1.msra.mxu0 %v1703_v56  ;;  %2829 = vperm.xlu1 %8520, %v9588_v62   ;;  %v1563_v33 = vmul.f32 %v10252_v8, %v1534_v28  ;;  %v1532_v62 = vsel %vm401_vm2, %v9917_v40, %v9820_v54  ;;  %v1560_v28 = vmul.f32 %v10243_v12, %v1529_v41  ;;  %v15943_v54 = vmov 0.0  }
 0x3f0   : > { %1939 = vmatprep.subr.mxu0 %v1700_v13  ;;  %v1527_v13 = vsel %vm401_vm2, %v9836_v22, %v9830_v7  ;;  %v1531_v41 = vsel %vm401_vm2, %v9915_v47, %v9836_v22  ;;  %v1555_v16 = vmul.f32 %v10252_v8, %v1532_v62  ;;  %v10324_v62 = vrot.slane %v10094_v10, %v15946_v53 }
 0x3f1   : > { %v10271_v56 = vpop.permute.xlu1 %1515  ;;  %1940 = vmatpush1.msra.mxu0 %v1699_v19  ;;  %v10273_v26 = vpop.permute.xlu0 %2389 }
 0x3f2   : > { %15942 = vst [vmem:[#allocation50_spill] sm:$0xff] %v10273_v26  ;;  %v1533_v15 = vsel %vm401_vm2, %v10271_v56, %v10003_v9  ;;  %2107 = vmatprep.subr.mxu0 %v1564_v39  ;;  %8181 = vmatmul.mubr.msk.f32.vlgmr.msra.gmra.mxu0 %vm1896_vm8, %v10262_v18  ;;  %v10295_v9 = vld [vmem:[%s15413_s3 + $0x28] sm:$0xff]  ;;  %v1556_v39 = vmul.f32 %v10243_v12, %v1528_v34  ;;  %15948 = vst [vmem:[#allocation53_spill] sm:$0xff] %v10324_v62 }
 0x3f3   : > { %v1559_v19 = vmul.f32 %v10252_v8, %v1533_v15  ;;  %2108 = vmatpush1.msra.mxu0 %v1563_v33  ;;  %1979 = vmatprep.mubr.f32.mxu0 %v15943_v54  ;;  %15944 = vst [vmem:[#allocation51_spill] sm:$0xff] %v10295_v9  ;;  %v1434_v33 = vsel %vm308_vm0, %v10013_v59, %v10011_v11 }
 0x3f4   : > { %2109 = vmatprep.subr.mxu0 %v1560_v28  ;;  %v1552_v34 = vmul.f32 %v10243_v12, %v1527_v13  ;;  %v1551_v28 = vmul.f32 %v10252_v8, %v1531_v41  ;;  %v1468_v13 = vmul.f32 %v10313_v0, %v1434_v33  ;;  %v1432_v41 = vsel %vm308_vm0, %v9838_v4, %v9840_v42 }
 0x3f5   : > { %v10307_v15 = vpop.permute.xlu1 %2373  ;;  %2110 = vmatpush1.msra.mxu0 %v1559_v19  ;;  %v10309_v50 = vpop.permute.xlu0 %1421  ;;  %v1433_v19 = vsel %vm308_vm0, %v10023_v5, %v10025_v24  ;;  %v1436_v12 = vsel %vm308_vm0, %v9925_v1, %v9838_v4  ;;  %v10367_v4 = vld [vmem:[%s15413_s3 + $0x38] sm:$0xff] }
 0x3f6   : > { %15945 = vst [vmem:[#allocation52_spill] sm:$0xff] %v10309_v50  ;;  %v1438_v22 = vsel %vm308_vm0, %v10309_v50, %v10013_v59  ;;  %2111 = vmatprep.subr.mxu0 %v1556_v39  ;;  %8182 = vmatmul.mubr.msk.f32.gmra.mxu0 %vm1896_vm8, %v10295_v9  ;;  %v10335_v59 = vld [vmem:[%s15413_s3 + $0x30] sm:$0xff]  ;;  %v15981_v50 = vld [vmem:[#allocation27_spill] sm:$0xff] }
 0x3f7   : > { %2112 = vmatpush1.msra.mxu0 %v1555_v16  ;;  %1985 = vmatprep.mubr.f32.mxu0 %v15943_v54  ;;  %15949 = vst [vmem:[#allocation54_spill] sm:$0xff] %v10335_v59  ;;  %v1467_v39 = vmul.f32 %v10324_v62, %v1438_v22  ;;  %v15951_v22 = vld [vmem:[#allocation18_spill] sm:$0xff] }
 0x3f8   : > { %2113 = vmatprep.subr.mxu0 %v1552_v34  ;;  %v1464_v34 = vmul.f32 %v10313_v0, %v1433_v19  ;;  %15952 = vst [vmem:[#allocation18_spill] sm:$0xff] %v10367_v4 }
 0x3f9   : > { %v10343_v8 = vpop.permute.xlu1 %1419  ;;  %2114 = vmatpush1.msra.mxu0 %v1551_v28  ;;  %v10345_v16 = vpop.permute.xlu0 %2291  ;;  %v1431_v28 = vsel %vm308_vm0, %v15951_v22, %v9842_v51  ;;  %v1459_v51 = vmul.f32 %v10324_v62, %v1436_v12 }
 0x3fa   : > { %15950 = vst [vmem:[#allocation55_spill] sm:$0xff] %v10343_v8  ;;  %v1437_v33 = vsel %vm308_vm0, %v10343_v8, %v10023_v5  ;;  %2115 = vmatprep.subr.mxu0 %v1468_v13  ;;  %8183 = vmatmul.mubr.msk.f32.gmra.mxu0 %vm1896_vm8, %v10335_v59  ;;  %v15953_v5 = vld [vmem:[#allocation29_spill] sm:$0xff]  ;;  %v1460_v13 = vmul.f32 %v10313_v0, %v1432_v41  ;;  %v15954_v59 = vld [vmem:[#allocation35_spill] sm:$0xff]  ;;  %v15957_v8 = vld [vmem:[#allocation4_spill] sm:$0xff] }
 0x3fb   : > { %v1463_v42 = vmul.f32 %v10324_v62, %v1437_v33  ;;  %2116 = vmatpush1.msra.mxu0 %v1467_v39  ;;  %1991 = vmatprep.mubr.f32.mxu0 %v15943_v54  ;;  %v1435_v19 = vsel %vm308_vm0, %v15953_v5, %v15951_v22  ;;  %v15955_v33 = vld [vmem:[#allocation36_spill] sm:$0xff]  ;;  %v10385_v9 = vrot.slane %v10077_v57, %v15957_v8  ;;  %v15960_v22 = vld [vmem:[#allocation38_spill] sm:$0xff] }
 0x3fc   : > { %2117 = vmatprep.subr.mxu0 %v1464_v34  ;;  %v1338_v39 = vsel %vm239_vm1, %v15955_v33, %v15954_v59  ;;  %v1456_v12 = vmul.f32 %v10313_v0, %v1431_v28  ;;  %v1455_v34 = vmul.f32 %v10324_v62, %v1435_v19  ;;  %v15961_v59 = vld [vmem:[#allocation37_spill] sm:$0xff] }
 0x3fd   : > { %v10379_v1 = vpop.permute.xlu1 %2289  ;;  %2118 = vmatpush1.msra.mxu0 %v1463_v42  ;;  %v10381_v24 = vpop.permute.xlu0 %1325  ;;  %15958 = vst [vmem:[#allocation56_spill] sm:$0xff] %v10385_v9  ;;  %v10397_v42 = vrot.slane %v10094_v10, %v15957_v8  ;;  %v1337_v5 = vsel %vm239_vm1, %v15961_v59, %v15960_v22  ;;  %v1372_v28 = vmul.f32 %v10385_v9, %v1338_v39  ;;  %v15965_v22 = vld [vmem:[#allocation32_spill] sm:$0xff]  ;;  %v15968_v8 = vld [vmem:[#allocation31_spill] sm:$0xff] }
 0x3fe   : > { %15956 = vst [vmem:[#allocation36_spill] sm:$0xff] %v10381_v24  ;;  %v1342_v41 = vsel %vm239_vm1, %v10381_v24, %v15955_v33  ;;  %2119 = vmatprep.subr.mxu0 %v1460_v13  ;;  %8184 = vmatmul.mubr.msk.f32.gmra.mxu0 %vm1896_vm8, %v10367_v4  ;;  %v15962_v13 = vld [vmem:[#allocation20_spill] sm:$0xff]  ;;  %v15963_v33 = vld [vmem:[#allocation19_spill] sm:$0xff] }
 0x3ff   : > { %15959 = vst [vmem:[#allocation57_spill] sm:$0xff] %v10397_v42  ;;  %2120 = vmatpush1.msra.mxu0 %v1459_v51  ;;  %2163 = vmatprep.mubr.f32.mxu0 %v15943_v54  ;;  %v1336_v19 = vsel %vm239_vm1, %v15963_v33, %v15962_v13  ;;  %v1371_v62 = vmul.f32 %v10397_v42, %v1342_v41  ;;  %v15966_v13 = vld [vmem:[#allocation21_spill] sm:$0xff]  ;;  %v15967_v41 = vld [vmem:[#allocation24_spill] sm:$0xff] }
 0x400   : > { %2121 = vmatprep.subr.mxu0 %v1456_v12  ;;  %v1340_v51 = vsel %vm239_vm1, %v15965_v22, %v15963_v33  ;;  %v1368_v12 = vmul.f32 %v10385_v9, %v1337_v5  ;;  %v1339_v33 = vsel %vm239_vm1, %v15968_v8, %v15967_v41  ;;  %v1364_v22 = vmul.f32 %v10385_v9, %v1336_v19  ;;  %v15975_v8 = vld [vmem:[#allocation39_spill] sm:$0xff] }
 0x401   : > { %v10410_v0 = vpop.permute.xlu1 %1323  ;;  %2122 = vmatpush1.msra.mxu0 %v1455_v34  ;;  %v10412_v4 = vpop.permute.xlu0 %2283  ;;  %v1335_v34 = vsel %vm239_vm1, %v15967_v41, %v15966_v13  ;;  %v1363_v5 = vmul.f32 %v10397_v42, %v1340_v51  ;;  %v15973_v13 = vld [vmem:[#allocation42_spill] sm:$0xff]  ;;  %v10455_v51 = vld [vmem:[%s15411_s1 + $0x20] ss:$0 sm:$0xff] }
 0x402   : > { %15964 = vst [vmem:[#allocation37_spill] sm:$0xff] %v10410_v0  ;;  %v1341_v39 = vsel %vm239_vm1, %v10410_v0, %v15961_v59  ;;  %2123 = vmatprep.subr.mxu0 %v1372_v28  ;;  %v10436_v59 = vld [vmem:[%s15411_s1 + $0x28] ss:$0 sm:$0xff] }
 0x403   : > { %v1367_v24 = vmul.f32 %v10397_v42, %v1341_v39  ;;  %2124 = vmatpush1.msra.mxu0 %v1371_v62  ;;  %15969 = vst [vmem:[#allocation19_spill] sm:$0xff] %v10436_v59  ;;  %v15972_v62 = vld [vmem:[#allocation40_spill] sm:$0xff] }
 0x404   : > { %2125 = vmatprep.subr.mxu0 %v1368_v12  ;;  %v2512_v41 = vsel %vm894_vm7, %v15973_v13, %v15972_v62  ;;  %v1360_v12 = vmul.f32 %v10385_v9, %v1335_v34  ;;  %15974 = vst [vmem:[#allocation40_spill] sm:$0xff] %v10455_v51  ;;  %v15977_v34 = vld [vmem:[#allocation41_spill] sm:$0xff] }
 0x405   : > { %v10439_v28 = vpop.permute.xlu1 %2491  ;;  %2126 = vmatpush1.msra.mxu0 %v1367_v24  ;;  %v10441_v39 = vpop.permute.xlu0 %2489  ;;  %v1359_v24 = vmul.f32 %v10397_v42, %v1339_v33  ;;  %v15978_v33 = vld [vmem:[#allocation3_spill] sm:$0xff]  ;;  %v15979_v9 = vld [vmem:[#allocation33_spill] sm:$0xff] }
 0x406   : > { %15970 = vst [vmem:[#allocation24_spill] sm:$0xff] %v10439_v28  ;;  %15971 = vst [vmem:[#allocation58_spill] sm:$0xff] %v10441_v39  ;;  %v2508_v19 = vsel %vm894_vm7, %v15972_v62, %v10439_v28  ;;  %2127 = vmatprep.subr.mxu0 %v1364_v22  ;;  %v2507_v13 = vsel %vm894_vm7, %v15975_v8, %v10441_v39  ;;  %v10466_v22 = vld [vmem:[%s15413_s3] sm:$0xff]  ;;  %v2511_v62 = vsel %vm894_vm7, %v15977_v34, %v15975_v8  ;;  %v15980_v28 = vld [vmem:[#allocation22_spill] sm:$0xff] }
 0x407   : > { %2128 = vmatpush1.msra.mxu0 %v1363_v5  ;;  %v2546_v0 = vmul.f32 %v10436_v59, %v2508_v19  ;;  %15976 = vst [vmem:[#allocation39_spill] sm:$0xff] %v10466_v22  ;;  %v10473_v42 = vsub.s32 7, %v15978_v33  ;;  %v2506_v5 = vsel %vm894_vm7, %v15980_v28, %v15979_v9  ;;  %v2545_v19 = vmul.f32 %v10455_v51, %v2512_v41  ;;  %v15982_v34 = vld [vmem:[#allocation7_spill] sm:$0xff]  ;;  %v15983_v9 = vld [vmem:[#allocation26_spill] sm:$0xff] }
 0x408   : > { %2129 = vmatprep.subr.mxu0 %v1360_v12  ;;  %v2510_v8 = vsel %vm894_vm7, %v15981_v50, %v15980_v28  ;;  %v2542_v12 = vmul.f32 %v10436_v59, %v2507_v13  ;;  %v2505_v41 = vsel %vm894_vm7, %v15983_v9, %v15982_v34  ;;  %v10500_v28 = vld [vmem:[%s15413_s3 + $0x8] sm:$0xff]  ;;  %v2538_v13 = vmul.f32 %v10436_v59, %v2506_v5 }
 0x409   : > { %v10480_v39 = vpop.permute.xlu1 %2281  ;;  %2130 = vmatpush1.msra.mxu0 %v1359_v24  ;;  %v10482_v11 = vpop.permute.xlu0 %2287  ;;  %v2541_v24 = vmul.f32 %v10455_v51, %v2511_v62  ;;  %v10509_v34 = vrot.slane %v10094_v10, %v10473_v42  ;;  %v10513_v62 = vrot.slane %v10077_v57, %v10473_v42 }
 0x40a   : > { %2638 = vmatprep.subr.mxu0 %v2546_v0  ;;  %8189 = vmatmul.mubr.msk.f32.vlgmr.msra.gmra.mxu0 %vm1896_vm8, %v10466_v22  ;;  %v2509_v0 = vsel %vm894_vm7, %v10122_v61, %v15983_v9  ;;  %v2416_v9 = vsel %vm805_vm6, %v10147_v2, %v10124_v44 }
 0x40b   : > { %2639 = vmatpush1.msra.mxu0 %v2545_v19  ;;  %2169 = vmatprep.mubr.f32.mxu0 %v15943_v54  ;;  %15984 = vst [vmem:[#allocation22_spill] sm:$0xff] %v10509_v34  ;;  %15985 = vst [vmem:[#allocation26_spill] sm:$0xff] %v10513_v62  ;;  %v2537_v19 = vmul.f32 %v10455_v51, %v2510_v8  ;;  %v2533_v8 = vmul.f32 %v10455_v51, %v2509_v0  ;;  %v10548_v0 = vsub.s32 6, %v15978_v33 }
 0x40c   : > { %2640 = vmatprep.subr.mxu0 %v2542_v12  ;;  %v2534_v12 = vmul.f32 %v10436_v59, %v2505_v41  ;;  %v2415_v41 = vsel %vm805_vm6, %v10156_v25, %v10145_v38 }
 0x40d   : > { %v10516_v22 = vpop.permute.xlu1 %2395  ;;  %2641 = vmatpush1.msra.mxu0 %v2541_v24  ;;  %v10518_v50 = vpop.permute.xlu0 %2393 }
 0x40e   : > { %v2412_v5 = vsel %vm805_vm6, %v10124_v44, %v10516_v22  ;;  %2642 = vmatprep.subr.mxu0 %v2538_v13  ;;  %8190 = vmatmul.mubr.msk.f32.gmra.mxu0 %vm1896_vm8, %v10500_v28  ;;  %v2411_v24 = vsel %vm805_vm6, %v10145_v38, %v10518_v50  ;;  %v10541_v44 = vld [vmem:[%s15413_s3 + $0x10] sm:$0xff]  ;;  %v2449_v13 = vmul.f32 %v10509_v34, %v2416_v9 }
 0x40f   : > { %2643 = vmatpush1.msra.mxu0 %v2537_v19  ;;  %v2450_v2 = vmul.f32 %v10513_v62, %v2412_v5  ;;  %2175 = vmatprep.mubr.f32.mxu0 %v15943_v54  ;;  %v2410_v19 = vsel %vm805_vm6, %v10158_v45, %v10176_v30  ;;  %v2414_v38 = vsel %vm805_vm6, %v10208_v27, %v10158_v45  ;;  %v10575_v45 = vld [vmem:[%s15413_s3 + $0x18] sm:$0xff] }
 0x410   : > { %2644 = vmatprep.subr.mxu0 %v2534_v12  ;;  %v2446_v12 = vmul.f32 %v10513_v62, %v2411_v24  ;;  %v2445_v9 = vmul.f32 %v10509_v34, %v2415_v41  ;;  %v2442_v24 = vmul.f32 %v10513_v62, %v2410_v19  ;;  %v10584_v41 = vrot.slane %v10094_v10, %v10548_v0 }
 0x411   : > { %v10555_v5 = vpop.permute.xlu1 %2295  ;;  %2645 = vmatpush1.msra.mxu0 %v2533_v8  ;;  %v10557_v51 = vpop.permute.xlu0 %2279  ;;  %v2409_v8 = vsel %vm805_vm6, %v10236_v63, %v10273_v26  ;;  %v2441_v33 = vmul.f32 %v10509_v34, %v2414_v38 }
 0x412   : > { %15986 = vst [vmem:[#allocation59_spill] sm:$0xff] %v10555_v5  ;;  %15987 = vst [vmem:[#allocation60_spill] sm:$0xff] %v10557_v51  ;;  %2646 = vmatprep.subr.mxu0 %v2450_v2  ;;  %8191 = vmatmul.mubr.msk.f32.gmra.mxu0 %vm1896_vm8, %v10541_v44  ;;  %v2413_v2 = vsel %vm805_vm6, %v10307_v15, %v10236_v63  ;;  %v2320_v63 = vsel %vm716_vm5, %v10412_v4, %v10345_v16 }
 0x413   : > { %2647 = vmatpush1.msra.mxu0 %v2449_v13  ;;  %2181 = vmatprep.mubr.f32.mxu0 %v15943_v54  ;;  %15988 = vst [vmem:[#allocation61_spill] sm:$0xff] %v10584_v41  ;;  %v10588_v13 = vrot.slane %v10077_v57, %v10548_v0  ;;  %v2438_v57 = vmul.f32 %v10513_v62, %v2409_v8 }
 0x414   : > { %2648 = vmatprep.subr.mxu0 %v2446_v12  ;;  %v2437_v19 = vmul.f32 %v10509_v34, %v2413_v2  ;;  %v2314_v8 = vsel %vm716_vm5, %v10482_v11, %v10555_v5 }
 0x415   : > { %15989 = vst [vmem:[#allocation62_spill] sm:$0xff] %v10588_v13  ;;  %v10591_v59 = vpop.permute.xlu1 %2299  ;;  %2649 = vmatpush1.msra.mxu0 %v2445_v9  ;;  %v10593_v26 = vpop.permute.xlu0 %2297  ;;  %v2353_v9 = vmul.f32 %v10584_v41, %v2320_v63  ;;  %v10632_v63 = vld [vmem:[%s15411_s1 + $0x10] sm:$0xff]  ;;  %v2346_v34 = vmul.f32 %v10588_v13, %v2314_v8 }
 0x416   : > { %15990 = vst [vmem:[#allocation63_spill] sm:$0xff] %v10593_v26  ;;  %v2316_v10 = vsel %vm716_vm5, %v10345_v16, %v10591_v59  ;;  %2650 = vmatprep.subr.mxu0 %v2442_v24  ;;  %8192 = vmatmul.mubr.msk.f32.gmra.mxu0 %vm1896_vm8, %v10575_v45  ;;  %v2315_v38 = vsel %vm716_vm5, %v10379_v1, %v10593_v26  ;;  %v15995_v26 = vld [vmem:[#allocation11_spill] sm:$0xff] }
 0x417   : > { %2651 = vmatpush1.msra.mxu0 %v2441_v33  ;;  %v2354_v12 = vmul.f32 %v10588_v13, %v2316_v10  ;;  %2694 = vmatprep.mubr.f32.mxu0 %v15943_v54  ;;  %v2319_v16 = vsel %vm716_vm5, %v10480_v39, %v10379_v1  ;;  %v2318_v24 = vsel %vm716_vm5, %v10557_v51, %v10482_v11  ;;  %v15992_v10 = vld [vmem:[#allocation43_spill] sm:$0xff] }
 0x418   : > { %2652 = vmatprep.subr.mxu0 %v2438_v57  ;;  %v2350_v1 = vmul.f32 %v10588_v13, %v2315_v38  ;;  %v10636_v57 = vrot.slane %v10632_v63, %v15992_v10  ;;  %v2349_v38 = vmul.f32 %v10584_v41, %v2319_v16  ;;  %v2345_v62 = vmul.f32 %v10584_v41, %v2318_v24 }
 0x419   : > { %v2286_v2 = vpop.permute.xlu1 %2285  ;;  %2653 = vmatpush1.msra.mxu0 %v2437_v19  ;;  %v10622_v33 = vpop.permute.xlu0 %2293  ;;  %v10641_v19 = vld [vmem:[%s15411_s1 + $0x18] sm:$0xff] }
 0x41a   : > { %15991 = vst [vmem:[#allocation64_spill] sm:$0xff] %v10622_v33  ;;  %2654 = vmatprep.subr.mxu0 %v2354_v12  ;;  %15993 = vst [vmem:[#allocation43_spill] sm:$0xff] %v10636_v57  ;;  %v10645_v11 = vrot.slane %v10641_v19, %v15992_v10  ;;  %v2313_v12 = vsel %vm716_vm5, %v2286_v2, %v10622_v33 }
 0x41b   : > { %2655 = vmatpush1.msra.mxu0 %v2353_v9  ;;  %v2342_v16 = vmul.f32 %v10588_v13, %v2313_v12  ;;  %v15997_v12 = vld [vmem:[#allocation46_spill] sm:$0xff] }
 0x41c   : > { %15994 = vst [vmem:[#allocation65_spill] sm:$0xff] %v10645_v11  ;;  %2656 = vmatprep.subr.mxu0 %v2350_v1  ;;  %v15996_v1 = vld [vmem:[#allocation45_spill] sm:$0xff] }
 0x41d   : > { %v10653_v5 = vpop.permute.xlu1 %2277  ;;  %2657 = vmatpush1.msra.mxu0 %v2349_v38  ;;  %v1778_v51 = vpop.permute.xlu0 %1777 }
 0x41e   : > { %v2317_v10 = vsel %vm716_vm5, %v10653_v5, %v2286_v2  ;;  %2658 = vmatprep.subr.mxu0 %v2346_v34  ;;  %v1794_v9 = vsel %vm627_vm4, %v1778_v51, %v15995_v26  ;;  %v1782_v8 = vsel %vm627_vm4, %v15996_v1, %v1778_v51  ;;  %v10671_v34 = vld [vmem:[%s15413_s3 + $0x40] sm:$0xff] }
 0x41f   : > { %v2341_v24 = vmul.f32 %v10584_v41, %v2317_v10  ;;  %2659 = vmatpush1.msra.mxu0 %v2345_v62  ;;  %v1826_v38 = vmul.f32 %v10645_v11, %v1794_v9  ;;  %v1825_v33 = vmul.f32 %v10636_v57, %v1782_v8  ;;  %v15998_v10 = vld [vmem:[#allocation15_spill] sm:$0xff]  ;;  %v15999_v9 = vld [vmem:[#allocation13_spill] sm:$0xff] }
 0x420   : > { %2660 = vmatprep.subr.mxu0 %v2342_v16 }
 0x421   : > { %v1776_v2 = vpop.permute.xlu1 %1775  ;;  %2006 = vmatprep.subr.mxu1 %v1826_v38  ;;  %2661 = vmatpush1.msra.mxu0 %v2341_v24  ;;  %v1774_v26 = vpop.permute.xlu0 %1773 }
 0x422   : > { %v1781_v51 = vsel %vm627_vm4, %v15997_v12, %v1776_v2  ;;  %v1793_v62 = vsel %vm627_vm4, %v1776_v2, %v9963_v55  ;;  %v1792_v16 = vsel %vm627_vm4, %v1774_v26, %v15998_v10  ;;  %2007 = vmatpush1.msra.mxu1 %v1825_v33  ;;  %v1780_v1 = vsel %vm627_vm4, %v15999_v9, %v1774_v26  ;;  %v10693_v55 = vld [vmem:[%s15413_s3 + $0x48] sm:$0xff] }
 0x423   : > { %8201 = vmatmul.mubr.msk.f32.vlgmr.msra.gmra.mxu0 %vm1896_vm8, %v10671_v34  ;;  %v1822_v8 = vmul.f32 %v10645_v11, %v1793_v62  ;;  %v1821_v24 = vmul.f32 %v10636_v57, %v1781_v51  ;;  %v1818_v2 = vmul.f32 %v10645_v11, %v1792_v16  ;;  %v16000_v26 = vld [vmem:[#allocation28_spill] sm:$0xff]  ;;  %v1817_v62 = vmul.f32 %v10636_v57, %v1780_v1  ;;  %v16001_v1 = vld [vmem:[#allocation25_spill] sm:$0xff] }
 0x424   : > { %2700 = vmatprep.mubr.f32.mxu0 %v15943_v54 }
 0x425   : > { %v1772_v38 = vpop.permute.xlu1 %1771  ;;  %2008 = vmatprep.subr.mxu1 %v1822_v8  ;;  %v1658_v33 = vpop.permute.xlu0 %1657 }
 0x426   : > { %v1779_v12 = vsel %vm627_vm4, %v16000_v26, %v1772_v38  ;;  %v1791_v51 = vsel %vm627_vm4, %v1772_v38, %v9802_v49  ;;  %2009 = vmatpush1.msra.mxu1 %v1821_v24  ;;  %v10711_v49 = vld [vmem:[%s15413_s3 + $0x50] sm:$0xff]  ;;  %v10719_v24 = vrot.slane %v10641_v19, %v15936_v21  ;;  %v10726_v26 = vld [vmem:[%s15413_s3 + $0x58] sm:$0xff] }
 0x427   : > { %8202 = vmatmul.mubr.msk.f32.gmra.mxu0 %vm1896_vm8, %v10693_v55  ;;  %2010 = vmatprep.subr.mxu1 %v1818_v2  ;;  %v1814_v10 = vmul.f32 %v10645_v11, %v1791_v51  ;;  %v1813_v9 = vmul.f32 %v10636_v57, %v1779_v12  ;;  %v1670_v12 = vsel %vm490_vm3, %v1658_v33, %v10178_v23  ;;  %v16004_v51 = vld [vmem:[#allocation23_spill] sm:$0xff] }
 0x428   : > { %2011 = vmatpush1.msra.mxu1 %v1817_v62  ;;  %2706 = vmatprep.mubr.f32.mxu0 %v15943_v54  ;;  %16002 = vst [vmem:[#allocation11_spill] sm:$0xff] %v10719_v24 }
 0x429   : > { %v1656_v16 = vpop.permute.xlu1 %1655  ;;  %2012 = vmatprep.subr.mxu1 %v1814_v10  ;;  %v1654_v8 = vpop.permute.xlu0 %1653  ;;  %v16005_v10 = vld [vmem:[#allocation14_spill] sm:$0xff] }
 0x42a   : > { %2013 = vmatpush1.msra.mxu1 %v1813_v9  ;;  %v1669_v62 = vsel %vm490_vm3, %v1656_v16, %v10206_v36  ;;  %v16006_v36 = vld [vmem:[#allocation12_spill] sm:$0xff] }
 0x42b   : > { %2014 = vmatprep.subr.mxu1 %v9897_v52  ;;  %8203 = vmatmul.mubr.msk.f32.gmra.mxu0 %vm1896_vm8, %v10711_v49  ;;  %v10730_v52 = vrot.slane %v10632_v63, %v15936_v21  ;;  %v1673_v21 = vsel %vm490_vm3, %v9985_v17, %v1656_v16  ;;  %v1672_v17 = vsel %vm490_vm3, %v9808_v46, %v1654_v8 }
 0x42c   : > { %2015 = vmatpush1.msra.mxu1 %v16001_v1  ;;  %2712 = vmatprep.mubr.f32.mxu0 %v15943_v54 }
 0x42d   : > { %v1652_v38 = vpop.permute.xlu1 %1651  ;;  %2016 = vmatprep.subr.mxu1 %v9909_v32  ;;  %v1510_v2 = vpop.permute.xlu0 %1509  ;;  %16003 = vst [vmem:[#allocation45_spill] sm:$0xff] %v10730_v52  ;;  %v1674_v32 = vsel %vm490_vm3, %v9971_v6, %v1658_v33  ;;  %v1714_v6 = vmul.f32 %v10719_v24, %v1670_v12  ;;  %v1709_v1 = vmul.f32 %v10730_v52, %v1673_v21 }
 0x42e   : > { %2017 = vmatpush1.msra.mxu1 %v16004_v51  ;;  %v1713_v33 = vmul.f32 %v10730_v52, %v1674_v32  ;;  %v1667_v16 = vsel %vm490_vm3, %v1652_v38, %v9899_v58  ;;  %v1671_v12 = vsel %vm490_vm3, %v9810_v31, %v1652_v38  ;;  %v10775_v32 = vrot.slane %v10632_v63, %v15939_v14 }
 0x42f   : > { %2018 = vmatprep.subr.mxu1 %v9725_v60  ;;  %8204 = vmatmul.mubr.msk.f32.gmra.mxu0 %vm1896_vm8, %v10726_v26  ;;  %v1668_v60 = vsel %vm490_vm3, %v1654_v8, %v9901_v48  ;;  %v10767_v48 = vrot.slane %v10641_v19, %v15939_v14  ;;  %v1522_v58 = vsel %vm401_vm2, %v1510_v2, %v10238_v37 }
 0x430   : > { %2019 = vmatpush1.msra.mxu1 %v16005_v10  ;;  %3750 = vmatprep.mubr.f32.mxu0 %v15943_v54  ;;  %v1706_v8 = vmul.f32 %v10719_v24, %v1668_v60  ;;  %16008 = vst [vmem:[#allocation15_spill] sm:$0xff] %v10775_v32  ;;  %v1526_v31 = vsel %vm401_vm2, %v9991_v3, %v1510_v2 }
 0x431   : > { %v1508_v23 = vpop.permute.xlu1 %1507  ;;  %2020 = vmatprep.subr.mxu1 %v9707_v43  ;;  %v1506_v9 = vpop.permute.xlu0 %1505  ;;  %v1710_v43 = vmul.f32 %v10719_v24, %v1669_v62  ;;  %16007 = vst [vmem:[#allocation46_spill] sm:$0xff] %v10767_v48  ;;  %v1705_v62 = vmul.f32 %v10730_v52, %v1672_v17  ;;  %v1702_v38 = vmul.f32 %v10719_v24, %v1667_v16 }
 0x432   : > { %2021 = vmatpush1.msra.mxu1 %v16006_v36  ;;  %v1521_v10 = vsel %vm401_vm2, %v1508_v23, %v10271_v56  ;;  %v1701_v14 = vmul.f32 %v10730_v52, %v1671_v12  ;;  %v1525_v37 = vsel %vm401_vm2, %v10005_v35, %v1508_v23  ;;  %v1566_v60 = vmul.f32 %v10767_v48, %v1522_v58 }
 0x433   : > { %2022 = vmatprep.subr.mxu1 %v1714_v6  ;;  %v1565_v3 = vmul.f32 %v10775_v32, %v1526_v31  ;;  %v1520_v2 = vsel %vm401_vm2, %v1506_v9, %v9917_v40  ;;  %v1524_v56 = vsel %vm401_vm2, %v9828_v29, %v1506_v9  ;;  %v1562_v35 = vmul.f32 %v10767_v48, %v1521_v10 }
 0x434   : > { %2023 = vmatpush1.msra.mxu1 %v1713_v33  ;;  %v1561_v23 = vmul.f32 %v10775_v32, %v1525_v37  ;;  %v10810_v40 = vrot.slane %v10641_v19, %v15946_v53  ;;  %v1558_v33 = vmul.f32 %v10767_v48, %v1520_v2  ;;  %v10818_v17 = vrot.slane %v10632_v63, %v15946_v53  ;;  %v16016_v37 = vld [vmem:[#allocation30_spill] sm:$0xff] }
 0x435   : > { %v1504_v51 = vpop.permute.xlu1 %1503  ;;  %2024 = vmatprep.subr.mxu1 %v1710_v43  ;;  %v1414_v46 = vpop.permute.xlu0 %1413  ;;  %v16011_v43 = vld [vmem:[#allocation52_spill] sm:$0xff] }
 0x436   : > { %2025 = vmatpush1.msra.mxu1 %v1709_v1  ;;  %v1519_v36 = vsel %vm401_vm2, %v1504_v51, %v9915_v47  ;;  %16009 = vst [vmem:[#allocation13_spill] sm:$0xff] %v10810_v40  ;;  %v1523_v29 = vsel %vm401_vm2, %v9830_v7, %v1504_v51  ;;  %16010 = vst [vmem:[#allocation28_spill] sm:$0xff] %v10818_v17  ;;  %v1557_v47 = vmul.f32 %v10775_v32, %v1524_v56  ;;  %v16012_v1 = vld [vmem:[#allocation9_spill] sm:$0xff]  ;;  %v16013_v51 = vld [vmem:[#allocation51_spill] sm:$0xff] }
 0x437   : > { %2026 = vmatprep.subr.mxu1 %v1706_v8  ;;  %v1426_v16 = vsel %vm308_vm0, %v1414_v46, %v16011_v43  ;;  %v1430_v7 = vsel %vm308_vm0, %v16012_v1, %v1414_v46  ;;  %v1554_v12 = vmul.f32 %v10767_v48, %v1519_v36  ;;  %v1553_v53 = vmul.f32 %v10775_v32, %v1523_v29  ;;  %v16014_v8 = vld [vmem:[#allocation55_spill] sm:$0xff]  ;;  %v16020_v29 = vld [vmem:[#allocation4_spill] sm:$0xff] }
 0x438   : > { %2027 = vmatpush1.msra.mxu1 %v1705_v62  ;;  %v16015_v62 = vld [vmem:[#allocation34_spill] sm:$0xff]  ;;  %v1470_v10 = vmul.f32 %v10810_v40, %v1426_v16 }
 0x439   : > { %v1412_v21 = vpop.permute.xlu1 %1411  ;;  %2028 = vmatprep.subr.mxu1 %v1702_v38  ;;  %v1410_v6 = vpop.permute.xlu0 %1409 }
 0x43a   : > { %2029 = vmatpush1.msra.mxu1 %v1701_v14  ;;  %v1425_v58 = vsel %vm308_vm0, %v1412_v21, %v16014_v8  ;;  %v1429_v31 = vsel %vm308_vm0, %v16015_v62, %v1412_v21  ;;  %v1469_v14 = vmul.f32 %v10818_v17, %v1430_v7  ;;  %v16018_v21 = vld [vmem:[#allocation54_spill] sm:$0xff]  ;;  %v10864_v7 = vrot.slane %v10632_v63, %v16020_v29  ;;  %v16025_v8 = vld [vmem:[#allocation35_spill] sm:$0xff] }
 0x43b   : > { %8185 = vmatmul.mubr.msk.f32.vlgmr.msra.gmra.mxu1 %vm1896_vm8, %v10262_v18  ;;  %2196 = vmatprep.subr.mxu1 %v1566_v60  ;;  %v1424_v60 = vsel %vm308_vm0, %v1410_v6, %v16016_v37  ;;  %v1466_v56 = vmul.f32 %v10810_v40, %v1425_v58  ;;  %v16026_v62 = vld [vmem:[#allocation18_spill] sm:$0xff] }
 0x43c   : > { %2197 = vmatpush1.msra.mxu1 %v1565_v3  ;;  %2068 = vmatprep.mubr.f32.mxu1 %v15943_v54  ;;  %v16017_v3 = vld [vmem:[#allocation16_spill] sm:$0xff]  ;;  %v1462_v1 = vmul.f32 %v10810_v40, %v1424_v60  ;;  %16023 = vst [vmem:[#allocation23_spill] sm:$0xff] %v10864_v7  ;;  %v16028_v37 = vld [vmem:[#allocation38_spill] sm:$0xff] }
 0x43d   : > { %v1408_v18 = vpop.permute.xlu1 %1407  ;;  %2198 = vmatprep.subr.mxu1 %v1562_v35  ;;  %v1318_v9 = vpop.permute.xlu0 %1317  ;;  %v1428_v2 = vsel %vm308_vm0, %v16017_v3, %v1410_v6  ;;  %v1465_v35 = vmul.f32 %v10818_v17, %v1429_v31  ;;  %v16022_v6 = vld [vmem:[#allocation17_spill] sm:$0xff] }
 0x43e   : > { %2199 = vmatpush1.msra.mxu1 %v1561_v23  ;;  %v16019_v23 = vld [vmem:[#allocation29_spill] sm:$0xff] }
 0x43f   : > { %2200 = vmatprep.subr.mxu1 %v1558_v33  ;;  %8186 = vmatmul.mubr.msk.f32.gmra.mxu1 %vm1896_vm8, %v16013_v51  ;;  %v1423_v36 = vsel %vm308_vm0, %v1408_v18, %v16019_v23  ;;  %v10856_v33 = vrot.slane %v10641_v19, %v16020_v29  ;;  %v16024_v51 = vld [vmem:[#allocation36_spill] sm:$0xff] }
 0x440   : > { %2201 = vmatpush1.msra.mxu1 %v1557_v47  ;;  %2074 = vmatprep.mubr.f32.mxu1 %v15943_v54  ;;  %v1427_v47 = vsel %vm308_vm0, %v16022_v6, %v1408_v18  ;;  %v1334_v18 = vsel %vm239_vm1, %v16025_v8, %v1318_v9  ;;  %v1458_v58 = vmul.f32 %v10810_v40, %v1423_v36  ;;  %v16030_v23 = vld [vmem:[#allocation20_spill] sm:$0xff]  ;;  %v16031_v6 = vld [vmem:[#allocation31_spill] sm:$0xff] }
 0x441   : > { %v1316_v46 = vpop.permute.xlu1 %1315  ;;  %2202 = vmatprep.subr.mxu1 %v1554_v12  ;;  %v1314_v38 = vpop.permute.xlu0 %1313  ;;  %16021 = vst [vmem:[#allocation25_spill] sm:$0xff] %v10856_v33  ;;  %v1461_v12 = vmul.f32 %v10818_v17, %v1428_v2  ;;  %v1457_v31 = vmul.f32 %v10818_v17, %v1427_v47 }
 0x442   : > { %2203 = vmatpush1.msra.mxu1 %v1553_v53  ;;  %v1330_v53 = vsel %vm239_vm1, %v1318_v9, %v16024_v51  ;;  %v1333_v60 = vsel %vm239_vm1, %v16028_v37, %v1316_v46  ;;  %v1332_v36 = vsel %vm239_vm1, %v16030_v23, %v1314_v38 }
 0x443   : > { %2204 = vmatprep.subr.mxu1 %v1470_v10  ;;  %8187 = vmatmul.mubr.msk.f32.gmra.mxu1 %vm1896_vm8, %v16018_v21  ;;  %v16027_v10 = vld [vmem:[#allocation37_spill] sm:$0xff]  ;;  %v1374_v2 = vmul.f32 %v10856_v33, %v1330_v53  ;;  %v16029_v21 = vld [vmem:[#allocation32_spill] sm:$0xff] }
 0x444   : > { %2205 = vmatpush1.msra.mxu1 %v1469_v14  ;;  %2080 = vmatprep.mubr.f32.mxu1 %v15943_v54  ;;  %v1329_v14 = vsel %vm239_vm1, %v1316_v46, %v16027_v10  ;;  %v1369_v46 = vmul.f32 %v10864_v7, %v1333_v60  ;;  %v16036_v10 = vld [vmem:[#allocation24_spill] sm:$0xff]  ;;  %v16037_v60 = vld [vmem:[#allocation41_spill] sm:$0xff] }
 0x445   : > { %v1312_v43 = vpop.permute.xlu1 %1311  ;;  %2206 = vmatprep.subr.mxu1 %v1466_v56  ;;  %v2500_v16 = vpop.permute.xlu0 %2499  ;;  %v1373_v56 = vmul.f32 %v10864_v7, %v1334_v18  ;;  %v1370_v29 = vmul.f32 %v10856_v33, %v1329_v14  ;;  %v10909_v18 = vld [vmem:[%s15411_s1 + $0x30] ss:$0 sm:$0xff] }
 0x446   : > { %2207 = vmatpush1.msra.mxu1 %v1465_v35  ;;  %v1328_v35 = vsel %vm239_vm1, %v1314_v38, %v16029_v21  ;;  %v1327_v47 = vsel %vm239_vm1, %v1312_v43, %v16031_v6  ;;  %16034 = vst [vmem:[#allocation12_spill] sm:$0xff] %v10909_v18 }
 0x447   : > { %2208 = vmatprep.subr.mxu1 %v1462_v1  ;;  %8188 = vmatmul.mubr.msk.f32.gmra.mxu1 %vm1896_vm8, %v16026_v62  ;;  %v10900_v1 = vld [vmem:[%s15411_s1 + $0x38] ss:$0 sm:$0xff]  ;;  %v1366_v8 = vmul.f32 %v10856_v33, %v1328_v35  ;;  %v1362_v14 = vmul.f32 %v10856_v33, %v1327_v47 }
 0x448   : > { %2209 = vmatpush1.msra.mxu1 %v1461_v12  ;;  %2252 = vmatprep.mubr.f32.mxu1 %v15943_v54  ;;  %16032 = vst [vmem:[#allocation14_spill] sm:$0xff] %v10900_v1  ;;  %v16033_v12 = vld [vmem:[#allocation21_spill] sm:$0xff]  ;;  %v16035_v62 = vld [vmem:[#allocation42_spill] sm:$0xff] }
 0x449   : > { %v2498_v9 = vpop.permute.xlu1 %2497  ;;  %2210 = vmatprep.subr.mxu1 %v1458_v58  ;;  %v2496_v3 = vpop.permute.xlu0 %2495  ;;  %v1331_v51 = vsel %vm239_vm1, %v16033_v12, %v1312_v43  ;;  %v1365_v58 = vmul.f32 %v10864_v7, %v1332_v36  ;;  %v2504_v43 = vsel %vm894_vm7, %v16036_v10, %v2500_v16  ;;  %v16039_v36 = vld [vmem:[#allocation27_spill] sm:$0xff] }
 0x44a   : > { %2211 = vmatpush1.msra.mxu1 %v1457_v31  ;;  %v2516_v31 = vsel %vm894_vm7, %v2500_v16, %v16035_v62  ;;  %v1361_v37 = vmul.f32 %v10864_v7, %v1331_v51  ;;  %v2547_v16 = vmul.f32 %v10909_v18, %v2504_v43  ;;  %v16041_v12 = vld [vmem:[#allocation39_spill] sm:$0xff]  ;;  %v10952_v43 = vrot.slane %v10632_v63, %v10473_v42 }
 0x44b   : > { %2212 = vmatprep.subr.mxu1 %v1374_v2  ;;  %v2515_v2 = vsel %vm894_vm7, %v2498_v9, %v16037_v60  ;;  %v2548_v23 = vmul.f32 %v10900_v1, %v2516_v31 }
 0x44c   : > { %2213 = vmatpush1.msra.mxu1 %v1373_v56  ;;  %v16038_v56 = vld [vmem:[#allocation58_spill] sm:$0xff]  ;;  %16044 = vst [vmem:[#allocation9_spill] sm:$0xff] %v10952_v43 }
 0x44d   : > { %v2494_v38 = vpop.permute.xlu1 %2493  ;;  %2214 = vmatprep.subr.mxu1 %v1370_v29  ;;  %v2404_v53 = vpop.permute.xlu0 %2403  ;;  %v2503_v21 = vsel %vm894_vm7, %v16038_v56, %v2498_v9  ;;  %v2514_v29 = vsel %vm894_vm7, %v2496_v3, %v16039_v36  ;;  %v2544_v9 = vmul.f32 %v10900_v1, %v2515_v2 }
 0x44e   : > { %2215 = vmatpush1.msra.mxu1 %v1369_v46  ;;  %v16040_v46 = vld [vmem:[#allocation33_spill] sm:$0xff]  ;;  %v2543_v51 = vmul.f32 %v10909_v18, %v2503_v21  ;;  %v2540_v10 = vmul.f32 %v10900_v1, %v2514_v29  ;;  %v2408_v60 = vsel %vm805_vm6, %v10516_v22, %v2404_v53  ;;  %v10998_v29 = vrot.slane %v10632_v63, %v10548_v0 }
 0x44f   : > { %2216 = vmatprep.subr.mxu1 %v1366_v8  ;;  %v2502_v6 = vsel %vm894_vm7, %v16040_v46, %v2496_v3  ;;  %v2513_v8 = vsel %vm894_vm7, %v2494_v38, %v10122_v61  ;;  %v16043_v3 = vld [vmem:[#allocation7_spill] sm:$0xff] }
 0x450   : > { %2217 = vmatpush1.msra.mxu1 %v1365_v58  ;;  %v10944_v58 = vrot.slane %v10641_v19, %v10473_v42  ;;  %v2501_v62 = vsel %vm894_vm7, %v16043_v3, %v2494_v38  ;;  %v2539_v61 = vmul.f32 %v10909_v18, %v2502_v6  ;;  %v2536_v38 = vmul.f32 %v10900_v1, %v2513_v8  ;;  %v16051_v3 = vld [vmem:[#allocation59_spill] sm:$0xff] }
 0x451   : > { %v2402_v35 = vpop.permute.xlu1 %2401  ;;  %2218 = vmatprep.subr.mxu1 %v1362_v14  ;;  %v16045_v14 = vld [vmem:[#allocation47_spill] sm:$0xff]  ;;  %v2535_v42 = vmul.f32 %v10909_v18, %v2501_v62  ;;  %16048 = vst [vmem:[#allocation55_spill] sm:$0xff] %v10998_v29 }
 0x452   : > { %2219 = vmatpush1.msra.mxu1 %v1361_v37  ;;  %v2400_v47 = vpop.permute.xlu0 %2399  ;;  %16042 = vst [vmem:[#allocation52_spill] sm:$0xff] %v10944_v58  ;;  %v2420_v37 = vsel %vm805_vm6, %v2404_v53, %v16045_v14  ;;  %v2419_v2 = vsel %vm805_vm6, %v2402_v35, %v10156_v25  ;;  %v2407_v56 = vsel %vm805_vm6, %v10518_v50, %v2402_v35 }
 0x453   : > { %8193 = vmatmul.mubr.msk.f32.vlgmr.msra.gmra.mxu1 %vm1896_vm8, %v16041_v12  ;;  %2727 = vmatprep.subr.mxu1 %v2548_v23  ;;  %v2451_v53 = vmul.f32 %v10952_v43, %v2408_v60  ;;  %v2418_v21 = vsel %vm805_vm6, %v2400_v47, %v10208_v27  ;;  %v2406_v25 = vsel %vm805_vm6, %v10176_v30, %v2400_v47  ;;  %v16047_v30 = vld [vmem:[#allocation50_spill] sm:$0xff] }
 0x454   : > { %2728 = vmatpush1.msra.mxu1 %v2547_v16  ;;  %2258 = vmatprep.mubr.f32.mxu1 %v15943_v54  ;;  %v2448_v50 = vmul.f32 %v10944_v58, %v2419_v2  ;;  %v2447_v35 = vmul.f32 %v10952_v43, %v2407_v56  ;;  %v10990_v27 = vrot.slane %v10641_v19, %v10548_v0 }
 0x455   : > { %v2398_v31 = vpop.permute.xlu1 %2397  ;;  %2729 = vmatprep.subr.mxu1 %v2544_v9  ;;  %v2444_v36 = vmul.f32 %v10944_v58, %v2418_v21 }
 0x456   : > { %2730 = vmatpush1.msra.mxu1 %v2543_v51  ;;  %v2308_v22 = vpop.permute.xlu0 %2307  ;;  %v2417_v16 = vsel %vm805_vm6, %v2398_v31, %v10307_v15  ;;  %16046 = vst [vmem:[#allocation51_spill] sm:$0xff] %v10990_v27  ;;  %v2443_v15 = vmul.f32 %v10952_v43, %v2406_v25  ;;  %v16050_v51 = vld [vmem:[#allocation60_spill] sm:$0xff] }
 0x457   : > { %8194 = vmatmul.mubr.msk.f32.gmra.mxu1 %vm1896_vm8, %v10500_v28  ;;  %2731 = vmatprep.subr.mxu1 %v2540_v10  ;;  %v2452_v28 = vmul.f32 %v10944_v58, %v2420_v37  ;;  %v2324_v46 = vsel %vm716_vm5, %v2308_v22, %v10412_v4  ;;  %v2312_v19 = vsel %vm716_vm5, %v10591_v59, %v2308_v22  ;;  %v16049_v4 = vld [vmem:[#allocation63_spill] sm:$0xff] }
 0x458   : > { %2732 = vmatpush1.msra.mxu1 %v2539_v61  ;;  %2264 = vmatprep.mubr.f32.mxu1 %v15943_v54  ;;  %v2440_v47 = vmul.f32 %v10944_v58, %v2417_v16  ;;  %v2355_v9 = vmul.f32 %v10998_v29, %v2312_v19  ;;  %v16052_v61 = vld [vmem:[#allocation64_spill] sm:$0xff] }
 0x459   : > { %2733 = vmatprep.subr.mxu1 %v2536_v38  ;;  %v2306_v23 = vpop.permute.xlu1 %2305 }
 0x45a   : > { %2734 = vmatpush1.msra.mxu1 %v2535_v42  ;;  %v2304_v6 = vpop.permute.xlu0 %2303  ;;  %v2323_v63 = vsel %vm716_vm5, %v2306_v23, %v10480_v39  ;;  %v2311_v59 = vsel %vm716_vm5, %v16049_v4, %v2306_v23 }
 0x45b   : > { %8195 = vmatmul.mubr.msk.f32.gmra.mxu1 %vm1896_vm8, %v10541_v44  ;;  %2735 = vmatprep.subr.mxu1 %v2452_v28  ;;  %v2405_v44 = vsel %vm805_vm6, %v16047_v30, %v2398_v31  ;;  %v2322_v8 = vsel %vm716_vm5, %v2304_v6, %v16050_v51  ;;  %v2310_v39 = vsel %vm716_vm5, %v16051_v3, %v2304_v6 }
 0x45c   : > { %2736 = vmatpush1.msra.mxu1 %v2451_v53  ;;  %2270 = vmatprep.mubr.f32.mxu1 %v15943_v54  ;;  %v2439_v0 = vmul.f32 %v10952_v43, %v2405_v44  ;;  %v2352_v62 = vmul.f32 %v10990_v27, %v2323_v63  ;;  %v2351_v31 = vmul.f32 %v10998_v29, %v2311_v59 }
 0x45d   : > { %2737 = vmatprep.subr.mxu1 %v2448_v50  ;;  %v2302_v12 = vpop.permute.xlu1 %2301  ;;  %v2348_v37 = vmul.f32 %v10990_v27, %v2322_v8  ;;  %v2347_v60 = vmul.f32 %v10998_v29, %v2310_v39 }
 0x45e   : > { %2738 = vmatpush1.msra.mxu1 %v2447_v35  ;;  %v2321_v10 = vsel %vm716_vm5, %v2302_v12, %v10653_v5  ;;  %v2309_v14 = vsel %vm716_vm5, %v16052_v61, %v2302_v12 }
 0x45f   : > { %8196 = vmatmul.mubr.msk.f32.gmra.mxu1 %vm1896_vm8, %v10575_v45  ;;  %2739 = vmatprep.subr.mxu1 %v2444_v36  ;;  %v2356_v45 = vmul.f32 %v10990_v27, %v2324_v46  ;;  %v2344_v38 = vmul.f32 %v10990_v27, %v2321_v10  ;;  %v2343_v42 = vmul.f32 %v10998_v29, %v2309_v14 }
 0x460   : > { %2740 = vmatpush1.msra.mxu1 %v2443_v15  ;;  %2783 = vmatprep.mubr.f32.mxu1 %v15943_v54 }
 0x461   : > { %2741 = vmatprep.subr.mxu1 %v2440_v47 }
 0x462   : > { %2742 = vmatpush1.msra.mxu1 %v2439_v0 }
 0x463   : > { %2743 = vmatprep.subr.mxu1 %v2356_v45 }
 0x464   : > { %2744 = vmatpush1.msra.mxu1 %v2355_v9 }
 0x465   : > { %2745 = vmatprep.subr.mxu1 %v2352_v62 }
 0x466   : > { %2746 = vmatpush1.msra.mxu1 %v2351_v31 }
 0x467   : > { %2747 = vmatprep.subr.mxu1 %v2348_v37  ;;  %v2826_v47 = vpop.permute.xlu0 %2825 }
 0x468   : > { %2748 = vmatpush1.msra.mxu1 %v2347_v60 }
 0x469   : > { %2749 = vmatprep.subr.mxu1 %v2344_v38 }
 0x46a   : > { %2750 = vmatpush1.msra.mxu1 %v2343_v42  ;;  %v2830_v51 = vpop.permute.xlu1 %2829 }
 0x46b   : > { %8205 = vmatmul.mubr.msk.f32.vlgmr.msra.gmra.mxu1 %vm1896_vm8, %v10671_v34 }
 0x46c   : > { %2789 = vmatprep.mubr.f32.mxu1 %v15943_v54 }
 0x46f   : > { %8206 = vmatmul.mubr.msk.f32.gmra.mxu1 %vm1896_vm8, %v10693_v55 }
 0x470   : > { %2795 = vmatprep.mubr.f32.mxu1 %v15943_v54 }
 0x473   : > { %8207 = vmatmul.mubr.msk.f32.gmra.mxu1 %vm1896_vm8, %v10711_v49 }
 0x474   : > { %2801 = vmatprep.mubr.f32.mxu1 %v15943_v54 }
 0x477   : > { %8208 = vmatmul.mubr.msk.f32.gmra.mxu1 %vm1896_vm8, %v10726_v26 }
 0x478   : > { %3839 = vmatprep.mubr.f32.mxu1 %v15943_v54 }
 0x4b2   : > { %v1975_v5 = vpop.f32.mrf.mxu0 }
 0x4b4   : > { %v1977_v2 = vpop.f32.mrf.mxu0 }
 0x4b6   : > { %v1981_v34 = vpop.f32.mrf.mxu0 }
 0x4b8   : > { %v1983_v56 = vpop.f32.mrf.mxu0 }
 0x4ba   : > { %v1987_v22 = vpop.f32.mrf.mxu0 }
 0x4bc   : > { %v1989_v28 = vpop.f32.mrf.mxu0 }
 0x4be   : > { %v1993_v53 = vpop.f32.mrf.mxu0 }
 0x4c0   : > { %v1995_v55 = vpop.f32.mrf.mxu0 }
 0x4ca   : > { %v2165_v21 = vpop.f32.mrf.mxu0 }
 0x4cb   : > { %v2166_v46 = vadd.f32 %v2165_v21, %v1975_v5 }
 0x4cc   : > { %v2167_v25 = vpop.f32.mrf.mxu0 }
 0x4cd   : > { %v2168_v19 = vadd.f32 %v2167_v25, %v1977_v2 }
 0x4ce   : > { %v2171_v23 = vpop.f32.mrf.mxu0 }
 0x4cf   : > { %v2172_v0 = vadd.f32 %v2171_v23, %v1981_v34 }
 0x4d0   : > { %v2173_v50 = vpop.f32.mrf.mxu0 }
 0x4d1   : > { %v2174_v59 = vadd.f32 %v2173_v50, %v1983_v56 }
 0x4d2   : > { %v2177_v49 = vpop.f32.mrf.mxu0 }
 0x4d3   : > { %v11050_v35 = vadd.f32 %v2177_v49, %v1987_v22 }
 0x4d4   : > { %v2179_v16 = vpop.f32.mrf.mxu0 }
 0x4d5   : > { %v11052_v30 = vadd.f32 %v2179_v16, %v1989_v28 }
 0x4d6   : > { %v2183_v26 = vpop.f32.mrf.mxu0 }
 0x4d7   : > { %v11054_v44 = vadd.f32 %v2183_v26, %v1993_v53 }
 0x4d8   : > { %v2185_v36 = vpop.f32.mrf.mxu0 }
 0x4d9   : > { %v11056_v15 = vadd.f32 %v2185_v36, %v1995_v55  ;;  %v11081_v55 = vld [vmem:[%s15412_s2 + $0x10] sm:$0xff] }
 0x4e3   : > { %v2696_v6 = vpop.f32.mrf.mxu0 }
 0x4e4   : > { %v2808_v63 = vadd.f32 %v2696_v6, %v2166_v46 }
 0x4e5   : > { %v2698_v4 = vpop.f32.mrf.mxu0 }
 0x4e6   : > { %v2809_v12 = vadd.f32 %v2698_v4, %v2168_v19  ;;  %v11058_v45 = vadd.f32 %v2826_v47, %v2808_v63 }
 0x4e7   : > { %v2702_v9 = vpop.f32.mrf.mxu0 }
 0x4e8   : > { %v2812_v8 = vadd.f32 %v2702_v9, %v2172_v0  ;;  %v11060_v3 = vadd.f32 %v2826_v47, %v2809_v12  ;;  %v2868_v39 = vmul.f32 %v11058_v45, %v11058_v45 }
 0x4e9   : > { %v2704_v62 = vpop.f32.mrf.mxu0 }
 0x4ea   : > { %v11064_v31 = vadd.f32 %v2830_v51, %v2812_v8  ;;  %v2813_v10 = vadd.f32 %v2704_v62, %v2174_v59  ;;  %v2856_v61 = vadd.f32 %v11060_v3, %v11058_v45  ;;  %v2869_v14 = vmul.f32 %v11060_v3, %v11060_v3 }
 0x4ec   : > { %v11070_v37 = vadd.f32 %v2830_v51, %v2813_v10  ;;  %v2857_v60 = vadd.f32 %v2856_v61, %v11064_v31  ;;  %v2870_v38 = vmul.f32 %v11064_v31, %v11064_v31  ;;  %v2872_v42 = vadd.f32 %v2869_v14, %v2868_v39 }
 0x4ee   : > { %v2858_v5 = vadd.f32 %v2857_v60, %v11070_v37  ;;  %v2871_v2 = vmul.f32 %v11070_v37, %v11070_v37  ;;  %v2873_v34 = vadd.f32 %v2872_v42, %v2870_v38 }
 0x4f0   : > { %2859 = vadd.xlane.f32.xlu1 %v2858_v5  ;;  %v2874_v56 = vadd.f32 %v2873_v34, %v2871_v2 }
 0x4f2   : > { %2875 = vadd.xlane.f32.xlu0 %v2874_v56 }
 0x4fb   : > { %v2064_v22 = vpop.f32.mrf.mxu1 }
 0x4fd   : > { %v2066_v28 = vpop.f32.mrf.mxu1 }
 0x4ff   : > { %v2070_v53 = vpop.f32.mrf.mxu1 }
 0x501   : > { %2833 = vperm.xlu1 %8520, %v11081_v55   ;;  %v2072_v21 = vpop.f32.mrf.mxu1 }
 0x503   : > { %v2076_v25 = vpop.f32.mrf.mxu1 }
 0x505   : > { %v2078_v23 = vpop.f32.mrf.mxu1 }
 0x507   : > { %v2082_v50 = vpop.f32.mrf.mxu1 }
 0x509   : > { %v2084_v49 = vpop.f32.mrf.mxu1 }
 0x513   : > { %v2254_v16 = vpop.f32.mrf.mxu1 }
 0x514   : > { %v2255_v8 = vadd.f32 %v2254_v16, %v2064_v22 }
 0x515   : > { %v2256_v26 = vpop.f32.mrf.mxu1 }
 0x516   : > { %v2257_v62 = vadd.f32 %v2256_v26, %v2066_v28 }
 0x517   : > { %v2260_v36 = vpop.f32.mrf.mxu1 }
 0x518   : > { %v2261_v14 = vadd.f32 %v2260_v36, %v2070_v53 }
 0x519   : > { %v2262_v46 = vpop.f32.mrf.mxu1 }
 0x51a   : > { %v2263_v5 = vadd.f32 %v2262_v46, %v2072_v21 }
 0x51b   : > { %v2266_v19 = vpop.f32.mrf.mxu1 }
 0x51c   : > { %v11084_v6 = vadd.f32 %v2266_v19, %v2076_v25  ;;  %v11115_v19 = vld [vmem:[%s15412_s2 + $0x18] sm:$0xff] }
 0x51d   : > { %v2268_v0 = vpop.f32.mrf.mxu1 }
 0x51e   : > { %v11086_v63 = vadd.f32 %v2268_v0, %v2078_v23 }
 0x51f   : > { %v2272_v4 = vpop.f32.mrf.mxu1 }
 0x520   : > { %v11088_v59 = vadd.f32 %v2272_v4, %v2082_v50 }
 0x521   : > { %v2274_v12 = vpop.f32.mrf.mxu1 }
 0x522   : > { %v11090_v9 = vadd.f32 %v2274_v12, %v2084_v49 }
 0x52b   : > { %v2785_v39 = vpop.f32.mrf.mxu1 }
 0x52c   : > { %v2810_v10 = vadd.f32 %v2785_v39, %v2255_v8 }
 0x52d   : > { %v2787_v61 = vpop.f32.mrf.mxu1 }
 0x52e   : > { %v2811_v60 = vadd.f32 %v2787_v61, %v2257_v62  ;;  %v11092_v38 = vadd.f32 %v2826_v47, %v2810_v10 }
 0x52f   : > { %v2791_v42 = vpop.f32.mrf.mxu1 }
 0x530   : > { %v11094_v2 = vadd.f32 %v2826_v47, %v2811_v60  ;;  %v2814_v34 = vadd.f32 %v2791_v42, %v2261_v14  ;;  %v2918_v53 = vmul.f32 %v11092_v38, %v11092_v38 }
 0x531   : > { %v2793_v56 = vpop.f32.mrf.mxu1 }
 0x532   : > { %v2906_v25 = vadd.f32 %v11094_v2, %v11092_v38  ;;  %v2919_v22 = vmul.f32 %v11094_v2, %v11094_v2  ;;  %v11100_v23 = vadd.f32 %v2830_v51, %v2814_v34  ;;  %v2815_v28 = vadd.f32 %v2793_v56, %v2263_v5 }
 0x534   : > { %v2920_v50 = vmul.f32 %v11100_v23, %v11100_v23  ;;  %v11106_v21 = vadd.f32 %v2830_v51, %v2815_v28  ;;  %v2907_v47 = vadd.f32 %v2906_v25, %v11100_v23  ;;  %v2922_v49 = vadd.f32 %v2919_v22, %v2918_v53  ;;  %v2708_v25 = vpop.f32.mrf.mxu0  ;;  %v2797_v28 = vpop.f32.mrf.mxu1 }
 0x535   : > { %v8643_v51 = vmov 16  }
 0x536   : > { %v2908_v16 = vadd.f32 %v2907_v47, %v11106_v21  ;;  %v2921_v26 = vmul.f32 %v11106_v21, %v11106_v21  ;;  %v2923_v36 = vadd.f32 %v2922_v49, %v2920_v50  ;;  %8522 = vset.pattern.permute.xlu1 %v8643_v51  ;;  %v2710_v22 = vpop.f32.mrf.mxu0 }
 0x538   : > { %2909 = vadd.xlane.f32.xlu0 %v2908_v16  ;;  %v2924_v46 = vadd.f32 %v2923_v36, %v2921_v26  ;;  %v2714_v49 = vpop.f32.mrf.mxu0  ;;  %v2799_v16 = vpop.f32.mrf.mxu1 }
 0x53c   : > { %2925 = vadd.xlane.f32.xlu0 %v2924_v46 }
 0x552   : > { %2837 = vperm.xlu0 %8519, %v11115_v19  }
 0x556   : > { %8521 = vset.pattern.permute.xlu0 %v8643_v51 }
 0x579   : > { %v2860_v0 = vpop.xlane.xlu1 %2859 }
 0x57a   : > { %v2861_v4 = vrot.slane %v2860_v0, 4 }
 0x57b   : > { %v2876_v12 = vpop.xlane.xlu0 %2875 }
 0x57c   : > { %v2862_v8 = vadd.f32 %v2861_v4, %v2860_v0  ;;  %v2877_v39 = vrot.slane %v2876_v12, 4  ;;  %v2816_v0 = vadd.f32 %v2708_v25, %v11050_v35  ;;  %v2817_v4 = vadd.f32 %v2710_v22, %v11052_v30 }
 0x57d   : > { %v2834_v36 = vpop.permute.xlu1 %2833  ;;  %v2820_v35 = vadd.f32 %v2714_v49, %v11054_v44 }
 0x57e   : > { %v2878_v62 = vadd.f32 %v2877_v39, %v2876_v12  ;;  %v2863_v10 = vrot.slane %v2862_v8, 2  ;;  %v2716_v39 = vpop.f32.mrf.mxu0 }
 0x57f   : > { %v2821_v30 = vadd.f32 %v2716_v39, %v11056_v15 }
 0x580   : > { %v2879_v61 = vrot.slane %v2878_v62, 2  ;;  %v2864_v14 = vadd.f32 %v2863_v10, %v2862_v8  ;;  %v11128_v10 = vadd.f32 %v2834_v36, %v2817_v4 }
 0x582   : > { %v2880_v60 = vadd.f32 %v2879_v61, %v2878_v62  ;;  %v2865_v42 = vrot.slane %v2864_v14, 1  ;;  %v11126_v62 = vadd.f32 %v2834_v36, %v2816_v0 }
 0x584   : > { %v2881_v5 = vrot.slane %v2880_v60, 1  ;;  %v2866_v34 = vadd.f32 %v2865_v42, %v2864_v14  ;;  %v2819_v42 = vadd.f32 %v2799_v16, %v11086_v63  ;;  %v2988_v44 = vadd.f32 %v11128_v10, %v11126_v62 }
 0x586   : > { %v2882_v56 = vadd.f32 %v2881_v5, %v2880_v60  ;;  %8344 = vpush %v2866_v34  ;;  %v2818_v60 = vadd.f32 %v2797_v28, %v11084_v6  ;;  %v2803_v5 = vpop.f32.mrf.mxu1  ;;  %v11136_v22 = vadd.f32 %v2834_v36, %v2819_v42  ;;  %v3001_v6 = vmul.f32 %v11128_v10, %v11128_v10 }
 0x588   : > { %8346 = vpush %v2882_v56  ;;  %v11134_v25 = vadd.f32 %v2834_v36, %v2818_v60  ;;  %v2805_v49 = vpop.f32.mrf.mxu1  ;;  %v3051_v4 = vmul.f32 %v11136_v22, %v11136_v22 }
 0x58a   : > { %v3050_v0 = vmul.f32 %v11134_v25, %v11134_v25 }
 0x5b7   : > { %s8345_s11 = spop %8344 }
 0x5b8   : > { %s11120_s12 = smul.f32 0.00024414063, %s8345_s11 }
 0x5b9   : > { %s8347_s13 = spop %8346 }
 0x5ba   : > { %s2889_s14 = smul.f32 0.00024414063, %s8347_s13 }
 0x5bb   : > { %s2890_s17 = smul.f32 %s11120_s12, %s11120_s12 }
 0x5bd   : > { %s2891_s18 = ssub.f32 %s2889_s14, %s2890_s17 }
 0x5bf   : > { %s2897_s19 = sadd.f32 1e-05, %s2891_s18 }
 0x5c1   : > { %v2898_v53 = vstv %s2897_s19  ;;  %v2910_v50 = vpop.xlane.xlu0 %2909 }
 0x5c2   : > { %8555 = vrsqrt.f32 %v2898_v53  ;;  %v2911_v47 = vrot.slane %v2910_v50, 4  ;;  %v2822_v53 = vadd.f32 %v2803_v5, %v11088_v59 }
 0x5c4   : > { %v2912_v26 = vadd.f32 %v2911_v47, %v2910_v50  ;;  %v3000_v47 = vmul.f32 %v11126_v62, %v11126_v62 }
 0x5c5   : > { %v2926_v46 = vpop.xlane.xlu0 %2925 }
 0x5c6   : > { %v2927_v12 = vrot.slane %v2926_v46, 4  ;;  %v2913_v8 = vrot.slane %v2912_v26, 2 }
 0x5c8   : > { %v2928_v61 = vadd.f32 %v2927_v12, %v2926_v46  ;;  %v2914_v14 = vadd.f32 %v2913_v8, %v2912_v26  ;;  %v3038_v46 = vadd.f32 %v11136_v22, %v11134_v25 }
 0x5ca   : > { %v2915_v34 = vrot.slane %v2914_v14, 1  ;;  %v2929_v56 = vrot.slane %v2928_v61, 2 }
 0x5cc   : > { %v2930_v50 = vadd.f32 %v2929_v56, %v2928_v61  ;;  %v2916_v28 = vadd.f32 %v2915_v34, %v2914_v14  ;;  %v3004_v61 = vadd.f32 %v3001_v6, %v3000_v47  ;;  %v2823_v14 = vadd.f32 %v2805_v49, %v11090_v9 }
 0x5cd   : > { %v2838_v63 = vpop.permute.xlu0 %2837 }
 0x5ce   : > { %v11145_v15 = vadd.f32 %v2838_v63, %v2820_v35  ;;  %v11147_v16 = vadd.f32 %v2838_v63, %v2822_v53  ;;  %v2931_v26 = vrot.slane %v2930_v50, 1  ;;  %v11149_v36 = vadd.f32 %v2838_v63, %v2821_v30 }
 0x5cf   : > { %v8556_v59 = vpop.eup %8555  ;;  %v11167_v30 = vadd.f32 %v2838_v63, %v2823_v14  ;;  %v3054_v53 = vadd.f32 %v3051_v4, %v3050_v0  ;;  %v11179_v63 = vld [vmem:[%s15412_s2 + $0x8] sm:$0xff] }
 0x5d0   : > { %8348 = vpush %v8556_v59  ;;  %v2932_v12 = vadd.f32 %v2931_v26, %v2930_v50  ;;  %v2989_v8 = vadd.f32 %v2988_v44, %v11145_v15  ;;  %v3002_v39 = vmul.f32 %v11145_v15, %v11145_v15  ;;  %v3003_v60 = vmul.f32 %v11149_v36, %v11149_v36 }
 0x5d1   : > { %8350 = vpush %v2916_v28  ;;  %v3039_v34 = vadd.f32 %v3038_v46, %v11147_v16  ;;  %v3052_v56 = vmul.f32 %v11147_v16, %v11147_v16  ;;  %v3053_v47 = vmul.f32 %v11167_v30, %v11167_v30  ;;  %v8644_v28 = vmov 17   ;;  %v11192_v46 = vld [vmem:[%s15412_s2] sm:$0xff] }
 0x5d2   : > { %8352 = vpush %v2932_v12  ;;  %v2990_v42 = vadd.f32 %v2989_v8, %v11149_v36  ;;  %v3005_v5 = vadd.f32 %v3004_v61, %v3002_v39  ;;  %v2892_v44 = vstv %s11120_s12 }
 0x5d3   : > { %v3040_v9 = vadd.f32 %v3039_v34, %v11167_v30  ;;  %v3055_v50 = vadd.f32 %v3054_v53, %v3052_v56  ;;  %v2893_v49 = vsub.f32 %v11058_v45, %v2892_v44  ;;  %v2894_v26 = vsub.f32 %v11060_v3, %v2892_v44 }
 0x5d4   : > { %2991 = vadd.xlane.f32.xlu1 %v2990_v42  ;;  %v3006_v35 = vadd.f32 %v3005_v5, %v3003_v60  ;;  %v2896_v59 = vsub.f32 %v11070_v37, %v2892_v44 }
 0x5d5   : > { %v3056_v6 = vadd.f32 %v3055_v50, %v3053_v47 }
 0x5d6   : > { %3007 = vadd.xlane.f32.xlu0 %v3006_v35 }
 0x5d8   : > { %3041 = vadd.xlane.f32.xlu1 %v3040_v9 }
 0x5dc   : > { %3057 = vadd.xlane.f32.xlu1 %v3056_v6 }
 0x5ec   : > { %3093 = vperm.xlu0 %8521, %v11115_v19  }
 0x5ed   : > { %3089 = vperm.xlu1 %8522, %v11081_v55  }
 0x5f1   : > { %8523 = vset.pattern.permute.xlu1 %v8644_v28 }
 0x5f2   : > { %3109 = vperm.xlu1 %8523, %v11115_v19   ;;  %v2895_v19 = vsub.f32 %v11064_v31, %v2892_v44 }
 0x5f6   : > { %8524 = vset.pattern.permute.xlu1 %v8643_v51 }
 0x5f7   : > { %2961 = vperm.xlu1 %8524, %v11179_v63  }
 0x5fb   : > { %8525 = vset.pattern.permute.xlu1 %v8644_v28 }
 0x5fc   : > { %3105 = vperm.xlu1 %8525, %v11081_v55  }
 0x600   : > { %8526 = vset.pattern.permute.xlu1 %v8643_v51 }
 0x601   : > { %s8349_s22 = spop %8348  ;;  %2957 = vperm.xlu1 %8526, %v11192_v46  }
 0x602   : > { %v2901_v55 = vstv %s8349_s22  ;;  %s8351_s7 = spop %8350 }
 0x603   : > { %v2902_v0 = vmul.f32 %v2901_v55, %v2893_v49  ;;  %v2903_v51 = vmul.f32 %v2901_v55, %v2894_v26  ;;  %v2904_v4 = vmul.f32 %v2901_v55, %v2895_v19  ;;  %v2905_v45 = vmul.f32 %v2901_v55, %v2896_v59  ;;  %s11195_s8 = smul.f32 0.00024414063, %s8351_s7  ;;  %s8353_s9 = spop %8352 }
 0x604   : > { %s2939_s10 = smul.f32 0.00024414063, %s8353_s9 }
 0x605   : > { %s2940_s11 = smul.f32 %s11195_s8, %s11195_s8  ;;  %8527 = vset.pattern.permute.xlu1 %v8644_v28 }
 0x606   : > { %2977 = vperm.xlu1 %8527, %v11179_v63  }
 0x607   : > { %s2941_s12 = ssub.f32 %s2939_s10, %s2940_s11 }
 0x609   : > { %s2947_s13 = sadd.f32 1e-05, %s2941_s12 }
 0x60a   : > { %2973 = vperm.xlu1 %8527, %v11192_v46  }
 0x60b   : > { %v2948_v3 = vstv %s2947_s13 }
 0x60c   : > { %8557 = vrsqrt.f32 %v2948_v3 }
 0x619   : > { %v8558_v31 = vpop.eup %8557 }
 0x61a   : > { %8354 = vpush %v8558_v31 }
 0x64b   : > { %s8355_s14 = spop %8354 }
 0x65d   : > { %v2992_v37 = vpop.xlane.xlu1 %2991 }
 0x65e   : > { %v2993_v12 = vrot.slane %v2992_v37, 4 }
 0x65f   : > { %v3008_v8 = vpop.xlane.xlu0 %3007 }
 0x660   : > { %v2994_v39 = vadd.f32 %v2993_v12, %v2992_v37  ;;  %v3009_v61 = vrot.slane %v3008_v8, 4 }
 0x661   : > { %v3042_v14 = vpop.xlane.xlu1 %3041 }
 0x662   : > { %v3010_v60 = vadd.f32 %v3009_v61, %v3008_v8  ;;  %v2995_v42 = vrot.slane %v2994_v39, 2 }
 0x664   : > { %v2996_v5 = vadd.f32 %v2995_v42, %v2994_v39  ;;  %v3011_v34 = vrot.slane %v3010_v60, 2 }
 0x665   : > { %v3058_v56 = vpop.xlane.xlu1 %3057 }
 0x666   : > { %v2997_v35 = vrot.slane %v2996_v5, 1  ;;  %v3012_v53 = vadd.f32 %v3011_v34, %v3010_v60 }
 0x668   : > { %v2998_v9 = vadd.f32 %v2997_v35, %v2996_v5  ;;  %v3013_v50 = vrot.slane %v3012_v53, 1 }
 0x669   : > { %v11201_v47 = vpop.permute.xlu1 %3089 }
 0x66a   : > { %8356 = vpush %v2998_v9  ;;  %v3014_v6 = vadd.f32 %v3013_v50, %v3012_v53  ;;  %v3059_v53 = vrot.slane %v3058_v56, 4 }
 0x66c   : > { %8358 = vpush %v3014_v6  ;;  %v3060_v50 = vadd.f32 %v3059_v53, %v3058_v56  ;;  %v2942_v6 = vstv %s11195_s8 }
 0x66d   : > { %v11203_v28 = vpop.permute.xlu1 %3109 }
 0x672   : > { %v11205_v44 = vpop.permute.xlu1 %2961 }
 0x673   : > { %v2968_v19 = vmul.f32 %v11205_v44, %v2904_v4  ;;  %v2969_v59 = vmul.f32 %v11205_v44, %v2905_v45 }
 0x677   : > { %v11207_v49 = vpop.permute.xlu1 %3105 }
 0x67c   : > { %v11209_v26 = vpop.permute.xlu1 %2957 }
 0x67d   : > { %v2964_v12 = vmul.f32 %v11209_v26, %v2902_v0  ;;  %v2965_v8 = vmul.f32 %v11209_v26, %v2903_v51  ;;  %v3043_v51 = vrot.slane %v3042_v14, 4 }
 0x67f   : > { %v3044_v9 = vadd.f32 %v3043_v51, %v3042_v14  ;;  %v2945_v14 = vsub.f32 %v11100_v23, %v2942_v6 }
 0x681   : > { %v11213_v55 = vpop.permute.xlu1 %2977 }
 0x682   : > { %v2984_v3 = vadd.f32 %v11213_v55, %v2968_v19  ;;  %v2985_v31 = vadd.f32 %v11213_v55, %v2969_v59  ;;  %v2951_v59 = vstv %s8355_s14 }
 0x684   : > { %v3125_v37 = vmul.f32 0.2, %v2985_v31  ;;  %v3124_v61 = vmul.f32 0.2, %v2984_v3 }
 0x685   : > { %v11219_v39 = vpop.permute.xlu1 %2973 }
 0x686   : > { %v11221_v60 = vmax.f32 %v2985_v31, %v3125_v37  ;;  %v2980_v4 = vadd.f32 %v11219_v39, %v2964_v12  ;;  %v2981_v45 = vadd.f32 %v11219_v39, %v2965_v8  ;;  %v11227_v5 = vmax.f32 %v2984_v3, %v3124_v61 }
 0x687   : > { %v3045_v3 = vrot.slane %v3044_v9, 2  ;;  %v2943_v31 = vsub.f32 %v11092_v38, %v2942_v6  ;;  %v3061_v37 = vrot.slane %v3060_v50, 2  ;;  %v2954_v12 = vmul.f32 %v2951_v59, %v2945_v14 }
 0x688   : > { %3551 = vrot.lane.b32.xlu1 %v11221_v60, %s8630_s29  ;;  %v3121_v42 = vmul.f32 0.2, %v2981_v45  ;;  %v3120_v34 = vmul.f32 0.2, %v2980_v4  ;;  %v2946_v61 = vsub.f32 %v11106_v21, %v2942_v6 }
 0x689   : > { %v2952_v56 = vmul.f32 %v2951_v59, %v2943_v31  ;;  %v3046_v8 = vadd.f32 %v3045_v3, %v3044_v9  ;;  %v3062_v38 = vadd.f32 %v3061_v37, %v3060_v50 }
 0x68a   : > { %v11229_v35 = vmax.f32 %v2981_v45, %v3121_v42  ;;  %v11235_v0 = vmax.f32 %v2980_v4, %v3120_v34  ;;  %v2944_v45 = vsub.f32 %v11094_v2, %v2942_v6  ;;  %v2970_v42 = vmul.f32 %v11205_v44, %v2954_v12 }
 0x68b   : > { %v2966_v4 = vmul.f32 %v11209_v26, %v2952_v56  ;;  %v2955_v23 = vmul.f32 %v2951_v59, %v2946_v61  ;;  %v3047_v21 = vrot.slane %v3046_v8, 1  ;;  %v3063_v50 = vrot.slane %v3062_v38, 1 }
 0x68c   : > { %3543 = vrot.lane.b32.xlu1 %v11227_v5, %s8630_s29  ;;  %3549 = vrot.lane.b32.xlu0 %v11229_v35, %s8630_s29  ;;  %v2953_v51 = vmul.f32 %v2951_v59, %v2944_v45  ;;  %v2986_v53 = vadd.f32 %v11213_v55, %v2970_v42 }
 0x68d   : > { %v2982_v34 = vadd.f32 %v11219_v39, %v2966_v4  ;;  %v2971_v9 = vmul.f32 %v11205_v44, %v2955_v23  ;;  %v3048_v37 = vadd.f32 %v3047_v21, %v3046_v8  ;;  %v3064_v14 = vadd.f32 %v3063_v50, %v3062_v38  ;;  %v11331_v23 = vpop.permute.xlu0 %3093 }
 0x68e   : > { %v2967_v2 = vmul.f32 %v11209_v26, %v2953_v51  ;;  %v3126_v31 = vmul.f32 0.2, %v2986_v53 }
 0x68f   : > { %v2987_v6 = vadd.f32 %v11213_v55, %v2971_v9 }
 0x690   : > { %3447 = vrot.lane.b32.xlu1 %v11227_v5, %s8627_s28  ;;  %3541 = vrot.lane.b32.xlu0 %v11235_v0, %s8630_s29  ;;  %v2983_v59 = vadd.f32 %v11219_v39, %v2967_v2  ;;  %v11296_v55 = vmax.f32 %v2986_v53, %v3126_v31 }
 0x691   : > { %v3127_v44 = vmul.f32 0.2, %v2987_v6 }
 0x692   : > { %16054 = vst [vmem:[#allocation30_spill] sm:$0xff] %v11296_v55  ;;  %v3123_v56 = vmul.f32 0.2, %v2983_v59 }
 0x693   : > { %v11302_v39 = vmax.f32 %v2987_v6, %v3127_v44 }
 0x694   : > { %3453 = vrot.lane.b32.xlu1 %v11229_v35, %s8627_s28  ;;  %3455 = vrot.lane.b32.xlu0 %v11221_v60, %s8627_s28  ;;  %v11304_v12 = vmax.f32 %v2983_v59, %v3123_v56 }
 0x698   : > { %3314 = vrot.lane.b32.xlu1 %v11227_v5, %s8625_s27  ;;  %3445 = vrot.lane.b32.xlu0 %v11235_v0, %s8627_s28 }
 0x69b   : > { %s8357_s17 = spop %8356 }
 0x69c   : > { %s11249_s18 = smul.f32 0.00024414063, %s8357_s17  ;;  %3320 = vrot.lane.b32.xlu1 %v11229_v35, %s8625_s27  ;;  %3322 = vrot.lane.b32.xlu0 %v11221_v60, %s8625_s27 }
 0x69d   : > { %s8359_s19 = spop %8358 }
 0x69e   : > { %s3022_s20 = smul.f32 %s11249_s18, %s11249_s18  ;;  %v3024_v8 = vstv %s11249_s18 }
 0x69f   : > { %s3021_s21 = smul.f32 0.00024414063, %s8359_s19  ;;  %v3025_v61 = vsub.f32 %v11126_v62, %v3024_v8  ;;  %v3026_v4 = vsub.f32 %v11128_v10, %v3024_v8  ;;  %v3027_v38 = vsub.f32 %v11145_v15, %v3024_v8  ;;  %v3028_v45 = vsub.f32 %v11149_v36, %v3024_v8 }
 0x6a0   : > { %3234 = vrot.lane.b32.xlu1 %v11227_v5, %s8624_s24  ;;  %3312 = vrot.lane.b32.xlu0 %v11235_v0, %s8625_s27 }
 0x6a1   : > { %s3023_s22 = ssub.f32 %s3021_s21, %s3022_s20 }
 0x6a3   : > { %s3029_s25 = sadd.f32 1e-05, %s3023_s22 }
 0x6a4   : > { %3240 = vrot.lane.b32.xlu1 %v11229_v35, %s8624_s24  ;;  %3242 = vrot.lane.b32.xlu0 %v11221_v60, %s8624_s24 }
 0x6a5   : > { %v3030_v19 = vstv %s3029_s25 }
 0x6a6   : > { %8559 = vrsqrt.f32 %v3030_v19  ;;  %v3122_v19 = vmul.f32 0.2, %v2982_v34 }
 0x6a8   : > { %3154 = vrot.lane.b32.xlu1 %v11227_v5, %s8623_s23  ;;  %3232 = vrot.lane.b32.xlu0 %v11235_v0, %s8624_s24  ;;  %v11294_v26 = vmax.f32 %v2982_v34, %v3122_v19 }
 0x6aa   : > { %16053 = vst [vmem:[#allocation34_spill] sm:$0xff] %v11294_v26 }
 0x6ac   : > { %3160 = vrot.lane.b32.xlu1 %v11229_v35, %s8623_s23  ;;  %3162 = vrot.lane.b32.xlu0 %v11221_v60, %s8623_s23 }
 0x6b0   : > { %4224 = vrot.lane.b32.xlu1 %v11221_v60, %s8636_s6  ;;  %3152 = vrot.lane.b32.xlu0 %v11235_v0, %s8623_s23 }
 0x6b3   : > { %v8560_v3 = vpop.eup %8559 }
 0x6b4   : > { %8360 = vpush %v8560_v3  ;;  %4216 = vrot.lane.b32.xlu1 %v11227_v5, %s8636_s6  ;;  %4222 = vrot.lane.b32.xlu0 %v11229_v35, %s8636_s6 }
 0x6b5   : > { %8362 = vpush %v3048_v37 }
 0x6b6   : > { %8364 = vpush %v3064_v14 }
 0x6b8   : > { %3557 = vrot.lane.b32.xlu1 %v11294_v26, %s8630_s29  ;;  %3559 = vrot.lane.b32.xlu0 %v11296_v55, %s8630_s29 }
 0x6bc   : > { %3471 = vrot.lane.b32.xlu1 %v11302_v39, %s8627_s28  ;;  %3469 = vrot.lane.b32.xlu0 %v11304_v12, %s8627_s28 }
 0x6c0   : > { %3338 = vrot.lane.b32.xlu1 %v11302_v39, %s8625_s27  ;;  %3336 = vrot.lane.b32.xlu0 %v11304_v12, %s8625_s27 }
 0x6c4   : > { %3258 = vrot.lane.b32.xlu1 %v11302_v39, %s8624_s24  ;;  %3256 = vrot.lane.b32.xlu0 %v11304_v12, %s8624_s24 }
 0x6c8   : > { %3178 = vrot.lane.b32.xlu1 %v11302_v39, %s8623_s23  ;;  %3176 = vrot.lane.b32.xlu0 %v11304_v12, %s8623_s23 }
 0x6cc   : > { %4230 = vrot.lane.b32.xlu1 %v11294_v26, %s8636_s6  ;;  %4232 = vrot.lane.b32.xlu0 %v11296_v55, %s8636_s6 }
 0x6e5   : > { %s8361_s26 = spop %8360 }
 0x6e6   : > { %v3033_v42 = vstv %s8361_s26  ;;  %s8363_s7 = spop %8362 }
 0x6e7   : > { %v3034_v34 = vmul.f32 %v3033_v42, %v3025_v61  ;;  %v3035_v51 = vmul.f32 %v3033_v42, %v3026_v4  ;;  %v3036_v53 = vmul.f32 %v3033_v42, %v3027_v38  ;;  %v3037_v21 = vmul.f32 %v3033_v42, %v3028_v45  ;;  %s11333_s8 = smul.f32 0.00024414063, %s8363_s7  ;;  %s8365_s9 = spop %8364 }
 0x6e8   : > { %s3071_s10 = smul.f32 0.00024414063, %s8365_s9 }
 0x6e9   : > { %v3096_v62 = vmul.f32 %v11201_v47, %v3034_v34  ;;  %v3097_v10 = vmul.f32 %v11201_v47, %v3035_v51  ;;  %s3072_s11 = smul.f32 %s11333_s8, %s11333_s8  ;;  %v3100_v15 = vmul.f32 %v11331_v23, %v3036_v53  ;;  %v3101_v36 = vmul.f32 %v11331_v23, %v3037_v21 }
 0x6eb   : > { %v3112_v9 = vadd.f32 %v11207_v49, %v3096_v62  ;;  %v3113_v50 = vadd.f32 %v11207_v49, %v3097_v10  ;;  %s3073_s12 = ssub.f32 %s3071_s10, %s3072_s11  ;;  %v3116_v2 = vadd.f32 %v11203_v28, %v3100_v15  ;;  %v3117_v6 = vadd.f32 %v11203_v28, %v3101_v36 }
 0x6ed   : > { %v3129_v19 = vmul.f32 0.2, %v3113_v50  ;;  %s3079_s13 = sadd.f32 1e-05, %s3073_s12  ;;  %v3133_v3 = vmul.f32 0.2, %v3117_v6 }
 0x6ee   : > { %v3128_v31 = vmul.f32 0.2, %v3112_v9  ;;  %v3132_v14 = vmul.f32 0.2, %v3116_v2 }
 0x6ef   : > { %v11345_v59 = vmax.f32 %v3113_v50, %v3129_v19  ;;  %v3080_v37 = vstv %s3079_s13  ;;  %v11347_v44 = vmax.f32 %v3117_v6, %v3133_v3  ;;  %v3074_v6 = vstv %s11333_s8 }
 0x6f0   : > { %8561 = vrsqrt.f32 %v3080_v37  ;;  %v11353_v56 = vmax.f32 %v3112_v9, %v3128_v31  ;;  %v11355_v8 = vmax.f32 %v3116_v2, %v3132_v14  ;;  %v3075_v31 = vsub.f32 %v11134_v25, %v3074_v6 }
 0x6f1   : > { %3553 = vrot.lane.b32.xlu0 %v11345_v59, %s8630_s29  ;;  %3555 = vrot.lane.b32.xlu1 %v11347_v44, %s8630_s29  ;;  %v3077_v37 = vsub.f32 %v11147_v16, %v3074_v6  ;;  %v3078_v25 = vsub.f32 %v11167_v30, %v3074_v6 }
 0x6f5   : > { %3545 = vrot.lane.b32.xlu0 %v11353_v56, %s8630_s29  ;;  %3547 = vrot.lane.b32.xlu1 %v11355_v8, %s8630_s29 }
 0x6f9   : > { %3459 = vrot.lane.b32.xlu0 %v11347_v44, %s8627_s28  ;;  %3451 = vrot.lane.b32.xlu1 %v11355_v8, %s8627_s28 }
 0x6fa   : > { %v11365_v4 = vpop.permute.xlu1 %3551 }
 0x6fd   : > { %v8562_v61 = vpop.eup %8561  ;;  %3449 = vrot.lane.b32.xlu0 %v11353_v56, %s8627_s28  ;;  %3457 = vrot.lane.b32.xlu1 %v11345_v59, %s8627_s28 }
 0x6fe   : > { %8366 = vpush %v8562_v61  ;;  %v11375_v38 = vpop.permute.xlu0 %3549  ;;  %v11377_v45 = vpop.permute.xlu1 %3543 }
 0x6ff   : > { %16055 = vst [vmem:[#allocation16_spill] sm:$0xff] %v11377_v45 }
 0x701   : > { %3326 = vrot.lane.b32.xlu0 %v11347_v44, %s8625_s27  ;;  %3318 = vrot.lane.b32.xlu1 %v11355_v8, %s8625_s27 }
 0x702   : > { %v11383_v42 = vpop.permute.xlu0 %3541  ;;  %v11385_v34 = vpop.permute.xlu1 %3447 }
 0x705   : > { %3316 = vrot.lane.b32.xlu0 %v11353_v56, %s8625_s27  ;;  %3324 = vrot.lane.b32.xlu1 %v11345_v59, %s8625_s27 }
 0x706   : > { %v11395_v51 = vpop.permute.xlu0 %3455  ;;  %v11397_v53 = vpop.permute.xlu1 %3453 }
 0x709   : > { %3246 = vrot.lane.b32.xlu0 %v11347_v44, %s8624_s24  ;;  %3238 = vrot.lane.b32.xlu1 %v11355_v8, %s8624_s24 }
 0x70a   : > { %v11403_v21 = vpop.permute.xlu0 %3445  ;;  %v11405_v62 = vpop.permute.xlu1 %3314 }
 0x70d   : > { %3236 = vrot.lane.b32.xlu0 %v11353_v56, %s8624_s24  ;;  %3244 = vrot.lane.b32.xlu1 %v11345_v59, %s8624_s24 }
 0x70e   : > { %v11415_v10 = vpop.permute.xlu0 %3322  ;;  %v11417_v15 = vpop.permute.xlu1 %3320 }
 0x711   : > { %3166 = vrot.lane.b32.xlu0 %v11347_v44, %s8623_s23  ;;  %3158 = vrot.lane.b32.xlu1 %v11355_v8, %s8623_s23 }
 0x712   : > { %v11423_v36 = vpop.permute.xlu0 %3312  ;;  %v11425_v9 = vpop.permute.xlu1 %3234 }
 0x715   : > { %3156 = vrot.lane.b32.xlu0 %v11353_v56, %s8623_s23  ;;  %3164 = vrot.lane.b32.xlu1 %v11345_v59, %s8623_s23 }
 0x716   : > { %v11427_v50 = vpop.permute.xlu0 %3242  ;;  %v11429_v2 = vpop.permute.xlu1 %3240 }
 0x717   : > { %16056 = vst [vmem:[#allocation54_spill] sm:$0xff] %v11427_v50  ;;  %16057 = vst [vmem:[#allocation29_spill] sm:$0xff] %v11429_v2 }
 0x719   : > { %4226 = vrot.lane.b32.xlu0 %v11345_v59, %s8636_s6  ;;  %4228 = vrot.lane.b32.xlu1 %v11347_v44, %s8636_s6 }
 0x71a   : > { %v11432_v19 = vpop.permute.xlu0 %3232  ;;  %v11434_v3 = vpop.permute.xlu1 %3154 }
 0x71b   : > { %16058 = vst [vmem:[#allocation4_spill] sm:$0xff] %v11434_v3 }
 0x71d   : > { %4218 = vrot.lane.b32.xlu0 %v11353_v56, %s8636_s6  ;;  %4220 = vrot.lane.b32.xlu1 %v11355_v8, %s8636_s6 }
 0x71e   : > { %v11438_v27 = vpop.permute.xlu0 %3162  ;;  %v11440_v43 = vpop.permute.xlu1 %3160 }
 0x71f   : > { %16059 = vst [vmem:[#allocation17_spill] sm:$0xff] %v11438_v27  ;;  %16060 = vst [vmem:[#allocation36_spill] sm:$0xff] %v11440_v43 }
 0x722   : > { %v11447_v17 = vpop.permute.xlu0 %3152 }
 0x723   : > { %16061 = vst [vmem:[#allocation35_spill] sm:$0xff] %v11447_v17 }
 0x72f   : > { %s8367_s14 = spop %8366 }
 0x730   : > { %v3083_v14 = vstv %s8367_s14 }
 0x731   : > { %v3084_v61 = vmul.f32 %v3083_v14, %v3075_v31  ;;  %v3086_v29 = vmul.f32 %v3083_v14, %v3077_v37  ;;  %v11449_v31 = vpop.permute.xlu1 %4224  ;;  %v3087_v37 = vmul.f32 %v3083_v14, %v3078_v25 }
 0x732   : > { %16062 = vst [vmem:[#allocation18_spill] sm:$0xff] %v11449_v31 }
 0x733   : > { %v3098_v58 = vmul.f32 %v11201_v47, %v3084_v61  ;;  %v3102_v18 = vmul.f32 %v11331_v23, %v3086_v29  ;;  %v3076_v61 = vsub.f32 %v11136_v22, %v3074_v6  ;;  %v11461_v29 = vpop.permute.xlu0 %4222 }
 0x734   : > { %16065 = vst [vmem:[#allocation32_spill] sm:$0xff] %v11461_v29 }
 0x735   : > { %v3114_v1 = vadd.f32 %v11207_v49, %v3098_v58  ;;  %v3118_v7 = vadd.f32 %v11203_v28, %v3102_v18  ;;  %v3085_v18 = vmul.f32 %v3083_v14, %v3076_v61  ;;  %v3103_v58 = vmul.f32 %v11331_v23, %v3087_v37  ;;  %v11463_v30 = vpop.permute.xlu1 %4216 }
 0x736   : > { %16066 = vst [vmem:[#allocation20_spill] sm:$0xff] %v11463_v30 }
 0x737   : > { %v3130_v33 = vmul.f32 0.2, %v3114_v1  ;;  %v3134_v16 = vmul.f32 0.2, %v3118_v7 }
 0x739   : > { %v11451_v40 = vmax.f32 %v3114_v1, %v3130_v33  ;;  %v11453_v32 = vmax.f32 %v3118_v7, %v3134_v16  ;;  %v3099_v33 = vmul.f32 %v11201_v47, %v3085_v18  ;;  %v3119_v7 = vadd.f32 %v11203_v28, %v3103_v58  ;;  %v11475_v1 = vpop.permute.xlu0 %3559  ;;  %v11477_v22 = vpop.permute.xlu1 %3557 }
 0x73a   : > { %16067 = vst [vmem:[#allocation31_spill] sm:$0xff] %v11475_v1  ;;  %16068 = vst [vmem:[#allocation21_spill] sm:$0xff] %v11477_v22 }
 0x73b   : > { %16063 = vst [vmem:[#allocation37_spill] sm:$0xff] %v11451_v40  ;;  %16064 = vst [vmem:[#allocation38_spill] sm:$0xff] %v11453_v32  ;;  %3561 = vrot.lane.b32.xlu1 %v11451_v40, %s8630_s29  ;;  %3563 = vrot.lane.b32.xlu0 %v11453_v32, %s8630_s29  ;;  %v3115_v23 = vadd.f32 %v11207_v49, %v3099_v33  ;;  %v3135_v6 = vmul.f32 0.2, %v3119_v7 }
 0x73d   : > { %v3131_v47 = vmul.f32 0.2, %v3115_v23  ;;  %v11484_v28 = vmax.f32 %v3119_v7, %v3135_v6  ;;  %v11486_v14 = vpop.permute.xlu0 %3469  ;;  %v11488_v25 = vpop.permute.xlu1 %3471 }
 0x73f   : > { %4148 = vrot.lane.b32.xlu1 %v11347_v44, %s8634_s5  ;;  %4214 = vrot.lane.b32.xlu0 %v11235_v0, %s8636_s6  ;;  %v11494_v49 = vmax.f32 %v3115_v23, %v3131_v47 }
 0x741   : > { %v11500_v16 = vpop.permute.xlu0 %3336  ;;  %v11502_v37 = vpop.permute.xlu1 %3338 }
 0x743   : > { %4140 = vrot.lane.b32.xlu1 %v11355_v8, %s8634_s5  ;;  %4146 = vrot.lane.b32.xlu0 %v11345_v59, %s8634_s5 }
 0x745   : > { %v11508_v61 = vpop.permute.xlu0 %3256  ;;  %v11510_v18 = vpop.permute.xlu1 %3258 }
 0x746   : > { %16069 = vst [vmem:[#allocation42_spill] sm:$0xff] %v11508_v61 }
 0x747   : > { %4144 = vrot.lane.b32.xlu1 %v11221_v60, %s8634_s5  ;;  %4138 = vrot.lane.b32.xlu0 %v11353_v56, %s8634_s5 }
 0x749   : > { %v11520_v58 = vpop.permute.xlu0 %3176  ;;  %v11522_v33 = vpop.permute.xlu1 %3178 }
 0x74a   : > { %16070 = vst [vmem:[#allocation24_spill] sm:$0xff] %v11520_v58  ;;  %16071 = vst [vmem:[#allocation41_spill] sm:$0xff] %v11522_v33 }
 0x74b   : > { %3475 = vrot.lane.b32.xlu1 %v11484_v28, %s8627_s28  ;;  %4152 = vrot.lane.b32.xlu0 %v11296_v55, %s8634_s5 }
 0x74d   : > { %v11528_v7 = vpop.permute.xlu0 %4232  ;;  %v11530_v23 = vpop.permute.xlu1 %4230 }
 0x74e   : > { %16072 = vst [vmem:[#allocation58_spill] sm:$0xff] %v11528_v7  ;;  %16073 = vst [vmem:[#allocation27_spill] sm:$0xff] %v11530_v23 }
 0x74f   : > { %4136 = vrot.lane.b32.xlu1 %v11227_v5, %s8634_s5  ;;  %3473 = vrot.lane.b32.xlu0 %v11494_v49, %s8627_s28 }
 0x753   : > { %3342 = vrot.lane.b32.xlu1 %v11484_v28, %s8625_s27  ;;  %4142 = vrot.lane.b32.xlu0 %v11229_v35, %s8634_s5 }
 0x757   : > { %4150 = vrot.lane.b32.xlu1 %v11294_v26, %s8634_s5  ;;  %3340 = vrot.lane.b32.xlu0 %v11494_v49, %s8625_s27 }
 0x75b   : > { %3262 = vrot.lane.b32.xlu1 %v11484_v28, %s8624_s24  ;;  %4134 = vrot.lane.b32.xlu0 %v11235_v0, %s8634_s5 }
 0x75f   : > { %4068 = vrot.lane.b32.xlu1 %v11347_v44, %s8632_s30  ;;  %3260 = vrot.lane.b32.xlu0 %v11494_v49, %s8624_s24 }
 0x763   : > { %3182 = vrot.lane.b32.xlu1 %v11484_v28, %s8623_s23  ;;  %4066 = vrot.lane.b32.xlu0 %v11345_v59, %s8632_s30  ;;  %v11536_v6 = vpop.permute.xlu0 %3553  ;;  %v11538_v47 = vpop.permute.xlu1 %3555 }
 0x767   : > { %4060 = vrot.lane.b32.xlu1 %v11355_v8, %s8632_s30  ;;  %3180 = vrot.lane.b32.xlu0 %v11494_v49, %s8623_s23  ;;  %v11548_v48 = vpop.permute.xlu0 %3545  ;;  %v11550_v52 = vpop.permute.xlu1 %3547 }
 0x768   : > { %16074 = vst [vmem:[#allocation33_spill] sm:$0xff] %v11550_v52 }
 0x76b   : > { %4234 = vrot.lane.b32.xlu1 %v11451_v40, %s8636_s6  ;;  %4236 = vrot.lane.b32.xlu0 %v11453_v32, %s8636_s6  ;;  %v11556_v24 = vpop.permute.xlu0 %3459  ;;  %v11558_v11 = vpop.permute.xlu1 %3451 }
 0x76f   : > { %4064 = vrot.lane.b32.xlu1 %v11221_v60, %s8632_s30  ;;  %4058 = vrot.lane.b32.xlu0 %v11353_v56, %s8632_s30  ;;  %v11568_v57 = vpop.permute.xlu0 %3449  ;;  %v11570_v41 = vpop.permute.xlu1 %3457 }
 0x773   : > { %4154 = vrot.lane.b32.xlu1 %v11451_v40, %s8634_s5  ;;  %4156 = vrot.lane.b32.xlu0 %v11453_v32, %s8634_s5  ;;  %v11576_v13 = vpop.permute.xlu0 %3326  ;;  %v11578_v29 = vpop.permute.xlu1 %3318 }
 0x777   : > { %4056 = vrot.lane.b32.xlu1 %v11227_v5, %s8632_s30  ;;  %4072 = vrot.lane.b32.xlu0 %v11296_v55, %s8632_s30  ;;  %v11588_v23 = vpop.permute.xlu0 %3316  ;;  %v11590_v30 = vpop.permute.xlu1 %3324 }
 0x77b   : > { %4074 = vrot.lane.b32.xlu1 %v11451_v40, %s8632_s30  ;;  %4076 = vrot.lane.b32.xlu0 %v11453_v32, %s8632_s30  ;;  %v11596_v31 = vpop.permute.xlu0 %3246  ;;  %v11598_v7 = vpop.permute.xlu1 %3238 }
 0x77f   : > { %4070 = vrot.lane.b32.xlu1 %v11294_v26, %s8632_s30  ;;  %4062 = vrot.lane.b32.xlu0 %v11229_v35, %s8632_s30  ;;  %v11608_v58 = vpop.permute.xlu0 %3236  ;;  %v11610_v17 = vpop.permute.xlu1 %3244 }
 0x783   : > { %3571 = vrot.lane.b32.xlu1 %v11484_v28, %s8630_s29  ;;  %4054 = vrot.lane.b32.xlu0 %v11235_v0, %s8632_s30  ;;  %v11616_v43 = vpop.permute.xlu0 %3166  ;;  %v11618_v33 = vpop.permute.xlu1 %3158 }
 0x784   : > { %16075 = vst [vmem:[#allocation39_spill] sm:$0xff] %v11616_v43  ;;  %16076 = vst [vmem:[#allocation7_spill] sm:$0xff] %v11618_v33 }
 0x787   : > { %3569 = vrot.lane.b32.xlu0 %v11494_v49, %s8630_s29  ;;  %3567 = vrot.lane.b32.xlu1 %v11302_v39, %s8630_s29  ;;  %v11628_v3 = vpop.permute.xlu0 %3156  ;;  %v11630_v27 = vpop.permute.xlu1 %3164 }
 0x788   : > { %16077 = vst [vmem:[#allocation47_spill] sm:$0xff] %v11628_v3  ;;  %16078 = vst [vmem:[#allocation50_spill] sm:$0xff] %v11630_v27 }
 0x78b   : > { %3565 = vrot.lane.b32.xlu0 %v11304_v12, %s8630_s29  ;;  %3467 = vrot.lane.b32.xlu1 %v11453_v32, %s8627_s28  ;;  %v11636_v33 = vpop.permute.xlu0 %4226  ;;  %v11638_v43 = vpop.permute.xlu1 %4228 }
 0x78c   : > { %16079 = vst [vmem:[#allocation63_spill] sm:$0xff] %v11636_v33  ;;  %16080 = vst [vmem:[#allocation60_spill] sm:$0xff] %v11638_v43  ;;  %v16086_v43 = vld [vmem:[#allocation10_spill] sm:$0xff] }
 0x78f   : > { %3465 = vrot.lane.b32.xlu0 %v11451_v40, %s8627_s28  ;;  %3463 = vrot.lane.b32.xlu1 %v11296_v55, %s8627_s28  ;;  %v11648_v3 = vpop.permute.xlu0 %4218  ;;  %v11650_v27 = vpop.permute.xlu1 %4220 }
 0x790   : > { %16081 = vst [vmem:[#allocation59_spill] sm:$0xff] %v11648_v3  ;;  %16082 = vst [vmem:[#allocation64_spill] sm:$0xff] %v11650_v27  ;;  %v3583_v27 = vsel %vm627_vm4, %v11548_v48, %v11536_v6 }
 0x793   : > { %3461 = vrot.lane.b32.xlu0 %v11294_v26, %s8627_s28  ;;  %3334 = vrot.lane.b32.xlu1 %v11453_v32, %s8625_s27 }
 0x797   : > { %3332 = vrot.lane.b32.xlu0 %v11451_v40, %s8625_s27  ;;  %3330 = vrot.lane.b32.xlu1 %v11296_v55, %s8625_s27 }
 0x79b   : > { %3328 = vrot.lane.b32.xlu0 %v11294_v26, %s8625_s27  ;;  %3254 = vrot.lane.b32.xlu1 %v11453_v32, %s8624_s24 }
 0x79f   : > { %3252 = vrot.lane.b32.xlu0 %v11451_v40, %s8624_s24  ;;  %3250 = vrot.lane.b32.xlu1 %v11296_v55, %s8624_s24 }
 0x7a3   : > { %3248 = vrot.lane.b32.xlu0 %v11294_v26, %s8624_s24  ;;  %3174 = vrot.lane.b32.xlu1 %v11453_v32, %s8623_s23  ;;  %v3584_v32 = vsel %vm627_vm4, %v11550_v52, %v11538_v47  ;;  %v16085_v52 = vld [vmem:[#allocation44_spill] sm:$0xff] }
 0x7a7   : > { %3172 = vrot.lane.b32.xlu0 %v11451_v40, %s8623_s23  ;;  %3170 = vrot.lane.b32.xlu1 %v11296_v55, %s8623_s23 }
 0x7ab   : > { %3168 = vrot.lane.b32.xlu0 %v11294_v26, %s8623_s23  ;;  %4244 = vrot.lane.b32.xlu1 %v11484_v28, %s8636_s6 }
 0x7ad   : > { %v11660_v33 = vpop.permute.xlu0 %3563  ;;  %v11662_v40 = vpop.permute.xlu1 %3561 }
 0x7ae   : > { %16083 = vst [vmem:[#allocation66_spill] sm:$0xff] %v11660_v33  ;;  %16084 = vst [vmem:[#allocation67_spill] sm:$0xff] %v11662_v40  ;;  %v3580_v55 = vsel %vm627_vm4, %v11538_v47, %v11660_v33  ;;  %v3579_v26 = vsel %vm627_vm4, %v11536_v6, %v11662_v40  ;;  %v3601_v47 = vmul.f32 %v3584_v32, %v16086_v43 }
 0x7af   : > { %4242 = vrot.lane.b32.xlu0 %v11494_v49, %s8636_s6  ;;  %4240 = vrot.lane.b32.xlu1 %v11302_v39, %s8636_s6  ;;  %v3602_v3 = vmul.f32 %v3580_v55, %v16085_v52  ;;  %v3578_v40 = vsel %vm627_vm4, %v11365_v4, %v11475_v1  ;;  %v3582_v55 = vsel %vm627_vm4, %v11377_v45, %v11365_v4 }
 0x7b0   : > { %v3598_v6 = vmul.f32 %v3579_v26, %v16085_v52  ;;  %v3577_v32 = vsel %vm627_vm4, %v11375_v38, %v11477_v22  ;;  %v3597_v1 = vmul.f32 %v3583_v27, %v16086_v43  ;;  %v3581_v4 = vsel %vm627_vm4, %v11383_v42, %v11375_v38 }
 0x7b1   : > { %v11686_v33 = vpop.permute.xlu0 %4214  ;;  %3694 = vmatprep.subr.mxu0 %v3602_v3  ;;  %v11688_v61 = vpop.permute.xlu1 %4148  ;;  %v3594_v26 = vmul.f32 %v3578_v40, %v16085_v52  ;;  %v3593_v3 = vmul.f32 %v3582_v55, %v16086_v43  ;;  %v3590_v22 = vmul.f32 %v3577_v32, %v16085_v52  ;;  %v3589_v45 = vmul.f32 %v3581_v4, %v16086_v43 }
 0x7b2   : > { %3695 = vmatpush1.msra.mxu0 %v3601_v47  ;;  %v3490_v32 = vsel %vm490_vm3, %v11488_v25, %v11385_v34 }
 0x7b3   : > { %4238 = vrot.lane.b32.xlu0 %v11304_v12, %s8636_s6  ;;  %4164 = vrot.lane.b32.xlu1 %v11484_v28, %s8634_s5 }
 0x7b4   : > { %3696 = vmatprep.subr.mxu0 %v3598_v6 }
 0x7b5   : > { %3697 = vmatpush1.msra.mxu0 %v3597_v1  ;;  %v11710_v47 = vpop.permute.xlu0 %4146  ;;  %v11712_v27 = vpop.permute.xlu1 %4140 }
 0x7b6   : > { %16087 = vst [vmem:[#allocation68_spill] sm:$0xff] %v11712_v27  ;;  %3698 = vmatprep.subr.mxu0 %v3594_v26  ;;  %v8645_v26 = vmov 11  }
 0x7b7   : > { %3699 = vmatpush1.msra.mxu0 %v3593_v3  ;;  %4162 = vrot.lane.b32.xlu0 %v11494_v49, %s8634_s5 }
 0x7b8   : > { %4160 = vrot.lane.b32.xlu1 %v11302_v39, %s8634_s5  ;;  %3700 = vmatprep.subr.mxu0 %v3590_v22  ;;  %v16088_v22 = vld [vmem:[#allocation5_spill] sm:$0xff] }
 0x7b9   : > { %3701 = vmatpush1.msra.mxu0 %v3589_v45  ;;  %v11720_v40 = vpop.permute.xlu0 %4138  ;;  %v11722_v38 = vpop.permute.xlu1 %4144  ;;  %v3488_v45 = vsel %vm490_vm3, %v11558_v11, %v11556_v24  ;;  %8528 = vset.pattern.permute.xlu1 %v8645_v26 }
 0x7ba   : > { %3702 = vmatprep.subr.mxu0 %v11347_v44  ;;  %8529 = vset.pattern.permute.xlu0 %v8645_v26  ;;  %v16091_v26 = vld [vmem:[#allocation49_spill] sm:$0xff] }
 0x7bb   : > { %3703 = vmatpush1.msra.mxu0 %v11355_v8  ;;  %4158 = vrot.lane.b32.xlu0 %v11304_v12, %s8634_s5 }
 0x7bc   : > { %4084 = vrot.lane.b32.xlu1 %v11484_v28, %s8632_s30  ;;  %3704 = vmatprep.subr.mxu0 %v11345_v59  ;;  %v3487_v59 = vsel %vm490_vm3, %v11568_v57, %v11570_v41 }
 0x7bd   : > { %3705 = vmatpush1.msra.mxu0 %v11353_v56  ;;  %v11736_v1 = vpop.permute.xlu0 %4152  ;;  %v11738_v44 = vpop.permute.xlu1 %3475 }
 0x7be   : > { %3706 = vmatprep.subr.mxu0 %v11221_v60  ;;  %v3492_v8 = vsel %vm490_vm3, %v11738_v44, %v11558_v11  ;;  %v16089_v60 = vld [vmem:[#allocation48_spill] sm:$0xff]  ;;  %v3486_v11 = vsel %vm490_vm3, %v11385_v34, %v11395_v51 }
 0x7bf   : > { %v3505_v55 = vmul.f32 %v3492_v8, %v16088_v22  ;;  %3707 = vmatpush1.msra.mxu0 %v11227_v5  ;;  %4082 = vrot.lane.b32.xlu0 %v11494_v49, %s8632_s30  ;;  %v3506_v56 = vmul.f32 %v3488_v45, %v16089_v60  ;;  %v3502_v4 = vmul.f32 %v3487_v59, %v16089_v60 }
 0x7c0   : > { %4080 = vrot.lane.b32.xlu1 %v11302_v39, %s8632_s30  ;;  %3708 = vmatprep.subr.mxu0 %v11229_v35  ;;  %v3498_v34 = vmul.f32 %v3486_v11, %v16089_v60  ;;  %v3497_v45 = vmul.f32 %v3490_v32, %v16088_v22  ;;  %v3355_v8 = vsel %vm401_vm2, %v11578_v29, %v11576_v13  ;;  %v11810_v32 = vld [vmem:[%s15413_s3 + $0x80] sm:$0xff] }
 0x7c1   : > { %3709 = vmatpush1.msra.mxu0 %v11235_v0  ;;  %v11762_v6 = vpop.permute.xlu0 %3473  ;;  %v11764_v5 = vpop.permute.xlu1 %4136  ;;  %v3485_v0 = vsel %vm490_vm3, %v11403_v21, %v11397_v53  ;;  %v3354_v11 = vsel %vm401_vm2, %v11588_v23, %v11590_v30 }
 0x7c2   : > { %v3491_v35 = vsel %vm490_vm3, %v11762_v6, %v11568_v57  ;;  %3710 = vmatprep.subr.mxu0 %v3506_v56  ;;  %v3489_v57 = vsel %vm490_vm3, %v11486_v14, %v11403_v21 }
 0x7c3   : > { %v3501_v3 = vmul.f32 %v3491_v35, %v16088_v22  ;;  %3711 = vmatpush1.msra.mxu0 %v3505_v55  ;;  %4078 = vrot.lane.b32.xlu0 %v11304_v12, %s8632_s30  ;;  %v3493_v56 = vmul.f32 %v3489_v57, %v16088_v22  ;;  %v16098_v22 = vld [vmem:[#allocation39_spill] sm:$0xff] }
 0x7c4   : > { %3712 = vmatprep.subr.mxu0 %v3502_v4  ;;  %4554 = vperm.xlu1 %8528, %v11192_v46   ;;  %v3494_v46 = vmul.f32 %v3485_v0, %v16089_v60  ;;  %v3353_v4 = vsel %vm401_vm2, %v11405_v62, %v11415_v10 }
 0x7c5   : > { %v11793_v59 = vpop.permute.xlu0 %4142  ;;  %3713 = vmatpush1.msra.mxu0 %v3501_v3  ;;  %v11795_v55 = vpop.permute.xlu1 %3342 }
 0x7c6   : > { %v3359_v21 = vsel %vm401_vm2, %v11795_v55, %v11578_v29  ;;  %3714 = vmatprep.subr.mxu0 %v3498_v34  ;;  %v16090_v29 = vld [vmem:[#allocation8_spill] sm:$0xff] }
 0x7c7   : > { %3715 = vmatpush1.msra.mxu0 %v3497_v45  ;;  %4558 = vperm.xlu0 %8529, %v11179_v63   ;;  %v3373_v35 = vmul.f32 %v3355_v8, %v16090_v29  ;;  %v3372_v0 = vmul.f32 %v3359_v21, %v16091_v26  ;;  %v3357_v63 = vsel %vm401_vm2, %v11502_v37, %v11405_v62  ;;  %v11843_v62 = vld [vmem:[%s15413_s3 + $0x88] sm:$0xff] }
 0x7c8   : > { %3716 = vmatprep.subr.mxu0 %v3494_v46  ;;  %v3369_v45 = vmul.f32 %v3354_v11, %v16090_v29  ;;  %v3352_v8 = vsel %vm401_vm2, %v11423_v36, %v11417_v15  ;;  %v3365_v46 = vmul.f32 %v3353_v4, %v16090_v29  ;;  %v3275_v11 = vsel %vm308_vm0, %v11598_v7, %v11596_v31 }
 0x7c9   : > { %v11819_v3 = vpop.permute.xlu0 %3340  ;;  %3717 = vmatpush1.msra.mxu0 %v3493_v56  ;;  %v11821_v57 = vpop.permute.xlu1 %4150  ;;  %v3364_v56 = vmul.f32 %v3357_v63, %v16091_v26  ;;  %v3361_v4 = vmul.f32 %v3352_v8, %v16090_v29  ;;  %v3277_v29 = vsel %vm308_vm0, %v11510_v18, %v11425_v9 }
 0x7ca   : > { %16092 = vst [vmem:[#allocation69_spill] sm:$0xff] %v11821_v57  ;;  %v3358_v34 = vsel %vm401_vm2, %v11819_v3, %v11588_v23  ;;  %3884 = vmatprep.subr.mxu0 %v3373_v35  ;;  %8217 = vmatmul.mubr.msk.f32.vlgmr.msra.gmra.mxu0 %vm1896_vm8, %v11810_v32  ;;  %v3356_v23 = vsel %vm401_vm2, %v11500_v16, %v11423_v36 }
 0x7cb   : > { %v3368_v21 = vmul.f32 %v3358_v34, %v16091_v26  ;;  %3885 = vmatpush1.msra.mxu0 %v3372_v0  ;;  %3756 = vmatprep.mubr.f32.mxu0 %v15943_v54  ;;  %v3360_v63 = vmul.f32 %v3356_v23, %v16091_v26  ;;  %v3274_v34 = vsel %vm308_vm0, %v11608_v58, %v11610_v17  ;;  %v16095_v23 = vld [vmem:[#allocation53_spill] sm:$0xff] }
 0x7cc   : > { %3886 = vmatprep.subr.mxu0 %v3369_v45  ;;  %v16094_v45 = vld [vmem:[#allocation6_spill] sm:$0xff]  ;;  %v3284_v60 = vmul.f32 %v3277_v29, %v16095_v23 }
 0x7cd   : > { %v11855_v35 = vpop.permute.xlu0 %4134  ;;  %3887 = vmatpush1.msra.mxu0 %v3368_v21  ;;  %v11857_v0 = vpop.permute.xlu1 %3262  ;;  %v3293_v8 = vmul.f32 %v3275_v11, %v16094_v45  ;;  %v3273_v21 = vsel %vm308_vm0, %v11425_v9, %v11427_v50  ;;  %v11907_v9 = vld [vmem:[%s15413_s3 + $0x98] sm:$0xff] }
 0x7ce   : > { %v3279_v36 = vsel %vm308_vm0, %v11857_v0, %v11598_v7  ;;  %3888 = vmatprep.subr.mxu0 %v3365_v46  ;;  %8218 = vmatmul.mubr.msk.f32.gmra.mxu0 %vm1896_vm8, %v11843_v62  ;;  %v11875_v7 = vld [vmem:[%s15413_s3 + $0x90] sm:$0xff]  ;;  %16096 = vst [vmem:[#allocation71_spill] sm:$0xff] %v11907_v9 }
 0x7cf   : > { %3889 = vmatpush1.msra.mxu0 %v3364_v56  ;;  %3762 = vmatprep.mubr.f32.mxu0 %v15943_v54  ;;  %16093 = vst [vmem:[#allocation70_spill] sm:$0xff] %v11875_v7  ;;  %v3292_v46 = vmul.f32 %v3279_v36, %v16095_v23  ;;  %v3272_v36 = vsel %vm308_vm0, %v11432_v19, %v11429_v2  ;;  %v16103_v2 = vld [vmem:[#allocation56_spill] sm:$0xff] }
 0x7d0   : > { %3890 = vmatprep.subr.mxu0 %v3361_v4  ;;  %v3289_v4 = vmul.f32 %v3274_v34, %v16094_v45 }
 0x7d1   : > { %v11883_v26 = vpop.permute.xlu0 %3260  ;;  %3891 = vmatpush1.msra.mxu0 %v3360_v63  ;;  %v11885_v56 = vpop.permute.xlu1 %4068 }
 0x7d2   : > { %v3278_v11 = vsel %vm308_vm0, %v11883_v26, %v11608_v58  ;;  %3892 = vmatprep.subr.mxu0 %v3293_v8  ;;  %8219 = vmatmul.mubr.msk.f32.gmra.mxu0 %vm1896_vm8, %v11875_v7  ;;  %v16097_v58 = vld [vmem:[#allocation42_spill] sm:$0xff]  ;;  %v3285_v8 = vmul.f32 %v3273_v21, %v16094_v45  ;;  %v3281_v21 = vmul.f32 %v3272_v36, %v16094_v45  ;;  %v16106_v45 = vld [vmem:[#allocation57_spill] sm:$0xff]  ;;  %v16112_v7 = vld [vmem:[#allocation24_spill] sm:$0xff] }
 0x7d3   : > { %v3288_v63 = vmul.f32 %v3278_v11, %v16095_v23  ;;  %3893 = vmatpush1.msra.mxu0 %v3292_v46  ;;  %3768 = vmatprep.mubr.f32.mxu0 %v15943_v54  ;;  %v3276_v34 = vsel %vm308_vm0, %v16097_v58, %v11432_v19  ;;  %v16099_v11 = vld [vmem:[#allocation7_spill] sm:$0xff] }
 0x7d4   : > { %3894 = vmatprep.subr.mxu0 %v3289_v4  ;;  %v3195_v46 = vsel %vm239_vm1, %v16099_v11, %v16098_v22  ;;  %v3280_v29 = vmul.f32 %v3276_v34, %v16095_v23  ;;  %v16101_v4 = vld [vmem:[#allocation50_spill] sm:$0xff]  ;;  %v16102_v22 = vld [vmem:[#allocation47_spill] sm:$0xff]  ;;  %v16109_v23 = vld [vmem:[#allocation41_spill] sm:$0xff] }
 0x7d5   : > { %v11919_v43 = vpop.permute.xlu0 %4066  ;;  %3895 = vmatpush1.msra.mxu0 %v3288_v63  ;;  %v11921_v52 = vpop.permute.xlu1 %3182  ;;  %v3194_v63 = vsel %vm239_vm1, %v16102_v22, %v16101_v4  ;;  %v3213_v58 = vmul.f32 %v3195_v46, %v16103_v2 }
 0x7d6   : > { %16100 = vst [vmem:[#allocation7_spill] sm:$0xff] %v11921_v52  ;;  %v3199_v19 = vsel %vm239_vm1, %v11921_v52, %v16099_v11  ;;  %3896 = vmatprep.subr.mxu0 %v3285_v8  ;;  %8220 = vmatmul.mubr.msk.f32.gmra.mxu0 %vm1896_vm8, %v11907_v9  ;;  %v16104_v11 = vld [vmem:[#allocation17_spill] sm:$0xff]  ;;  %v16105_v8 = vld [vmem:[#allocation4_spill] sm:$0xff] }
 0x7d7   : > { %3897 = vmatpush1.msra.mxu0 %v3284_v60  ;;  %3940 = vmatprep.mubr.f32.mxu0 %v15943_v54  ;;  %v3193_v36 = vsel %vm239_vm1, %v16105_v8, %v16104_v11  ;;  %v3212_v9 = vmul.f32 %v3199_v19, %v16106_v45  ;;  %v3197_v60 = vsel %vm239_vm1, %v16109_v23, %v16105_v8  ;;  %v16110_v11 = vld [vmem:[#allocation36_spill] sm:$0xff]  ;;  %v16111_v19 = vld [vmem:[#allocation35_spill] sm:$0xff] }
 0x7d8   : > { %3898 = vmatprep.subr.mxu0 %v3281_v21  ;;  %v3209_v21 = vmul.f32 %v3194_v63, %v16103_v2  ;;  %v3196_v8 = vsel %vm239_vm1, %v16112_v7, %v16111_v19  ;;  %v3205_v23 = vmul.f32 %v3193_v36, %v16103_v2 }
 0x7d9   : > { %v11942_v52 = vpop.permute.xlu0 %3180  ;;  %3899 = vmatpush1.msra.mxu0 %v3280_v29  ;;  %v11944_v34 = vpop.permute.xlu1 %4060  ;;  %v3192_v29 = vsel %vm239_vm1, %v16111_v19, %v16110_v11  ;;  %v16116_v11 = vld [vmem:[#allocation64_spill] sm:$0xff]  ;;  %v16118_v19 = vld [vmem:[#allocation19_spill] sm:$0xff] }
 0x7da   : > { %16107 = vst [vmem:[#allocation47_spill] sm:$0xff] %v11942_v52  ;;  %16108 = vst [vmem:[#allocation4_spill] sm:$0xff] %v11944_v34  ;;  %v3198_v46 = vsel %vm239_vm1, %v11942_v52, %v16102_v22  ;;  %3900 = vmatprep.subr.mxu0 %v3213_v58  ;;  %v3204_v22 = vmul.f32 %v3197_v60, %v16106_v45  ;;  %v16115_v52 = vld [vmem:[#allocation60_spill] sm:$0xff]  ;;  %v3201_v36 = vmul.f32 %v3192_v29, %v16103_v2  ;;  %v16121_v29 = vld [vmem:[#allocation58_spill] sm:$0xff] }
 0x7db   : > { %v3208_v4 = vmul.f32 %v3198_v46, %v16106_v45  ;;  %3901 = vmatpush1.msra.mxu0 %v3212_v9  ;;  %v4257_v9 = vsel %vm894_vm7, %v16116_v11, %v16115_v52  ;;  %v3200_v60 = vmul.f32 %v3196_v8, %v16106_v45  ;;  %v11988_v11 = vld [vmem:[%s15413_s3 + $0x60] sm:$0xff]  ;;  %v16122_v8 = vld [vmem:[#allocation18_spill] sm:$0xff]  ;;  %v16123_v2 = vld [vmem:[#allocation40_spill] sm:$0xff] }
 0x7dc   : > { %3902 = vmatprep.subr.mxu0 %v3209_v21  ;;  %v16117_v21 = vld [vmem:[#allocation63_spill] sm:$0xff]  ;;  %16119 = vst [vmem:[#allocation60_spill] sm:$0xff] %v11988_v11  ;;  %v4251_v45 = vsel %vm894_vm7, %v16122_v8, %v16121_v29  ;;  %v16126_v29 = vld [vmem:[#allocation32_spill] sm:$0xff] }
 0x7dd   : > { %v11966_v58 = vpop.permute.xlu0 %4236  ;;  %3903 = vmatpush1.msra.mxu0 %v3208_v4  ;;  %v11968_v63 = vpop.permute.xlu1 %4234 }
 0x7de   : > { %16113 = vst [vmem:[#allocation35_spill] sm:$0xff] %v11966_v58  ;;  %16114 = vst [vmem:[#allocation72_spill] sm:$0xff] %v11968_v63  ;;  %v4253_v46 = vsel %vm894_vm7, %v16115_v52, %v11966_v58  ;;  %3904 = vmatprep.subr.mxu0 %v3205_v23  ;;  %v4252_v4 = vsel %vm894_vm7, %v16117_v21, %v11968_v63  ;;  %v16120_v52 = vld [vmem:[#allocation59_spill] sm:$0xff]  ;;  %v16124_v58 = vld [vmem:[#allocation20_spill] sm:$0xff] }
 0x7df   : > { %3905 = vmatpush1.msra.mxu0 %v3204_v22  ;;  %v4275_v7 = vmul.f32 %v16118_v19, %v4253_v46  ;;  %v4256_v23 = vsel %vm894_vm7, %v16120_v52, %v16117_v21  ;;  %v4274_v22 = vmul.f32 %v16123_v2, %v4257_v9  ;;  %v4255_v50 = vsel %vm894_vm7, %v16124_v58, %v16122_v8  ;;  %v16125_v21 = vld [vmem:[#allocation27_spill] sm:$0xff]  ;;  %v12019_v8 = vld [vmem:[%s15413_s3 + $0x68] sm:$0xff] }
 0x7e0   : > { %3906 = vmatprep.subr.mxu0 %v3201_v36  ;;  %v4271_v36 = vmul.f32 %v16118_v19, %v4252_v4  ;;  %v4250_v9 = vsel %vm894_vm7, %v16126_v29, %v16125_v21  ;;  %v4267_v4 = vmul.f32 %v16118_v19, %v4251_v45  ;;  %v4266_v21 = vmul.f32 %v16123_v2, %v4255_v50 }
 0x7e1   : > { %v11999_v63 = vpop.permute.xlu0 %4058  ;;  %3907 = vmatpush1.msra.mxu0 %v3200_v60  ;;  %v12001_v46 = vpop.permute.xlu1 %4064  ;;  %v4270_v60 = vmul.f32 %v16123_v2, %v4256_v23  ;;  %v4263_v45 = vmul.f32 %v16118_v19, %v4250_v9  ;;  %v4176_v9 = vsel %vm805_vm6, %v11720_v40, %v11710_v47  ;;  %v4175_v19 = vsel %vm805_vm6, %v11764_v5, %v11722_v38 }
 0x7e2   : > { %4367 = vmatprep.subr.mxu0 %v4275_v7  ;;  %8225 = vmatmul.mubr.msk.f32.vlgmr.msra.gmra.mxu0 %vm1896_vm8, %v11988_v11  ;;  %v4254_v7 = vsel %vm894_vm7, %v11686_v33, %v16126_v29 }
 0x7e3   : > { %4368 = vmatpush1.msra.mxu0 %v4274_v22  ;;  %3946 = vmatprep.mubr.f32.mxu0 %v15943_v54  ;;  %v4177_v22 = vsel %vm805_vm6, %v11712_v27, %v11688_v61  ;;  %v4262_v50 = vmul.f32 %v16123_v2, %v4254_v7  ;;  %v16128_v7 = vld [vmem:[#allocation22_spill] sm:$0xff] }
 0x7e4   : > { %4369 = vmatprep.subr.mxu0 %v4271_v36 }
 0x7e5   : > { %v12027_v11 = vpop.permute.xlu0 %4156  ;;  %4370 = vmatpush1.msra.mxu0 %v4270_v60  ;;  %v12029_v23 = vpop.permute.xlu1 %4154  ;;  %v16127_v60 = vld [vmem:[#allocation26_spill] sm:$0xff] }
 0x7e6   : > { %v4173_v29 = vsel %vm805_vm6, %v11688_v61, %v12027_v11  ;;  %4371 = vmatprep.subr.mxu0 %v4267_v4  ;;  %8226 = vmatmul.mubr.msk.f32.gmra.mxu0 %vm1896_vm8, %v12019_v8  ;;  %v4172_v36 = vsel %vm805_vm6, %v11710_v47, %v12029_v23  ;;  %v12052_v61 = vld [vmem:[%s15413_s3 + $0x70] sm:$0xff]  ;;  %v4194_v4 = vmul.f32 %v4177_v22, %v16128_v7 }
 0x7e7   : > { %4372 = vmatpush1.msra.mxu0 %v4266_v21  ;;  %v4195_v27 = vmul.f32 %v4173_v29, %v16127_v60  ;;  %3952 = vmatprep.mubr.f32.mxu0 %v15943_v54  ;;  %v4171_v21 = vsel %vm805_vm6, %v11722_v38, %v11736_v1  ;;  %v4191_v47 = vmul.f32 %v4172_v36, %v16127_v60  ;;  %v12083_v38 = vld [vmem:[%s15413_s3 + $0x78] sm:$0xff] }
 0x7e8   : > { %4373 = vmatprep.subr.mxu0 %v4263_v45  ;;  %v4190_v22 = vmul.f32 %v4176_v9, %v16128_v7  ;;  %v4170_v45 = vsel %vm805_vm6, %v11793_v59, %v11821_v57  ;;  %v4186_v36 = vmul.f32 %v4175_v19, %v16128_v7  ;;  %v4097_v57 = vsel %vm716_vm5, %v11944_v34, %v11885_v56 }
 0x7e9   : > { %v12063_v29 = vpop.permute.xlu0 %4072  ;;  %4374 = vmatpush1.msra.mxu0 %v4262_v50  ;;  %v12065_v2 = vpop.permute.xlu1 %4056  ;;  %v4187_v50 = vmul.f32 %v4171_v21, %v16127_v60  ;;  %v4183_v21 = vmul.f32 %v4170_v45, %v16127_v60  ;;  %v16133_v45 = vld [vmem:[#allocation61_spill] sm:$0xff] }
 0x7ea   : > { %16129 = vst [vmem:[#allocation63_spill] sm:$0xff] %v12063_v29  ;;  %16130 = vst [vmem:[#allocation59_spill] sm:$0xff] %v12065_v2  ;;  %4375 = vmatprep.subr.mxu0 %v4195_v27  ;;  %8227 = vmatmul.mubr.msk.f32.gmra.mxu0 %vm1896_vm8, %v12052_v61  ;;  %v4174_v27 = vsel %vm805_vm6, %v11855_v35, %v11793_v59 }
 0x7eb   : > { %4376 = vmatpush1.msra.mxu0 %v4194_v4  ;;  %3958 = vmatprep.mubr.f32.mxu0 %v15943_v54  ;;  %v4182_v19 = vmul.f32 %v4174_v27, %v16128_v7  ;;  %v4091_v27 = vsel %vm716_vm5, %v12001_v46, %v12063_v29 }
 0x7ec   : > { %4377 = vmatprep.subr.mxu0 %v4191_v47 }
 0x7ed   : > { %v12091_v9 = vpop.permute.xlu0 %4076  ;;  %4378 = vmatpush1.msra.mxu0 %v4190_v22  ;;  %v12093_v4 = vpop.permute.xlu1 %4074  ;;  %v16132_v22 = vld [vmem:[#allocation62_spill] sm:$0xff] }
 0x7ee   : > { %16131 = vst [vmem:[#allocation18_spill] sm:$0xff] %v12093_v4  ;;  %v4093_v59 = vsel %vm716_vm5, %v11885_v56, %v12091_v9  ;;  %4379 = vmatprep.subr.mxu0 %v4187_v50  ;;  %8228 = vmatmul.mubr.msk.f32.gmra.mxu0 %vm1896_vm8, %v12083_v38  ;;  %v4092_v47 = vsel %vm716_vm5, %v11919_v43, %v12093_v4 }
 0x7ef   : > { %4380 = vmatpush1.msra.mxu0 %v4186_v36  ;;  %v4115_v34 = vmul.f32 %v4093_v59, %v16132_v22  ;;  %4423 = vmatprep.mubr.f32.mxu0 %v15943_v54  ;;  %v4096_v56 = vsel %vm716_vm5, %v11999_v63, %v11919_v43  ;;  %v4114_v50 = vmul.f32 %v4097_v57, %v16133_v45 }
 0x7f0   : > { %4381 = vmatprep.subr.mxu0 %v4183_v21  ;;  %v4095_v59 = vsel %vm716_vm5, %v12065_v2, %v12001_v46  ;;  %v4111_v43 = vmul.f32 %v4092_v47, %v16132_v22  ;;  %v4110_v21 = vmul.f32 %v4096_v56, %v16133_v45  ;;  %v16135_v46 = vld [vmem:[#allocation66_spill] sm:$0xff]  ;;  %v16136_v56 = vld [vmem:[#allocation33_spill] sm:$0xff] }
 0x7f1   : > { %v4063_v7 = vpop.permute.xlu0 %4062  ;;  %4382 = vmatpush1.msra.mxu0 %v4182_v19  ;;  %v12122_v36 = vpop.permute.xlu1 %4070  ;;  %v4107_v19 = vmul.f32 %v4091_v27, %v16132_v22  ;;  %v4106_v60 = vmul.f32 %v4095_v59, %v16133_v45 }
 0x7f2   : > { %16134 = vst [vmem:[#allocation20_spill] sm:$0xff] %v12122_v36  ;;  %4383 = vmatprep.subr.mxu0 %v4115_v34  ;;  %v4090_v57 = vsel %vm716_vm5, %v4063_v7, %v12122_v36  ;;  %v16138_v36 = vld [vmem:[#allocation65_spill] sm:$0xff] }
 0x7f3   : > { %4384 = vmatpush1.msra.mxu0 %v4114_v50  ;;  %v4103_v27 = vmul.f32 %v4090_v57, %v16132_v22 }
 0x7f4   : > { %4385 = vmatprep.subr.mxu0 %v4111_v43  ;;  %v16137_v43 = vld [vmem:[#allocation43_spill] sm:$0xff] }
 0x7f5   : > { %v12135_v29 = vpop.permute.xlu0 %4054  ;;  %4386 = vmatpush1.msra.mxu0 %v4110_v21  ;;  %v3572_v4 = vpop.permute.xlu1 %3571 }
 0x7f6   : > { %v4094_v34 = vsel %vm716_vm5, %v12135_v29, %v4063_v7  ;;  %v3576_v47 = vsel %vm627_vm4, %v16135_v46, %v3572_v4  ;;  %v3588_v50 = vsel %vm627_vm4, %v3572_v4, %v16136_v56  ;;  %4387 = vmatprep.subr.mxu0 %v4107_v19  ;;  %v12153_v7 = vld [vmem:[%s15413_s3 + $0xa0] sm:$0xff] }
 0x7f7   : > { %v4102_v59 = vmul.f32 %v4094_v34, %v16133_v45  ;;  %v3603_v21 = vmul.f32 %v3576_v47, %v16137_v43  ;;  %4388 = vmatpush1.msra.mxu0 %v4106_v60  ;;  %v3604_v2 = vmul.f32 %v3588_v50, %v16138_v36  ;;  %v16139_v19 = vld [vmem:[#allocation67_spill] sm:$0xff]  ;;  %v16140_v34 = vld [vmem:[#allocation16_spill] sm:$0xff] }
 0x7f8   : > { %4389 = vmatprep.subr.mxu0 %v4103_v27  ;;  %v16141_v50 = vld [vmem:[#allocation31_spill] sm:$0xff] }
 0x7f9   : > { %v3570_v46 = vpop.permute.xlu0 %3569  ;;  %3783 = vmatprep.subr.mxu1 %v3604_v2  ;;  %4390 = vmatpush1.msra.mxu0 %v4102_v59  ;;  %v3568_v4 = vpop.permute.xlu1 %3567 }
 0x7fa   : > { %v3575_v57 = vsel %vm627_vm4, %v16139_v19, %v3570_v46  ;;  %v3587_v60 = vsel %vm627_vm4, %v3570_v46, %v11548_v48  ;;  %v3586_v47 = vsel %vm627_vm4, %v3568_v4, %v16140_v34  ;;  %3784 = vmatpush1.msra.mxu1 %v3603_v21  ;;  %v3574_v2 = vsel %vm627_vm4, %v16141_v50, %v3568_v4  ;;  %v12175_v48 = vld [vmem:[%s15413_s3 + $0xa8] sm:$0xff]  ;;  %v16142_v4 = vld [vmem:[#allocation21_spill] sm:$0xff] }
 0x7fb   : > { %v3599_v56 = vmul.f32 %v3575_v57, %v16137_v43  ;;  %8237 = vmatmul.mubr.msk.f32.vlgmr.msra.gmra.mxu0 %vm1896_vm8, %v12153_v7  ;;  %v3600_v27 = vmul.f32 %v3587_v60, %v16138_v36  ;;  %v3596_v46 = vmul.f32 %v3586_v47, %v16138_v36  ;;  %v3595_v19 = vmul.f32 %v3574_v2, %v16137_v43 }
 0x7fc   : > { %4429 = vmatprep.mubr.f32.mxu0 %v15943_v54 }
 0x7fd   : > { %v3566_v59 = vpop.permute.xlu0 %3565  ;;  %3785 = vmatprep.subr.mxu1 %v3600_v27  ;;  %v3468_v21 = vpop.permute.xlu1 %3467  ;;  %v12193_v27 = vld [vmem:[%s15413_s3 + $0xb0] sm:$0xff] }
 0x7fe   : > { %v3573_v57 = vsel %vm627_vm4, %v16142_v4, %v3566_v59  ;;  %v3585_v60 = vsel %vm627_vm4, %v3566_v59, %v11383_v42  ;;  %3786 = vmatpush1.msra.mxu1 %v3599_v56  ;;  %v16143_v42 = vld [vmem:[#allocation38_spill] sm:$0xff]  ;;  %v3484_v4 = vsel %vm490_vm3, %v11556_v24, %v3468_v21  ;;  %v16146_v24 = vld [vmem:[#allocation11_spill] sm:$0xff] }
 0x7ff   : > { %v3591_v34 = vmul.f32 %v3573_v57, %v16137_v43  ;;  %8238 = vmatmul.mubr.msk.f32.gmra.mxu0 %vm1896_vm8, %v12175_v48  ;;  %3787 = vmatprep.subr.mxu1 %v3596_v46  ;;  %v3592_v50 = vmul.f32 %v3585_v60, %v16138_v36  ;;  %v12204_v46 = vld [vmem:[%s15413_s3 + $0xb8] sm:$0xff] }
 0x800   : > { %3788 = vmatpush1.msra.mxu1 %v3595_v19  ;;  %4435 = vmatprep.mubr.f32.mxu0 %v15943_v54  ;;  %v16144_v19 = vld [vmem:[#allocation37_spill] sm:$0xff]  ;;  %v16145_v57 = vld [vmem:[#allocation30_spill] sm:$0xff] }
 0x801   : > { %v3466_v47 = vpop.permute.xlu0 %3465  ;;  %3789 = vmatprep.subr.mxu1 %v3592_v50  ;;  %v3464_v2 = vpop.permute.xlu1 %3463 }
 0x802   : > { %3790 = vmatpush1.msra.mxu1 %v3591_v34 }
 0x803   : > { %3791 = vmatprep.subr.mxu1 %v11484_v28  ;;  %8239 = vmatmul.mubr.msk.f32.gmra.mxu0 %vm1896_vm8, %v12193_v27  ;;  %v3480_v28 = vsel %vm490_vm3, %v3468_v21, %v11738_v44  ;;  %v3483_v44 = vsel %vm490_vm3, %v11570_v41, %v3466_v47  ;;  %v3482_v41 = vsel %vm490_vm3, %v11395_v51, %v3464_v2 }
 0x804   : > { %3792 = vmatpush1.msra.mxu1 %v16143_v42  ;;  %4441 = vmatprep.mubr.f32.mxu0 %v15943_v54  ;;  %v3508_v21 = vmul.f32 %v3480_v28, %v16146_v24  ;;  %v16148_v42 = vld [vmem:[#allocation34_spill] sm:$0xff] }
 0x805   : > { %v3462_v56 = vpop.permute.xlu0 %3461  ;;  %3793 = vmatprep.subr.mxu1 %v11494_v49  ;;  %v3335_v59 = vpop.permute.xlu1 %3334  ;;  %v3479_v49 = vsel %vm490_vm3, %v3466_v47, %v11762_v6  ;;  %v3478_v6 = vsel %vm490_vm3, %v3464_v2, %v11488_v25 }
 0x806   : > { %3794 = vmatpush1.msra.mxu1 %v16144_v19  ;;  %v3477_v28 = vsel %vm490_vm3, %v3462_v56, %v11486_v14  ;;  %v3481_v25 = vsel %vm490_vm3, %v11397_v53, %v3462_v56  ;;  %v3347_v2 = vsel %vm401_vm2, %v3335_v59, %v11795_v55  ;;  %v3351_v14 = vsel %vm401_vm2, %v11576_v13, %v3335_v59  ;;  %v16150_v13 = vld [vmem:[#allocation15_spill] sm:$0xff] }
 0x807   : > { %3795 = vmatprep.subr.mxu1 %v11302_v39  ;;  %8240 = vmatmul.mubr.msk.f32.gmra.mxu0 %vm1896_vm8, %v12204_v46  ;;  %v16147_v39 = vld [vmem:[#allocation45_spill] sm:$0xff]  ;;  %v3374_v59 = vmul.f32 %v3351_v14, %v16150_v13 }
 0x808   : > { %3796 = vmatpush1.msra.mxu1 %v16145_v57  ;;  %5479 = vmatprep.mubr.f32.mxu0 %v15943_v54  ;;  %v3507_v50 = vmul.f32 %v3484_v4, %v16147_v39  ;;  %v3503_v47 = vmul.f32 %v3483_v44, %v16147_v39  ;;  %v3500_v57 = vmul.f32 %v3478_v6, %v16146_v24 }
 0x809   : > { %v3333_v60 = vpop.permute.xlu0 %3332  ;;  %3797 = vmatprep.subr.mxu1 %v11304_v12  ;;  %v3331_v34 = vpop.permute.xlu1 %3330  ;;  %v3504_v12 = vmul.f32 %v3479_v49, %v16146_v24  ;;  %v3499_v51 = vmul.f32 %v3482_v41, %v16147_v39  ;;  %v3496_v49 = vmul.f32 %v3477_v28, %v16146_v24  ;;  %v3495_v53 = vmul.f32 %v3481_v25, %v16147_v39 }
 0x80a   : > { %3798 = vmatpush1.msra.mxu1 %v16148_v42  ;;  %v3346_v56 = vsel %vm401_vm2, %v3333_v60, %v11819_v3  ;;  %v3350_v44 = vsel %vm401_vm2, %v11590_v30, %v3333_v60  ;;  %v3345_v42 = vsel %vm401_vm2, %v3331_v34, %v11502_v37  ;;  %v3349_v3 = vsel %vm401_vm2, %v11415_v10, %v3331_v34 }
 0x80b   : > { %3799 = vmatprep.subr.mxu1 %v3508_v21  ;;  %v3370_v60 = vmul.f32 %v3350_v44, %v16150_v13 }
 0x80c   : > { %3800 = vmatpush1.msra.mxu1 %v3507_v50  ;;  %v16149_v50 = vld [vmem:[#allocation46_spill] sm:$0xff] }
 0x80d   : > { %v3329_v19 = vpop.permute.xlu0 %3328  ;;  %3801 = vmatprep.subr.mxu1 %v3504_v12  ;;  %v3255_v4 = vpop.permute.xlu1 %3254  ;;  %v3375_v6 = vmul.f32 %v3347_v2, %v16149_v50  ;;  %v3371_v30 = vmul.f32 %v3346_v56, %v16149_v50  ;;  %v3366_v12 = vmul.f32 %v3349_v3, %v16150_v13  ;;  %v16155_v56 = vld [vmem:[#allocation42_spill] sm:$0xff]  ;;  %v16157_v3 = vld [vmem:[#allocation7_spill] sm:$0xff] }
 0x80e   : > { %3802 = vmatpush1.msra.mxu1 %v3503_v47  ;;  %v3344_v41 = vsel %vm401_vm2, %v3329_v19, %v11500_v16  ;;  %v3348_v37 = vsel %vm401_vm2, %v11417_v15, %v3329_v19  ;;  %v3267_v47 = vsel %vm308_vm0, %v3255_v4, %v11857_v0  ;;  %v3271_v16 = vsel %vm308_vm0, %v11596_v31, %v3255_v4  ;;  %v16151_v4 = vld [vmem:[#allocation13_spill] sm:$0xff] }
 0x80f   : > { %3803 = vmatprep.subr.mxu1 %v3500_v57  ;;  %v3363_v28 = vmul.f32 %v3344_v41, %v16149_v50  ;;  %v3362_v15 = vmul.f32 %v3348_v37, %v16150_v13  ;;  %v3295_v57 = vmul.f32 %v3267_v47, %v16151_v4 }
 0x810   : > { %3804 = vmatpush1.msra.mxu1 %v3499_v51  ;;  %v16152_v51 = vld [vmem:[#allocation28_spill] sm:$0xff] }
 0x811   : > { %v3253_v55 = vpop.permute.xlu0 %3252  ;;  %3805 = vmatprep.subr.mxu1 %v3496_v49  ;;  %v3251_v21 = vpop.permute.xlu1 %3250 }
 0x812   : > { %3806 = vmatpush1.msra.mxu1 %v3495_v53  ;;  %v3266_v25 = vsel %vm308_vm0, %v3253_v55, %v11883_v26  ;;  %v3270_v0 = vsel %vm308_vm0, %v11610_v17, %v3253_v55  ;;  %v3265_v2 = vsel %vm308_vm0, %v3251_v21, %v11510_v18  ;;  %v16153_v26 = vld [vmem:[#allocation54_spill] sm:$0xff]  ;;  %v16156_v18 = vld [vmem:[#allocation29_spill] sm:$0xff] }
 0x813   : > { %8221 = vmatmul.mubr.msk.f32.vlgmr.msra.gmra.mxu1 %vm1896_vm8, %v11810_v32  ;;  %3973 = vmatprep.subr.mxu1 %v3375_v6  ;;  %v3367_v32 = vmul.f32 %v3345_v42, %v16149_v50  ;;  %v3269_v14 = vsel %vm308_vm0, %v16153_v26, %v3251_v21  ;;  %v3291_v49 = vmul.f32 %v3266_v25, %v16151_v4  ;;  %v16154_v17 = vld [vmem:[#allocation70_spill] sm:$0xff]  ;;  %v16162_v25 = vld [vmem:[#allocation25_spill] sm:$0xff] }
 0x814   : > { %3974 = vmatpush1.msra.mxu1 %v3374_v59  ;;  %3845 = vmatprep.mubr.f32.mxu1 %v15943_v54  ;;  %v3290_v53 = vmul.f32 %v3270_v0, %v16152_v51  ;;  %v3287_v59 = vmul.f32 %v3265_v2, %v16151_v4  ;;  %v3286_v42 = vmul.f32 %v3269_v14, %v16152_v51  ;;  %v16164_v2 = vld [vmem:[#allocation41_spill] sm:$0xff] }
 0x815   : > { %v3249_v10 = vpop.permute.xlu0 %3248  ;;  %3975 = vmatprep.subr.mxu1 %v3371_v30  ;;  %v3175_v34 = vpop.permute.xlu1 %3174  ;;  %v16165_v14 = vld [vmem:[#allocation17_spill] sm:$0xff] }
 0x816   : > { %3976 = vmatpush1.msra.mxu1 %v3370_v60  ;;  %v3264_v44 = vsel %vm308_vm0, %v3249_v10, %v16155_v56  ;;  %v3268_v55 = vsel %vm308_vm0, %v16156_v18, %v3249_v10  ;;  %v3187_v30 = vsel %vm239_vm1, %v3175_v34, %v16157_v3  ;;  %v16158_v60 = vld [vmem:[#allocation39_spill] sm:$0xff]  ;;  %v16168_v3 = vld [vmem:[#allocation64_spill] sm:$0xff] }
 0x817   : > { %3977 = vmatprep.subr.mxu1 %v3367_v32  ;;  %8222 = vmatmul.mubr.msk.f32.gmra.mxu1 %vm1896_vm8, %v11843_v62  ;;  %v3294_v62 = vmul.f32 %v3271_v16, %v16152_v51  ;;  %v3191_v41 = vsel %vm239_vm1, %v16158_v60, %v3175_v34  ;;  %v3283_v37 = vmul.f32 %v3264_v44, %v16151_v4  ;;  %v16159_v10 = vld [vmem:[#allocation71_spill] sm:$0xff]  ;;  %v16161_v16 = vld [vmem:[#allocation50_spill] sm:$0xff]  ;;  %v16167_v44 = vld [vmem:[#allocation36_spill] sm:$0xff] }
 0x818   : > { %3978 = vmatpush1.msra.mxu1 %v3366_v12  ;;  %3851 = vmatprep.mubr.f32.mxu1 %v15943_v54  ;;  %v3282_v32 = vmul.f32 %v3268_v55, %v16152_v51  ;;  %v16160_v12 = vld [vmem:[#allocation47_spill] sm:$0xff]  ;;  %v3215_v0 = vmul.f32 %v3187_v30, %v16162_v25 }
 0x819   : > { %v3173_v31 = vpop.permute.xlu0 %3172  ;;  %3979 = vmatprep.subr.mxu1 %v3363_v28  ;;  %v3171_v19 = vpop.permute.xlu1 %3170  ;;  %v16169_v60 = vld [vmem:[#allocation35_spill] sm:$0xff] }
 0x81a   : > { %3980 = vmatpush1.msra.mxu1 %v3362_v15  ;;  %v3186_v47 = vsel %vm239_vm1, %v3173_v31, %v16160_v12  ;;  %v3190_v28 = vsel %vm239_vm1, %v16161_v16, %v3173_v31  ;;  %v3185_v26 = vsel %vm239_vm1, %v3171_v19, %v16164_v2  ;;  %v16171_v16 = vld [vmem:[#allocation14_spill] sm:$0xff] }
 0x81b   : > { %3981 = vmatprep.subr.mxu1 %v3295_v57  ;;  %8223 = vmatmul.mubr.msk.f32.gmra.mxu1 %vm1896_vm8, %v16154_v17  ;;  %v16163_v57 = vld [vmem:[#allocation23_spill] sm:$0xff]  ;;  %v3211_v17 = vmul.f32 %v3186_v47, %v16162_v25  ;;  %v16173_v2 = vld [vmem:[#allocation58_spill] sm:$0xff] }
 0x81c   : > { %3982 = vmatpush1.msra.mxu1 %v3294_v62  ;;  %3857 = vmatprep.mubr.f32.mxu1 %v15943_v54  ;;  %v3214_v62 = vmul.f32 %v3191_v41, %v16163_v57  ;;  %v3210_v31 = vmul.f32 %v3190_v28, %v16163_v57 }
 0x81d   : > { %v3169_v21 = vpop.permute.xlu0 %3168  ;;  %3983 = vmatprep.subr.mxu1 %v3291_v49  ;;  %v4245_v6 = vpop.permute.xlu1 %4244  ;;  %v3189_v49 = vsel %vm239_vm1, %v16165_v14, %v3171_v19  ;;  %v16174_v14 = vld [vmem:[#allocation60_spill] sm:$0xff] }
 0x81e   : > { %3984 = vmatpush1.msra.mxu1 %v3290_v53  ;;  %v16166_v53 = vld [vmem:[#allocation24_spill] sm:$0xff]  ;;  %v3188_v18 = vsel %vm239_vm1, %v16167_v44, %v3169_v21  ;;  %v3206_v19 = vmul.f32 %v3189_v49, %v16163_v57  ;;  %v4261_v30 = vsel %vm894_vm7, %v4245_v6, %v16168_v3  ;;  %v4249_v41 = vsel %vm894_vm7, %v16169_v60, %v4245_v6 }
 0x81f   : > { %3985 = vmatprep.subr.mxu1 %v3287_v59  ;;  %8224 = vmatmul.mubr.msk.f32.gmra.mxu1 %vm1896_vm8, %v16159_v10  ;;  %v3184_v56 = vsel %vm239_vm1, %v3169_v21, %v16166_v53  ;;  %v3202_v21 = vmul.f32 %v3188_v18, %v16163_v57  ;;  %v4277_v28 = vmul.f32 %v16171_v16, %v4261_v30  ;;  %v16176_v44 = vld [vmem:[#allocation68_spill] sm:$0xff]  ;;  %v16178_v30 = vld [vmem:[#allocation9_spill] sm:$0xff] }
 0x820   : > { %3986 = vmatpush1.msra.mxu1 %v3286_v42  ;;  %4029 = vmatprep.mubr.f32.mxu1 %v15943_v54  ;;  %v3207_v42 = vmul.f32 %v3185_v26, %v16162_v25 }
 0x821   : > { %v4243_v34 = vpop.permute.xlu0 %4242  ;;  %3987 = vmatprep.subr.mxu1 %v3283_v37  ;;  %v4241_v15 = vpop.permute.xlu1 %4240  ;;  %v3203_v37 = vmul.f32 %v3184_v56, %v16162_v25 }
 0x822   : > { %3988 = vmatpush1.msra.mxu1 %v3282_v32  ;;  %v4260_v10 = vsel %vm894_vm7, %v4243_v34, %v16120_v52  ;;  %v16170_v32 = vld [vmem:[#allocation72_spill] sm:$0xff]  ;;  %v4247_v52 = vsel %vm894_vm7, %v16173_v2, %v4241_v15 }
 0x823   : > { %3989 = vmatprep.subr.mxu1 %v3215_v0  ;;  %v4248_v12 = vsel %vm894_vm7, %v16170_v32, %v4243_v34  ;;  %v16172_v0 = vld [vmem:[#allocation12_spill] sm:$0xff]  ;;  %v4273_v34 = vmul.f32 %v16171_v16, %v4260_v10 }
 0x824   : > { %3990 = vmatpush1.msra.mxu1 %v3214_v62  ;;  %v4276_v6 = vmul.f32 %v16172_v0, %v4249_v41  ;;  %v4259_v62 = vsel %vm894_vm7, %v4241_v15, %v16124_v58  ;;  %v4272_v49 = vmul.f32 %v16172_v0, %v4248_v12  ;;  %v16175_v58 = vld [vmem:[#allocation27_spill] sm:$0xff]  ;;  %v4268_v56 = vmul.f32 %v16172_v0, %v4247_v52  ;;  %v16180_v12 = vld [vmem:[#allocation4_spill] sm:$0xff]  ;;  %v16181_v52 = vld [vmem:[#allocation18_spill] sm:$0xff] }
 0x825   : > { %v4239_v55 = vpop.permute.xlu0 %4238  ;;  %3991 = vmatprep.subr.mxu1 %v3211_v17  ;;  %v4165_v59 = vpop.permute.xlu1 %4164  ;;  %v4269_v53 = vmul.f32 %v16171_v16, %v4259_v62 }
 0x826   : > { %3992 = vmatpush1.msra.mxu1 %v3210_v31  ;;  %v4258_v17 = vsel %vm894_vm7, %v4239_v55, %v11686_v33  ;;  %v4246_v15 = vsel %vm894_vm7, %v16175_v58, %v4239_v55  ;;  %v4181_v18 = vsel %vm805_vm6, %v4165_v59, %v16176_v44  ;;  %v4169_v33 = vsel %vm805_vm6, %v12027_v11, %v4165_v59  ;;  %v16177_v59 = vld [vmem:[#allocation52_spill] sm:$0xff] }
 0x827   : > { %3993 = vmatprep.subr.mxu1 %v3207_v42  ;;  %v4265_v55 = vmul.f32 %v16171_v16, %v4258_v17  ;;  %v4264_v42 = vmul.f32 %v16172_v0, %v4246_v15  ;;  %v4196_v60 = vmul.f32 %v4169_v33, %v16178_v30  ;;  %v16184_v17 = vld [vmem:[#allocation59_spill] sm:$0xff]  ;;  %v16186_v44 = vld [vmem:[#allocation20_spill] sm:$0xff] }
 0x828   : > { %3994 = vmatpush1.msra.mxu1 %v3206_v19  ;;  %v16185_v15 = vld [vmem:[#allocation63_spill] sm:$0xff] }
 0x829   : > { %v4163_v47 = vpop.permute.xlu0 %4162  ;;  %3995 = vmatprep.subr.mxu1 %v3203_v37 }
 0x82a   : > { %3996 = vmatpush1.msra.mxu1 %v3202_v21  ;;  %v4161_v26 = vpop.permute.xlu1 %4160  ;;  %v4180_v19 = vsel %vm805_vm6, %v4163_v47, %v11720_v40  ;;  %v4168_v3 = vsel %vm805_vm6, %v12029_v23, %v4163_v47 }
 0x82b   : > { %8229 = vmatmul.mubr.msk.f32.vlgmr.msra.gmra.mxu1 %vm1896_vm8, %v16174_v14  ;;  %4456 = vmatprep.subr.mxu1 %v4277_v28  ;;  %v4179_v41 = vsel %vm805_vm6, %v4161_v26, %v11764_v5  ;;  %v4167_v40 = vsel %vm805_vm6, %v11736_v1, %v4161_v26  ;;  %v4193_v23 = vmul.f32 %v4180_v19, %v16177_v59  ;;  %v16179_v5 = vld [vmem:[#allocation69_spill] sm:$0xff]  ;;  %v16182_v14 = vld [vmem:[#allocation51_spill] sm:$0xff] }
 0x82c   : > { %4457 = vmatpush1.msra.mxu1 %v4276_v6  ;;  %4035 = vmatprep.mubr.f32.mxu1 %v15943_v54  ;;  %v4192_v21 = vmul.f32 %v4168_v3, %v16178_v30  ;;  %v4189_v32 = vmul.f32 %v4179_v41, %v16177_v59 }
 0x82d   : > { %v4159_v31 = vpop.permute.xlu0 %4158  ;;  %4458 = vmatprep.subr.mxu1 %v4273_v34  ;;  %v16183_v34 = vld [vmem:[#allocation55_spill] sm:$0xff] }
 0x82e   : > { %4459 = vmatpush1.msra.mxu1 %v4272_v49  ;;  %v4085_v11 = vpop.permute.xlu1 %4084  ;;  %v4178_v10 = vsel %vm805_vm6, %v4159_v31, %v11855_v35  ;;  %v4166_v1 = vsel %vm805_vm6, %v16179_v5, %v4159_v31 }
 0x82f   : > { %8230 = vmatmul.mubr.msk.f32.gmra.mxu1 %vm1896_vm8, %v12019_v8  ;;  %4460 = vmatprep.subr.mxu1 %v4269_v53  ;;  %v4197_v8 = vmul.f32 %v4181_v18, %v16177_v59  ;;  %v4101_v47 = vsel %vm716_vm5, %v4085_v11, %v16180_v12  ;;  %v4089_v35 = vsel %vm716_vm5, %v12091_v9, %v4085_v11 }
 0x830   : > { %4461 = vmatpush1.msra.mxu1 %v4268_v56  ;;  %4041 = vmatprep.mubr.f32.mxu1 %v15943_v54  ;;  %v4185_v6 = vmul.f32 %v4178_v10, %v16177_v59  ;;  %v4184_v62 = vmul.f32 %v4166_v1, %v16178_v30  ;;  %v4116_v49 = vmul.f32 %v4089_v35, %v16183_v34 }
 0x831   : > { %4462 = vmatprep.subr.mxu1 %v4265_v55  ;;  %v4083_v37 = vpop.permute.xlu0 %4082 }
 0x832   : > { %4463 = vmatpush1.msra.mxu1 %v4264_v42  ;;  %v4081_v28 = vpop.permute.xlu1 %4080  ;;  %v4100_v2 = vsel %vm716_vm5, %v4083_v37, %v11999_v63  ;;  %v4088_v9 = vsel %vm716_vm5, %v16181_v52, %v4083_v37 }
 0x833   : > { %8231 = vmatmul.mubr.msk.f32.gmra.mxu1 %vm1896_vm8, %v12052_v61  ;;  %4464 = vmatprep.subr.mxu1 %v4197_v8  ;;  %v4188_v61 = vmul.f32 %v4167_v40, %v16178_v30  ;;  %v4099_v58 = vsel %vm716_vm5, %v4081_v28, %v16184_v17  ;;  %v4087_v63 = vsel %vm716_vm5, %v16185_v15, %v4081_v28 }
 0x834   : > { %4465 = vmatpush1.msra.mxu1 %v4196_v60  ;;  %4047 = vmatprep.mubr.f32.mxu1 %v15943_v54  ;;  %v4113_v31 = vmul.f32 %v4100_v2, %v16182_v14  ;;  %v4112_v53 = vmul.f32 %v4088_v9, %v16183_v34  ;;  %v4109_v33 = vmul.f32 %v4099_v58, %v16182_v14 }
 0x835   : > { %4466 = vmatprep.subr.mxu1 %v4193_v23  ;;  %v4079_v26 = vpop.permute.xlu0 %4078  ;;  %v4108_v55 = vmul.f32 %v4087_v63, %v16183_v34 }
 0x836   : > { %4467 = vmatpush1.msra.mxu1 %v4192_v21  ;;  %v4098_v56 = vsel %vm716_vm5, %v4079_v26, %v12135_v29  ;;  %v4086_v18 = vsel %vm716_vm5, %v16186_v44, %v4079_v26 }
 0x837   : > { %8232 = vmatmul.mubr.msk.f32.gmra.mxu1 %vm1896_vm8, %v12083_v38  ;;  %4468 = vmatprep.subr.mxu1 %v4189_v32  ;;  %v4117_v38 = vmul.f32 %v4101_v47, %v16182_v14  ;;  %v4105_v42 = vmul.f32 %v4098_v56, %v16182_v14  ;;  %v4104_v19 = vmul.f32 %v4086_v18, %v16183_v34 }
 0x838   : > { %4469 = vmatpush1.msra.mxu1 %v4188_v61  ;;  %4512 = vmatprep.mubr.f32.mxu1 %v15943_v54 }
 0x839   : > { %4470 = vmatprep.subr.mxu1 %v4185_v6 }
 0x83a   : > { %4471 = vmatpush1.msra.mxu1 %v4184_v62 }
 0x83b   : > { %4472 = vmatprep.subr.mxu1 %v4117_v38 }
 0x83c   : > { %4473 = vmatpush1.msra.mxu1 %v4116_v49 }
 0x83d   : > { %4474 = vmatprep.subr.mxu1 %v4113_v31 }
 0x83e   : > { %4475 = vmatpush1.msra.mxu1 %v4112_v53 }
 0x83f   : > { %4476 = vmatprep.subr.mxu1 %v4109_v33  ;;  %v4555_v6 = vpop.permute.xlu1 %4554 }
 0x840   : > { %4477 = vmatpush1.msra.mxu1 %v4108_v55 }
 0x841   : > { %4478 = vmatprep.subr.mxu1 %v4105_v42 }
 0x842   : > { %4479 = vmatpush1.msra.mxu1 %v4104_v19  ;;  %v4559_v17 = vpop.permute.xlu0 %4558 }
 0x843   : > { %8241 = vmatmul.mubr.msk.f32.vlgmr.msra.gmra.mxu1 %vm1896_vm8, %v12153_v7 }
 0x844   : > { %4518 = vmatprep.mubr.f32.mxu1 %v15943_v54 }
 0x847   : > { %8242 = vmatmul.mubr.msk.f32.gmra.mxu1 %vm1896_vm8, %v12175_v48 }
 0x848   : > { %4524 = vmatprep.mubr.f32.mxu1 %v15943_v54 }
 0x84b   : > { %8243 = vmatmul.mubr.msk.f32.gmra.mxu1 %vm1896_vm8, %v12193_v27 }
 0x84c   : > { %4530 = vmatprep.mubr.f32.mxu1 %v15943_v54 }
 0x84f   : > { %8244 = vmatmul.mubr.msk.f32.gmra.mxu1 %vm1896_vm8, %v12204_v46 }
 0x850   : > { %5568 = vmatprep.mubr.f32.mxu1 %v15943_v54 }
 0x88a   : > { %v3752_v29 = vpop.f32.mrf.mxu0 }
 0x88c   : > { %v3754_v3 = vpop.f32.mrf.mxu0 }
 0x88e   : > { %v3758_v7 = vpop.f32.mrf.mxu0 }
 0x890   : > { %v3760_v11 = vpop.f32.mrf.mxu0 }
 0x892   : > { %v3764_v8 = vpop.f32.mrf.mxu0 }
 0x894   : > { %v3766_v60 = vpop.f32.mrf.mxu0 }
 0x896   : > { %v3770_v41 = vpop.f32.mrf.mxu0 }
 0x898   : > { %v3772_v48 = vpop.f32.mrf.mxu0 }
 0x8a2   : > { %v3942_v40 = vpop.f32.mrf.mxu0 }
 0x8a3   : > { %v3943_v47 = vadd.f32 %v3942_v40, %v3752_v29 }
 0x8a4   : > { %v3944_v37 = vpop.f32.mrf.mxu0 }
 0x8a5   : > { %v3945_v35 = vadd.f32 %v3944_v37, %v3754_v3 }
 0x8a6   : > { %v3948_v23 = vpop.f32.mrf.mxu0 }
 0x8a7   : > { %v3949_v62 = vadd.f32 %v3948_v23, %v3758_v7 }
 0x8a8   : > { %v3950_v21 = vpop.f32.mrf.mxu0 }
 0x8a9   : > { %v3951_v9 = vadd.f32 %v3950_v21, %v3760_v11 }
 0x8aa   : > { %v3954_v27 = vpop.f32.mrf.mxu0 }
 0x8ab   : > { %v12474_v10 = vadd.f32 %v3954_v27, %v3764_v8 }
 0x8ac   : > { %v3956_v5 = vpop.f32.mrf.mxu0 }
 0x8ad   : > { %v12476_v1 = vadd.f32 %v3956_v5, %v3766_v60 }
 0x8ae   : > { %v3960_v46 = vpop.f32.mrf.mxu0 }
 0x8af   : > { %v12478_v32 = vadd.f32 %v3960_v46, %v3770_v41 }
 0x8b0   : > { %v3962_v61 = vpop.f32.mrf.mxu0 }
 0x8b1   : > { %v12480_v12 = vadd.f32 %v3962_v61, %v3772_v48  ;;  %v12505_v48 = vld [vmem:[%s15412_s2 + $0x10] sm:$0xff] }
 0x8bb   : > { %v4425_v28 = vpop.f32.mrf.mxu0 }
 0x8bc   : > { %v4537_v2 = vadd.f32 %v4425_v28, %v3943_v47 }
 0x8bd   : > { %v4427_v52 = vpop.f32.mrf.mxu0 }
 0x8be   : > { %v4538_v26 = vadd.f32 %v4427_v52, %v3945_v35  ;;  %v12482_v38 = vadd.f32 %v4555_v6, %v4537_v2 }
 0x8bf   : > { %v4431_v49 = vpop.f32.mrf.mxu0 }
 0x8c0   : > { %v4541_v58 = vadd.f32 %v4431_v49, %v3949_v62  ;;  %v12484_v15 = vadd.f32 %v4555_v6, %v4538_v26  ;;  %v4597_v63 = vmul.f32 %v12482_v38, %v12482_v38 }
 0x8c1   : > { %v4433_v31 = vpop.f32.mrf.mxu0 }
 0x8c2   : > { %v12488_v53 = vadd.f32 %v4559_v17, %v4541_v58  ;;  %v4542_v56 = vadd.f32 %v4433_v31, %v3951_v9  ;;  %v4585_v44 = vadd.f32 %v12484_v15, %v12482_v38  ;;  %v4598_v18 = vmul.f32 %v12484_v15, %v12484_v15 }
 0x8c4   : > { %v12494_v33 = vadd.f32 %v4559_v17, %v4542_v56  ;;  %v4586_v55 = vadd.f32 %v4585_v44, %v12488_v53  ;;  %v4599_v42 = vmul.f32 %v12488_v53, %v12488_v53  ;;  %v4601_v19 = vadd.f32 %v4598_v18, %v4597_v63 }
 0x8c6   : > { %v4587_v29 = vadd.f32 %v4586_v55, %v12494_v33  ;;  %v4600_v3 = vmul.f32 %v12494_v33, %v12494_v33  ;;  %v4602_v7 = vadd.f32 %v4601_v19, %v4599_v42 }
 0x8c8   : > { %4588 = vadd.xlane.f32.xlu1 %v4587_v29  ;;  %v4603_v11 = vadd.f32 %v4602_v7, %v4600_v3 }
 0x8ca   : > { %4604 = vadd.xlane.f32.xlu0 %v4603_v11 }
 0x8d3   : > { %v3841_v8 = vpop.f32.mrf.mxu1 }
 0x8d5   : > { %v3843_v60 = vpop.f32.mrf.mxu1 }
 0x8d7   : > { %v3847_v41 = vpop.f32.mrf.mxu1 }
 0x8d9   : > { %4562 = vperm.xlu1 %8528, %v12505_v48   ;;  %v3849_v40 = vpop.f32.mrf.mxu1 }
 0x8db   : > { %v3853_v37 = vpop.f32.mrf.mxu1 }
 0x8dd   : > { %v3855_v23 = vpop.f32.mrf.mxu1 }
 0x8df   : > { %v3859_v21 = vpop.f32.mrf.mxu1 }
 0x8e1   : > { %v3861_v27 = vpop.f32.mrf.mxu1 }
 0x8eb   : > { %v4031_v5 = vpop.f32.mrf.mxu1 }
 0x8ec   : > { %v4032_v58 = vadd.f32 %v4031_v5, %v3841_v8 }
 0x8ed   : > { %v4033_v46 = vpop.f32.mrf.mxu1 }
 0x8ee   : > { %v4034_v31 = vadd.f32 %v4033_v46, %v3843_v60 }
 0x8ef   : > { %v4037_v61 = vpop.f32.mrf.mxu1 }
 0x8f0   : > { %v4038_v18 = vadd.f32 %v4037_v61, %v3847_v41 }
 0x8f1   : > { %v4039_v47 = vpop.f32.mrf.mxu1 }
 0x8f2   : > { %v4040_v29 = vadd.f32 %v4039_v47, %v3849_v40 }
 0x8f3   : > { %v4043_v35 = vpop.f32.mrf.mxu1 }
 0x8f4   : > { %v12508_v28 = vadd.f32 %v4043_v35, %v3853_v37  ;;  %v12539_v35 = vld [vmem:[%s15412_s2 + $0x18] sm:$0xff] }
 0x8f5   : > { %v4045_v62 = vpop.f32.mrf.mxu1 }
 0x8f6   : > { %v12510_v2 = vadd.f32 %v4045_v62, %v3855_v23 }
 0x8f7   : > { %v4049_v52 = vpop.f32.mrf.mxu1 }
 0x8f8   : > { %v12512_v9 = vadd.f32 %v4049_v52, %v3859_v21 }
 0x8f9   : > { %v4051_v26 = vpop.f32.mrf.mxu1 }
 0x8fa   : > { %v12514_v49 = vadd.f32 %v4051_v26, %v3861_v27 }
 0x903   : > { %v4514_v63 = vpop.f32.mrf.mxu1 }
 0x904   : > { %v4539_v56 = vadd.f32 %v4514_v63, %v4032_v58 }
 0x905   : > { %v4516_v44 = vpop.f32.mrf.mxu1 }
 0x906   : > { %v4540_v55 = vadd.f32 %v4516_v44, %v4034_v31  ;;  %v12516_v42 = vadd.f32 %v4555_v6, %v4539_v56 }
 0x907   : > { %v4520_v19 = vpop.f32.mrf.mxu1 }
 0x908   : > { %v12518_v3 = vadd.f32 %v4555_v6, %v4540_v55  ;;  %v4543_v7 = vadd.f32 %v4520_v19, %v4038_v18  ;;  %v4647_v41 = vmul.f32 %v12516_v42, %v12516_v42 }
 0x909   : > { %v4522_v11 = vpop.f32.mrf.mxu1 }
 0x90a   : > { %v4635_v37 = vadd.f32 %v12518_v3, %v12516_v42  ;;  %v4648_v8 = vmul.f32 %v12518_v3, %v12518_v3  ;;  %v12524_v23 = vadd.f32 %v4559_v17, %v4543_v7  ;;  %v4544_v60 = vadd.f32 %v4522_v11, %v4040_v29 }
 0x90c   : > { %v4649_v21 = vmul.f32 %v12524_v23, %v12524_v23  ;;  %v12530_v40 = vadd.f32 %v4559_v17, %v4544_v60  ;;  %v4636_v6 = vadd.f32 %v4635_v37, %v12524_v23  ;;  %v4651_v27 = vadd.f32 %v4648_v8, %v4647_v41  ;;  %v4437_v37 = vpop.f32.mrf.mxu0  ;;  %v4526_v60 = vpop.f32.mrf.mxu1 }
 0x90d   : > { %v8646_v17 = vmov 18  }
 0x90e   : > { %v4637_v5 = vadd.f32 %v4636_v6, %v12530_v40  ;;  %v4650_v46 = vmul.f32 %v12530_v40, %v12530_v40  ;;  %v4652_v61 = vadd.f32 %v4651_v27, %v4649_v21  ;;  %8531 = vset.pattern.permute.xlu1 %v8646_v17  ;;  %v4439_v8 = vpop.f32.mrf.mxu0 }
 0x910   : > { %4638 = vadd.xlane.f32.xlu0 %v4637_v5  ;;  %v4653_v47 = vadd.f32 %v4652_v61, %v4650_v46  ;;  %v4443_v27 = vpop.f32.mrf.mxu0  ;;  %v4528_v5 = vpop.f32.mrf.mxu1 }
 0x914   : > { %4654 = vadd.xlane.f32.xlu0 %v4653_v47 }
 0x92a   : > { %4566 = vperm.xlu0 %8529, %v12539_v35  }
 0x92e   : > { %8530 = vset.pattern.permute.xlu0 %v8646_v17 }
 0x951   : > { %v4589_v62 = vpop.xlane.xlu1 %4588 }
 0x952   : > { %v4590_v52 = vrot.slane %v4589_v62, 4 }
 0x953   : > { %v4605_v26 = vpop.xlane.xlu0 %4604 }
 0x954   : > { %v4591_v58 = vadd.f32 %v4590_v52, %v4589_v62  ;;  %v4606_v63 = vrot.slane %v4605_v26, 4  ;;  %v4545_v62 = vadd.f32 %v4437_v37, %v12474_v10  ;;  %v4546_v52 = vadd.f32 %v4439_v8, %v12476_v1 }
 0x955   : > { %v4563_v61 = vpop.permute.xlu1 %4562  ;;  %v4549_v10 = vadd.f32 %v4443_v27, %v12478_v32 }
 0x956   : > { %v4607_v31 = vadd.f32 %v4606_v63, %v4605_v26  ;;  %v4592_v56 = vrot.slane %v4591_v58, 2  ;;  %v4445_v63 = vpop.f32.mrf.mxu0 }
 0x957   : > { %v4550_v1 = vadd.f32 %v4445_v63, %v12480_v12 }
 0x958   : > { %v4608_v44 = vrot.slane %v4607_v31, 2  ;;  %v4593_v18 = vadd.f32 %v4592_v56, %v4591_v58  ;;  %v12552_v56 = vadd.f32 %v4563_v61, %v4546_v52 }
 0x95a   : > { %v4609_v55 = vadd.f32 %v4608_v44, %v4607_v31  ;;  %v4594_v19 = vrot.slane %v4593_v18, 1  ;;  %v12550_v31 = vadd.f32 %v4563_v61, %v4545_v62 }
 0x95c   : > { %v4610_v29 = vrot.slane %v4609_v55, 1  ;;  %v4595_v7 = vadd.f32 %v4594_v19, %v4593_v18  ;;  %v4548_v19 = vadd.f32 %v4528_v5, %v12510_v2  ;;  %v4717_v32 = vadd.f32 %v12552_v56, %v12550_v31 }
 0x95e   : > { %v4611_v11 = vadd.f32 %v4610_v29, %v4609_v55  ;;  %8368 = vpush %v4595_v7  ;;  %v4547_v55 = vadd.f32 %v4526_v60, %v12508_v28  ;;  %v4532_v29 = vpop.f32.mrf.mxu1  ;;  %v12560_v8 = vadd.f32 %v4563_v61, %v4548_v19  ;;  %v4730_v28 = vmul.f32 %v12552_v56, %v12552_v56 }
 0x960   : > { %8370 = vpush %v4611_v11  ;;  %v12558_v37 = vadd.f32 %v4563_v61, %v4547_v55  ;;  %v4534_v27 = vpop.f32.mrf.mxu1  ;;  %v4780_v52 = vmul.f32 %v12560_v8, %v12560_v8 }
 0x962   : > { %v4779_v62 = vmul.f32 %v12558_v37, %v12558_v37 }
 0x98f   : > { %s8369_s11 = spop %8368 }
 0x990   : > { %s12544_s12 = smul.f32 0.00024414063, %s8369_s11 }
 0x991   : > { %s8371_s13 = spop %8370 }
 0x992   : > { %s4618_s14 = smul.f32 0.00024414063, %s8371_s13 }
 0x993   : > { %s4619_s17 = smul.f32 %s12544_s12, %s12544_s12 }
 0x995   : > { %s4620_s18 = ssub.f32 %s4618_s14, %s4619_s17 }
 0x997   : > { %s4626_s19 = sadd.f32 1e-05, %s4620_s18 }
 0x999   : > { %v4627_v41 = vstv %s4626_s19  ;;  %v4639_v21 = vpop.xlane.xlu0 %4638 }
 0x99a   : > { %8563 = vrsqrt.f32 %v4627_v41  ;;  %v4640_v6 = vrot.slane %v4639_v21, 4  ;;  %v4551_v41 = vadd.f32 %v4532_v29, %v12512_v9 }
 0x99c   : > { %v4641_v46 = vadd.f32 %v4640_v6, %v4639_v21  ;;  %v4729_v6 = vmul.f32 %v12550_v31, %v12550_v31 }
 0x99d   : > { %v4655_v47 = vpop.xlane.xlu0 %4654 }
 0x99e   : > { %v4656_v26 = vrot.slane %v4655_v47, 4  ;;  %v4642_v58 = vrot.slane %v4641_v46, 2 }
 0x9a0   : > { %v4657_v44 = vadd.f32 %v4656_v26, %v4655_v47  ;;  %v4643_v18 = vadd.f32 %v4642_v58, %v4641_v46  ;;  %v4767_v47 = vadd.f32 %v12560_v8, %v12558_v37 }
 0x9a2   : > { %v4644_v7 = vrot.slane %v4643_v18, 1  ;;  %v4658_v11 = vrot.slane %v4657_v44, 2 }
 0x9a4   : > { %v4659_v21 = vadd.f32 %v4658_v11, %v4657_v44  ;;  %v4645_v60 = vadd.f32 %v4644_v7, %v4643_v18  ;;  %v4733_v44 = vadd.f32 %v4730_v28, %v4729_v6  ;;  %v4552_v18 = vadd.f32 %v4534_v27, %v12514_v49 }
 0x9a5   : > { %v4567_v2 = vpop.permute.xlu0 %4566 }
 0x9a6   : > { %v12569_v12 = vadd.f32 %v4567_v2, %v4549_v10  ;;  %v12571_v5 = vadd.f32 %v4567_v2, %v4551_v41  ;;  %v4660_v46 = vrot.slane %v4659_v21, 1  ;;  %v12573_v61 = vadd.f32 %v4567_v2, %v4550_v1 }
 0x9a7   : > { %v8564_v9 = vpop.eup %8563  ;;  %v12591_v1 = vadd.f32 %v4567_v2, %v4552_v18  ;;  %v4783_v41 = vadd.f32 %v4780_v52, %v4779_v62  ;;  %v8603_v2 = vld [vmem:[%s15412_s2 + $0x8] sm:$0xff] }
 0x9a8   : > { %8372 = vpush %v8564_v9  ;;  %v4661_v26 = vadd.f32 %v4660_v46, %v4659_v21  ;;  %v4718_v58 = vadd.f32 %v4717_v32, %v12569_v12  ;;  %v4731_v63 = vmul.f32 %v12569_v12, %v12569_v12  ;;  %v4732_v55 = vmul.f32 %v12573_v61, %v12573_v61 }
 0x9a9   : > { %8374 = vpush %v4645_v60  ;;  %v4768_v7 = vadd.f32 %v4767_v47, %v12571_v5  ;;  %v4781_v11 = vmul.f32 %v12571_v5, %v12571_v5  ;;  %v4782_v6 = vmul.f32 %v12591_v1, %v12591_v1  ;;  %v8647_v60 = vmov 19   ;;  %v12613_v47 = vld [vmem:[%s15412_s2] sm:$0xff] }
 0x9aa   : > { %8376 = vpush %v4661_v26  ;;  %v4719_v19 = vadd.f32 %v4718_v58, %v12573_v61  ;;  %v4734_v29 = vadd.f32 %v4733_v44, %v4731_v63  ;;  %v4621_v32 = vstv %s12544_s12 }
 0x9ab   : > { %v4769_v49 = vadd.f32 %v4768_v7, %v12591_v1  ;;  %v4784_v21 = vadd.f32 %v4783_v41, %v4781_v11  ;;  %v4622_v27 = vsub.f32 %v12482_v38, %v4621_v32  ;;  %v4623_v46 = vsub.f32 %v12484_v15, %v4621_v32 }
 0x9ac   : > { %4720 = vadd.xlane.f32.xlu1 %v4719_v19  ;;  %v4735_v10 = vadd.f32 %v4734_v29, %v4732_v55  ;;  %v4624_v9 = vsub.f32 %v12488_v53, %v4621_v32 }
 0x9ad   : > { %v4785_v28 = vadd.f32 %v4784_v21, %v4782_v6 }
 0x9ae   : > { %4736 = vadd.xlane.f32.xlu0 %v4735_v10 }
 0x9b0   : > { %4770 = vadd.xlane.f32.xlu1 %v4769_v49 }
 0x9b4   : > { %4786 = vadd.xlane.f32.xlu1 %v4785_v28 }
 0x9c4   : > { %4822 = vperm.xlu0 %8530, %v12539_v35  }
 0x9c5   : > { %4818 = vperm.xlu1 %8531, %v12505_v48  }
 0x9c9   : > { %8532 = vset.pattern.permute.xlu1 %v8647_v60 }
 0x9ca   : > { %4838 = vperm.xlu1 %8532, %v12539_v35   ;;  %v4625_v35 = vsub.f32 %v12494_v33, %v4621_v32 }
 0x9ce   : > { %8533 = vset.pattern.permute.xlu1 %v8646_v17 }
 0x9cf   : > { %4690 = vperm.xlu1 %8533, %v8603_v2  }
 0x9d3   : > { %8534 = vset.pattern.permute.xlu1 %v8647_v60 }
 0x9d4   : > { %4834 = vperm.xlu1 %8534, %v12505_v48  }
 0x9d8   : > { %8535 = vset.pattern.permute.xlu1 %v8646_v17 }
 0x9d9   : > { %s8373_s22 = spop %8372  ;;  %4686 = vperm.xlu1 %8535, %v12613_v47  }
 0x9da   : > { %v4630_v48 = vstv %s8373_s22  ;;  %s8375_s7 = spop %8374 }
 0x9db   : > { %v4631_v62 = vmul.f32 %v4630_v48, %v4622_v27  ;;  %v4632_v17 = vmul.f32 %v4630_v48, %v4623_v46  ;;  %v4633_v52 = vmul.f32 %v4630_v48, %v4624_v9  ;;  %v4634_v38 = vmul.f32 %v4630_v48, %v4625_v35  ;;  %s12616_s8 = smul.f32 0.00024414063, %s8375_s7  ;;  %s8377_s9 = spop %8376 }
 0x9dc   : > { %s4668_s10 = smul.f32 0.00024414063, %s8377_s9 }
 0x9dd   : > { %s4669_s11 = smul.f32 %s12616_s8, %s12616_s8  ;;  %8536 = vset.pattern.permute.xlu1 %v8647_v60 }
 0x9de   : > { %4706 = vperm.xlu1 %8536, %v8603_v2  }
 0x9df   : > { %s4670_s12 = ssub.f32 %s4668_s10, %s4669_s11 }
 0x9e1   : > { %s4676_s13 = sadd.f32 1e-05, %s4670_s12 }
 0x9e2   : > { %4702 = vperm.xlu1 %8536, %v12613_v47  }
 0x9e3   : > { %v4677_v15 = vstv %s4676_s13 }
 0x9e4   : > { %8565 = vrsqrt.f32 %v4677_v15 }
 0x9f1   : > { %v8566_v53 = vpop.eup %8565 }
 0x9f2   : > { %8378 = vpush %v8566_v53 }
 0xa23   : > { %s8379_s14 = spop %8378 }
 0xa35   : > { %v4721_v33 = vpop.xlane.xlu1 %4720 }
 0xa36   : > { %v4722_v26 = vrot.slane %v4721_v33, 4 }
 0xa37   : > { %v4737_v58 = vpop.xlane.xlu0 %4736 }
 0xa38   : > { %v4723_v63 = vadd.f32 %v4722_v26, %v4721_v33  ;;  %v4738_v44 = vrot.slane %v4737_v58, 4 }
 0xa39   : > { %v4771_v18 = vpop.xlane.xlu1 %4770 }
 0xa3a   : > { %v4739_v55 = vadd.f32 %v4738_v44, %v4737_v58  ;;  %v4724_v19 = vrot.slane %v4723_v63, 2 }
 0xa3c   : > { %v4725_v29 = vadd.f32 %v4724_v19, %v4723_v63  ;;  %v4740_v7 = vrot.slane %v4739_v55, 2 }
 0xa3d   : > { %v4787_v11 = vpop.xlane.xlu1 %4786 }
 0xa3e   : > { %v4726_v10 = vrot.slane %v4725_v29, 1  ;;  %v4741_v41 = vadd.f32 %v4740_v7, %v4739_v55 }
 0xa40   : > { %v4727_v49 = vadd.f32 %v4726_v10, %v4725_v29  ;;  %v4742_v21 = vrot.slane %v4741_v41, 1  ;;  %v4788_v10 = vrot.slane %v4787_v11, 4 }
 0xa41   : > { %v12621_v6 = vpop.permute.xlu1 %4818 }
 0xa42   : > { %8380 = vpush %v4727_v49  ;;  %v4743_v28 = vadd.f32 %v4742_v21, %v4741_v41  ;;  %v4789_v49 = vadd.f32 %v4788_v10, %v4787_v11  ;;  %v4671_v21 = vstv %s12616_s8 }
 0xa44   : > { %8382 = vpush %v4743_v28 }
 0xa45   : > { %v12623_v60 = vpop.permute.xlu1 %4838 }
 0xa4a   : > { %v12625_v2 = vpop.permute.xlu1 %4690 }
 0xa4b   : > { %v4697_v46 = vmul.f32 %v12625_v2, %v4633_v52  ;;  %v4698_v9 = vmul.f32 %v12625_v2, %v4634_v38 }
 0xa4f   : > { %v12627_v32 = vpop.permute.xlu1 %4834 }
 0xa54   : > { %v12629_v27 = vpop.permute.xlu1 %4686 }
 0xa55   : > { %v4693_v33 = vmul.f32 %v12629_v27, %v4631_v62  ;;  %v4694_v26 = vmul.f32 %v12629_v27, %v4632_v17  ;;  %v4772_v17 = vrot.slane %v4771_v18, 4 }
 0xa57   : > { %v4773_v41 = vadd.f32 %v4772_v17, %v4771_v18  ;;  %v4674_v18 = vsub.f32 %v12524_v23, %v4671_v21 }
 0xa59   : > { %v12633_v35 = vpop.permute.xlu1 %4706 }
 0xa5a   : > { %v4713_v48 = vadd.f32 %v12633_v35, %v4697_v46  ;;  %v4714_v15 = vadd.f32 %v12633_v35, %v4698_v9  ;;  %v4680_v46 = vstv %s8379_s14  ;;  %v4774_v9 = vrot.slane %v4773_v41, 2 }
 0xa5c   : > { %v4854_v53 = vmul.f32 0.2, %v4714_v15  ;;  %v4853_v63 = vmul.f32 0.2, %v4713_v48 }
 0xa5d   : > { %v12639_v58 = vpop.permute.xlu1 %4702 }
 0xa5e   : > { %v12641_v44 = vmax.f32 %v4714_v15, %v4854_v53  ;;  %v4709_v52 = vadd.f32 %v12639_v58, %v4693_v33  ;;  %v4710_v38 = vadd.f32 %v12639_v58, %v4694_v26  ;;  %v12647_v19 = vmax.f32 %v4713_v48, %v4853_v63 }
 0xa5f   : > { %v4672_v48 = vsub.f32 %v12516_v42, %v4671_v21  ;;  %v4790_v15 = vrot.slane %v4789_v49, 2  ;;  %v4683_v53 = vmul.f32 %v4680_v46, %v4674_v18  ;;  %v4775_v33 = vadd.f32 %v4774_v9, %v4773_v41 }
 0xa60   : > { %5280 = vrot.lane.b32.xlu1 %v12641_v44, %s8630_s29  ;;  %v4850_v55 = vmul.f32 0.2, %v4710_v38  ;;  %v4849_v29 = vmul.f32 0.2, %v4709_v52  ;;  %v4675_v26 = vsub.f32 %v12530_v40, %v4671_v21 }
 0xa61   : > { %v4681_v11 = vmul.f32 %v4680_v46, %v4672_v48  ;;  %v4791_v42 = vadd.f32 %v4790_v15, %v4789_v49  ;;  %v4776_v40 = vrot.slane %v4775_v33, 1 }
 0xa62   : > { %v12649_v7 = vmax.f32 %v4710_v38, %v4850_v55  ;;  %v12655_v62 = vmax.f32 %v4709_v52, %v4849_v29  ;;  %v4673_v52 = vsub.f32 %v12518_v3, %v4671_v21  ;;  %v4699_v38 = vmul.f32 %v12625_v2, %v4683_v53 }
 0xa63   : > { %v4695_v63 = vmul.f32 %v12629_v27, %v4681_v11  ;;  %v4684_v23 = vmul.f32 %v4680_v46, %v4675_v26  ;;  %v4792_v41 = vrot.slane %v4791_v42, 1  ;;  %v4777_v48 = vadd.f32 %v4776_v40, %v4775_v33 }
 0xa64   : > { %5272 = vrot.lane.b32.xlu1 %v12647_v19, %s8630_s29  ;;  %5278 = vrot.lane.b32.xlu0 %v12649_v7, %s8630_s29  ;;  %v4682_v29 = vmul.f32 %v4680_v46, %v4673_v52  ;;  %v4715_v17 = vadd.f32 %v12633_v35, %v4699_v38  ;;  %v12751_v38 = vpop.permute.xlu0 %4822 }
 0xa65   : > { %v4711_v55 = vadd.f32 %v12639_v58, %v4695_v63  ;;  %v4700_v10 = vmul.f32 %v12625_v2, %v4684_v23  ;;  %v4793_v15 = vadd.f32 %v4792_v41, %v4791_v42 }
 0xa66   : > { %v4696_v3 = vmul.f32 %v12629_v27, %v4682_v29  ;;  %v4855_v9 = vmul.f32 0.2, %v4715_v17 }
 0xa67   : > { %v4716_v49 = vadd.f32 %v12633_v35, %v4700_v10  ;;  %v4851_v21 = vmul.f32 0.2, %v4711_v55 }
 0xa68   : > { %5176 = vrot.lane.b32.xlu1 %v12647_v19, %s8627_s28  ;;  %5270 = vrot.lane.b32.xlu0 %v12655_v62, %s8630_s29  ;;  %v4712_v46 = vadd.f32 %v12639_v58, %v4696_v3  ;;  %v12716_v35 = vmax.f32 %v4715_v17, %v4855_v9 }
 0xa69   : > { %v4856_v2 = vmul.f32 0.2, %v4716_v49  ;;  %v12714_v27 = vmax.f32 %v4711_v55, %v4851_v21 }
 0xa6a   : > { %16188 = vst [vmem:[#allocation66_spill] sm:$0xff] %v12716_v35  ;;  %v4852_v18 = vmul.f32 0.2, %v4712_v46 }
 0xa6b   : > { %16187 = vst [vmem:[#allocation32_spill] sm:$0xff] %v12714_v27  ;;  %v12722_v58 = vmax.f32 %v4716_v49, %v4856_v2 }
 0xa6c   : > { %5182 = vrot.lane.b32.xlu1 %v12649_v7, %s8627_s28  ;;  %5184 = vrot.lane.b32.xlu0 %v12641_v44, %s8627_s28  ;;  %v12724_v11 = vmax.f32 %v4712_v46, %v4852_v18 }
 0xa70   : > { %5043 = vrot.lane.b32.xlu1 %v12647_v19, %s8625_s27  ;;  %5174 = vrot.lane.b32.xlu0 %v12655_v62, %s8627_s28 }
 0xa73   : > { %s8381_s17 = spop %8380 }
 0xa74   : > { %s12669_s18 = smul.f32 0.00024414063, %s8381_s17  ;;  %5049 = vrot.lane.b32.xlu1 %v12649_v7, %s8625_s27  ;;  %5051 = vrot.lane.b32.xlu0 %v12641_v44, %s8625_s27 }
 0xa75   : > { %s8383_s19 = spop %8382 }
 0xa76   : > { %s4751_s20 = smul.f32 %s12669_s18, %s12669_s18  ;;  %v4753_v53 = vstv %s12669_s18 }
 0xa77   : > { %s4750_s21 = smul.f32 0.00024414063, %s8383_s19  ;;  %v4754_v33 = vsub.f32 %v12550_v31, %v4753_v53  ;;  %v4755_v26 = vsub.f32 %v12552_v56, %v4753_v53  ;;  %v4756_v63 = vsub.f32 %v12569_v12, %v4753_v53  ;;  %v4757_v42 = vsub.f32 %v12573_v61, %v4753_v53 }
 0xa78   : > { %4963 = vrot.lane.b32.xlu1 %v12647_v19, %s8624_s24  ;;  %5041 = vrot.lane.b32.xlu0 %v12655_v62, %s8625_s27 }
 0xa79   : > { %s4752_s22 = ssub.f32 %s4750_s21, %s4751_s20 }
 0xa7b   : > { %s4758_s25 = sadd.f32 1e-05, %s4752_s22 }
 0xa7c   : > { %4969 = vrot.lane.b32.xlu1 %v12649_v7, %s8624_s24  ;;  %4971 = vrot.lane.b32.xlu0 %v12641_v44, %s8624_s24 }
 0xa7d   : > { %v4759_v28 = vstv %s4758_s25 }
 0xa7e   : > { %8567 = vrsqrt.f32 %v4759_v28 }
 0xa80   : > { %4883 = vrot.lane.b32.xlu1 %v12647_v19, %s8623_s23  ;;  %4961 = vrot.lane.b32.xlu0 %v12655_v62, %s8624_s24 }
 0xa84   : > { %4889 = vrot.lane.b32.xlu1 %v12649_v7, %s8623_s23  ;;  %4891 = vrot.lane.b32.xlu0 %v12641_v44, %s8623_s23 }
 0xa88   : > { %5953 = vrot.lane.b32.xlu1 %v12641_v44, %s8636_s6  ;;  %4881 = vrot.lane.b32.xlu0 %v12655_v62, %s8623_s23 }
 0xa8b   : > { %v8568_v28 = vpop.eup %8567 }
 0xa8c   : > { %8384 = vpush %v8568_v28  ;;  %5945 = vrot.lane.b32.xlu1 %v12647_v19, %s8636_s6  ;;  %5951 = vrot.lane.b32.xlu0 %v12649_v7, %s8636_s6 }
 0xa8d   : > { %8386 = vpush %v4777_v48 }
 0xa8e   : > { %8388 = vpush %v4793_v15 }
 0xa90   : > { %5286 = vrot.lane.b32.xlu1 %v12714_v27, %s8630_s29  ;;  %5288 = vrot.lane.b32.xlu0 %v12716_v35, %s8630_s29 }
 0xa94   : > { %5200 = vrot.lane.b32.xlu1 %v12722_v58, %s8627_s28  ;;  %5198 = vrot.lane.b32.xlu0 %v12724_v11, %s8627_s28 }
 0xa98   : > { %5067 = vrot.lane.b32.xlu1 %v12722_v58, %s8625_s27  ;;  %5065 = vrot.lane.b32.xlu0 %v12724_v11, %s8625_s27 }
 0xa9c   : > { %4987 = vrot.lane.b32.xlu1 %v12722_v58, %s8624_s24  ;;  %4985 = vrot.lane.b32.xlu0 %v12724_v11, %s8624_s24 }
 0xaa0   : > { %4907 = vrot.lane.b32.xlu1 %v12722_v58, %s8623_s23  ;;  %4905 = vrot.lane.b32.xlu0 %v12724_v11, %s8623_s23 }
 0xaa4   : > { %5959 = vrot.lane.b32.xlu1 %v12714_v27, %s8636_s6  ;;  %5961 = vrot.lane.b32.xlu0 %v12716_v35, %s8636_s6 }
 0xabd   : > { %s8385_s26 = spop %8384 }
 0xabe   : > { %v4762_v52 = vstv %s8385_s26  ;;  %s8387_s7 = spop %8386 }
 0xabf   : > { %v4763_v23 = vmul.f32 %v4762_v52, %v4754_v33  ;;  %v4764_v55 = vmul.f32 %v4762_v52, %v4755_v26  ;;  %v4765_v29 = vmul.f32 %v4762_v52, %v4756_v63  ;;  %v4766_v17 = vmul.f32 %v4762_v52, %v4757_v42  ;;  %s12753_s8 = smul.f32 0.00024414063, %s8387_s7  ;;  %s8389_s9 = spop %8388 }
 0xac0   : > { %s4800_s10 = smul.f32 0.00024414063, %s8389_s9 }
 0xac1   : > { %v4825_v31 = vmul.f32 %v12621_v6, %v4763_v23  ;;  %v4826_v56 = vmul.f32 %v12621_v6, %v4764_v55  ;;  %s4801_s11 = smul.f32 %s12753_s8, %s12753_s8  ;;  %v4829_v12 = vmul.f32 %v12751_v38, %v4765_v29  ;;  %v4830_v61 = vmul.f32 %v12751_v38, %v4766_v17 }
 0xac3   : > { %v4841_v40 = vadd.f32 %v12627_v32, %v4825_v31  ;;  %v4842_v10 = vadd.f32 %v12627_v32, %v4826_v56  ;;  %s4802_s12 = ssub.f32 %s4800_s10, %s4801_s11  ;;  %v4845_v41 = vadd.f32 %v12623_v60, %v4829_v12  ;;  %v4846_v3 = vadd.f32 %v12623_v60, %v4830_v61 }
 0xac5   : > { %v4858_v49 = vmul.f32 0.2, %v4842_v10  ;;  %s4808_s13 = sadd.f32 1e-05, %s4802_s12  ;;  %v4862_v21 = vmul.f32 0.2, %v4846_v3 }
 0xac6   : > { %v4857_v28 = vmul.f32 0.2, %v4841_v40  ;;  %v4861_v48 = vmul.f32 0.2, %v4845_v41 }
 0xac7   : > { %v12765_v9 = vmax.f32 %v4842_v10, %v4858_v49  ;;  %v4809_v46 = vstv %s4808_s13  ;;  %v12767_v15 = vmax.f32 %v4846_v3, %v4862_v21 }
 0xac8   : > { %8569 = vrsqrt.f32 %v4809_v46  ;;  %v12773_v2 = vmax.f32 %v4841_v40, %v4857_v28  ;;  %v12775_v18 = vmax.f32 %v4845_v41, %v4861_v48  ;;  %v4803_v41 = vstv %s12753_s8 }
 0xac9   : > { %5282 = vrot.lane.b32.xlu0 %v12765_v9, %s8630_s29  ;;  %5284 = vrot.lane.b32.xlu1 %v12767_v15, %s8630_s29  ;;  %v4804_v21 = vsub.f32 %v12558_v37, %v4803_v41  ;;  %v4806_v28 = vsub.f32 %v12571_v5, %v4803_v41  ;;  %v4807_v37 = vsub.f32 %v12591_v1, %v4803_v41 }
 0xacd   : > { %5274 = vrot.lane.b32.xlu0 %v12773_v2, %s8630_s29  ;;  %5276 = vrot.lane.b32.xlu1 %v12775_v18, %s8630_s29 }
 0xad1   : > { %5188 = vrot.lane.b32.xlu0 %v12767_v15, %s8627_s28  ;;  %5180 = vrot.lane.b32.xlu1 %v12775_v18, %s8627_s28 }
 0xad2   : > { %v12785_v33 = vpop.permute.xlu1 %5280 }
 0xad5   : > { %v8570_v53 = vpop.eup %8569  ;;  %5178 = vrot.lane.b32.xlu0 %v12773_v2, %s8627_s28  ;;  %5186 = vrot.lane.b32.xlu1 %v12765_v9, %s8627_s28 }
 0xad6   : > { %8390 = vpush %v8570_v53  ;;  %v12795_v26 = vpop.permute.xlu0 %5278  ;;  %v12797_v63 = vpop.permute.xlu1 %5272 }
 0xad7   : > { %16189 = vst [vmem:[#allocation33_spill] sm:$0xff] %v12797_v63 }
 0xad9   : > { %5055 = vrot.lane.b32.xlu0 %v12767_v15, %s8625_s27  ;;  %5047 = vrot.lane.b32.xlu1 %v12775_v18, %s8625_s27 }
 0xada   : > { %v12803_v42 = vpop.permute.xlu0 %5270  ;;  %v12805_v52 = vpop.permute.xlu1 %5176 }
 0xadd   : > { %5045 = vrot.lane.b32.xlu0 %v12773_v2, %s8625_s27  ;;  %5053 = vrot.lane.b32.xlu1 %v12765_v9, %s8625_s27 }
 0xade   : > { %v12815_v23 = vpop.permute.xlu0 %5184  ;;  %v12817_v55 = vpop.permute.xlu1 %5182 }
 0xae1   : > { %4975 = vrot.lane.b32.xlu0 %v12767_v15, %s8624_s24  ;;  %4967 = vrot.lane.b32.xlu1 %v12775_v18, %s8624_s24 }
 0xae2   : > { %v12823_v29 = vpop.permute.xlu0 %5174  ;;  %v12825_v17 = vpop.permute.xlu1 %5043 }
 0xae5   : > { %4965 = vrot.lane.b32.xlu0 %v12773_v2, %s8624_s24  ;;  %4973 = vrot.lane.b32.xlu1 %v12765_v9, %s8624_s24 }
 0xae6   : > { %v12835_v31 = vpop.permute.xlu0 %5051  ;;  %v12837_v56 = vpop.permute.xlu1 %5049 }
 0xae9   : > { %4895 = vrot.lane.b32.xlu0 %v12767_v15, %s8623_s23  ;;  %4887 = vrot.lane.b32.xlu1 %v12775_v18, %s8623_s23 }
 0xaea   : > { %v12843_v12 = vpop.permute.xlu0 %5041  ;;  %v12845_v61 = vpop.permute.xlu1 %4963 }
 0xaed   : > { %4885 = vrot.lane.b32.xlu0 %v12773_v2, %s8623_s23  ;;  %4893 = vrot.lane.b32.xlu1 %v12765_v9, %s8623_s23 }
 0xaee   : > { %v12847_v40 = vpop.permute.xlu0 %4971  ;;  %v12849_v10 = vpop.permute.xlu1 %4969 }
 0xaef   : > { %16190 = vst [vmem:[#allocation67_spill] sm:$0xff] %v12847_v40  ;;  %16191 = vst [vmem:[#allocation16_spill] sm:$0xff] %v12849_v10 }
 0xaf1   : > { %5955 = vrot.lane.b32.xlu0 %v12765_v9, %s8636_s6  ;;  %5957 = vrot.lane.b32.xlu1 %v12767_v15, %s8636_s6 }
 0xaf2   : > { %v12852_v3 = vpop.permute.xlu0 %4961  ;;  %v12854_v49 = vpop.permute.xlu1 %4883 }
 0xaf3   : > { %16192 = vst [vmem:[#allocation31_spill] sm:$0xff] %v12854_v49 }
 0xaf5   : > { %5947 = vrot.lane.b32.xlu0 %v12773_v2, %s8636_s6  ;;  %5949 = vrot.lane.b32.xlu1 %v12775_v18, %s8636_s6 }
 0xaf6   : > { %v12858_v34 = vpop.permute.xlu0 %4891  ;;  %v12860_v14 = vpop.permute.xlu1 %4889 }
 0xaf7   : > { %16193 = vst [vmem:[#allocation21_spill] sm:$0xff] %v12858_v34  ;;  %16194 = vst [vmem:[#allocation38_spill] sm:$0xff] %v12860_v14 }
 0xafa   : > { %v12867_v25 = vpop.permute.xlu0 %4881 }
 0xafb   : > { %16195 = vst [vmem:[#allocation37_spill] sm:$0xff] %v12867_v25 }
 0xafe   : > { %v12881_v1 = vpop.permute.xlu0 %5951 }
 0xaff   : > { %16199 = vst [vmem:[#allocation70_spill] sm:$0xff] %v12881_v1 }
 0xb07   : > { %s8391_s14 = spop %8390 }
 0xb08   : > { %v4812_v46 = vstv %s8391_s14 }
 0xb09   : > { %v4813_v48 = vmul.f32 %v4812_v46, %v4804_v21  ;;  %v4815_v53 = vmul.f32 %v4812_v46, %v4806_v28  ;;  %v12869_v21 = vpop.permute.xlu1 %5953  ;;  %v4816_v28 = vmul.f32 %v4812_v46, %v4807_v37 }
 0xb0a   : > { %16196 = vst [vmem:[#allocation30_spill] sm:$0xff] %v12869_v21 }
 0xb0b   : > { %v4827_v30 = vmul.f32 %v12621_v6, %v4813_v48  ;;  %v4831_v59 = vmul.f32 %v12751_v38, %v4815_v53  ;;  %v4805_v48 = vsub.f32 %v12560_v8, %v4803_v41 }
 0xb0d   : > { %v4843_v0 = vadd.f32 %v12627_v32, %v4827_v30  ;;  %v4847_v16 = vadd.f32 %v12623_v60, %v4831_v59  ;;  %v4814_v59 = vmul.f32 %v4812_v46, %v4805_v48  ;;  %v4832_v30 = vmul.f32 %v12751_v38, %v4816_v28  ;;  %v12883_v53 = vpop.permute.xlu1 %5945 }
 0xb0e   : > { %16200 = vst [vmem:[#allocation42_spill] sm:$0xff] %v12883_v53 }
 0xb0f   : > { %v4859_v57 = vmul.f32 0.2, %v4843_v0  ;;  %v4863_v5 = vmul.f32 0.2, %v4847_v16 }
 0xb11   : > { %v12871_v51 = vmax.f32 %v4843_v0, %v4859_v57  ;;  %v12873_v4 = vmax.f32 %v4847_v16, %v4863_v5  ;;  %v4828_v57 = vmul.f32 %v12621_v6, %v4814_v59  ;;  %v4848_v16 = vadd.f32 %v12623_v60, %v4832_v30  ;;  %v12895_v0 = vpop.permute.xlu0 %5288  ;;  %v12897_v8 = vpop.permute.xlu1 %5286 }
 0xb12   : > { %16201 = vst [vmem:[#allocation29_spill] sm:$0xff] %v12895_v0  ;;  %16202 = vst [vmem:[#allocation7_spill] sm:$0xff] %v12897_v8 }
 0xb13   : > { %16197 = vst [vmem:[#allocation34_spill] sm:$0xff] %v12871_v51  ;;  %16198 = vst [vmem:[#allocation54_spill] sm:$0xff] %v12873_v4  ;;  %5290 = vrot.lane.b32.xlu1 %v12871_v51, %s8630_s29  ;;  %5292 = vrot.lane.b32.xlu0 %v12873_v4, %s8630_s29  ;;  %v4844_v38 = vadd.f32 %v12627_v32, %v4828_v57  ;;  %v4864_v41 = vmul.f32 0.2, %v4848_v16 }
 0xb15   : > { %v4860_v6 = vmul.f32 0.2, %v4844_v38  ;;  %v12904_v60 = vmax.f32 %v4848_v16, %v4864_v41  ;;  %v12906_v46 = vpop.permute.xlu0 %5198  ;;  %v12908_v37 = vpop.permute.xlu1 %5200 }
 0xb17   : > { %5877 = vrot.lane.b32.xlu1 %v12767_v15, %s8634_s5  ;;  %5943 = vrot.lane.b32.xlu0 %v12655_v62, %s8636_s6  ;;  %v12914_v32 = vmax.f32 %v4844_v38, %v4860_v6 }
 0xb19   : > { %v12920_v5 = vpop.permute.xlu0 %5065  ;;  %v12922_v28 = vpop.permute.xlu1 %5067 }
 0xb1b   : > { %5869 = vrot.lane.b32.xlu1 %v12775_v18, %s8634_s5  ;;  %5875 = vrot.lane.b32.xlu0 %v12765_v9, %s8634_s5 }
 0xb1d   : > { %v12928_v48 = vpop.permute.xlu0 %4985  ;;  %v12930_v59 = vpop.permute.xlu1 %4987 }
 0xb1e   : > { %16203 = vst [vmem:[#allocation39_spill] sm:$0xff] %v12928_v48 }
 0xb1f   : > { %5873 = vrot.lane.b32.xlu1 %v12641_v44, %s8634_s5  ;;  %5867 = vrot.lane.b32.xlu0 %v12773_v2, %s8634_s5 }
 0xb21   : > { %v12940_v30 = vpop.permute.xlu0 %4905  ;;  %v12942_v57 = vpop.permute.xlu1 %4907 }
 0xb22   : > { %16204 = vst [vmem:[#allocation71_spill] sm:$0xff] %v12940_v30  ;;  %16205 = vst [vmem:[#allocation47_spill] sm:$0xff] %v12942_v57 }
 0xb23   : > { %5204 = vrot.lane.b32.xlu1 %v12904_v60, %s8627_s28  ;;  %5881 = vrot.lane.b32.xlu0 %v12716_v35, %s8634_s5 }
 0xb25   : > { %v12948_v16 = vpop.permute.xlu0 %5961  ;;  %v12950_v38 = vpop.permute.xlu1 %5959 }
 0xb26   : > { %16206 = vst [vmem:[#allocation50_spill] sm:$0xff] %v12948_v16  ;;  %16207 = vst [vmem:[#allocation41_spill] sm:$0xff] %v12950_v38 }
 0xb27   : > { %5865 = vrot.lane.b32.xlu1 %v12647_v19, %s8634_s5  ;;  %5202 = vrot.lane.b32.xlu0 %v12914_v32, %s8627_s28 }
 0xb2b   : > { %5071 = vrot.lane.b32.xlu1 %v12904_v60, %s8625_s27  ;;  %5871 = vrot.lane.b32.xlu0 %v12649_v7, %s8634_s5 }
 0xb2f   : > { %5879 = vrot.lane.b32.xlu1 %v12714_v27, %s8634_s5  ;;  %5069 = vrot.lane.b32.xlu0 %v12914_v32, %s8625_s27 }
 0xb33   : > { %4991 = vrot.lane.b32.xlu1 %v12904_v60, %s8624_s24  ;;  %5863 = vrot.lane.b32.xlu0 %v12655_v62, %s8634_s5 }
 0xb37   : > { %5797 = vrot.lane.b32.xlu1 %v12767_v15, %s8632_s30  ;;  %4989 = vrot.lane.b32.xlu0 %v12914_v32, %s8624_s24 }
 0xb3b   : > { %4911 = vrot.lane.b32.xlu1 %v12904_v60, %s8623_s23  ;;  %5795 = vrot.lane.b32.xlu0 %v12765_v9, %s8632_s30  ;;  %v12956_v41 = vpop.permute.xlu0 %5282  ;;  %v12958_v6 = vpop.permute.xlu1 %5284 }
 0xb3f   : > { %5789 = vrot.lane.b32.xlu1 %v12775_v18, %s8632_s30  ;;  %4909 = vrot.lane.b32.xlu0 %v12914_v32, %s8623_s23  ;;  %v12968_v13 = vpop.permute.xlu0 %5274  ;;  %v12970_v50 = vpop.permute.xlu1 %5276 }
 0xb40   : > { %16208 = vst [vmem:[#allocation17_spill] sm:$0xff] %v12970_v50 }
 0xb43   : > { %5963 = vrot.lane.b32.xlu1 %v12871_v51, %s8636_s6  ;;  %5965 = vrot.lane.b32.xlu0 %v12873_v4, %s8636_s6  ;;  %v12976_v39 = vpop.permute.xlu0 %5188  ;;  %v12978_v24 = vpop.permute.xlu1 %5180 }
 0xb47   : > { %5793 = vrot.lane.b32.xlu1 %v12641_v44, %s8632_s30  ;;  %5787 = vrot.lane.b32.xlu0 %v12773_v2, %s8632_s30  ;;  %v12988_v36 = vpop.permute.xlu0 %5178  ;;  %v12990_v43 = vpop.permute.xlu1 %5186 }
 0xb4b   : > { %5883 = vrot.lane.b32.xlu1 %v12871_v51, %s8634_s5  ;;  %5885 = vrot.lane.b32.xlu0 %v12873_v4, %s8634_s5  ;;  %v12996_v45 = vpop.permute.xlu0 %5055  ;;  %v12998_v22 = vpop.permute.xlu1 %5047 }
 0xb4f   : > { %5785 = vrot.lane.b32.xlu1 %v12647_v19, %s8632_s30  ;;  %5801 = vrot.lane.b32.xlu0 %v12716_v35, %s8632_s30  ;;  %v13008_v1 = vpop.permute.xlu0 %5045  ;;  %v13010_v38 = vpop.permute.xlu1 %5053 }
 0xb53   : > { %5803 = vrot.lane.b32.xlu1 %v12871_v51, %s8632_s30  ;;  %5805 = vrot.lane.b32.xlu0 %v12873_v4, %s8632_s30  ;;  %v13016_v53 = vpop.permute.xlu0 %4975  ;;  %v13018_v21 = vpop.permute.xlu1 %4967 }
 0xb57   : > { %5799 = vrot.lane.b32.xlu1 %v12714_v27, %s8632_s30  ;;  %5791 = vrot.lane.b32.xlu0 %v12649_v7, %s8632_s30  ;;  %v13028_v16 = vpop.permute.xlu0 %4965  ;;  %v13030_v30 = vpop.permute.xlu1 %4973 }
 0xb5b   : > { %5300 = vrot.lane.b32.xlu1 %v12904_v60, %s8630_s29  ;;  %5783 = vrot.lane.b32.xlu0 %v12655_v62, %s8632_s30  ;;  %v13036_v25 = vpop.permute.xlu0 %4895  ;;  %v13038_v14 = vpop.permute.xlu1 %4887 }
 0xb5c   : > { %16209 = vst [vmem:[#allocation24_spill] sm:$0xff] %v13036_v25  ;;  %16210 = vst [vmem:[#allocation36_spill] sm:$0xff] %v13038_v14 }
 0xb5f   : > { %5298 = vrot.lane.b32.xlu0 %v12914_v32, %s8630_s29  ;;  %5296 = vrot.lane.b32.xlu1 %v12722_v58, %s8630_s29  ;;  %v13048_v57 = vpop.permute.xlu0 %4885  ;;  %v13050_v49 = vpop.permute.xlu1 %4893 }
 0xb60   : > { %16211 = vst [vmem:[#allocation64_spill] sm:$0xff] %v13048_v57  ;;  %16212 = vst [vmem:[#allocation35_spill] sm:$0xff] %v13050_v49 }
 0xb63   : > { %5294 = vrot.lane.b32.xlu0 %v12724_v11, %s8630_s29  ;;  %5196 = vrot.lane.b32.xlu1 %v12873_v4, %s8627_s28  ;;  %v13056_v34 = vpop.permute.xlu0 %5955  ;;  %v13058_v14 = vpop.permute.xlu1 %5957 }
 0xb64   : > { %16213 = vst [vmem:[#allocation72_spill] sm:$0xff] %v13056_v34  ;;  %16214 = vst [vmem:[#allocation58_spill] sm:$0xff] %v13058_v14  ;;  %v16220_v14 = vld [vmem:[#allocation10_spill] sm:$0xff] }
 0xb67   : > { %5194 = vrot.lane.b32.xlu0 %v12871_v51, %s8627_s28  ;;  %5192 = vrot.lane.b32.xlu1 %v12716_v35, %s8627_s28  ;;  %v13068_v57 = vpop.permute.xlu0 %5947  ;;  %v13070_v49 = vpop.permute.xlu1 %5949 }
 0xb68   : > { %16215 = vst [vmem:[#allocation60_spill] sm:$0xff] %v13068_v57  ;;  %16216 = vst [vmem:[#allocation27_spill] sm:$0xff] %v13070_v49  ;;  %v5312_v49 = vsel %vm627_vm4, %v12968_v13, %v12956_v41 }
 0xb6b   : > { %5190 = vrot.lane.b32.xlu0 %v12714_v27, %s8627_s28  ;;  %5063 = vrot.lane.b32.xlu1 %v12873_v4, %s8625_s27 }
 0xb6f   : > { %5061 = vrot.lane.b32.xlu0 %v12871_v51, %s8625_s27  ;;  %5059 = vrot.lane.b32.xlu1 %v12716_v35, %s8625_s27 }
 0xb73   : > { %5057 = vrot.lane.b32.xlu0 %v12714_v27, %s8625_s27  ;;  %4983 = vrot.lane.b32.xlu1 %v12873_v4, %s8624_s24 }
 0xb77   : > { %4981 = vrot.lane.b32.xlu0 %v12871_v51, %s8624_s24  ;;  %4979 = vrot.lane.b32.xlu1 %v12716_v35, %s8624_s24 }
 0xb7b   : > { %4977 = vrot.lane.b32.xlu0 %v12714_v27, %s8624_s24  ;;  %4903 = vrot.lane.b32.xlu1 %v12873_v4, %s8623_s23  ;;  %v5313_v4 = vsel %vm627_vm4, %v12970_v50, %v12958_v6  ;;  %v16219_v50 = vld [vmem:[#allocation44_spill] sm:$0xff] }
 0xb7f   : > { %4901 = vrot.lane.b32.xlu0 %v12871_v51, %s8623_s23  ;;  %4899 = vrot.lane.b32.xlu1 %v12716_v35, %s8623_s23 }
 0xb83   : > { %4897 = vrot.lane.b32.xlu0 %v12714_v27, %s8623_s23  ;;  %5973 = vrot.lane.b32.xlu1 %v12904_v60, %s8636_s6 }
 0xb85   : > { %v13080_v34 = vpop.permute.xlu0 %5292  ;;  %v13082_v51 = vpop.permute.xlu1 %5290 }
 0xb86   : > { %16217 = vst [vmem:[#allocation68_spill] sm:$0xff] %v13080_v34  ;;  %16218 = vst [vmem:[#allocation69_spill] sm:$0xff] %v13082_v51  ;;  %v5309_v35 = vsel %vm627_vm4, %v12958_v6, %v13080_v34  ;;  %v5308_v27 = vsel %vm627_vm4, %v12956_v41, %v13082_v51  ;;  %v5330_v6 = vmul.f32 %v5313_v4, %v16220_v14 }
 0xb87   : > { %5971 = vrot.lane.b32.xlu0 %v12914_v32, %s8636_s6  ;;  %5969 = vrot.lane.b32.xlu1 %v12722_v58, %s8636_s6  ;;  %v5331_v57 = vmul.f32 %v5309_v35, %v16219_v50  ;;  %v5307_v51 = vsel %vm627_vm4, %v12785_v33, %v12895_v0  ;;  %v5311_v35 = vsel %vm627_vm4, %v12797_v63, %v12785_v33 }
 0xb88   : > { %v5327_v41 = vmul.f32 %v5308_v27, %v16219_v50  ;;  %v5306_v4 = vsel %vm627_vm4, %v12795_v26, %v12897_v8  ;;  %v5326_v0 = vmul.f32 %v5312_v49, %v16220_v14  ;;  %v5310_v33 = vsel %vm627_vm4, %v12803_v42, %v12795_v26 }
 0xb89   : > { %v13106_v34 = vpop.permute.xlu0 %5943  ;;  %5423 = vmatprep.subr.mxu0 %v5331_v57  ;;  %v13108_v25 = vpop.permute.xlu1 %5877  ;;  %v5323_v27 = vmul.f32 %v5307_v51, %v16219_v50  ;;  %v5322_v57 = vmul.f32 %v5311_v35, %v16220_v14  ;;  %v5319_v8 = vmul.f32 %v5306_v4, %v16219_v50  ;;  %v5318_v63 = vmul.f32 %v5310_v33, %v16220_v14 }
 0xb8a   : > { %5424 = vmatpush1.msra.mxu0 %v5330_v6  ;;  %v8648_v4 = vmov 12  }
 0xb8b   : > { %5967 = vrot.lane.b32.xlu0 %v12724_v11, %s8636_s6  ;;  %5893 = vrot.lane.b32.xlu1 %v12904_v60, %s8634_s5 }
 0xb8c   : > { %5425 = vmatprep.subr.mxu0 %v5327_v41  ;;  %8537 = vset.pattern.permute.xlu1 %v8648_v4 }
 0xb8d   : > { %5426 = vmatpush1.msra.mxu0 %v5326_v0  ;;  %v13130_v6 = vpop.permute.xlu0 %5875  ;;  %v13132_v49 = vpop.permute.xlu1 %5869  ;;  %8538 = vset.pattern.permute.xlu0 %v8648_v4  ;;  %v13230_v4 = vld [vmem:[%s15413_s3 + $0xe0] sm:$0xff] }
 0xb8e   : > { %5427 = vmatprep.subr.mxu0 %v5323_v27 }
 0xb8f   : > { %5428 = vmatpush1.msra.mxu0 %v5322_v57  ;;  %5891 = vrot.lane.b32.xlu0 %v12914_v32, %s8634_s5 }
 0xb90   : > { %5889 = vrot.lane.b32.xlu1 %v12722_v58, %s8634_s5  ;;  %5429 = vmatprep.subr.mxu0 %v5319_v8  ;;  %v16221_v8 = vld [vmem:[#allocation5_spill] sm:$0xff] }
 0xb91   : > { %5430 = vmatpush1.msra.mxu0 %v5318_v63  ;;  %v13140_v51 = vpop.permute.xlu0 %5867  ;;  %v13142_v26 = vpop.permute.xlu1 %5873  ;;  %v5217_v63 = vsel %vm490_vm3, %v12978_v24, %v12976_v39 }
 0xb92   : > { %5431 = vmatprep.subr.mxu0 %v12767_v15 }
 0xb93   : > { %5432 = vmatpush1.msra.mxu0 %v12775_v18  ;;  %5887 = vrot.lane.b32.xlu0 %v12724_v11, %s8634_s5 }
 0xb94   : > { %5813 = vrot.lane.b32.xlu1 %v12904_v60, %s8632_s30  ;;  %5433 = vmatprep.subr.mxu0 %v12765_v9  ;;  %v5216_v9 = vsel %vm490_vm3, %v12988_v36, %v12990_v43 }
 0xb95   : > { %5434 = vmatpush1.msra.mxu0 %v12773_v2  ;;  %v13156_v0 = vpop.permute.xlu0 %5881  ;;  %v13158_v15 = vpop.permute.xlu1 %5204 }
 0xb96   : > { %5435 = vmatprep.subr.mxu0 %v12641_v44  ;;  %v5221_v18 = vsel %vm490_vm3, %v13158_v15, %v12978_v24  ;;  %v16222_v44 = vld [vmem:[#allocation48_spill] sm:$0xff]  ;;  %v5215_v24 = vsel %vm490_vm3, %v12805_v52, %v12815_v23 }
 0xb97   : > { %v5234_v35 = vmul.f32 %v5221_v18, %v16221_v8  ;;  %5436 = vmatpush1.msra.mxu0 %v12647_v19  ;;  %5811 = vrot.lane.b32.xlu0 %v12914_v32, %s8632_s30  ;;  %v5235_v2 = vmul.f32 %v5217_v63, %v16222_v44  ;;  %v5231_v27 = vmul.f32 %v5216_v9, %v16222_v44 }
 0xb98   : > { %5809 = vrot.lane.b32.xlu1 %v12722_v58, %s8632_s30  ;;  %5437 = vmatprep.subr.mxu0 %v12649_v7  ;;  %v5219_v7 = vsel %vm490_vm3, %v12908_v37, %v12805_v52  ;;  %v5227_v52 = vmul.f32 %v5215_v24, %v16222_v44  ;;  %v5084_v18 = vsel %vm401_vm2, %v12998_v22, %v12996_v45 }
 0xb99   : > { %5438 = vmatpush1.msra.mxu0 %v12655_v62  ;;  %v13182_v41 = vpop.permute.xlu0 %5202  ;;  %v13184_v19 = vpop.permute.xlu1 %5865  ;;  %v5214_v62 = vsel %vm490_vm3, %v12823_v29, %v12817_v55  ;;  %v5226_v63 = vmul.f32 %v5219_v7, %v16221_v8  ;;  %v5083_v24 = vsel %vm401_vm2, %v13008_v1, %v13010_v38  ;;  %v16223_v7 = vld [vmem:[#allocation8_spill] sm:$0xff] }
 0xb9a   : > { %v5220_v33 = vsel %vm490_vm3, %v13182_v41, %v12988_v36  ;;  %5439 = vmatprep.subr.mxu0 %v5235_v2  ;;  %v5218_v36 = vsel %vm490_vm3, %v12906_v46, %v12823_v29 }
 0xb9b   : > { %v5230_v57 = vmul.f32 %v5220_v33, %v16221_v8  ;;  %5440 = vmatpush1.msra.mxu0 %v5234_v35  ;;  %5807 = vrot.lane.b32.xlu0 %v12724_v11, %s8632_s30  ;;  %v5222_v2 = vmul.f32 %v5218_v36, %v16221_v8  ;;  %v5102_v33 = vmul.f32 %v5084_v18, %v16223_v7 }
 0xb9c   : > { %5441 = vmatprep.subr.mxu0 %v5231_v27  ;;  %6283 = vperm.xlu1 %8537, %v12613_v47   ;;  %v5223_v47 = vmul.f32 %v5214_v62, %v16222_v44  ;;  %v16224_v27 = vld [vmem:[#allocation49_spill] sm:$0xff]  ;;  %v5098_v18 = vmul.f32 %v5083_v24, %v16223_v7  ;;  %v16230_v44 = vld [vmem:[#allocation24_spill] sm:$0xff] }
 0xb9d   : > { %v13213_v9 = vpop.permute.xlu0 %5871  ;;  %5442 = vmatpush1.msra.mxu0 %v5230_v57  ;;  %v13215_v35 = vpop.permute.xlu1 %5071 }
 0xb9e   : > { %v5088_v29 = vsel %vm401_vm2, %v13215_v35, %v12998_v22  ;;  %5443 = vmatprep.subr.mxu0 %v5227_v52  ;;  %v5082_v22 = vsel %vm401_vm2, %v12825_v17, %v12835_v31  ;;  %v5086_v52 = vsel %vm401_vm2, %v12922_v28, %v12825_v17  ;;  %v13262_v17 = vld [vmem:[%s15413_s3 + $0xe8] sm:$0xff] }
 0xb9f   : > { %5444 = vmatpush1.msra.mxu0 %v5226_v63  ;;  %v5101_v62 = vmul.f32 %v5088_v29, %v16224_v27  ;;  %v5081_v29 = vsel %vm401_vm2, %v12843_v12, %v12837_v56  ;;  %v5093_v24 = vmul.f32 %v5086_v52, %v16224_v27 }
 0xba0   : > { %5445 = vmatprep.subr.mxu0 %v5223_v47 }
 0xba1   : > { %v13238_v57 = vpop.permute.xlu0 %5069  ;;  %5446 = vmatpush1.msra.mxu0 %v5222_v2  ;;  %v13240_v36 = vpop.permute.xlu1 %5879  ;;  %v5094_v2 = vmul.f32 %v5082_v22, %v16223_v7  ;;  %v5090_v22 = vmul.f32 %v5081_v29, %v16223_v7  ;;  %v16227_v29 = vld [vmem:[#allocation6_spill] sm:$0xff]  ;;  %v5006_v7 = vsel %vm308_vm0, %v12930_v59, %v12845_v61 }
 0xba2   : > { %16225 = vst [vmem:[#allocation4_spill] sm:$0xff] %v13240_v36  ;;  %v5087_v63 = vsel %vm401_vm2, %v13238_v57, %v13008_v1  ;;  %8253 = vmatmul.mubr.msk.f32.vlgmr.msra.gmra.mxu0 %vm1896_vm8, %v13230_v4  ;;  %5613 = vmatprep.subr.mxu0 %v5102_v33  ;;  %v5085_v1 = vsel %vm401_vm2, %v12920_v5, %v12843_v12 }
 0xba3   : > { %v5097_v47 = vmul.f32 %v5087_v63, %v16224_v27  ;;  %5614 = vmatpush1.msra.mxu0 %v5101_v62  ;;  %5485 = vmatprep.mubr.f32.mxu0 %v15943_v54  ;;  %v5004_v33 = vsel %vm308_vm0, %v13018_v21, %v13016_v53  ;;  %v5089_v52 = vmul.f32 %v5085_v1, %v16224_v27 }
 0xba4   : > { %5615 = vmatprep.subr.mxu0 %v5098_v18  ;;  %v5003_v18 = vsel %vm308_vm0, %v13028_v16, %v13030_v30  ;;  %v5002_v1 = vsel %vm308_vm0, %v12845_v61, %v12847_v40  ;;  %v13326_v61 = vld [vmem:[%s15413_s3 + $0xf8] sm:$0xff] }
 0xba5   : > { %v13274_v62 = vpop.permute.xlu0 %5863  ;;  %5616 = vmatpush1.msra.mxu0 %v5097_v47  ;;  %v13276_v63 = vpop.permute.xlu1 %4991  ;;  %v5022_v47 = vmul.f32 %v5004_v33, %v16227_v29  ;;  %16229 = vst [vmem:[#allocation59_spill] sm:$0xff] %v13326_v61 }
 0xba6   : > { %v5008_v12 = vsel %vm308_vm0, %v13276_v63, %v13018_v21  ;;  %5617 = vmatprep.subr.mxu0 %v5094_v2  ;;  %8254 = vmatmul.mubr.msk.f32.gmra.mxu0 %vm1896_vm8, %v13262_v17  ;;  %v13294_v21 = vld [vmem:[%s15413_s3 + $0xf0] sm:$0xff] }
 0xba7   : > { %5618 = vmatpush1.msra.mxu0 %v5093_v24  ;;  %5491 = vmatprep.mubr.f32.mxu0 %v15943_v54  ;;  %16226 = vst [vmem:[#allocation18_spill] sm:$0xff] %v13294_v21  ;;  %v16228_v2 = vld [vmem:[#allocation53_spill] sm:$0xff] }
 0xba8   : > { %5619 = vmatprep.subr.mxu0 %v5090_v22  ;;  %v5021_v27 = vmul.f32 %v5008_v12, %v16228_v2  ;;  %v5018_v22 = vmul.f32 %v5003_v18, %v16227_v29  ;;  %v5001_v12 = vsel %vm308_vm0, %v12852_v3, %v12849_v10  ;;  %v5014_v18 = vmul.f32 %v5002_v1, %v16227_v29  ;;  %v16235_v10 = vld [vmem:[#allocation56_spill] sm:$0xff] }
 0xba9   : > { %v13302_v8 = vpop.permute.xlu0 %4989  ;;  %5620 = vmatpush1.msra.mxu0 %v5089_v52  ;;  %v13304_v24 = vpop.permute.xlu1 %5797  ;;  %v5010_v1 = vmul.f32 %v5001_v12, %v16227_v29  ;;  %v16238_v29 = vld [vmem:[#allocation57_spill] sm:$0xff] }
 0xbaa   : > { %v5007_v33 = vsel %vm308_vm0, %v13302_v8, %v13028_v16  ;;  %5621 = vmatprep.subr.mxu0 %v5022_v47  ;;  %8255 = vmatmul.mubr.msk.f32.gmra.mxu0 %vm1896_vm8, %v13294_v21  ;;  %v5005_v16 = vsel %vm308_vm0, %v12928_v48, %v12852_v3  ;;  %v5013_v47 = vmul.f32 %v5006_v7, %v16228_v2  ;;  %v16244_v21 = vld [vmem:[#allocation71_spill] sm:$0xff] }
 0xbab   : > { %v5017_v52 = vmul.f32 %v5007_v33, %v16228_v2  ;;  %5622 = vmatpush1.msra.mxu0 %v5021_v27  ;;  %5497 = vmatprep.mubr.f32.mxu0 %v15943_v54  ;;  %v16231_v33 = vld [vmem:[#allocation36_spill] sm:$0xff]  ;;  %v5009_v7 = vmul.f32 %v5005_v16, %v16228_v2  ;;  %v16241_v2 = vld [vmem:[#allocation47_spill] sm:$0xff] }
 0xbac   : > { %5623 = vmatprep.subr.mxu0 %v5018_v22  ;;  %v4924_v27 = vsel %vm239_vm1, %v16231_v33, %v16230_v44  ;;  %v16233_v22 = vld [vmem:[#allocation35_spill] sm:$0xff]  ;;  %v16234_v44 = vld [vmem:[#allocation64_spill] sm:$0xff] }
 0xbad   : > { %v13338_v14 = vpop.permute.xlu0 %5795  ;;  %5624 = vmatpush1.msra.mxu0 %v5017_v52  ;;  %v13340_v50 = vpop.permute.xlu1 %4911  ;;  %v4923_v52 = vsel %vm239_vm1, %v16234_v44, %v16233_v22  ;;  %v4942_v48 = vmul.f32 %v4924_v27, %v16235_v10 }
 0xbae   : > { %16232 = vst [vmem:[#allocation63_spill] sm:$0xff] %v13340_v50  ;;  %v4928_v3 = vsel %vm239_vm1, %v13340_v50, %v16231_v33  ;;  %5625 = vmatprep.subr.mxu0 %v5014_v18  ;;  %8256 = vmatmul.mubr.msk.f32.gmra.mxu0 %vm1896_vm8, %v13326_v61  ;;  %v16236_v33 = vld [vmem:[#allocation21_spill] sm:$0xff]  ;;  %v16237_v18 = vld [vmem:[#allocation31_spill] sm:$0xff] }
 0xbaf   : > { %5626 = vmatpush1.msra.mxu0 %v5013_v47  ;;  %5669 = vmatprep.mubr.f32.mxu0 %v15943_v54  ;;  %v4922_v12 = vsel %vm239_vm1, %v16237_v18, %v16236_v33  ;;  %v4941_v61 = vmul.f32 %v4928_v3, %v16238_v29  ;;  %v4926_v47 = vsel %vm239_vm1, %v16241_v2, %v16237_v18  ;;  %v16242_v33 = vld [vmem:[#allocation38_spill] sm:$0xff]  ;;  %v16243_v3 = vld [vmem:[#allocation37_spill] sm:$0xff] }
 0xbb0   : > { %5627 = vmatprep.subr.mxu0 %v5010_v1  ;;  %v4938_v1 = vmul.f32 %v4923_v52, %v16235_v10  ;;  %v4925_v18 = vsel %vm239_vm1, %v16244_v21, %v16243_v3  ;;  %v4934_v2 = vmul.f32 %v4922_v12, %v16235_v10 }
 0xbb1   : > { %v13361_v50 = vpop.permute.xlu0 %4909  ;;  %5628 = vmatpush1.msra.mxu0 %v5009_v7  ;;  %v13363_v16 = vpop.permute.xlu1 %5789  ;;  %v4921_v7 = vsel %vm239_vm1, %v16243_v3, %v16242_v33  ;;  %v16248_v33 = vld [vmem:[#allocation27_spill] sm:$0xff] }
 0xbb2   : > { %16239 = vst [vmem:[#allocation20_spill] sm:$0xff] %v13361_v50  ;;  %16240 = vst [vmem:[#allocation36_spill] sm:$0xff] %v13363_v16  ;;  %v4927_v27 = vsel %vm239_vm1, %v13361_v50, %v16234_v44  ;;  %5629 = vmatprep.subr.mxu0 %v4942_v48  ;;  %v4933_v48 = vmul.f32 %v4926_v47, %v16238_v29  ;;  %v16247_v50 = vld [vmem:[#allocation58_spill] sm:$0xff]  ;;  %v4930_v12 = vmul.f32 %v4921_v7, %v16235_v10  ;;  %v13406_v3 = vld [vmem:[%s15413_s3 + $0xc0] sm:$0xff] }
 0xbb3   : > { %v4937_v22 = vmul.f32 %v4927_v27, %v16238_v29  ;;  %5630 = vmatpush1.msra.mxu0 %v4941_v61  ;;  %v5986_v61 = vsel %vm894_vm7, %v16248_v33, %v16247_v50  ;;  %v4929_v47 = vmul.f32 %v4925_v18, %v16238_v29  ;;  %16250 = vst [vmem:[#allocation37_spill] sm:$0xff] %v13406_v3  ;;  %v16251_v33 = vld [vmem:[#allocation19_spill] sm:$0xff]  ;;  %v16253_v7 = vld [vmem:[#allocation50_spill] sm:$0xff]  ;;  %v16255_v29 = vld [vmem:[#allocation40_spill] sm:$0xff] }
 0xbb4   : > { %5631 = vmatprep.subr.mxu0 %v4938_v1  ;;  %v16249_v1 = vld [vmem:[#allocation72_spill] sm:$0xff]  ;;  %v16254_v18 = vld [vmem:[#allocation30_spill] sm:$0xff] }
 0xbb5   : > { %v13385_v44 = vpop.permute.xlu0 %5965  ;;  %5632 = vmatpush1.msra.mxu0 %v4937_v22  ;;  %v13387_v52 = vpop.permute.xlu1 %5963  ;;  %v5980_v10 = vsel %vm894_vm7, %v16254_v18, %v16253_v7  ;;  %v16258_v7 = vld [vmem:[#allocation70_spill] sm:$0xff] }
 0xbb6   : > { %16245 = vst [vmem:[#allocation64_spill] sm:$0xff] %v13385_v44  ;;  %16246 = vst [vmem:[#allocation31_spill] sm:$0xff] %v13387_v52  ;;  %v5982_v27 = vsel %vm894_vm7, %v16247_v50, %v13385_v44  ;;  %5633 = vmatprep.subr.mxu0 %v4934_v2  ;;  %v5981_v22 = vsel %vm894_vm7, %v16249_v1, %v13387_v52  ;;  %v16252_v50 = vld [vmem:[#allocation60_spill] sm:$0xff] }
 0xbb7   : > { %5634 = vmatpush1.msra.mxu0 %v4933_v48  ;;  %v6004_v21 = vmul.f32 %v16251_v33, %v5982_v27  ;;  %v5985_v2 = vsel %vm894_vm7, %v16252_v50, %v16249_v1  ;;  %v6003_v48 = vmul.f32 %v16255_v29, %v5986_v61  ;;  %v16256_v27 = vld [vmem:[#allocation42_spill] sm:$0xff]  ;;  %v16257_v1 = vld [vmem:[#allocation41_spill] sm:$0xff] }
 0xbb8   : > { %5635 = vmatprep.subr.mxu0 %v4930_v12  ;;  %v5984_v40 = vsel %vm894_vm7, %v16256_v27, %v16254_v18  ;;  %v6000_v12 = vmul.f32 %v16251_v33, %v5981_v22  ;;  %v5979_v61 = vsel %vm894_vm7, %v16258_v7, %v16257_v1  ;;  %v13438_v18 = vld [vmem:[%s15413_s3 + $0xc8] sm:$0xff]  ;;  %v5996_v22 = vmul.f32 %v16251_v33, %v5980_v10 }
 0xbb9   : > { %v13418_v52 = vpop.permute.xlu0 %5787  ;;  %5636 = vmatpush1.msra.mxu0 %v4929_v47  ;;  %v13420_v44 = vpop.permute.xlu1 %5793  ;;  %v5999_v47 = vmul.f32 %v16255_v29, %v5985_v2  ;;  %16259 = vst [vmem:[#allocation58_spill] sm:$0xff] %v13438_v18  ;;  %v5995_v1 = vmul.f32 %v16255_v29, %v5984_v40  ;;  %v5992_v40 = vmul.f32 %v16251_v33, %v5979_v61 }
 0xbba   : > { %8261 = vmatmul.mubr.msk.f32.vlgmr.msra.gmra.mxu0 %vm1896_vm8, %v13406_v3  ;;  %6096 = vmatprep.subr.mxu0 %v6004_v21  ;;  %v5983_v21 = vsel %vm894_vm7, %v13106_v34, %v16258_v7  ;;  %v5905_v61 = vsel %vm805_vm6, %v13140_v51, %v13130_v6 }
 0xbbb   : > { %6097 = vmatpush1.msra.mxu0 %v6003_v48  ;;  %5675 = vmatprep.mubr.f32.mxu0 %v15943_v54  ;;  %v5906_v48 = vsel %vm805_vm6, %v13132_v49, %v13108_v25  ;;  %v5991_v10 = vmul.f32 %v16255_v29, %v5983_v21  ;;  %v16261_v21 = vld [vmem:[#allocation22_spill] sm:$0xff] }
 0xbbc   : > { %6098 = vmatprep.subr.mxu0 %v6000_v12 }
 0xbbd   : > { %v13446_v3 = vpop.permute.xlu0 %5885  ;;  %6099 = vmatpush1.msra.mxu0 %v5999_v47  ;;  %v13448_v2 = vpop.permute.xlu1 %5883  ;;  %v16260_v47 = vld [vmem:[#allocation26_spill] sm:$0xff] }
 0xbbe   : > { %v5902_v7 = vsel %vm805_vm6, %v13108_v25, %v13446_v3  ;;  %8262 = vmatmul.mubr.msk.f32.gmra.mxu0 %vm1896_vm8, %v13438_v18  ;;  %6100 = vmatprep.subr.mxu0 %v5996_v22  ;;  %v5901_v12 = vsel %vm805_vm6, %v13130_v6, %v13448_v2  ;;  %v13470_v25 = vld [vmem:[%s15413_s3 + $0xd0] sm:$0xff]  ;;  %v5923_v22 = vmul.f32 %v5906_v48, %v16261_v21 }
 0xbbf   : > { %6101 = vmatpush1.msra.mxu0 %v5995_v1  ;;  %5681 = vmatprep.mubr.f32.mxu0 %v15943_v54  ;;  %v5924_v18 = vmul.f32 %v5902_v7, %v16260_v47  ;;  %v5900_v1 = vsel %vm805_vm6, %v13142_v26, %v13156_v0  ;;  %v5904_v7 = vsel %vm805_vm6, %v13184_v19, %v13142_v26  ;;  %v13502_v26 = vld [vmem:[%s15413_s3 + $0xd8] sm:$0xff] }
 0xbc0   : > { %6102 = vmatprep.subr.mxu0 %v5992_v40  ;;  %v5920_v6 = vmul.f32 %v5901_v12, %v16260_v47  ;;  %v5919_v48 = vmul.f32 %v5905_v61, %v16261_v21  ;;  %v5899_v40 = vsel %vm805_vm6, %v13213_v9, %v13240_v36  ;;  %v5915_v12 = vmul.f32 %v5904_v7, %v16261_v21 }
 0xbc1   : > { %v13482_v29 = vpop.permute.xlu0 %5801  ;;  %6103 = vmatpush1.msra.mxu0 %v5991_v10  ;;  %v13484_v33 = vpop.permute.xlu1 %5785  ;;  %v5916_v10 = vmul.f32 %v5900_v1, %v16260_v47  ;;  %v5826_v36 = vsel %vm716_vm5, %v13363_v16, %v13304_v24  ;;  %v5912_v1 = vmul.f32 %v5899_v40, %v16260_v47 }
 0xbc2   : > { %16262 = vst [vmem:[#allocation72_spill] sm:$0xff] %v13482_v29  ;;  %16263 = vst [vmem:[#allocation60_spill] sm:$0xff] %v13484_v33  ;;  %8263 = vmatmul.mubr.msk.f32.gmra.mxu0 %vm1896_vm8, %v13470_v25  ;;  %6104 = vmatprep.subr.mxu0 %v5924_v18  ;;  %v5903_v18 = vsel %vm805_vm6, %v13274_v62, %v13213_v9 }
 0xbc3   : > { %6105 = vmatpush1.msra.mxu0 %v5923_v22  ;;  %5687 = vmatprep.mubr.f32.mxu0 %v15943_v54  ;;  %v5911_v7 = vmul.f32 %v5903_v18, %v16261_v21  ;;  %v5820_v18 = vsel %vm716_vm5, %v13420_v44, %v13482_v29 }
 0xbc4   : > { %6106 = vmatprep.subr.mxu0 %v5920_v6 }
 0xbc5   : > { %v13510_v61 = vpop.permute.xlu0 %5805  ;;  %6107 = vmatpush1.msra.mxu0 %v5919_v48  ;;  %v13512_v22 = vpop.permute.xlu1 %5803  ;;  %v16265_v48 = vld [vmem:[#allocation62_spill] sm:$0xff] }
 0xbc6   : > { %16264 = vst [vmem:[#allocation30_spill] sm:$0xff] %v13512_v22  ;;  %v5822_v9 = vsel %vm716_vm5, %v13304_v24, %v13510_v61  ;;  %8264 = vmatmul.mubr.msk.f32.gmra.mxu0 %vm1896_vm8, %v13502_v26  ;;  %6108 = vmatprep.subr.mxu0 %v5916_v10  ;;  %v5821_v6 = vsel %vm716_vm5, %v13338_v14, %v13512_v22  ;;  %v16266_v10 = vld [vmem:[#allocation61_spill] sm:$0xff] }
 0xbc7   : > { %6109 = vmatpush1.msra.mxu0 %v5915_v12  ;;  %v5844_v16 = vmul.f32 %v5822_v9, %v16265_v48  ;;  %6152 = vmatprep.mubr.f32.mxu0 %v15943_v54  ;;  %v5825_v24 = vsel %vm716_vm5, %v13418_v52, %v13338_v14  ;;  %v5843_v40 = vmul.f32 %v5826_v36, %v16266_v10 }
 0xbc8   : > { %6110 = vmatprep.subr.mxu0 %v5912_v1  ;;  %v5824_v9 = vsel %vm716_vm5, %v13484_v33, %v13420_v44  ;;  %v5840_v14 = vmul.f32 %v5821_v6, %v16265_v48  ;;  %v5839_v1 = vmul.f32 %v5825_v24, %v16266_v10  ;;  %v16268_v44 = vld [vmem:[#allocation68_spill] sm:$0xff]  ;;  %v16269_v24 = vld [vmem:[#allocation17_spill] sm:$0xff] }
 0xbc9   : > { %v5792_v21 = vpop.permute.xlu0 %5791  ;;  %6111 = vmatpush1.msra.mxu0 %v5911_v7  ;;  %v13541_v12 = vpop.permute.xlu1 %5799  ;;  %v5836_v7 = vmul.f32 %v5820_v18, %v16265_v48  ;;  %v5835_v47 = vmul.f32 %v5824_v9, %v16266_v10 }
 0xbca   : > { %16267 = vst [vmem:[#allocation42_spill] sm:$0xff] %v13541_v12  ;;  %6112 = vmatprep.subr.mxu0 %v5844_v16  ;;  %v5819_v36 = vsel %vm716_vm5, %v5792_v21, %v13541_v12  ;;  %v16271_v12 = vld [vmem:[#allocation65_spill] sm:$0xff] }
 0xbcb   : > { %6113 = vmatpush1.msra.mxu0 %v5843_v40  ;;  %v5832_v18 = vmul.f32 %v5819_v36, %v16265_v48 }
 0xbcc   : > { %6114 = vmatprep.subr.mxu0 %v5840_v14  ;;  %v16270_v14 = vld [vmem:[#allocation43_spill] sm:$0xff] }
 0xbcd   : > { %v13554_v29 = vpop.permute.xlu0 %5783  ;;  %6115 = vmatpush1.msra.mxu0 %v5839_v1  ;;  %v5301_v22 = vpop.permute.xlu1 %5300 }
 0xbce   : > { %v5823_v16 = vsel %vm716_vm5, %v13554_v29, %v5792_v21  ;;  %v5305_v6 = vsel %vm627_vm4, %v16268_v44, %v5301_v22  ;;  %v5317_v40 = vsel %vm627_vm4, %v5301_v22, %v16269_v24  ;;  %6116 = vmatprep.subr.mxu0 %v5836_v7  ;;  %v13572_v21 = vld [vmem:[%s15413_s3 + $0x100] sm:$0xff]  ;;  %v16272_v7 = vld [vmem:[#allocation69_spill] sm:$0xff] }
 0xbcf   : > { %v5831_v9 = vmul.f32 %v5823_v16, %v16266_v10  ;;  %v5332_v1 = vmul.f32 %v5305_v6, %v16270_v14  ;;  %6117 = vmatpush1.msra.mxu0 %v5835_v47  ;;  %v5333_v33 = vmul.f32 %v5317_v40, %v16271_v12  ;;  %v16273_v16 = vld [vmem:[#allocation33_spill] sm:$0xff] }
 0xbd0   : > { %6118 = vmatprep.subr.mxu0 %v5832_v18  ;;  %v16274_v40 = vld [vmem:[#allocation29_spill] sm:$0xff] }
 0xbd1   : > { %v5299_v44 = vpop.permute.xlu0 %5298  ;;  %5512 = vmatprep.subr.mxu1 %v5333_v33  ;;  %6119 = vmatpush1.msra.mxu0 %v5831_v9  ;;  %v5297_v22 = vpop.permute.xlu1 %5296 }
 0xbd2   : > { %v5304_v36 = vsel %vm627_vm4, %v16272_v7, %v5299_v44  ;;  %v5316_v47 = vsel %vm627_vm4, %v5299_v44, %v12968_v13  ;;  %v5315_v6 = vsel %vm627_vm4, %v5297_v22, %v16273_v16  ;;  %5513 = vmatpush1.msra.mxu1 %v5332_v1  ;;  %v5303_v33 = vsel %vm627_vm4, %v16274_v40, %v5297_v22  ;;  %v13594_v13 = vld [vmem:[%s15413_s3 + $0x108] sm:$0xff]  ;;  %v16275_v22 = vld [vmem:[#allocation7_spill] sm:$0xff] }
 0xbd3   : > { %v5328_v24 = vmul.f32 %v5304_v36, %v16270_v14  ;;  %8273 = vmatmul.mubr.msk.f32.vlgmr.msra.gmra.mxu0 %vm1896_vm8, %v13572_v21  ;;  %v5329_v18 = vmul.f32 %v5316_v47, %v16271_v12  ;;  %v5325_v44 = vmul.f32 %v5315_v6, %v16271_v12  ;;  %v5324_v7 = vmul.f32 %v5303_v33, %v16270_v14  ;;  %v13612_v6 = vld [vmem:[%s15413_s3 + $0x110] sm:$0xff] }
 0xbd4   : > { %6158 = vmatprep.mubr.f32.mxu0 %v15943_v54 }
 0xbd5   : > { %v5295_v9 = vpop.permute.xlu0 %5294  ;;  %5514 = vmatprep.subr.mxu1 %v5329_v18  ;;  %v5197_v1 = vpop.permute.xlu1 %5196  ;;  %v13622_v18 = vld [vmem:[%s15413_s3 + $0x118] sm:$0xff] }
 0xbd6   : > { %v5302_v36 = vsel %vm627_vm4, %v16275_v22, %v5295_v9  ;;  %v5314_v47 = vsel %vm627_vm4, %v5295_v9, %v12803_v42  ;;  %5515 = vmatpush1.msra.mxu1 %v5328_v24  ;;  %v16276_v24 = vld [vmem:[#allocation54_spill] sm:$0xff] }
 0xbd7   : > { %v5320_v16 = vmul.f32 %v5302_v36, %v16270_v14  ;;  %8274 = vmatmul.mubr.msk.f32.gmra.mxu0 %vm1896_vm8, %v13594_v13  ;;  %5516 = vmatprep.subr.mxu1 %v5325_v44  ;;  %v5321_v40 = vmul.f32 %v5314_v47, %v16271_v12  ;;  %v16277_v22 = vld [vmem:[#allocation34_spill] sm:$0xff] }
 0xbd8   : > { %5517 = vmatpush1.msra.mxu1 %v5324_v7  ;;  %6164 = vmatprep.mubr.f32.mxu0 %v15943_v54  ;;  %v5209_v7 = vsel %vm490_vm3, %v5197_v1, %v13158_v15  ;;  %v16278_v36 = vld [vmem:[#allocation66_spill] sm:$0xff] }
 0xbd9   : > { %v5195_v33 = vpop.permute.xlu0 %5194  ;;  %5518 = vmatprep.subr.mxu1 %v5321_v40  ;;  %v5193_v42 = vpop.permute.xlu1 %5192  ;;  %v16280_v40 = vld [vmem:[#allocation45_spill] sm:$0xff] }
 0xbda   : > { %5519 = vmatpush1.msra.mxu1 %v5320_v16  ;;  %v5212_v15 = vsel %vm490_vm3, %v12990_v43, %v5195_v33 }
 0xbdb   : > { %8275 = vmatmul.mubr.msk.f32.gmra.mxu0 %vm1896_vm8, %v13612_v6  ;;  %5520 = vmatprep.subr.mxu1 %v12904_v60  ;;  %v5213_v60 = vsel %vm490_vm3, %v12976_v39, %v5197_v1  ;;  %v16279_v1 = vld [vmem:[#allocation11_spill] sm:$0xff] }
 0xbdc   : > { %5521 = vmatpush1.msra.mxu1 %v16276_v24  ;;  %6170 = vmatprep.mubr.f32.mxu0 %v15943_v54  ;;  %v5237_v16 = vmul.f32 %v5209_v7, %v16279_v1  ;;  %v16281_v24 = vld [vmem:[#allocation32_spill] sm:$0xff] }
 0xbdd   : > { %v5191_v9 = vpop.permute.xlu0 %5190  ;;  %5522 = vmatprep.subr.mxu1 %v12914_v32  ;;  %v5064_v44 = vpop.permute.xlu1 %5063  ;;  %v5208_v32 = vsel %vm490_vm3, %v5195_v33, %v13182_v41  ;;  %v5207_v41 = vsel %vm490_vm3, %v5193_v42, %v12908_v37 }
 0xbde   : > { %5523 = vmatpush1.msra.mxu1 %v16277_v22  ;;  %v5211_v22 = vsel %vm490_vm3, %v12815_v23, %v5193_v42  ;;  %v5233_v43 = vmul.f32 %v5208_v32, %v16279_v1  ;;  %v5206_v33 = vsel %vm490_vm3, %v5191_v9, %v12906_v46  ;;  %v5210_v37 = vsel %vm490_vm3, %v12817_v55, %v5191_v9 }
 0xbdf   : > { %8276 = vmatmul.mubr.msk.f32.gmra.mxu0 %vm1896_vm8, %v13622_v18  ;;  %5524 = vmatprep.subr.mxu1 %v12722_v58  ;;  %v5236_v58 = vmul.f32 %v5213_v60, %v16280_v40  ;;  %v5228_v23 = vmul.f32 %v5211_v22, %v16280_v40  ;;  %v5076_v42 = vsel %vm401_vm2, %v5064_v44, %v13215_v35 }
 0xbe0   : > { %5525 = vmatpush1.msra.mxu1 %v16278_v36  ;;  %7328 = vmatprep.mubr.f32.mxu0 %v15943_v54  ;;  %v5229_v36 = vmul.f32 %v5207_v41, %v16279_v1  ;;  %v5080_v46 = vsel %vm401_vm2, %v12996_v45, %v5064_v44  ;;  %v5225_v32 = vmul.f32 %v5206_v33, %v16279_v1  ;;  %v16283_v45 = vld [vmem:[#allocation15_spill] sm:$0xff] }
 0xbe1   : > { %v5062_v47 = vpop.permute.xlu0 %5061  ;;  %5526 = vmatprep.subr.mxu1 %v12724_v11  ;;  %v5060_v39 = vpop.permute.xlu1 %5059  ;;  %v5232_v11 = vmul.f32 %v5212_v15, %v16280_v40  ;;  %v5224_v55 = vmul.f32 %v5210_v37, %v16280_v40  ;;  %v5103_v44 = vmul.f32 %v5080_v46, %v16283_v45 }
 0xbe2   : > { %5527 = vmatpush1.msra.mxu1 %v16281_v24  ;;  %v5075_v9 = vsel %vm401_vm2, %v5062_v47, %v13238_v57  ;;  %v5079_v15 = vsel %vm401_vm2, %v13010_v38, %v5062_v47  ;;  %v5074_v24 = vsel %vm401_vm2, %v5060_v39, %v12922_v28  ;;  %v5078_v57 = vsel %vm401_vm2, %v12835_v31, %v5060_v39 }
 0xbe3   : > { %5528 = vmatprep.subr.mxu1 %v5237_v16  ;;  %v5099_v47 = vmul.f32 %v5079_v15, %v16283_v45 }
 0xbe4   : > { %5529 = vmatpush1.msra.mxu1 %v5236_v58  ;;  %v16282_v58 = vld [vmem:[#allocation46_spill] sm:$0xff] }
 0xbe5   : > { %v5058_v7 = vpop.permute.xlu0 %5057  ;;  %5530 = vmatprep.subr.mxu1 %v5233_v43  ;;  %v4984_v60 = vpop.permute.xlu1 %4983  ;;  %v5104_v41 = vmul.f32 %v5076_v42, %v16282_v58  ;;  %v5100_v38 = vmul.f32 %v5075_v9, %v16282_v58  ;;  %v5095_v43 = vmul.f32 %v5078_v57, %v16283_v45  ;;  %v16288_v9 = vld [vmem:[#allocation39_spill] sm:$0xff] }
 0xbe6   : > { %5531 = vmatpush1.msra.mxu1 %v5232_v11  ;;  %v5073_v22 = vsel %vm401_vm2, %v5058_v7, %v12920_v5  ;;  %v5077_v28 = vsel %vm401_vm2, %v12837_v56, %v5058_v7  ;;  %v4996_v11 = vsel %vm308_vm0, %v4984_v60, %v13276_v63  ;;  %v5000_v5 = vsel %vm308_vm0, %v13016_v53, %v4984_v60  ;;  %v16284_v60 = vld [vmem:[#allocation13_spill] sm:$0xff]  ;;  %v16290_v57 = vld [vmem:[#allocation63_spill] sm:$0xff] }
 0xbe7   : > { %5532 = vmatprep.subr.mxu1 %v5229_v36  ;;  %v5092_v33 = vmul.f32 %v5073_v22, %v16282_v58  ;;  %v5091_v56 = vmul.f32 %v5077_v28, %v16283_v45  ;;  %v5024_v36 = vmul.f32 %v4996_v11, %v16284_v60 }
 0xbe8   : > { %5533 = vmatpush1.msra.mxu1 %v5228_v23  ;;  %v16285_v23 = vld [vmem:[#allocation28_spill] sm:$0xff] }
 0xbe9   : > { %v4982_v35 = vpop.permute.xlu0 %4981  ;;  %5534 = vmatprep.subr.mxu1 %v5225_v32  ;;  %v4980_v16 = vpop.permute.xlu1 %4979 }
 0xbea   : > { %5535 = vmatpush1.msra.mxu1 %v5224_v55  ;;  %v4995_v37 = vsel %vm308_vm0, %v4982_v35, %v13302_v8  ;;  %v4999_v63 = vsel %vm308_vm0, %v13030_v30, %v4982_v35  ;;  %v4994_v42 = vsel %vm308_vm0, %v4980_v16, %v12930_v59  ;;  %v16286_v8 = vld [vmem:[#allocation67_spill] sm:$0xff]  ;;  %v16287_v30 = vld [vmem:[#allocation18_spill] sm:$0xff]  ;;  %v16289_v59 = vld [vmem:[#allocation16_spill] sm:$0xff] }
 0xbeb   : > { %5702 = vmatprep.subr.mxu1 %v5104_v41  ;;  %8257 = vmatmul.mubr.msk.f32.vlgmr.msra.gmra.mxu1 %vm1896_vm8, %v13230_v4  ;;  %v5096_v4 = vmul.f32 %v5074_v24, %v16282_v58  ;;  %v4998_v46 = vsel %vm308_vm0, %v16286_v8, %v4980_v16  ;;  %v5020_v32 = vmul.f32 %v4995_v37, %v16284_v60  ;;  %v16295_v37 = vld [vmem:[#allocation25_spill] sm:$0xff] }
 0xbec   : > { %5703 = vmatpush1.msra.mxu1 %v5103_v44  ;;  %5574 = vmatprep.mubr.f32.mxu1 %v15943_v54  ;;  %v5019_v55 = vmul.f32 %v4999_v63, %v16285_v23  ;;  %v5016_v44 = vmul.f32 %v4994_v42, %v16284_v60  ;;  %v5015_v24 = vmul.f32 %v4998_v46, %v16285_v23  ;;  %v16297_v42 = vld [vmem:[#allocation47_spill] sm:$0xff]  ;;  %v16298_v46 = vld [vmem:[#allocation21_spill] sm:$0xff] }
 0xbed   : > { %v4978_v31 = vpop.permute.xlu0 %4977  ;;  %5704 = vmatprep.subr.mxu1 %v5100_v38  ;;  %v4904_v39 = vpop.permute.xlu1 %4903 }
 0xbee   : > { %5705 = vmatpush1.msra.mxu1 %v5099_v47  ;;  %v4993_v15 = vsel %vm308_vm0, %v4978_v31, %v16288_v9  ;;  %v4997_v35 = vsel %vm308_vm0, %v16289_v59, %v4978_v31  ;;  %v4916_v38 = vsel %vm239_vm1, %v4904_v39, %v16290_v57  ;;  %v16291_v47 = vld [vmem:[#allocation24_spill] sm:$0xff]  ;;  %v16292_v31 = vld [vmem:[#allocation59_spill] sm:$0xff] }
 0xbef   : > { %5706 = vmatprep.subr.mxu1 %v5096_v4  ;;  %8258 = vmatmul.mubr.msk.f32.gmra.mxu1 %vm1896_vm8, %v13262_v17  ;;  %v5023_v17 = vmul.f32 %v5000_v5, %v16285_v23  ;;  %v4920_v22 = vsel %vm239_vm1, %v16291_v47, %v4904_v39  ;;  %v5012_v28 = vmul.f32 %v4993_v15, %v16284_v60  ;;  %v16294_v5 = vld [vmem:[#allocation35_spill] sm:$0xff]  ;;  %v16300_v15 = vld [vmem:[#allocation38_spill] sm:$0xff]  ;;  %v16302_v47 = vld [vmem:[#allocation64_spill] sm:$0xff] }
 0xbf0   : > { %5707 = vmatpush1.msra.mxu1 %v5095_v43  ;;  %5580 = vmatprep.mubr.f32.mxu1 %v15943_v54  ;;  %v5011_v4 = vmul.f32 %v4997_v35, %v16285_v23  ;;  %v16293_v43 = vld [vmem:[#allocation20_spill] sm:$0xff]  ;;  %v4944_v63 = vmul.f32 %v4916_v38, %v16295_v37  ;;  %v16301_v57 = vld [vmem:[#allocation27_spill] sm:$0xff] }
 0xbf1   : > { %v4902_v53 = vpop.permute.xlu0 %4901  ;;  %5708 = vmatprep.subr.mxu1 %v5092_v33  ;;  %v4900_v7 = vpop.permute.xlu1 %4899 }
 0xbf2   : > { %5709 = vmatpush1.msra.mxu1 %v5091_v56  ;;  %v4915_v11 = vsel %vm239_vm1, %v4902_v53, %v16293_v43  ;;  %v4919_v33 = vsel %vm239_vm1, %v16294_v5, %v4902_v53  ;;  %v4914_v8 = vsel %vm239_vm1, %v4900_v7, %v16297_v42  ;;  %v16304_v5 = vld [vmem:[#allocation14_spill] sm:$0xff] }
 0xbf3   : > { %5710 = vmatprep.subr.mxu1 %v5024_v36  ;;  %8259 = vmatmul.mubr.msk.f32.gmra.mxu1 %vm1896_vm8, %v16287_v30  ;;  %v16296_v36 = vld [vmem:[#allocation23_spill] sm:$0xff]  ;;  %v4940_v30 = vmul.f32 %v4915_v11, %v16295_v37  ;;  %v16306_v42 = vld [vmem:[#allocation50_spill] sm:$0xff] }
 0xbf4   : > { %5711 = vmatpush1.msra.mxu1 %v5023_v17  ;;  %5586 = vmatprep.mubr.f32.mxu1 %v15943_v54  ;;  %v4943_v17 = vmul.f32 %v4920_v22, %v16296_v36  ;;  %v4939_v53 = vmul.f32 %v4919_v33, %v16296_v36 }
 0xbf5   : > { %v4898_v16 = vpop.permute.xlu0 %4897  ;;  %5712 = vmatprep.subr.mxu1 %v5020_v32  ;;  %v5974_v41 = vpop.permute.xlu1 %5973  ;;  %v4918_v32 = vsel %vm239_vm1, %v16298_v46, %v4900_v7  ;;  %v16307_v46 = vld [vmem:[#allocation37_spill] sm:$0xff] }
 0xbf6   : > { %5713 = vmatpush1.msra.mxu1 %v5019_v55  ;;  %v16299_v55 = vld [vmem:[#allocation71_spill] sm:$0xff]  ;;  %v4917_v59 = vsel %vm239_vm1, %v16300_v15, %v4898_v16  ;;  %v4935_v7 = vmul.f32 %v4918_v32, %v16296_v36  ;;  %v5990_v38 = vsel %vm894_vm7, %v5974_v41, %v16301_v57  ;;  %v5978_v22 = vsel %vm894_vm7, %v16302_v47, %v5974_v41 }
 0xbf7   : > { %5714 = vmatprep.subr.mxu1 %v5016_v44  ;;  %8260 = vmatmul.mubr.msk.f32.gmra.mxu1 %vm1896_vm8, %v16292_v31  ;;  %v4913_v9 = vsel %vm239_vm1, %v4898_v16, %v16299_v55  ;;  %v4931_v16 = vmul.f32 %v4917_v59, %v16296_v36  ;;  %v6006_v33 = vmul.f32 %v16304_v5, %v5990_v38  ;;  %v16309_v59 = vld [vmem:[#allocation58_spill] sm:$0xff]  ;;  %v16311_v38 = vld [vmem:[#allocation9_spill] sm:$0xff] }
 0xbf8   : > { %5715 = vmatpush1.msra.mxu1 %v5015_v24  ;;  %5758 = vmatprep.mubr.f32.mxu1 %v15943_v54  ;;  %v4936_v24 = vmul.f32 %v4914_v8, %v16295_v37 }
 0xbf9   : > { %v5972_v39 = vpop.permute.xlu0 %5971  ;;  %5716 = vmatprep.subr.mxu1 %v5012_v28  ;;  %v5970_v56 = vpop.permute.xlu1 %5969  ;;  %v4932_v28 = vmul.f32 %v4913_v9, %v16295_v37 }
 0xbfa   : > { %5717 = vmatpush1.msra.mxu1 %v5011_v4  ;;  %v5989_v31 = vsel %vm894_vm7, %v5972_v39, %v16252_v50  ;;  %v16303_v4 = vld [vmem:[#allocation31_spill] sm:$0xff]  ;;  %v5976_v50 = vsel %vm894_vm7, %v16306_v42, %v5970_v56 }
 0xbfb   : > { %5718 = vmatprep.subr.mxu1 %v4944_v63  ;;  %v5977_v43 = vsel %vm894_vm7, %v16303_v4, %v5972_v39  ;;  %v16305_v63 = vld [vmem:[#allocation12_spill] sm:$0xff]  ;;  %v6002_v39 = vmul.f32 %v16304_v5, %v5989_v31 }
 0xbfc   : > { %5719 = vmatpush1.msra.mxu1 %v4943_v17  ;;  %v6005_v41 = vmul.f32 %v16305_v63, %v5978_v22  ;;  %v5988_v17 = vsel %vm894_vm7, %v5970_v56, %v16256_v27  ;;  %v6001_v32 = vmul.f32 %v16305_v63, %v5977_v43  ;;  %v16308_v27 = vld [vmem:[#allocation41_spill] sm:$0xff]  ;;  %v5997_v9 = vmul.f32 %v16305_v63, %v5976_v50  ;;  %v16313_v43 = vld [vmem:[#allocation36_spill] sm:$0xff]  ;;  %v16314_v50 = vld [vmem:[#allocation30_spill] sm:$0xff] }
 0xbfd   : > { %v5968_v35 = vpop.permute.xlu0 %5967  ;;  %5720 = vmatprep.subr.mxu1 %v4940_v30  ;;  %v5894_v44 = vpop.permute.xlu1 %5893  ;;  %v5998_v55 = vmul.f32 %v16304_v5, %v5988_v17 }
 0xbfe   : > { %5721 = vmatpush1.msra.mxu1 %v4939_v53  ;;  %v5987_v30 = vsel %vm894_vm7, %v5968_v35, %v13106_v34  ;;  %v5975_v56 = vsel %vm894_vm7, %v16308_v27, %v5968_v35  ;;  %v5910_v15 = vsel %vm805_vm6, %v5894_v44, %v13132_v49  ;;  %v5898_v34 = vsel %vm805_vm6, %v13446_v3, %v5894_v44  ;;  %v16310_v44 = vld [vmem:[#allocation52_spill] sm:$0xff] }
 0xbff   : > { %5722 = vmatprep.subr.mxu1 %v4936_v24  ;;  %v5994_v35 = vmul.f32 %v16304_v5, %v5987_v30  ;;  %v5993_v24 = vmul.f32 %v16305_v63, %v5975_v56  ;;  %v5926_v57 = vmul.f32 %v5910_v15, %v16310_v44  ;;  %v5925_v47 = vmul.f32 %v5898_v34, %v16311_v38  ;;  %v16317_v30 = vld [vmem:[#allocation60_spill] sm:$0xff]  ;;  %v16319_v15 = vld [vmem:[#allocation42_spill] sm:$0xff] }
 0xc00   : > { %5723 = vmatpush1.msra.mxu1 %v4935_v7  ;;  %v16318_v56 = vld [vmem:[#allocation72_spill] sm:$0xff] }
 0xc01   : > { %v5892_v11 = vpop.permute.xlu0 %5891  ;;  %5724 = vmatprep.subr.mxu1 %v4932_v28 }
 0xc02   : > { %5725 = vmatpush1.msra.mxu1 %v4931_v16  ;;  %v5890_v8 = vpop.permute.xlu1 %5889  ;;  %v5909_v7 = vsel %vm805_vm6, %v5892_v11, %v13140_v51  ;;  %v5897_v49 = vsel %vm805_vm6, %v13448_v2, %v5892_v11 }
 0xc03   : > { %8265 = vmatmul.mubr.msk.f32.vlgmr.msra.gmra.mxu1 %vm1896_vm8, %v16307_v46  ;;  %6185 = vmatprep.subr.mxu1 %v6006_v33  ;;  %v5908_v22 = vsel %vm805_vm6, %v5890_v8, %v13184_v19  ;;  %v5896_v51 = vsel %vm805_vm6, %v13156_v0, %v5890_v8  ;;  %v5922_v2 = vmul.f32 %v5909_v7, %v16310_v44  ;;  %v16312_v19 = vld [vmem:[#allocation4_spill] sm:$0xff]  ;;  %v16315_v46 = vld [vmem:[#allocation51_spill] sm:$0xff] }
 0xc04   : > { %6186 = vmatpush1.msra.mxu1 %v6005_v41  ;;  %5764 = vmatprep.mubr.f32.mxu1 %v15943_v54  ;;  %v5921_v16 = vmul.f32 %v5897_v49, %v16311_v38  ;;  %v5918_v4 = vmul.f32 %v5908_v22, %v16310_v44 }
 0xc05   : > { %v5888_v53 = vpop.permute.xlu0 %5887  ;;  %6187 = vmatprep.subr.mxu1 %v6002_v39  ;;  %v16316_v39 = vld [vmem:[#allocation55_spill] sm:$0xff] }
 0xc06   : > { %6188 = vmatpush1.msra.mxu1 %v6001_v32  ;;  %v5814_v3 = vpop.permute.xlu1 %5813  ;;  %v5907_v31 = vsel %vm805_vm6, %v5888_v53, %v13274_v62  ;;  %v5895_v0 = vsel %vm805_vm6, %v16312_v19, %v5888_v53 }
 0xc07   : > { %8266 = vmatmul.mubr.msk.f32.gmra.mxu1 %vm1896_vm8, %v16309_v59  ;;  %6189 = vmatprep.subr.mxu1 %v5998_v55  ;;  %v5830_v11 = vsel %vm716_vm5, %v5814_v3, %v16313_v43  ;;  %v5818_v62 = vsel %vm716_vm5, %v13510_v61, %v5814_v3  ;;  %v5914_v41 = vmul.f32 %v5907_v31, %v16310_v44 }
 0xc08   : > { %6190 = vmatpush1.msra.mxu1 %v5997_v9  ;;  %5770 = vmatprep.mubr.f32.mxu1 %v15943_v54  ;;  %v5913_v17 = vmul.f32 %v5895_v0, %v16311_v38  ;;  %v5845_v32 = vmul.f32 %v5818_v62, %v16316_v39 }
 0xc09   : > { %6191 = vmatprep.subr.mxu1 %v5994_v35  ;;  %v5812_v28 = vpop.permute.xlu0 %5811 }
 0xc0a   : > { %6192 = vmatpush1.msra.mxu1 %v5993_v24  ;;  %v5810_v33 = vpop.permute.xlu1 %5809  ;;  %v5829_v42 = vsel %vm716_vm5, %v5812_v28, %v13418_v52  ;;  %v5817_v61 = vsel %vm716_vm5, %v16314_v50, %v5812_v28 }
 0xc0b   : > { %8267 = vmatmul.mubr.msk.f32.gmra.mxu1 %vm1896_vm8, %v13470_v25  ;;  %6193 = vmatprep.subr.mxu1 %v5926_v57  ;;  %v5917_v25 = vmul.f32 %v5896_v51, %v16311_v38  ;;  %v5828_v27 = vsel %vm716_vm5, %v5810_v33, %v16317_v30  ;;  %v5816_v52 = vsel %vm716_vm5, %v16318_v56, %v5810_v33 }
 0xc0c   : > { %6194 = vmatpush1.msra.mxu1 %v5925_v47  ;;  %5776 = vmatprep.mubr.f32.mxu1 %v15943_v54  ;;  %v5842_v53 = vmul.f32 %v5829_v42, %v16315_v46  ;;  %v5841_v55 = vmul.f32 %v5817_v61, %v16316_v39  ;;  %v5838_v59 = vmul.f32 %v5828_v27, %v16315_v46 }
 0xc0d   : > { %6195 = vmatprep.subr.mxu1 %v5922_v2  ;;  %v5808_v8 = vpop.permute.xlu0 %5807  ;;  %v5837_v35 = vmul.f32 %v5816_v52, %v16316_v39 }
 0xc0e   : > { %6196 = vmatpush1.msra.mxu1 %v5921_v16  ;;  %v5827_v9 = vsel %vm716_vm5, %v5808_v8, %v13554_v29  ;;  %v5815_v34 = vsel %vm716_vm5, %v16319_v15, %v5808_v8 }
 0xc0f   : > { %8268 = vmatmul.mubr.msk.f32.gmra.mxu1 %vm1896_vm8, %v13502_v26  ;;  %6197 = vmatprep.subr.mxu1 %v5918_v4  ;;  %v5846_v26 = vmul.f32 %v5830_v11, %v16315_v46  ;;  %v5834_v24 = vmul.f32 %v5827_v9, %v16315_v46  ;;  %v5833_v7 = vmul.f32 %v5815_v34, %v16316_v39  ;;  %v13918_v9 = vld [vmem:[%s15412_s2 + $0x8] sm:$0xff] }
 0xc10   : > { %6198 = vmatpush1.msra.mxu1 %v5917_v25  ;;  %6241 = vmatprep.mubr.f32.mxu1 %v15943_v54 }
 0xc11   : > { %6199 = vmatprep.subr.mxu1 %v5914_v41 }
 0xc12   : > { %6200 = vmatpush1.msra.mxu1 %v5913_v17 }
 0xc13   : > { %6201 = vmatprep.subr.mxu1 %v5846_v26 }
 0xc14   : > { %6202 = vmatpush1.msra.mxu1 %v5845_v32 }
 0xc15   : > { %6203 = vmatprep.subr.mxu1 %v5842_v53 }
 0xc16   : > { %6204 = vmatpush1.msra.mxu1 %v5841_v55 }
 0xc17   : > { %6205 = vmatprep.subr.mxu1 %v5838_v59  ;;  %v6284_v17 = vpop.permute.xlu1 %6283  ;;  %v13924_v59 = vld [vmem:[%s15412_s2 + $0x10] sm:$0xff] }
 0xc18   : > { %6206 = vmatpush1.msra.mxu1 %v5837_v35 }
 0xc19   : > { %6207 = vmatprep.subr.mxu1 %v5834_v24 }
 0xc1a   : > { %6208 = vmatpush1.msra.mxu1 %v5833_v7 }
 0xc1b   : > { %8277 = vmatmul.mubr.msk.f32.vlgmr.msra.gmra.mxu1 %vm1896_vm8, %v13572_v21 }
 0xc1c   : > { %6247 = vmatprep.mubr.f32.mxu1 %v15943_v54 }
 0xc1f   : > { %8278 = vmatmul.mubr.msk.f32.gmra.mxu1 %vm1896_vm8, %v13594_v13 }
 0xc20   : > { %6253 = vmatprep.mubr.f32.mxu1 %v15943_v54 }
 0xc23   : > { %8279 = vmatmul.mubr.msk.f32.gmra.mxu1 %vm1896_vm8, %v13612_v6 }
 0xc24   : > { %6259 = vmatprep.mubr.f32.mxu1 %v15943_v54 }
 0xc27   : > { %8280 = vmatmul.mubr.msk.f32.gmra.mxu1 %vm1896_vm8, %v13622_v18 }
 0xc28   : > { %7411 = vmatprep.mubr.f32.mxu1 %v15943_v54 }
 0xc62   : > { %v5481_v29 = vpop.f32.mrf.mxu0 }
 0xc64   : > { %v5483_v49 = vpop.f32.mrf.mxu0 }
 0xc66   : > { %v5487_v21 = vpop.f32.mrf.mxu0 }
 0xc68   : > { %v5489_v3 = vpop.f32.mrf.mxu0 }
 0xc6a   : > { %v5493_v57 = vpop.f32.mrf.mxu0 }
 0xc6c   : > { %v5495_v47 = vpop.f32.mrf.mxu0 }
 0xc6e   : > { %v5499_v22 = vpop.f32.mrf.mxu0 }
 0xc70   : > { %v5501_v13 = vpop.f32.mrf.mxu0 }
 0xc7a   : > { %v5671_v51 = vpop.f32.mrf.mxu0 }
 0xc7b   : > { %v5672_v33 = vadd.f32 %v5671_v51, %v5481_v29 }
 0xc7c   : > { %v5673_v28 = vpop.f32.mrf.mxu0 }
 0xc7d   : > { %v5674_v42 = vadd.f32 %v5673_v28, %v5483_v49 }
 0xc7e   : > { %v5677_v2 = vpop.f32.mrf.mxu0 }
 0xc7f   : > { %v13893_v16 = vadd.f32 %v5677_v2, %v5487_v21 }
 0xc80   : > { %v5679_v6 = vpop.f32.mrf.mxu0 }
 0xc81   : > { %v13895_v31 = vadd.f32 %v5679_v6, %v5489_v3 }
 0xc82   : > { %v5683_v19 = vpop.f32.mrf.mxu0 }
 0xc83   : > { %v13897_v18 = vadd.f32 %v5683_v19, %v5493_v57 }
 0xc84   : > { %v5685_v0 = vpop.f32.mrf.mxu0 }
 0xc85   : > { %v13899_v4 = vadd.f32 %v5685_v0, %v5495_v47 }
 0xc86   : > { %v5689_v25 = vpop.f32.mrf.mxu0 }
 0xc87   : > { %v13901_v43 = vadd.f32 %v5689_v25, %v5499_v22 }
 0xc88   : > { %v5691_v11 = vpop.f32.mrf.mxu0 }
 0xc89   : > { %v13903_v62 = vadd.f32 %v5691_v11, %v5501_v13 }
 0xc93   : > { %v6154_v41 = vpop.f32.mrf.mxu0 }
 0xc94   : > { %v6266_v50 = vadd.f32 %v6154_v41, %v5672_v33 }
 0xc95   : > { %v6156_v61 = vpop.f32.mrf.mxu0 }
 0xc96   : > { %v6267_v8 = vadd.f32 %v6156_v61, %v5674_v42  ;;  %v13905_v26 = vadd.f32 %v6284_v17, %v6266_v50 }
 0xc98   : > { %v13907_v32 = vadd.f32 %v6284_v17, %v6267_v8  ;;  %v6324_v27 = vmul.f32 %v13905_v26, %v13905_v26 }
 0xc9a   : > { %v6314_v30 = vadd.f32 %v13907_v32, %v13905_v26  ;;  %v6325_v56 = vmul.f32 %v13907_v32, %v13907_v32 }
 0xc9c   : > { %6315 = vadd.xlane.f32.xlu0 %v6314_v30  ;;  %v6326_v52 = vadd.f32 %v6325_v56, %v6324_v27 }
 0xc9e   : > { %6327 = vadd.xlane.f32.xlu1 %v6326_v52 }
 0xcab   : > { %v5570_v53 = vpop.f32.mrf.mxu1 }
 0xcad   : > { %v5572_v55 = vpop.f32.mrf.mxu1 }
 0xcaf   : > { %6287 = vperm.xlu1 %8537, %v13918_v9   ;;  %v5576_v15 = vpop.f32.mrf.mxu1 }
 0xcb1   : > { %v5578_v34 = vpop.f32.mrf.mxu1 }
 0xcb3   : > { %6291 = vperm.xlu1 %8537, %v13924_v59   ;;  %v5582_v35 = vpop.f32.mrf.mxu1 }
 0xcb5   : > { %v5584_v24 = vpop.f32.mrf.mxu1 }
 0xcb7   : > { %v5588_v7 = vpop.f32.mrf.mxu1 }
 0xcb9   : > { %v5590_v29 = vpop.f32.mrf.mxu1 }
 0xcc3   : > { %v5760_v49 = vpop.f32.mrf.mxu1 }
 0xcc4   : > { %v5761_v11 = vadd.f32 %v5760_v49, %v5570_v53 }
 0xcc5   : > { %v5762_v21 = vpop.f32.mrf.mxu1 }
 0xcc6   : > { %v5763_v41 = vadd.f32 %v5762_v21, %v5572_v55  ;;  %v6160_v55 = vpop.f32.mrf.mxu0 }
 0xcc7   : > { %v5766_v3 = vpop.f32.mrf.mxu1  ;;  %v6270_v21 = vadd.f32 %v6160_v55, %v13893_v16 }
 0xcc8   : > { %v5767_v57 = vadd.f32 %v5766_v3, %v5576_v15  ;;  %v6162_v15 = vpop.f32.mrf.mxu0 }
 0xcc9   : > { %v5768_v47 = vpop.f32.mrf.mxu1  ;;  %v6271_v3 = vadd.f32 %v6162_v15, %v13895_v31 }
 0xcca   : > { %v5769_v22 = vadd.f32 %v5768_v47, %v5578_v34 }
 0xccb   : > { %v5772_v13 = vpop.f32.mrf.mxu1 }
 0xccc   : > { %v13927_v51 = vadd.f32 %v5772_v13, %v5582_v35  ;;  %v6166_v35 = vpop.f32.mrf.mxu0 }
 0xccd   : > { %v5774_v28 = vpop.f32.mrf.mxu1 }
 0xcce   : > { %v13929_v2 = vadd.f32 %v5774_v28, %v5584_v24  ;;  %v6168_v47 = vpop.f32.mrf.mxu0 }
 0xccf   : > { %v5778_v6 = vpop.f32.mrf.mxu1 }
 0xcd0   : > { %v13931_v19 = vadd.f32 %v5778_v6, %v5588_v7 }
 0xcd1   : > { %v5780_v0 = vpop.f32.mrf.mxu1 }
 0xcd2   : > { %v13933_v25 = vadd.f32 %v5780_v0, %v5590_v29 }
 0xcdb   : > { %v6243_v33 = vpop.f32.mrf.mxu1 }
 0xcdc   : > { %v6268_v42 = vadd.f32 %v6243_v33, %v5761_v11 }
 0xcdd   : > { %v6245_v50 = vpop.f32.mrf.mxu1 }
 0xcde   : > { %v6269_v61 = vadd.f32 %v6245_v50, %v5763_v41  ;;  %v13935_v8 = vadd.f32 %v6284_v17, %v6268_v42  ;;  %v6274_v42 = vadd.f32 %v6166_v35, %v13897_v18  ;;  %v6275_v50 = vadd.f32 %v6168_v47, %v13899_v4 }
 0xcdf   : > { %v6249_v49 = vpop.f32.mrf.mxu1 }
 0xce0   : > { %v13937_v30 = vadd.f32 %v6284_v17, %v6269_v61  ;;  %v6364_v52 = vmul.f32 %v13935_v8, %v13935_v8 }
 0xce1   : > { %v6251_v61 = vpop.f32.mrf.mxu1 }
 0xce2   : > { %v6354_v27 = vadd.f32 %v13937_v30, %v13935_v8  ;;  %v6365_v56 = vmul.f32 %v13937_v30, %v13937_v30  ;;  %v6273_v15 = vadd.f32 %v6251_v61, %v5769_v22 }
 0xce4   : > { %6355 = vadd.xlane.f32.xlu0 %v6354_v27  ;;  %v6366_v53 = vadd.f32 %v6365_v56, %v6364_v52  ;;  %v6272_v52 = vadd.f32 %v6249_v49, %v5767_v57 }
 0xce8   : > { %6367 = vadd.xlane.f32.xlu0 %v6366_v53 }
 0xd25   : > { %v6316_v34 = vpop.xlane.xlu0 %6315 }
 0xd26   : > { %v6317_v24 = vrot.slane %v6316_v34, 4 }
 0xd27   : > { %v6328_v7 = vpop.xlane.xlu1 %6327 }
 0xd28   : > { %v6318_v17 = vadd.f32 %v6317_v24, %v6316_v34  ;;  %v6329_v29 = vrot.slane %v6328_v7, 4 }
 0xd2a   : > { %v6330_v13 = vadd.f32 %v6329_v29, %v6328_v7  ;;  %v6319_v28 = vrot.slane %v6318_v17, 2 }
 0xd2b   : > { %v6288_v6 = vpop.permute.xlu1 %6287 }
 0xd2c   : > { %v13947_v0 = vadd.f32 %v6288_v6, %v6270_v21  ;;  %v13949_v11 = vadd.f32 %v6288_v6, %v6271_v3  ;;  %v6320_v33 = vadd.f32 %v6319_v28, %v6318_v17  ;;  %v6331_v41 = vrot.slane %v6330_v13, 2  ;;  %v6255_v21 = vpop.f32.mrf.mxu1 }
 0xd2d   : > { %v13963_v24 = vadd.f32 %v6288_v6, %v6272_v52  ;;  %v13969_v29 = vadd.f32 %v6288_v6, %v6273_v15  ;;  %v6276_v6 = vadd.f32 %v6255_v21, %v13927_v51  ;;  %v8650_v52 = vmov 21  }
 0xd2e   : > { %v6410_v16 = vadd.f32 %v13949_v11, %v13947_v0  ;;  %v6321_v27 = vrot.slane %v6320_v33, 1  ;;  %v6420_v31 = vmul.f32 %v13947_v0, %v13947_v0  ;;  %v6421_v56 = vmul.f32 %v13949_v11, %v13949_v11  ;;  %v6257_v28 = vpop.f32.mrf.mxu1 }
 0xd2f   : > { %v6292_v53 = vpop.permute.xlu1 %6291  ;;  %v6332_v55 = vadd.f32 %v6331_v41, %v6330_v13  ;;  %v6450_v3 = vadd.f32 %v13969_v29, %v13963_v24  ;;  %v6460_v47 = vmul.f32 %v13963_v24, %v13963_v24  ;;  %v6461_v13 = vmul.f32 %v13969_v29, %v13969_v29 }
 0xd30   : > { %v13959_v34 = vadd.f32 %v6292_v53, %v6274_v42  ;;  %v13961_v18 = vadd.f32 %v6292_v53, %v6275_v50  ;;  %6411 = vadd.xlane.f32.xlu0 %v6410_v16  ;;  %v6322_v4 = vadd.f32 %v6321_v27, %v6320_v33  ;;  %v6422_v7 = vadd.f32 %v6421_v56, %v6420_v31  ;;  %v13995_v56 = vld [vmem:[%s15412_s2 + $0x18] sm:$0xff] }
 0xd31   : > { %v6333_v35 = vrot.slane %v6332_v55, 1  ;;  %v6462_v33 = vadd.f32 %v6461_v13, %v6460_v47  ;;  %v6277_v41 = vadd.f32 %v6257_v28, %v13929_v2  ;;  %v13981_v50 = vadd.f32 %v6292_v53, %v6276_v6 }
 0xd32   : > { %8392 = vpush %v6322_v4  ;;  %v6516_v17 = vmul.f32 %v13959_v34, %v13959_v34  ;;  %v6517_v57 = vmul.f32 %v13961_v18, %v13961_v18  ;;  %v6506_v42 = vadd.f32 %v13961_v18, %v13959_v34  ;;  %v8649_v16 = vmov 20  }
 0xd33   : > { %v6334_v22 = vadd.f32 %v6333_v35, %v6332_v55  ;;  %v13983_v61 = vadd.f32 %v6292_v53, %v6277_v41  ;;  %8539 = vset.pattern.permute.xlu1 %v8649_v16  ;;  %v6556_v51 = vmul.f32 %v13981_v50, %v13981_v50 }
 0xd34   : > { %6423 = vadd.xlane.f32.xlu0 %v6422_v7  ;;  %v6518_v49 = vadd.f32 %v6517_v57, %v6516_v17 }
 0xd35   : > { %8394 = vpush %v6334_v22  ;;  %v6546_v27 = vadd.f32 %v13983_v61, %v13981_v50  ;;  %v6557_v2 = vmul.f32 %v13983_v61, %v13983_v61 }
 0xd36   : > { %6519 = vadd.xlane.f32.xlu1 %v6518_v49 }
 0xd37   : > { %v6558_v31 = vadd.f32 %v6557_v2, %v6556_v51 }
 0xd38   : > { %6451 = vadd.xlane.f32.xlu0 %v6450_v3 }
 0xd3c   : > { %6463 = vadd.xlane.f32.xlu0 %v6462_v33 }
 0xd40   : > { %6507 = vadd.xlane.f32.xlu0 %v6506_v42 }
 0xd44   : > { %6547 = vadd.xlane.f32.xlu0 %v6546_v27 }
 0xd48   : > { %6559 = vadd.xlane.f32.xlu0 %v6558_v31 }
 0xd5e   : > { %6295 = vperm.xlu0 %8538, %v13995_v56  }
 0xd62   : > { %8540 = vset.pattern.permute.xlu0 %v8649_v16 }
 0xd63   : > { %s8393_s13 = spop %8392  ;;  %6587 = vperm.xlu0 %8540, %v13924_v59  }
 0xd64   : > { %s14000_s14 = smul.f32 0.00048828125, %s8393_s13 }
 0xd66   : > { %s6342_s17 = smul.f32 %s14000_s14, %s14000_s14  ;;  %s8395_s18 = spop %8394  ;;  %v6344_v6 = vstv %s14000_s14 }
 0xd67   : > { %s6341_s19 = smul.f32 0.00048828125, %s8395_s18  ;;  %6491 = vperm.xlu0 %8540, %v13918_v9   ;;  %v6345_v41 = vsub.f32 %v13905_v26, %v6344_v6 }
 0xd69   : > { %s6343_s20 = ssub.f32 %s6341_s19, %s6342_s17 }
 0xd6b   : > { %s6347_s21 = sadd.f32 1e-05, %s6343_s20  ;;  %8541 = vset.pattern.permute.xlu0 %v8650_v52 }
 0xd6c   : > { %6691 = vperm.xlu0 %8541, %v13995_v56  }
 0xd6d   : > { %v6348_v53 = vstv %s6347_s21  ;;  %v6356_v55 = vpop.xlane.xlu0 %6355 }
 0xd6e   : > { %8571 = vrsqrt.f32 %v6348_v53  ;;  %v6357_v15 = vrot.slane %v6356_v55, 4 }
 0xd70   : > { %v6358_v4 = vadd.f32 %v6357_v15, %v6356_v55  ;;  %6499 = vperm.xlu0 %8541, %v13918_v9   ;;  %v6346_v9 = vsub.f32 %v13907_v32, %v6344_v6  ;;  %v6172_v6 = vpop.f32.mrf.mxu0 }
 0xd71   : > { %v6368_v35 = vpop.xlane.xlu0 %6367 }
 0xd72   : > { %v6369_v7 = vrot.slane %v6368_v35, 4  ;;  %v6359_v17 = vrot.slane %v6358_v4, 2 }
 0xd74   : > { %v6370_v57 = vadd.f32 %v6369_v7, %v6368_v35  ;;  %v6360_v22 = vadd.f32 %v6359_v17, %v6358_v4 }
 0xd76   : > { %v6361_v49 = vrot.slane %v6360_v22, 1  ;;  %v6371_v21 = vrot.slane %v6370_v57, 2 }
 0xd78   : > { %v6372_v3 = vadd.f32 %v6371_v21, %v6370_v57  ;;  %v6362_v47 = vadd.f32 %v6361_v49, %v6360_v22 }
 0xd7a   : > { %v6373_v13 = vrot.slane %v6372_v3, 1 }
 0xd7b   : > { %v8572_v28 = vpop.eup %8571 }
 0xd7c   : > { %8396 = vpush %v8572_v28  ;;  %v6374_v33 = vadd.f32 %v6373_v13, %v6372_v3 }
 0xd7d   : > { %8398 = vpush %v6362_v47 }
 0xd7e   : > { %8400 = vpush %v6374_v33 }
 0xdad   : > { %s8397_s22 = spop %8396 }
 0xdae   : > { %v6351_v42 = vstv %s8397_s22  ;;  %s8399_s25 = spop %8398 }
 0xdaf   : > { %v14011_v27 = vmul.f32 %v6351_v42, %v6345_v41  ;;  %v14013_v51 = vmul.f32 %v6351_v42, %v6346_v9  ;;  %s14015_s26 = smul.f32 0.00048828125, %s8399_s25  ;;  %s8401_s7 = spop %8400  ;;  %v6174_v41 = vpop.f32.mrf.mxu0  ;;  %v6261_v42 = vpop.f32.mrf.mxu1 }
 0xdb0   : > { %s6381_s8 = smul.f32 0.00048828125, %s8401_s7 }
 0xdb1   : > { %s6382_s9 = smul.f32 %s14015_s26, %s14015_s26 }
 0xdb3   : > { %s6383_s10 = ssub.f32 %s6381_s8, %s6382_s9 }
 0xdb5   : > { %s6387_s11 = sadd.f32 1e-05, %s6383_s10 }
 0xdb7   : > { %v6388_v2 = vstv %s6387_s11 }
 0xdb8   : > { %8573 = vrsqrt.f32 %v6388_v2  ;;  %v6278_v2 = vadd.f32 %v6172_v6, %v13901_v43  ;;  %v6280_v43 = vadd.f32 %v6261_v42, %v13931_v19  ;;  %v14063_v42 = vld [vmem:[%s15412_s2] sm:$0xff] }
 0xdb9   : > { %v6412_v26 = vpop.xlane.xlu0 %6411 }
 0xdba   : > { %v6413_v32 = vrot.slane %v6412_v26, 4 }
 0xdbc   : > { %v6414_v31 = vadd.f32 %v6413_v32, %v6412_v26  ;;  %v6279_v26 = vadd.f32 %v6174_v41, %v13903_v62 }
 0xdbd   : > { %v6424_v53 = vpop.xlane.xlu0 %6423 }
 0xdbe   : > { %v6425_v55 = vrot.slane %v6424_v53, 4  ;;  %v6415_v15 = vrot.slane %v6414_v31, 2 }
 0xdc0   : > { %v6426_v4 = vadd.f32 %v6425_v55, %v6424_v53  ;;  %v6416_v35 = vadd.f32 %v6415_v15, %v6414_v31  ;;  %v6263_v55 = vpop.f32.mrf.mxu1 }
 0xdc1   : > { %v6452_v7 = vpop.xlane.xlu0 %6451  ;;  %v6281_v62 = vadd.f32 %v6263_v55, %v13933_v25 }
 0xdc2   : > { %v6417_v17 = vrot.slane %v6416_v35, 1  ;;  %v6427_v57 = vrot.slane %v6426_v4, 2 }
 0xdc4   : > { %v6418_v22 = vadd.f32 %v6417_v17, %v6416_v35  ;;  %v6428_v49 = vadd.f32 %v6427_v57, %v6426_v4 }
 0xdc5   : > { %v8574_v21 = vpop.eup %8573  ;;  %v6464_v3 = vpop.xlane.xlu0 %6463 }
 0xdc6   : > { %8402 = vpush %v8574_v21  ;;  %v6429_v47 = vrot.slane %v6428_v49, 1  ;;  %v6384_v21 = vstv %s14015_s26 }
 0xdc7   : > { %8404 = vpush %v6418_v22 }
 0xdc8   : > { %v6430_v13 = vadd.f32 %v6429_v47, %v6428_v49  ;;  %v6385_v47 = vsub.f32 %v13935_v8, %v6384_v21  ;;  %v6453_v8 = vrot.slane %v6452_v7, 4 }
 0xdc9   : > { %v14019_v28 = vpop.xlane.xlu0 %6507 }
 0xdca   : > { %8406 = vpush %v6430_v13  ;;  %v6386_v13 = vsub.f32 %v13937_v30, %v6384_v21  ;;  %v6465_v30 = vrot.slane %v6464_v3, 4 }
 0xdcc   : > { %v6466_v41 = vadd.f32 %v6465_v30, %v6464_v3 }
 0xdcd   : > { %v14021_v33 = vpop.xlane.xlu0 %6547 }
 0xdd1   : > { %v14023_v9 = vpop.xlane.xlu0 %6559 }
 0xdd9   : > { %v6296_v32 = vpop.permute.xlu0 %6295 }
 0xdda   : > { %v14027_v31 = vadd.f32 %v6296_v32, %v6278_v2  ;;  %v14029_v53 = vadd.f32 %v6296_v32, %v6279_v26  ;;  %v14039_v57 = vadd.f32 %v6296_v32, %v6280_v43  ;;  %v14041_v22 = vadd.f32 %v6296_v32, %v6281_v62 }
 0xddc   : > { %v6602_v15 = vadd.f32 %v14029_v53, %v14027_v31  ;;  %v6612_v4 = vmul.f32 %v14027_v31, %v14027_v31  ;;  %v6613_v35 = vmul.f32 %v14029_v53, %v14029_v53  ;;  %v6642_v49 = vadd.f32 %v14041_v22, %v14039_v57 }
 0xdde   : > { %6603 = vadd.xlane.f32.xlu1 %v6602_v15  ;;  %v6614_v17 = vadd.f32 %v6613_v35, %v6612_v4  ;;  %v6652_v35 = vmul.f32 %v14039_v57, %v14039_v57 }
 0xde2   : > { %6615 = vadd.xlane.f32.xlu1 %v6614_v17 }
 0xde6   : > { %6643 = vadd.xlane.f32.xlu1 %v6642_v49 }
 0xdf7   : > { %s8403_s12 = spop %8402  ;;  %6683 = vperm.xlu1 %8539, %v13995_v56   ;;  %v6454_v56 = vadd.f32 %v6453_v8, %v6452_v7  ;;  %v6509_v8 = vrot.slane %v14019_v28, 4 }
 0xdf8   : > { %v6391_v19 = vstv %s8403_s12  ;;  %s8405_s13 = spop %8404 }
 0xdf9   : > { %v14049_v25 = vmul.f32 %v6391_v19, %v6385_v47  ;;  %v14051_v6 = vmul.f32 %v6391_v19, %v6386_v13  ;;  %s14053_s14 = smul.f32 0.00048828125, %s8405_s13  ;;  %v6455_v26 = vrot.slane %v6454_v56, 2  ;;  %v6520_v47 = vpop.xlane.xlu1 %6519 }
 0xdfb   : > { %s6438_s17 = smul.f32 %s14053_s14, %s14053_s14  ;;  %s8407_s18 = spop %8406  ;;  %8542 = vset.pattern.permute.xlu1 %v8650_v52  ;;  %v6456_v7 = vadd.f32 %v6455_v26, %v6454_v56  ;;  %v6440_v62 = vstv %s14053_s14 }
 0xdfc   : > { %s6437_s19 = smul.f32 0.00048828125, %s8407_s18  ;;  %6595 = vperm.xlu1 %8542, %v13924_v59   ;;  %v6467_v59 = vrot.slane %v6466_v41, 2  ;;  %v6441_v17 = vsub.f32 %v13947_v0, %v6440_v62  ;;  %v6442_v49 = vsub.f32 %v13949_v11, %v6440_v62  ;;  %v6521_v0 = vrot.slane %v6520_v47, 4 }
 0xdfd   : > { %v6510_v11 = vadd.f32 %v6509_v8, %v14019_v28 }
 0xdfe   : > { %s6439_s20 = ssub.f32 %s6437_s19, %s6438_s17  ;;  %v6468_v32 = vadd.f32 %v6467_v59, %v6466_v41  ;;  %v6522_v30 = vadd.f32 %v6521_v0, %v6520_v47 }
 0xdff   : > { %v6511_v41 = vrot.slane %v6510_v11, 2 }
 0xe00   : > { %s6443_s21 = sadd.f32 1e-05, %s6439_s20  ;;  %8543 = vset.pattern.permute.xlu1 %v8649_v16  ;;  %v6457_v16 = vrot.slane %v6456_v7, 1  ;;  %v6469_v3 = vrot.slane %v6468_v32, 1 }
 0xe01   : > { %6395 = vperm.xlu1 %8543, %v14063_v42   ;;  %v6512_v26 = vadd.f32 %v6511_v41, %v6510_v11 }
 0xe02   : > { %v6444_v2 = vstv %s6443_s21  ;;  %v6458_v15 = vadd.f32 %v6457_v16, %v6456_v7  ;;  %v6470_v4 = vadd.f32 %v6469_v3, %v6468_v32 }
 0xe03   : > { %8575 = vrsqrt.f32 %v6444_v2  ;;  %v6523_v2 = vrot.slane %v6522_v30, 2  ;;  %v6513_v7 = vrot.slane %v6512_v26, 1 }
 0xe05   : > { %8544 = vset.pattern.permute.xlu1 %v8650_v52  ;;  %v6653_v52 = vmul.f32 %v14041_v22, %v14041_v22  ;;  %v6524_v59 = vadd.f32 %v6523_v2, %v6522_v30  ;;  %v6514_v3 = vadd.f32 %v6513_v7, %v6512_v26 }
 0xe06   : > { %6403 = vperm.xlu1 %8544, %v14063_v42  }
 0xe07   : > { %v6654_v43 = vadd.f32 %v6653_v52, %v6652_v35  ;;  %v6525_v32 = vrot.slane %v6524_v59, 1 }
 0xe10   : > { %v8576_v55 = vpop.eup %8575 }
 0xe11   : > { %8408 = vpush %v8576_v55  ;;  %v6526_v55 = vadd.f32 %v6525_v32, %v6524_v59 }
 0xe12   : > { %8410 = vpush %v6458_v15 }
 0xe13   : > { %8412 = vpush %v6470_v4 }
 0xe2a   : > { %6655 = vadd.xlane.f32.xlu1 %v6654_v43 }
 0xe42   : > { %s8409_s26 = spop %8408 }
 0xe43   : > { %v6447_v21 = vstv %s8409_s26  ;;  %s8411_s7 = spop %8410 }
 0xe44   : > { %v14075_v13 = vmul.f32 %v6447_v21, %v6441_v17  ;;  %v14077_v19 = vmul.f32 %v6447_v21, %v6442_v49  ;;  %s14079_s8 = smul.f32 0.00048828125, %s8411_s7  ;;  %s8413_s9 = spop %8412 }
 0xe45   : > { %s6477_s10 = smul.f32 0.00048828125, %s8413_s9 }
 0xe46   : > { %s6478_s11 = smul.f32 %s14079_s8, %s14079_s8 }
 0xe48   : > { %s6479_s12 = ssub.f32 %s6477_s10, %s6478_s11 }
 0xe4a   : > { %s6483_s13 = sadd.f32 1e-05, %s6479_s12 }
 0xe4c   : > { %v6484_v56 = vstv %s6483_s13 }
 0xe4d   : > { %8577 = vrsqrt.f32 %v6484_v56 }
 0xe5a   : > { %v8578_v16 = vpop.eup %8577 }
 0xe5b   : > { %8414 = vpush %v8578_v16 }
 0xe5c   : > { %8416 = vpush %v6514_v3 }
 0xe5d   : > { %8418 = vpush %v6526_v55 }
 0xe67   : > { %v14085_v15 = vpop.xlane.xlu1 %6603 }
 0xe6b   : > { %v14087_v4 = vpop.xlane.xlu1 %6615 }
 0xe6f   : > { %v14089_v28 = vpop.xlane.xlu1 %6643 }
 0xe70   : > { %v6645_v5 = vrot.slane %v14089_v28, 4 }
 0xe73   : > { %v14091_v35 = vpop.permute.xlu1 %6683 }
 0xe77   : > { %v14093_v52 = vpop.permute.xlu1 %6595 }
 0xe7c   : > { %v6396_v43 = vpop.permute.xlu1 %6395 }
 0xe7d   : > { %v6398_v62 = vmul.f32 %v6396_v43, %v14011_v27  ;;  %v6399_v17 = vmul.f32 %v6396_v43, %v14013_v51  ;;  %v6549_v27 = vrot.slane %v14021_v33, 4  ;;  %v6561_v51 = vrot.slane %v14023_v9, 4 }
 0xe7e   : > { %v6400_v41 = vmul.f32 %v6396_v43, %v14049_v25  ;;  %v6401_v2 = vmul.f32 %v6396_v43, %v14051_v6  ;;  %v14133_v25 = vpop.permute.xlu0 %6587 }
 0xe7f   : > { %v6550_v56 = vadd.f32 %v6549_v27, %v14021_v33  ;;  %v6562_v26 = vadd.f32 %v6561_v51, %v14023_v9 }
 0xe81   : > { %v6404_v49 = vpop.permute.xlu1 %6403  ;;  %v6551_v33 = vrot.slane %v6550_v56, 2  ;;  %v6563_v6 = vrot.slane %v6562_v26, 2 }
 0xe82   : > { %v6406_v21 = vadd.f32 %v6404_v49, %v6398_v62  ;;  %v6407_v47 = vadd.f32 %v6404_v49, %v6399_v17  ;;  %v6408_v59 = vadd.f32 %v6404_v49, %v6400_v41  ;;  %v6409_v7 = vadd.f32 %v6404_v49, %v6401_v2  ;;  %v6492_v17 = vpop.permute.xlu0 %6491 }
 0xe83   : > { %v6552_v9 = vadd.f32 %v6551_v33, %v6550_v56  ;;  %v6564_v55 = vadd.f32 %v6563_v6, %v6562_v26  ;;  %v6494_v51 = vmul.f32 %v6492_v17, %v14075_v13  ;;  %v6495_v56 = vmul.f32 %v6492_v17, %v14077_v19 }
 0xe84   : > { %v6698_v8 = vmul.f32 0.2, %v6406_v21  ;;  %v6699_v0 = vmul.f32 0.2, %v6407_v47  ;;  %v6700_v16 = vmul.f32 0.2, %v6408_v59 }
 0xe85   : > { %v6701_v3 = vmul.f32 0.2, %v6409_v7  ;;  %v6553_v49 = vrot.slane %v6552_v9, 1 }
 0xe86   : > { %v14097_v11 = vmax.f32 %v6406_v21, %v6698_v8  ;;  %v14099_v30 = vmax.f32 %v6407_v47, %v6699_v0  ;;  %v14139_v43 = vmax.f32 %v6408_v59, %v6700_v16  ;;  %v6565_v21 = vrot.slane %v6564_v55, 1  ;;  %v14151_v0 = vpop.permute.xlu0 %6691 }
 0xe87   : > { %v14141_v62 = vmax.f32 %v6409_v7, %v6701_v3  ;;  %v6554_v8 = vadd.f32 %v6553_v49, %v6552_v9 }
 0xe88   : > { %7127 = vrot.lane.b32.xlu0 %v14099_v30, %s8630_s29  ;;  %7119 = vrot.lane.b32.xlu1 %v14097_v11, %s8630_s29  ;;  %v6566_v27 = vadd.f32 %v6565_v21, %v6564_v55 }
 0xe8a   : > { %v6500_v41 = vpop.permute.xlu0 %6499 }
 0xe8b   : > { %v6502_v2 = vadd.f32 %v6500_v41, %v6494_v51  ;;  %v6503_v26 = vadd.f32 %v6500_v41, %v6495_v56 }
 0xe8c   : > { %s14105_s14 = spop %8414  ;;  %7031 = vrot.lane.b32.xlu0 %v14099_v30, %s8627_s28  ;;  %7023 = vrot.lane.b32.xlu1 %v14097_v11, %s8627_s28 }
 0xe8d   : > { %s8417_s17 = spop %8416  ;;  %v6702_v13 = vmul.f32 0.2, %v6502_v2  ;;  %v6703_v59 = vmul.f32 0.2, %v6503_v26  ;;  %v6487_v33 = vstv %s14105_s14 }
 0xe8e   : > { %s14111_s18 = smul.f32 0.00048828125, %s8417_s17  ;;  %s8419_s19 = spop %8418 }
 0xe8f   : > { %s6533_s20 = smul.f32 0.00048828125, %s8419_s19  ;;  %v14171_v19 = vmax.f32 %v6502_v2, %v6702_v13  ;;  %v14173_v7 = vmax.f32 %v6503_v26, %v6703_v59  ;;  %v6617_v59 = vrot.slane %v14087_v4, 4 }
 0xe90   : > { %s6534_s21 = smul.f32 %s14111_s18, %s14111_s18  ;;  %6898 = vrot.lane.b32.xlu0 %v14099_v30, %s8625_s27  ;;  %6890 = vrot.lane.b32.xlu1 %v14097_v11, %s8625_s27 }
 0xe92   : > { %s6535_s22 = ssub.f32 %s6533_s20, %s6534_s21 }
 0xe94   : > { %s6539_s25 = sadd.f32 1e-05, %s6535_s22  ;;  %6818 = vrot.lane.b32.xlu0 %v14099_v30, %s8624_s24  ;;  %6810 = vrot.lane.b32.xlu1 %v14097_v11, %s8624_s24 }
 0xe96   : > { %v6540_v32 = vstv %s6539_s25 }
 0xe97   : > { %8579 = vrsqrt.f32 %v6540_v32  ;;  %v6480_v32 = vstv %s14079_s8 }
 0xe98   : > { %6738 = vrot.lane.b32.xlu0 %v14099_v30, %s8623_s23  ;;  %6730 = vrot.lane.b32.xlu1 %v14097_v11, %s8623_s23  ;;  %v6481_v6 = vsub.f32 %v13963_v24, %v6480_v32  ;;  %v6482_v16 = vsub.f32 %v13969_v29, %v6480_v32 }
 0xe9a   : > { %v6488_v3 = vmul.f32 %v6487_v33, %v6481_v6  ;;  %v6489_v9 = vmul.f32 %v6487_v33, %v6482_v16  ;;  %v6618_v16 = vadd.f32 %v6617_v59, %v14087_v4 }
 0xe9c   : > { %7776 = vrot.lane.b32.xlu0 %v14099_v30, %s8636_s6  ;;  %7768 = vrot.lane.b32.xlu1 %v14097_v11, %s8636_s6  ;;  %v6496_v55 = vmul.f32 %v6492_v17, %v6488_v3  ;;  %v6497_v49 = vmul.f32 %v6492_v17, %v6489_v9 }
 0xe9e   : > { %v6504_v24 = vadd.f32 %v6500_v41, %v6496_v55  ;;  %v6505_v29 = vadd.f32 %v6500_v41, %v6497_v49 }
 0xea0   : > { %7143 = vrot.lane.b32.xlu0 %v14141_v62, %s8630_s29  ;;  %7135 = vrot.lane.b32.xlu1 %v14139_v43, %s8630_s29  ;;  %v6704_v21 = vmul.f32 0.2, %v6504_v24 }
 0xea2   : > { %v14203_v17 = vmax.f32 %v6504_v24, %v6704_v21  ;;  %v6619_v24 = vrot.slane %v6618_v16, 2 }
 0xea4   : > { %v8580_v47 = vpop.eup %8579  ;;  %7047 = vrot.lane.b32.xlu0 %v14141_v62, %s8627_s28  ;;  %7039 = vrot.lane.b32.xlu1 %v14139_v43, %s8627_s28  ;;  %v6620_v21 = vadd.f32 %v6619_v24, %v6618_v16 }
 0xea5   : > { %8420 = vpush %v8580_v47  ;;  %v6705_v47 = vmul.f32 0.2, %v6505_v29 }
 0xea6   : > { %8422 = vpush %v6554_v8 }
 0xea7   : > { %8424 = vpush %v6566_v27  ;;  %v14205_v8 = vmax.f32 %v6505_v29, %v6705_v47  ;;  %v6536_v27 = vstv %s14111_s18 }
 0xea8   : > { %6914 = vrot.lane.b32.xlu0 %v14141_v62, %s8625_s27  ;;  %6906 = vrot.lane.b32.xlu1 %v14139_v43, %s8625_s27  ;;  %v6537_v51 = vsub.f32 %v13959_v34, %v6536_v27  ;;  %v6538_v56 = vsub.f32 %v13961_v18, %v6536_v27  ;;  %v6605_v34 = vrot.slane %v14085_v15, 4  ;;  %v6621_v27 = vrot.slane %v6620_v21, 1 }
 0xeaa   : > { %v6606_v32 = vadd.f32 %v6605_v34, %v14085_v15 }
 0xeac   : > { %6834 = vrot.lane.b32.xlu0 %v14141_v62, %s8624_s24  ;;  %6826 = vrot.lane.b32.xlu1 %v14139_v43, %s8624_s24  ;;  %v6607_v49 = vrot.slane %v6606_v32, 2 }
 0xeae   : > { %v6608_v29 = vadd.f32 %v6607_v49, %v6606_v32 }
 0xeb0   : > { %6754 = vrot.lane.b32.xlu0 %v14141_v62, %s8623_s23  ;;  %6746 = vrot.lane.b32.xlu1 %v14139_v43, %s8623_s23  ;;  %v6609_v47 = vrot.slane %v6608_v29, 1 }
 0xeb4   : > { %7792 = vrot.lane.b32.xlu0 %v14141_v62, %s8636_s6  ;;  %7784 = vrot.lane.b32.xlu1 %v14139_v43, %s8636_s6 }
 0xeb8   : > { %7129 = vrot.lane.b32.xlu0 %v14173_v7, %s8630_s29  ;;  %7121 = vrot.lane.b32.xlu1 %v14171_v19, %s8630_s29 }
 0xebc   : > { %7033 = vrot.lane.b32.xlu0 %v14173_v7, %s8627_s28  ;;  %7025 = vrot.lane.b32.xlu1 %v14171_v19, %s8627_s28 }
 0xec0   : > { %6900 = vrot.lane.b32.xlu0 %v14173_v7, %s8625_s27  ;;  %6892 = vrot.lane.b32.xlu1 %v14171_v19, %s8625_s27 }
 0xec4   : > { %6820 = vrot.lane.b32.xlu0 %v14173_v7, %s8624_s24  ;;  %6812 = vrot.lane.b32.xlu1 %v14171_v19, %s8624_s24 }
 0xec8   : > { %6740 = vrot.lane.b32.xlu0 %v14173_v7, %s8623_s23  ;;  %6732 = vrot.lane.b32.xlu1 %v14171_v19, %s8623_s23 }
 0xecc   : > { %7778 = vrot.lane.b32.xlu0 %v14173_v7, %s8636_s6  ;;  %7770 = vrot.lane.b32.xlu1 %v14171_v19, %s8636_s6 }
 0xed0   : > { %7145 = vrot.lane.b32.xlu0 %v14205_v8, %s8630_s29  ;;  %7137 = vrot.lane.b32.xlu1 %v14203_v17, %s8630_s29 }
 0xed4   : > { %7049 = vrot.lane.b32.xlu0 %v14205_v8, %s8627_s28  ;;  %7041 = vrot.lane.b32.xlu1 %v14203_v17, %s8627_s28 }
 0xed6   : > { %s8421_s26 = spop %8420 }
 0xed7   : > { %v6543_v41 = vstv %s8421_s26  ;;  %s8423_s7 = spop %8422 }
 0xed8   : > { %v6544_v2 = vmul.f32 %v6543_v41, %v6537_v51  ;;  %v6545_v26 = vmul.f32 %v6543_v41, %v6538_v56  ;;  %s14218_s8 = smul.f32 0.00048828125, %s8423_s7  ;;  %s8425_s9 = spop %8424  ;;  %6916 = vrot.lane.b32.xlu0 %v14205_v8, %s8625_s27  ;;  %6908 = vrot.lane.b32.xlu1 %v14203_v17, %s8625_s27  ;;  %v6610_v56 = vadd.f32 %v6609_v47, %v6608_v29 }
 0xed9   : > { %s6573_s10 = smul.f32 0.00048828125, %s8425_s9  ;;  %v6622_v41 = vadd.f32 %v6621_v27, %v6620_v21 }
 0xeda   : > { %v6590_v18 = vmul.f32 %v14133_v25, %v6544_v2  ;;  %v6591_v13 = vmul.f32 %v14133_v25, %v6545_v26  ;;  %s6574_s11 = smul.f32 %s14218_s8, %s14218_s8  ;;  %v6656_v2 = vpop.xlane.xlu1 %6655 }
 0xedc   : > { %s6575_s12 = ssub.f32 %s6573_s10, %s6574_s11  ;;  %6836 = vrot.lane.b32.xlu0 %v14205_v8, %s8624_s24  ;;  %6828 = vrot.lane.b32.xlu1 %v14203_v17, %s8624_s24  ;;  %v6598_v33 = vadd.f32 %v14093_v52, %v6590_v18  ;;  %v6599_v6 = vadd.f32 %v14093_v52, %v6591_v13 }
 0xede   : > { %s6579_s13 = sadd.f32 1e-05, %s6575_s12  ;;  %v6706_v9 = vmul.f32 0.2, %v6598_v33  ;;  %v6707_v55 = vmul.f32 0.2, %v6599_v6 }
 0xee0   : > { %v6580_v3 = vstv %s6579_s13  ;;  %6756 = vrot.lane.b32.xlu0 %v14205_v8, %s8623_s23  ;;  %6748 = vrot.lane.b32.xlu1 %v14203_v17, %s8623_s23  ;;  %v14246_v15 = vmax.f32 %v6598_v33, %v6706_v9  ;;  %v14248_v4 = vmax.f32 %v6599_v6, %v6707_v55 }
 0xee1   : > { %8581 = vrsqrt.f32 %v6580_v3 }
 0xee4   : > { %7794 = vrot.lane.b32.xlu0 %v14205_v8, %s8636_s6  ;;  %7786 = vrot.lane.b32.xlu1 %v14203_v17, %s8636_s6 }
 0xee8   : > { %7131 = vrot.lane.b32.xlu0 %v14248_v4, %s8630_s29  ;;  %7123 = vrot.lane.b32.xlu1 %v14246_v15, %s8630_s29 }
 0xeec   : > { %7035 = vrot.lane.b32.xlu0 %v14248_v4, %s8627_s28  ;;  %7027 = vrot.lane.b32.xlu1 %v14246_v15, %s8627_s28 }
 0xeee   : > { %v8582_v51 = vpop.eup %8581 }
 0xeef   : > { %8426 = vpush %v8582_v51  ;;  %v6576_v51 = vstv %s14218_s8 }
 0xef0   : > { %8428 = vpush %v6610_v56  ;;  %6902 = vrot.lane.b32.xlu0 %v14248_v4, %s8625_s27  ;;  %6894 = vrot.lane.b32.xlu1 %v14246_v15, %s8625_s27  ;;  %v6577_v10 = vsub.f32 %v13981_v50, %v6576_v51  ;;  %v6578_v39 = vsub.f32 %v13983_v61, %v6576_v51  ;;  %v6657_v51 = vrot.slane %v6656_v2, 4 }
 0xef1   : > { %8430 = vpush %v6622_v41 }
 0xef4   : > { %6822 = vrot.lane.b32.xlu0 %v14248_v4, %s8624_s24  ;;  %6814 = vrot.lane.b32.xlu1 %v14246_v15, %s8624_s24 }
 0xef8   : > { %6742 = vrot.lane.b32.xlu0 %v14248_v4, %s8623_s23  ;;  %6734 = vrot.lane.b32.xlu1 %v14246_v15, %s8623_s23 }
 0xefa   : > { %v14270_v26 = vpop.permute.xlu1 %7119  ;;  %v14272_v34 = vpop.permute.xlu0 %7127 }
 0xefc   : > { %7780 = vrot.lane.b32.xlu0 %v14248_v4, %s8636_s6  ;;  %7772 = vrot.lane.b32.xlu1 %v14246_v15, %s8636_s6 }
 0xefe   : > { %v14278_v18 = vpop.permute.xlu1 %7023  ;;  %v14280_v13 = vpop.permute.xlu0 %7031 }
 0xf00   : > { %7700 = vrot.lane.b32.xlu0 %v14248_v4, %s8634_s5  ;;  %7692 = vrot.lane.b32.xlu1 %v14246_v15, %s8634_s5 }
 0xf02   : > { %v14286_v59 = vpop.permute.xlu1 %6890  ;;  %v14288_v32 = vpop.permute.xlu0 %6898 }
 0xf06   : > { %v14290_v33 = vpop.permute.xlu1 %6810  ;;  %v14292_v6 = vpop.permute.xlu0 %6818 }
 0xf07   : > { %16320 = vst [vmem:[#allocation70_spill] sm:$0xff] %v14290_v33  ;;  %16321 = vst [vmem:[#allocation68_spill] sm:$0xff] %v14292_v6 }
 0xf0a   : > { %v14294_v16 = vpop.permute.xlu1 %6730  ;;  %v14296_v3 = vpop.permute.xlu0 %6738 }
 0xf0b   : > { %16322 = vst [vmem:[#allocation17_spill] sm:$0xff] %v14294_v16  ;;  %16323 = vst [vmem:[#allocation43_spill] sm:$0xff] %v14296_v3 }
 0xf0e   : > { %v14298_v9 = vpop.permute.xlu1 %7768  ;;  %v14300_v55 = vpop.permute.xlu0 %7776 }
 0xf0f   : > { %16324 = vst [vmem:[#allocation65_spill] sm:$0xff] %v14298_v9  ;;  %16325 = vst [vmem:[#allocation69_spill] sm:$0xff] %v14300_v55 }
 0xf12   : > { %v14302_v49 = vpop.permute.xlu1 %7135  ;;  %v14304_v24 = vpop.permute.xlu0 %7143 }
 0xf16   : > { %v14306_v29 = vpop.permute.xlu1 %7039  ;;  %v14308_v21 = vpop.permute.xlu0 %7047 }
 0xf1a   : > { %v14310_v47 = vpop.permute.xlu1 %6906  ;;  %v14312_v27 = vpop.permute.xlu0 %6914 }
 0xf1b   : > { %16326 = vst [vmem:[#allocation33_spill] sm:$0xff] %v14310_v47  ;;  %16327 = vst [vmem:[#allocation29_spill] sm:$0xff] %v14312_v27 }
 0xf1e   : > { %v14315_v56 = vpop.permute.xlu1 %6826  ;;  %v14317_v41 = vpop.permute.xlu0 %6834 }
 0xf1f   : > { %16328 = vst [vmem:[#allocation7_spill] sm:$0xff] %v14315_v56  ;;  %16329 = vst [vmem:[#allocation54_spill] sm:$0xff] %v14317_v41 }
 0xf20   : > { %s8427_s14 = spop %8426 }
 0xf21   : > { %v6583_v46 = vstv %s8427_s14  ;;  %s8429_s17 = spop %8428 }
 0xf22   : > { %v6584_v48 = vmul.f32 %v6583_v46, %v6577_v10  ;;  %v6585_v38 = vmul.f32 %v6583_v46, %v6578_v39  ;;  %s14321_s18 = smul.f32 0.00048828125, %s8429_s17  ;;  %s8431_s19 = spop %8430  ;;  %v14323_v44 = vpop.permute.xlu1 %6746  ;;  %v14325_v63 = vpop.permute.xlu0 %6754 }
 0xf23   : > { %16330 = vst [vmem:[#allocation34_spill] sm:$0xff] %v14323_v44  ;;  %16331 = vst [vmem:[#allocation66_spill] sm:$0xff] %v14325_v63  ;;  %s6629_s20 = smul.f32 0.00048828125, %s8431_s19  ;;  %v6646_v63 = vadd.f32 %v6645_v5, %v14089_v28 }
 0xf24   : > { %v6592_v50 = vmul.f32 %v14133_v25, %v6584_v48  ;;  %v6593_v61 = vmul.f32 %v14133_v25, %v6585_v38  ;;  %s6630_s21 = smul.f32 %s14321_s18, %s14321_s18  ;;  %v6658_v48 = vadd.f32 %v6657_v51, %v6656_v2 }
 0xf25   : > { %v6647_v5 = vrot.slane %v6646_v63, 2 }
 0xf26   : > { %v6600_v10 = vadd.f32 %v14093_v52, %v6592_v50  ;;  %v6601_v46 = vadd.f32 %v14093_v52, %v6593_v61  ;;  %s6631_s22 = ssub.f32 %s6629_s20, %s6630_s21  ;;  %v14334_v39 = vpop.permute.xlu1 %7784  ;;  %v14336_v44 = vpop.permute.xlu0 %7792  ;;  %v6659_v28 = vrot.slane %v6658_v48, 2 }
 0xf27   : > { %16332 = vst [vmem:[#allocation11_spill] sm:$0xff] %v14334_v39  ;;  %16333 = vst [vmem:[#allocation45_spill] sm:$0xff] %v14336_v44 }
 0xf28   : > { %v6708_v9 = vmul.f32 0.2, %v6600_v10  ;;  %v6709_v55 = vmul.f32 0.2, %v6601_v46  ;;  %s6635_s25 = sadd.f32 1e-05, %s6631_s22 }
 0xf2a   : > { %v14339_v16 = vmax.f32 %v6600_v10, %v6708_v9  ;;  %v14341_v38 = vmax.f32 %v6601_v46, %v6709_v55  ;;  %v6636_v25 = vstv %s6635_s25  ;;  %v14343_v3 = vpop.permute.xlu1 %7121  ;;  %v14345_v50 = vpop.permute.xlu0 %7129  ;;  %v6648_v9 = vadd.f32 %v6647_v5, %v6646_v63 }
 0xf2b   : > { %8583 = vrsqrt.f32 %v6636_v25  ;;  %v6660_v55 = vadd.f32 %v6659_v28, %v6658_v48 }
 0xf2c   : > { %7147 = vrot.lane.b32.xlu0 %v14341_v38, %s8630_s29  ;;  %7139 = vrot.lane.b32.xlu1 %v14339_v16, %s8630_s29  ;;  %v6649_v10 = vrot.slane %v6648_v9, 1 }
 0xf2d   : > { %v6661_v46 = vrot.slane %v6660_v55, 1 }
 0xf2e   : > { %v14351_v52 = vpop.permute.xlu1 %7025  ;;  %v14353_v2 = vpop.permute.xlu0 %7033  ;;  %v6650_v36 = vadd.f32 %v6649_v10, %v6648_v9 }
 0xf2f   : > { %v6662_v63 = vadd.f32 %v6661_v46, %v6660_v55 }
 0xf30   : > { %7051 = vrot.lane.b32.xlu0 %v14341_v38, %s8627_s28  ;;  %7043 = vrot.lane.b32.xlu1 %v14339_v16, %s8627_s28 }
 0xf32   : > { %v14359_v61 = vpop.permute.xlu1 %6892  ;;  %v14361_v51 = vpop.permute.xlu0 %6900 }
 0xf33   : > { %16334 = vst [vmem:[#allocation32_spill] sm:$0xff] %v14359_v61  ;;  %16335 = vst [vmem:[#allocation67_spill] sm:$0xff] %v14361_v51 }
 0xf34   : > { %6918 = vrot.lane.b32.xlu0 %v14341_v38, %s8625_s27  ;;  %6910 = vrot.lane.b32.xlu1 %v14339_v16, %s8625_s27 }
 0xf36   : > { %v14367_v25 = vpop.permute.xlu1 %6812  ;;  %v14369_v44 = vpop.permute.xlu0 %6820 }
 0xf37   : > { %16336 = vst [vmem:[#allocation18_spill] sm:$0xff] %v14367_v25  ;;  %16337 = vst [vmem:[#allocation39_spill] sm:$0xff] %v14369_v44 }
 0xf38   : > { %v8584_v39 = vpop.eup %8583  ;;  %6838 = vrot.lane.b32.xlu0 %v14341_v38, %s8624_s24  ;;  %6830 = vrot.lane.b32.xlu1 %v14339_v16, %s8624_s24 }
 0xf39   : > { %8432 = vpush %v8584_v39 }
 0xf3a   : > { %8434 = vpush %v6650_v36  ;;  %v6733_v48 = vpop.permute.xlu1 %6732  ;;  %v6741_v5 = vpop.permute.xlu0 %6740 }
 0xf3b   : > { %8436 = vpush %v6662_v63  ;;  %v14377_v28 = vsel %vm239_vm1, %v6733_v48, %v6741_v5 }
 0xf3c   : > { %16338 = vst [vmem:[#allocation16_spill] sm:$0xff] %v14377_v28  ;;  %6758 = vrot.lane.b32.xlu0 %v14341_v38, %s8623_s23  ;;  %6750 = vrot.lane.b32.xlu1 %v14339_v16, %s8623_s23 }
 0xf3e   : > { %v7771_v9 = vpop.permute.xlu1 %7770  ;;  %v7779_v10 = vpop.permute.xlu0 %7778 }
 0xf3f   : > { %v14385_v39 = vsel %vm894_vm7, %v7771_v9, %v7779_v10 }
 0xf40   : > { %16339 = vst [vmem:[#allocation63_spill] sm:$0xff] %v14385_v39  ;;  %7796 = vrot.lane.b32.xlu0 %v14341_v38, %s8636_s6  ;;  %7788 = vrot.lane.b32.xlu1 %v14339_v16, %s8636_s6 }
 0xf42   : > { %v14391_v36 = vpop.permute.xlu1 %7137  ;;  %v14393_v55 = vpop.permute.xlu0 %7145 }
 0xf43   : > { %v14399_v46 = vsel %vm627_vm4, %v14391_v36, %v14393_v55 }
 0xf44   : > { %7716 = vrot.lane.b32.xlu0 %v14341_v38, %s8634_s5  ;;  %7708 = vrot.lane.b32.xlu1 %v14339_v16, %s8634_s5 }
 0xf46   : > { %v14405_v63 = vpop.permute.xlu1 %7041  ;;  %v14407_v39 = vpop.permute.xlu0 %7049 }
 0xf47   : > { %16340 = vst [vmem:[#allocation24_spill] sm:$0xff] %v14407_v39  ;;  %v14413_v28 = vsel %vm490_vm3, %v14405_v63, %v14407_v39 }
 0xf48   : > { %16341 = vst [vmem:[#allocation59_spill] sm:$0xff] %v14413_v28 }
 0xf4a   : > { %v14415_v37 = vpop.permute.xlu1 %6908  ;;  %v14417_v54 = vpop.permute.xlu0 %6916 }
 0xf4b   : > { %16342 = vst [vmem:[#allocation20_spill] sm:$0xff] %v14415_v37  ;;  %16343 = vst [vmem:[#allocation35_spill] sm:$0xff] %v14417_v54  ;;  %v14423_v41 = vsel %vm401_vm2, %v14415_v37, %v14417_v54 }
 0xf4c   : > { %16344 = vst [vmem:[#allocation47_spill] sm:$0xff] %v14423_v41 }
 0xf4e   : > { %v6829_v56 = vpop.permute.xlu1 %6828  ;;  %v14425_v25 = vpop.permute.xlu0 %6836 }
 0xf4f   : > { %16345 = vst [vmem:[#allocation21_spill] sm:$0xff] %v14425_v25  ;;  %v14430_v33 = vsel %vm308_vm0, %v14369_v44, %v6829_v56  ;;  %v14435_v6 = vsel %vm308_vm0, %v6829_v56, %v14425_v25 }
 0xf50   : > { %16346 = vst [vmem:[#allocation71_spill] sm:$0xff] %v14430_v33  ;;  %16347 = vst [vmem:[#allocation38_spill] sm:$0xff] %v14435_v6 }
 0xf52   : > { %v6749_v60 = vpop.permute.xlu1 %6748  ;;  %v6757_v23 = vpop.permute.xlu0 %6756 }
 0xf53   : > { %v14439_v61 = vsel %vm239_vm1, %v6741_v5, %v6749_v60  ;;  %v14443_v41 = vsel %vm239_vm1, %v6749_v60, %v6757_v23  ;;  %v14447_v54 = vsel %vm239_vm1, %v6757_v23, %v6733_v48  ;;  %v6632_v60 = vstv %s14321_s18 }
 0xf54   : > { %16348 = vst [vmem:[#allocation27_spill] sm:$0xff] %v14439_v61  ;;  %16349 = vst [vmem:[#allocation64_spill] sm:$0xff] %v14443_v41  ;;  %v6633_v41 = vsub.f32 %v14027_v31, %v6632_v60  ;;  %v6634_v23 = vsub.f32 %v14029_v53, %v6632_v60 }
 0xf55   : > { %16350 = vst [vmem:[#allocation31_spill] sm:$0xff] %v14447_v54 }
 0xf56   : > { %v7787_v33 = vpop.permute.xlu1 %7786  ;;  %v7795_v44 = vpop.permute.xlu0 %7794 }
 0xf57   : > { %v14451_v56 = vsel %vm894_vm7, %v7779_v10, %v7787_v33  ;;  %v14455_v6 = vsel %vm894_vm7, %v7787_v33, %v7795_v44  ;;  %v14459_v5 = vsel %vm894_vm7, %v7795_v44, %v7771_v9 }
 0xf58   : > { %16351 = vst [vmem:[#allocation50_spill] sm:$0xff] %v14451_v56  ;;  %16352 = vst [vmem:[#allocation37_spill] sm:$0xff] %v14455_v6 }
 0xf59   : > { %16353 = vst [vmem:[#allocation41_spill] sm:$0xff] %v14459_v5 }
 0xf6a   : > { %s8433_s26 = spop %8432 }
 0xf6b   : > { %v6639_v48 = vstv %s8433_s26  ;;  %s8435_s7 = spop %8434 }
 0xf6c   : > { %v6640_v54 = vmul.f32 %v6639_v48, %v6633_v41  ;;  %v6641_v61 = vmul.f32 %v6639_v48, %v6634_v23  ;;  %s14464_s8 = smul.f32 0.00048828125, %s8435_s7  ;;  %s8437_s9 = spop %8436  ;;  %v14476_v48 = vpop.permute.xlu1 %7123 }
 0xf6d   : > { %s6669_s10 = smul.f32 0.00048828125, %s8437_s9 }
 0xf6e   : > { %v6686_v33 = vmul.f32 %v14091_v35, %v6640_v54  ;;  %v6687_v44 = vmul.f32 %v14091_v35, %v6641_v61  ;;  %s6670_s11 = smul.f32 %s14464_s8, %s14464_s8  ;;  %v14478_v54 = vpop.permute.xlu0 %7131 }
 0xf70   : > { %v6694_v31 = vadd.f32 %v14151_v0, %v6686_v33  ;;  %v6695_v53 = vadd.f32 %v14151_v0, %v6687_v44  ;;  %s6671_s12 = ssub.f32 %s6669_s10, %s6670_s11  ;;  %v14488_v61 = vpop.permute.xlu1 %7027 }
 0xf72   : > { %v6710_v9 = vmul.f32 0.2, %v6694_v31  ;;  %v6711_v10 = vmul.f32 0.2, %v6695_v53  ;;  %s6675_s13 = sadd.f32 1e-05, %s6671_s12  ;;  %v14490_v33 = vpop.permute.xlu0 %7035 }
 0xf74   : > { %v14472_v41 = vmax.f32 %v6694_v31, %v6710_v9  ;;  %v14474_v60 = vmax.f32 %v6695_v53, %v6711_v10  ;;  %v6676_v23 = vstv %s6675_s13  ;;  %v14496_v31 = vpop.permute.xlu1 %6894 }
 0xf75   : > { %8585 = vrsqrt.f32 %v6676_v23  ;;  %16354 = vst [vmem:[#allocation58_spill] sm:$0xff] %v14496_v31 }
 0xf76   : > { %7133 = vrot.lane.b32.xlu0 %v14474_v60, %s8630_s29  ;;  %7125 = vrot.lane.b32.xlu1 %v14472_v41, %s8630_s29  ;;  %v14498_v53 = vpop.permute.xlu0 %6902 }
 0xf77   : > { %16355 = vst [vmem:[#allocation4_spill] sm:$0xff] %v14498_v53 }
 0xf78   : > { %v14508_v9 = vpop.permute.xlu1 %6814 }
 0xf79   : > { %16356 = vst [vmem:[#allocation36_spill] sm:$0xff] %v14508_v9 }
 0xf7a   : > { %7037 = vrot.lane.b32.xlu0 %v14474_v60, %s8627_s28  ;;  %7029 = vrot.lane.b32.xlu1 %v14472_v41, %s8627_s28  ;;  %v14510_v10 = vpop.permute.xlu0 %6822 }
 0xf7b   : > { %16357 = vst [vmem:[#allocation30_spill] sm:$0xff] %v14510_v10 }
 0xf7c   : > { %v14516_v23 = vpop.permute.xlu1 %6734 }
 0xf7d   : > { %16358 = vst [vmem:[#allocation60_spill] sm:$0xff] %v14516_v23 }
 0xf7e   : > { %6904 = vrot.lane.b32.xlu0 %v14474_v60, %s8625_s27  ;;  %6896 = vrot.lane.b32.xlu1 %v14472_v41, %s8625_s27  ;;  %v14518_v6 = vpop.permute.xlu0 %6742 }
 0xf7f   : > { %16359 = vst [vmem:[#allocation72_spill] sm:$0xff] %v14518_v6 }
 0xf82   : > { %v8586_v44 = vpop.eup %8585  ;;  %6824 = vrot.lane.b32.xlu0 %v14474_v60, %s8624_s24  ;;  %6816 = vrot.lane.b32.xlu1 %v14472_v41, %s8624_s24  ;;  %v14526_v5 = vpop.permute.xlu0 %7780 }
 0xf83   : > { %8438 = vpush %v8586_v44  ;;  %v14524_v44 = vpop.permute.xlu1 %7772  ;;  %16361 = vst [vmem:[#allocation73_spill] sm:$0xff] %v14526_v5 }
 0xf84   : > { %16360 = vst [vmem:[#allocation42_spill] sm:$0xff] %v14524_v44 }
 0xf86   : > { %6744 = vrot.lane.b32.xlu0 %v14474_v60, %s8623_s23  ;;  %6736 = vrot.lane.b32.xlu1 %v14472_v41, %s8623_s23  ;;  %v14530_v25 = vpop.permute.xlu0 %7700 }
 0xf87   : > { %v14528_v56 = vpop.permute.xlu1 %7692  ;;  %16363 = vst [vmem:[#allocation75_spill] sm:$0xff] %v14530_v25 }
 0xf88   : > { %16362 = vst [vmem:[#allocation74_spill] sm:$0xff] %v14528_v56 }
 0xf8a   : > { %7782 = vrot.lane.b32.xlu0 %v14474_v60, %s8636_s6  ;;  %7774 = vrot.lane.b32.xlu1 %v14472_v41, %s8636_s6 }
 0xf8e   : > { %7702 = vrot.lane.b32.xlu0 %v14474_v60, %s8634_s5  ;;  %7694 = vrot.lane.b32.xlu1 %v14472_v41, %s8634_s5 }
 0xf9e   : > { %v14532_v9 = vpop.permute.xlu1 %7139  ;;  %v14534_v23 = vpop.permute.xlu0 %7147 }
 0xfa2   : > { %v14536_v6 = vpop.permute.xlu1 %7043  ;;  %v14538_v10 = vpop.permute.xlu0 %7051 }
 0xfa3   : > { %v14544_v44 = vsel %vm490_vm3, %v14536_v6, %v14538_v10 }
 0xfa4   : > { %16364 = vst [vmem:[#allocation76_spill] sm:$0xff] %v14544_v44 }
 0xfa6   : > { %v14546_v5 = vpop.permute.xlu1 %6910  ;;  %v14548_v56 = vpop.permute.xlu0 %6918 }
 0xfa7   : > { %16365 = vst [vmem:[#allocation77_spill] sm:$0xff] %v14546_v5  ;;  %16366 = vst [vmem:[#allocation78_spill] sm:$0xff] %v14548_v56  ;;  %v14554_v25 = vsel %vm401_vm2, %v14546_v5, %v14548_v56 }
 0xfa8   : > { %16367 = vst [vmem:[#allocation79_spill] sm:$0xff] %v14554_v25  ;;  %v6672_v25 = vstv %s14464_s8 }
 0xfaa   : > { %v14556_v37 = vpop.permute.xlu1 %6830  ;;  %v14558_v51 = vpop.permute.xlu0 %6838 }
 0xfab   : > { %16368 = vst [vmem:[#allocation80_spill] sm:$0xff] %v14556_v37  ;;  %16369 = vst [vmem:[#allocation81_spill] sm:$0xff] %v14558_v51  ;;  %v14564_v58 = vsel %vm308_vm0, %v14556_v37, %v14558_v51  ;;  %v6673_v51 = vsub.f32 %v14039_v57, %v6672_v25  ;;  %v6674_v37 = vsub.f32 %v14041_v22, %v6672_v25 }
 0xfac   : > { %16370 = vst [vmem:[#allocation82_spill] sm:$0xff] %v14564_v58 }
 0xfae   : > { %v14566_v45 = vpop.permute.xlu1 %6750  ;;  %v14568_v31 = vpop.permute.xlu0 %6758 }
 0xfaf   : > { %16371 = vst [vmem:[#allocation83_spill] sm:$0xff] %v14566_v45  ;;  %16372 = vst [vmem:[#allocation84_spill] sm:$0xff] %v14568_v31  ;;  %v14574_v56 = vsel %vm239_vm1, %v14566_v45, %v14568_v31 }
 0xfb0   : > { %16373 = vst [vmem:[#allocation85_spill] sm:$0xff] %v14574_v56 }
 0xfb2   : > { %v14577_v5 = vpop.permute.xlu1 %7788  ;;  %v14579_v53 = vpop.permute.xlu0 %7796 }
 0xfb3   : > { %16374 = vst [vmem:[#allocation86_spill] sm:$0xff] %v14577_v5  ;;  %16375 = vst [vmem:[#allocation87_spill] sm:$0xff] %v14579_v53  ;;  %v14585_v58 = vsel %vm894_vm7, %v14577_v5, %v14579_v53  ;;  %v8651_v5 = vmov 13  }
 0xfb4   : > { %16376 = vst [vmem:[#allocation88_spill] sm:$0xff] %v14585_v58  ;;  %s8439_s14 = spop %8438  ;;  %8545 = vset.pattern.permute.xlu1 %v8651_v5  ;;  %8546 = vset.pattern.permute.xlu0 %v8651_v5  ;;  %v7161_v5 = vsel %vm627_vm4, %v14476_v48, %v14478_v54 }
 0xfb5   : > { %v6679_v27 = vstv %s8439_s14 }
 0xfb6   : > { %v6680_v28 = vmul.f32 %v6679_v27, %v6673_v51  ;;  %v6681_v31 = vmul.f32 %v6679_v27, %v6674_v37  ;;  %v14589_v56 = vpop.permute.xlu1 %7708  ;;  %v14591_v45 = vpop.permute.xlu0 %7716 }
 0xfb7   : > { %16377 = vst [vmem:[#allocation89_spill] sm:$0xff] %v14589_v56  ;;  %16378 = vst [vmem:[#allocation90_spill] sm:$0xff] %v14591_v45  ;;  %v14597_v47 = vsel %vm805_vm6, %v14589_v56, %v14591_v45 }
 0xfb8   : > { %16379 = vst [vmem:[#allocation91_spill] sm:$0xff] %v14597_v47  ;;  %v6688_v58 = vmul.f32 %v14091_v35, %v6680_v28  ;;  %v6689_v57 = vmul.f32 %v14091_v35, %v6681_v31 }
 0xfba   : > { %v6696_v22 = vadd.f32 %v14151_v0, %v6688_v58  ;;  %v6697_v25 = vadd.f32 %v14151_v0, %v6689_v57 }
 0xfbc   : > { %v6712_v51 = vmul.f32 0.2, %v6696_v22  ;;  %v6713_v37 = vmul.f32 0.2, %v6697_v25 }
 0xfbe   : > { %v14603_v27 = vmax.f32 %v6696_v22, %v6712_v51  ;;  %v14605_v53 = vmax.f32 %v6697_v25, %v6713_v37 }
 0xfc0   : > { %7149 = vrot.lane.b32.xlu0 %v14605_v53, %s8630_s29  ;;  %7141 = vrot.lane.b32.xlu1 %v14603_v27, %s8630_s29 }
 0xfc4   : > { %7698 = vrot.lane.b32.xlu0 %v14173_v7, %s8634_s5  ;;  %7690 = vrot.lane.b32.xlu1 %v14171_v19, %s8634_s5 }
 0xfc8   : > { %7714 = vrot.lane.b32.xlu0 %v14205_v8, %s8634_s5  ;;  %7706 = vrot.lane.b32.xlu1 %v14203_v17, %s8634_s5 }
 0xfcc   : > { %7696 = vrot.lane.b32.xlu0 %v14099_v30, %s8634_s5  ;;  %7688 = vrot.lane.b32.xlu1 %v14097_v11, %s8634_s5 }
 0xfd0   : > { %7045 = vrot.lane.b32.xlu1 %v14603_v27, %s8627_s28  ;;  %7053 = vrot.lane.b32.xlu0 %v14605_v53, %s8627_s28 }
 0xfd4   : > { %7704 = vrot.lane.b32.xlu1 %v14139_v43, %s8634_s5  ;;  %7712 = vrot.lane.b32.xlu0 %v14141_v62, %s8634_s5 }
 0xfd8   : > { %6912 = vrot.lane.b32.xlu1 %v14603_v27, %s8625_s27  ;;  %6920 = vrot.lane.b32.xlu0 %v14605_v53, %s8625_s27 }
 0xfdc   : > { %7614 = vrot.lane.b32.xlu1 %v14472_v41, %s8632_s30  ;;  %7622 = vrot.lane.b32.xlu0 %v14474_v60, %s8632_s30 }
 0xfe0   : > { %6832 = vrot.lane.b32.xlu1 %v14603_v27, %s8624_s24  ;;  %6840 = vrot.lane.b32.xlu0 %v14605_v53, %s8624_s24 }
 0xfe4   : > { %7612 = vrot.lane.b32.xlu1 %v14246_v15, %s8632_s30  ;;  %7620 = vrot.lane.b32.xlu0 %v14248_v4, %s8632_s30 }
 0xfe8   : > { %6752 = vrot.lane.b32.xlu1 %v14603_v27, %s8623_s23  ;;  %6760 = vrot.lane.b32.xlu0 %v14605_v53, %s8623_s23  ;;  %v7126_v58 = vpop.permute.xlu1 %7125  ;;  %v7134_v35 = vpop.permute.xlu0 %7133  ;;  %s8319_s23 = sshll.u32 %s16493_s16, 3 }
 0xfe9   : > { %s194_s28 = scalar_lea.vmem %s15414_s4, %s8319_s23 }
 0xfec   : > { %7628 = vrot.lane.b32.xlu1 %v14339_v16, %s8632_s30  ;;  %7636 = vrot.lane.b32.xlu0 %v14341_v38, %s8632_s30  ;;  %v14655_v0 = vpop.permute.xlu1 %7029  ;;  %v14657_v28 = vpop.permute.xlu0 %7037 }
 0xff0   : > { %7790 = vrot.lane.b32.xlu1 %v14603_v27, %s8636_s6  ;;  %7798 = vrot.lane.b32.xlu0 %v14605_v53, %s8636_s6  ;;  %v14663_v31 = vpop.permute.xlu1 %6896  ;;  %v14665_v57 = vpop.permute.xlu0 %6904 }
 0xff1   : > { %16380 = vst [vmem:[#allocation92_spill] sm:$0xff] %v14663_v31  ;;  %16381 = vst [vmem:[#allocation93_spill] sm:$0xff] %v14665_v57  ;;  %v16391_v57 = vld [vmem:[#allocation44_spill] sm:$0xff] }
 0xff4   : > { %7610 = vrot.lane.b32.xlu1 %v14171_v19, %s8632_s30  ;;  %7618 = vrot.lane.b32.xlu0 %v14173_v7, %s8632_s30  ;;  %v14671_v22 = vpop.permute.xlu1 %6816  ;;  %v14673_v25 = vpop.permute.xlu0 %6824 }
 0xff5   : > { %16382 = vst [vmem:[#allocation94_spill] sm:$0xff] %v14671_v22  ;;  %16383 = vst [vmem:[#allocation95_spill] sm:$0xff] %v14673_v25 }
 0xff8   : > { %7710 = vrot.lane.b32.xlu1 %v14603_v27, %s8634_s5  ;;  %7718 = vrot.lane.b32.xlu0 %v14605_v53, %s8634_s5  ;;  %v14679_v51 = vpop.permute.xlu1 %6736  ;;  %v14681_v37 = vpop.permute.xlu0 %6744 }
 0xff9   : > { %16384 = vst [vmem:[#allocation96_spill] sm:$0xff] %v14679_v51  ;;  %16385 = vst [vmem:[#allocation97_spill] sm:$0xff] %v14681_v37  ;;  %v7155_v51 = vsel %vm627_vm4, %v14272_v34, %v14302_v49 }
 0xffc   : > { %7626 = vrot.lane.b32.xlu1 %v14203_v17, %s8632_s30  ;;  %7634 = vrot.lane.b32.xlu0 %v14205_v8, %s8632_s30  ;;  %v14687_v47 = vpop.permute.xlu1 %7774  ;;  %v14689_v45 = vpop.permute.xlu0 %7782 }
 0xffd   : > { %16386 = vst [vmem:[#allocation98_spill] sm:$0xff] %v14687_v47  ;;  %16387 = vst [vmem:[#allocation99_spill] sm:$0xff] %v14689_v45  ;;  %v14695_v56 = vsel %vm894_vm7, %v14687_v47, %v14689_v45  ;;  %v7159_v45 = vsel %vm627_vm4, %v14270_v26, %v14272_v34  ;;  %v7165_v34 = vsel %vm627_vm4, %v14534_v23, %v14476_v48 }
 0xffe   : > { %16388 = vst [vmem:[#allocation100_spill] sm:$0xff] %v14695_v56 }
0x1000   : > { %7630 = vrot.lane.b32.xlu1 %v14603_v27, %s8632_s30  ;;  %7638 = vrot.lane.b32.xlu0 %v14605_v53, %s8632_s30  ;;  %v14710_v56 = vpop.permute.xlu1 %7694  ;;  %v14712_v47 = vpop.permute.xlu0 %7702 }
0x1001   : > { %16389 = vst [vmem:[#allocation101_spill] sm:$0xff] %v14710_v56  ;;  %16390 = vst [vmem:[#allocation102_spill] sm:$0xff] %v14712_v47  ;;  %v7162_v56 = vsel %vm627_vm4, %v7126_v58, %v7134_v35 }
0x1004   : > { %7608 = vrot.lane.b32.xlu1 %v14097_v11, %s8632_s30  ;;  %7616 = vrot.lane.b32.xlu0 %v14099_v30, %s8632_s30 }
0x1008   : > { %7624 = vrot.lane.b32.xlu1 %v14139_v43, %s8632_s30  ;;  %7632 = vrot.lane.b32.xlu0 %v14141_v62, %s8632_s30 }
0x100c   : > { %8084 = vperm.xlu1 %8545, %v14063_v42   ;;  %v7157_v42 = vsel %vm627_vm4, %v14478_v54, %v14532_v9  ;;  %v7153_v54 = vsel %vm627_vm4, %v14532_v9, %v14534_v23  ;;  %v7164_v9 = vsel %vm627_vm4, %v14393_v55, %v14343_v3  ;;  %v16392_v23 = vld [vmem:[#allocation10_spill] sm:$0xff] }
0x100d   : > { %v7177_v55 = vmul.f32 %v7153_v54, %v16270_v14  ;;  %v7167_v54 = vmul.f32 %v7159_v45, %v16392_v23  ;;  %v7067_v45 = vsel %vm490_vm3, %v14308_v21, %v14278_v18 }
0x1032   : > { %v7142_v47 = vpop.permute.xlu1 %7141  ;;  %v7150_v37 = vpop.permute.xlu0 %7149 }
0x1033   : > { %v7158_v22 = vsel %vm627_vm4, %v7134_v35, %v7142_v47  ;;  %v7154_v25 = vsel %vm627_vm4, %v7142_v47, %v7150_v37  ;;  %v7166_v31 = vsel %vm627_vm4, %v7150_v37, %v7126_v58  ;;  %v7163_v35 = vsel %vm627_vm4, %v14304_v24, %v14270_v26 }
0x1034   : > { %v7180_v44 = vmul.f32 %v7158_v22, %v16391_v57  ;;  %v7181_v39 = vmul.f32 %v7154_v25, %v16270_v14  ;;  %v7182_v48 = vmul.f32 %v7166_v31, %v16271_v12  ;;  %v7156_v47 = vsel %vm627_vm4, %v14345_v50, %v14391_v36 }
0x1035   : > { %v7179_v58 = vmul.f32 %v7162_v56, %v16392_v23  ;;  %v7160_v31 = vsel %vm627_vm4, %v14343_v3, %v14345_v50  ;;  %v7176_v22 = vmul.f32 %v7157_v42, %v16391_v57  ;;  %v7178_v26 = vmul.f32 %v7165_v34, %v16271_v12 }
0x1036   : > { %v14768_v25 = vpop.permute.xlu1 %7690  ;;  %7272 = vmatprep.subr.mxu0 %v7180_v44  ;;  %7355 = vmatprep.subr.mxu1 %v7182_v48  ;;  %v14770_v36 = vpop.permute.xlu0 %7698  ;;  %v7175_v37 = vmul.f32 %v7161_v5, %v16392_v23  ;;  %v7151_v3 = vsel %vm627_vm4, %v14302_v49, %v14304_v24  ;;  %v7172_v50 = vmul.f32 %v7156_v47, %v16391_v57 }
0x1037   : > { %v14778_v56 = vsel %vm805_vm6, %v14768_v25, %v14770_v36  ;;  %7273 = vmatpush1.msra.mxu0 %v7179_v58  ;;  %7356 = vmatpush1.msra.mxu1 %v7181_v39  ;;  %v7174_v44 = vmul.f32 %v7164_v9, %v16271_v12  ;;  %v7171_v5 = vmul.f32 %v7160_v31, %v16392_v23 }
0x1038   : > { %7274 = vmatprep.subr.mxu0 %v7176_v22  ;;  %7357 = vmatprep.subr.mxu1 %v7178_v26  ;;  %v7173_v42 = vmul.f32 %v14399_v46, %v16270_v14  ;;  %v7168_v49 = vmul.f32 %v7155_v51, %v16391_v57  ;;  %v7170_v24 = vmul.f32 %v7163_v35, %v16271_v12  ;;  %v16399_v26 = vld [vmem:[#allocation92_spill] sm:$0xff] }
0x1039   : > { %7275 = vmatpush1.msra.mxu0 %v7175_v37  ;;  %7358 = vmatpush1.msra.mxu1 %v7177_v55  ;;  %v7169_v48 = vmul.f32 %v7151_v3, %v16270_v14  ;;  %v7063_v57 = vsel %vm490_vm3, %v14278_v18, %v14280_v13  ;;  %v6930_v12 = vsel %vm401_vm2, %v14286_v59, %v14288_v32  ;;  %v16400_v37 = vld [vmem:[#allocation33_spill] sm:$0xff]  ;;  %v16401_v3 = vld [vmem:[#allocation59_spill] sm:$0xff] }
0x103a   : > { %v14789_v34 = vpop.permute.xlu1 %7706  ;;  %7276 = vmatprep.subr.mxu0 %v7172_v50  ;;  %7359 = vmatprep.subr.mxu1 %v7174_v44  ;;  %v14791_v39 = vpop.permute.xlu0 %7714  ;;  %v7059_v14 = vsel %vm490_vm3, %v14280_v13, %v14306_v29  ;;  %v7066_v47 = vsel %vm490_vm3, %v14655_v0, %v14657_v28  ;;  %v7055_v18 = vsel %vm490_vm3, %v14306_v29, %v14308_v21  ;;  %v16393_v13 = vld [vmem:[#allocation48_spill] sm:$0xff] }
0x103b   : > { %v14801_v46 = vsel %vm805_vm6, %v14789_v34, %v14791_v39  ;;  %7277 = vmatpush1.msra.mxu0 %v7171_v5  ;;  %7360 = vmatpush1.msra.mxu1 %v7173_v42  ;;  %v14844_v23 = vmul.f32 %v7059_v14, %v16280_v40  ;;  %v7065_v29 = vsel %vm490_vm3, %v14488_v61, %v14490_v33  ;;  %v16402_v5 = vld [vmem:[#allocation29_spill] sm:$0xff] }
0x103c   : > { %7278 = vmatprep.subr.mxu0 %v7168_v49  ;;  %7361 = vmatprep.subr.mxu1 %v7170_v24  ;;  %v7069_v21 = vsel %vm490_vm3, %v14538_v10, %v14488_v61  ;;  %v7064_v10 = vsel %vm490_vm3, %v14351_v52, %v14353_v2  ;;  %v6926_v55 = vsel %vm401_vm2, %v14288_v32, %v16400_v37  ;;  %v16403_v32 = vld [vmem:[#allocation4_spill] sm:$0xff] }
0x103d   : > { %7279 = vmatpush1.msra.mxu0 %v7167_v54  ;;  %7362 = vmatpush1.msra.mxu1 %v7169_v48  ;;  %v7078_v50 = vmul.f32 %v16401_v3, %v16279_v1  ;;  %v7076_v44 = vmul.f32 %v7064_v10, %v16393_v13  ;;  %v6922_v42 = vsel %vm401_vm2, %v16400_v37, %v16402_v5  ;;  %v16404_v54 = vld [vmem:[#allocation58_spill] sm:$0xff]  ;;  %v16417_v3 = vld [vmem:[#allocation36_spill] sm:$0xff] }
0x103e   : > { %v14819_v51 = vpop.permute.xlu1 %7688  ;;  %7280 = vmatprep.subr.mxu0 %v14474_v60  ;;  %7363 = vmatprep.subr.mxu1 %v14605_v53  ;;  %v14823_v35 = vpop.permute.xlu0 %7696  ;;  %v14838_v60 = vmul.f32 %v7063_v57, %v16393_v13  ;;  %v16394_v53 = vld [vmem:[#allocation8_spill] sm:$0xff]  ;;  %v6932_v48 = vsel %vm401_vm2, %v16404_v54, %v16403_v32 }
0x103f   : > { %7281 = vmatpush1.msra.mxu0 %v14472_v41  ;;  %7364 = vmatpush1.msra.mxu1 %v14603_v27  ;;  %v14841_v9 = vmul.f32 %v6930_v12, %v16394_v53  ;;  %v16395_v41 = vld [vmem:[#allocation5_spill] sm:$0xff] }
0x1040   : > { %7282 = vmatprep.subr.mxu0 %v14248_v4  ;;  %7365 = vmatprep.subr.mxu1 %v14341_v38  ;;  %v14847_v27 = vmul.f32 %v7067_v45, %v16395_v41  ;;  %v7061_v4 = vsel %vm490_vm3, %v14490_v33, %v14536_v6  ;;  %v7084_v38 = vmul.f32 %v7066_v47, %v16393_v13  ;;  %v16405_v47 = vld [vmem:[#allocation15_spill] sm:$0xff] }
0x1041   : > { %7283 = vmatpush1.msra.mxu0 %v14246_v15  ;;  %7366 = vmatpush1.msra.mxu1 %v14339_v16 }
0x1042   : > { %v7046_v58 = vpop.permute.xlu1 %7045  ;;  %7284 = vmatprep.subr.mxu0 %v14173_v7  ;;  %7367 = vmatprep.subr.mxu1 %v14205_v8  ;;  %v7054_v15 = vpop.permute.xlu0 %7053 }
0x1043   : > { %v7062_v16 = vsel %vm490_vm3, %v14657_v28, %v7046_v58  ;;  %v7058_v6 = vsel %vm490_vm3, %v7046_v58, %v7054_v15  ;;  %v7070_v33 = vsel %vm490_vm3, %v7054_v15, %v14655_v0  ;;  %7285 = vmatpush1.msra.mxu0 %v14171_v19  ;;  %7368 = vmatpush1.msra.mxu1 %v14203_v17  ;;  %v16397_v28 = vld [vmem:[#allocation76_spill] sm:$0xff]  ;;  %v16408_v58 = vld [vmem:[#allocation77_spill] sm:$0xff] }
0x1044   : > { %v7085_v7 = vmul.f32 %v7062_v16, %v16280_v40  ;;  %v7083_v8 = vmul.f32 %v7070_v33, %v16395_v41  ;;  %v7086_v61 = vmul.f32 %v7058_v6, %v16279_v1  ;;  %7286 = vmatprep.subr.mxu0 %v14099_v30  ;;  %7369 = vmatprep.subr.mxu1 %v14141_v62  ;;  %v16396_v30 = vld [vmem:[#allocation24_spill] sm:$0xff]  ;;  %v16409_v16 = vld [vmem:[#allocation78_spill] sm:$0xff]  ;;  %v16410_v33 = vld [vmem:[#allocation67_spill] sm:$0xff] }
0x1045   : > { %v7060_v19 = vsel %vm490_vm3, %v14353_v2, %v14405_v63  ;;  %7287 = vmatpush1.msra.mxu0 %v14097_v11  ;;  %7370 = vmatpush1.msra.mxu1 %v14139_v43  ;;  %v7074_v17 = vmul.f32 %v7055_v18, %v16279_v1  ;;  %v7068_v62 = vsel %vm490_vm3, %v16396_v30, %v14351_v52  ;;  %v16398_v63 = vld [vmem:[#allocation93_spill] sm:$0xff] }
0x1046   : > { %v7080_v0 = vmul.f32 %v7065_v29, %v16393_v13  ;;  %v7082_v31 = vmul.f32 %v16397_v28, %v16279_v1  ;;  %v14899_v22 = vpop.permute.xlu1 %7704  ;;  %7288 = vmatprep.subr.mxu0 %v7084_v38  ;;  %7371 = vmatprep.subr.mxu1 %v7086_v61  ;;  %v14901_v2 = vpop.permute.xlu0 %7712  ;;  %v7081_v11 = vmul.f32 %v7061_v4, %v16280_v40  ;;  %v16406_v13 = vld [vmem:[#allocation49_spill] sm:$0xff]  ;;  %v16407_v29 = vld [vmem:[#allocation46_spill] sm:$0xff]  ;;  %v16412_v61 = vld [vmem:[#allocation20_spill] sm:$0xff] }
0x1047   : > { %v7079_v43 = vmul.f32 %v7069_v21, %v16395_v41  ;;  %v6933_v52 = vsel %vm401_vm2, %v16399_v26, %v16398_v63  ;;  %7289 = vmatpush1.msra.mxu0 %v7083_v8  ;;  %7372 = vmatpush1.msra.mxu1 %v7085_v7  ;;  %v7077_v49 = vmul.f32 %v7060_v19, %v16280_v40  ;;  %v8285_v21 = vld [vmem:[%s15413_s3 + $0x140] sm:$0xff]  ;;  %v16411_v7 = vld [vmem:[#allocation32_spill] sm:$0xff] }
0x1048   : > { %7290 = vmatprep.subr.mxu0 %v7080_v0  ;;  %7373 = vmatprep.subr.mxu1 %v7082_v31  ;;  %v7075_v24 = vmul.f32 %v7068_v62, %v16395_v41  ;;  %v6934_v1 = vsel %vm401_vm2, %v16402_v5, %v14286_v59  ;;  %v6951_v57 = vmul.f32 %v6933_v52, %v16394_v53  ;;  %v16414_v62 = vld [vmem:[#allocation79_spill] sm:$0xff]  ;;  %v16419_v5 = vld [vmem:[#allocation94_spill] sm:$0xff] }
0x1049   : > { %7291 = vmatpush1.msra.mxu0 %v7079_v43  ;;  %7374 = vmatpush1.msra.mxu1 %v7081_v11  ;;  %v6940_v38 = vmul.f32 %v6926_v55, %v16405_v47  ;;  %v6928_v15 = vsel %vm401_vm2, %v16403_v32, %v16408_v58  ;;  %v6936_v6 = vsel %vm401_vm2, %v16409_v16, %v16404_v54  ;;  %v16416_v55 = vld [vmem:[#allocation30_spill] sm:$0xff]  ;;  %v16420_v54 = vld [vmem:[#allocation28_spill] sm:$0xff] }
0x104a   : > { %v6913_v12 = vpop.permute.xlu1 %6912  ;;  %7292 = vmatprep.subr.mxu0 %v7076_v44  ;;  %7375 = vmatprep.subr.mxu1 %v7078_v50  ;;  %v6921_v40 = vpop.permute.xlu0 %6920  ;;  %v6931_v8 = vsel %vm401_vm2, %v16411_v7, %v16410_v33  ;;  %v6927_v10 = vsel %vm401_vm2, %v16410_v33, %v16412_v61  ;;  %v6947_v30 = vmul.f32 %v6932_v48, %v16394_v53  ;;  %v16418_v44 = vld [vmem:[#allocation95_spill] sm:$0xff]  ;;  %v16427_v58 = vld [vmem:[#allocation70_spill] sm:$0xff] }
0x104b   : > { %v6929_v14 = vsel %vm401_vm2, %v16398_v63, %v6913_v12  ;;  %v6925_v45 = vsel %vm401_vm2, %v6913_v12, %v6921_v40  ;;  %v6937_v59 = vsel %vm401_vm2, %v6921_v40, %v16399_v26  ;;  %7293 = vmatpush1.msra.mxu0 %v7075_v24  ;;  %7376 = vmatpush1.msra.mxu1 %v7077_v49  ;;  %v16415_v63 = vld [vmem:[#allocation47_spill] sm:$0xff]  ;;  %v16422_v40 = vld [vmem:[#allocation13_spill] sm:$0xff]  ;;  %v16428_v16 = vld [vmem:[#allocation82_spill] sm:$0xff] }
0x104c   : > { %v6952_v18 = vmul.f32 %v6929_v14, %v16405_v47  ;;  %v6950_v41 = vmul.f32 %v6937_v59, %v16406_v13  ;;  %v6953_v4 = vmul.f32 %v6925_v45, %v16407_v29  ;;  %7294 = vmatprep.subr.mxu0 %v14838_v60  ;;  %7377 = vmatprep.subr.mxu1 %v7074_v17  ;;  %v16423_v45 = vld [vmem:[#allocation6_spill] sm:$0xff]  ;;  %v16429_v33 = vld [vmem:[#allocation39_spill] sm:$0xff] }
0x104d   : > { %7295 = vmatpush1.msra.mxu0 %v14847_v27  ;;  %7378 = vmatpush1.msra.mxu1 %v14844_v23  ;;  %v6938_v60 = vmul.f32 %v6934_v1, %v16406_v13  ;;  %v16413_v23 = vld [vmem:[#allocation35_spill] sm:$0xff]  ;;  %v6949_v0 = vmul.f32 %v16414_v62, %v16407_v29  ;;  %v6948_v28 = vmul.f32 %v6928_v15, %v16405_v47  ;;  %v16433_v62 = vld [vmem:[#allocation54_spill] sm:$0xff] }
0x104e   : > { %v14966_v19 = vpop.permute.xlu1 %7614  ;;  %7450 = vmatprep.subr.mxu0 %v6951_v57  ;;  %7533 = vmatprep.subr.mxu1 %v6953_v4  ;;  %v14968_v17 = vpop.permute.xlu0 %7622  ;;  %v6935_v27 = vsel %vm401_vm2, %v16413_v23, %v16411_v7  ;;  %v6946_v31 = vmul.f32 %v6936_v6, %v16406_v13  ;;  %v6941_v11 = vmul.f32 %v6922_v42, %v16407_v29  ;;  %v16421_v57 = vld [vmem:[#allocation53_spill] sm:$0xff]  ;;  %v16430_v7 = vld [vmem:[#allocation18_spill] sm:$0xff]  ;;  %v8286_v23 = vld [vmem:[%s15413_s3 + $0x148] sm:$0xff] }
0x104f   : > { %8289 = vmatmul.mubr.msk.f32.vlgmr.msra.gmra.mxu0 %vm1896_vm8, %v8285_v21  ;;  %8293 = vmatmul.mubr.msk.f32.vlgmr.msra.gmra.mxu1 %vm1896_vm8, %v8285_v21  ;;  %v6944_v43 = vmul.f32 %v6927_v10, %v16405_v47  ;;  %v6945_v26 = vmul.f32 %v16415_v63, %v16407_v29  ;;  %v6943_v52 = vmul.f32 %v6931_v8, %v16394_v53  ;;  %v16424_v47 = vld [vmem:[#allocation80_spill] sm:$0xff] }
0x1050   : > { %7451 = vmatpush1.msra.mxu0 %v6950_v41  ;;  %7534 = vmatpush1.msra.mxu1 %v6952_v18  ;;  %v6942_v37 = vmul.f32 %v6935_v27, %v16406_v13  ;;  %v6852_v50 = vsel %vm308_vm0, %v16417_v3, %v16416_v55  ;;  %v6853_v42 = vsel %vm308_vm0, %v16419_v5, %v16418_v44  ;;  %v16425_v13 = vld [vmem:[#allocation81_spill] sm:$0xff]  ;;  %v16426_v21 = vld [vmem:[#allocation68_spill] sm:$0xff]  ;;  %v16432_v27 = vld [vmem:[#allocation7_spill] sm:$0xff] }
0x1051   : > { %7452 = vmatprep.subr.mxu0 %v6947_v30  ;;  %7535 = vmatprep.subr.mxu1 %v6949_v0  ;;  %v6871_v59 = vmul.f32 %v6853_v42, %v16423_v45  ;;  %v6848_v18 = vsel %vm308_vm0, %v16416_v55, %v16424_v47  ;;  %v6856_v41 = vsel %vm308_vm0, %v16425_v13, %v16417_v3  ;;  %v16436_v55 = vld [vmem:[#allocation71_spill] sm:$0xff]  ;;  %v16440_v47 = vld [vmem:[#allocation72_spill] sm:$0xff] }
0x1052   : > { %7453 = vmatpush1.msra.mxu0 %v6946_v31  ;;  %7536 = vmatpush1.msra.mxu1 %v6948_v28  ;;  %v6833_v49 = vpop.permute.xlu1 %6832  ;;  %v6841_v24 = vpop.permute.xlu0 %6840  ;;  %v6867_v15 = vmul.f32 %v6852_v50, %v16423_v45  ;;  %v6869_v6 = vmul.f32 %v16428_v16, %v16422_v40  ;;  %v6868_v61 = vmul.f32 %v6848_v18, %v16420_v54  ;;  %v16434_v28 = vmov 0.0   ;;  %v16441_v18 = vld [vmem:[#allocation60_spill] sm:$0xff] }
0x1053   : > { %v6849_v53 = vsel %vm308_vm0, %v16418_v44, %v6833_v49  ;;  %7454 = vmatprep.subr.mxu0 %v6943_v52  ;;  %7537 = vmatprep.subr.mxu1 %v6945_v26  ;;  %v6845_v1 = vsel %vm308_vm0, %v6833_v49, %v6841_v24  ;;  %v6857_v32 = vsel %vm308_vm0, %v6841_v24, %v16419_v5  ;;  %v16435_v52 = vld [vmem:[#allocation38_spill] sm:$0xff]  ;;  %v16437_v5 = vld [vmem:[#allocation97_spill] sm:$0xff]  ;;  %v16438_v49 = vld [vmem:[#allocation96_spill] sm:$0xff] }
0x1054   : > { %v6872_v48 = vmul.f32 %v6849_v53, %v16420_v54  ;;  %v6870_v12 = vmul.f32 %v6857_v32, %v16421_v57  ;;  %v6873_v14 = vmul.f32 %v6845_v1, %v16422_v40  ;;  %7455 = vmatpush1.msra.mxu0 %v6942_v37  ;;  %7538 = vmatpush1.msra.mxu1 %v6944_v43  ;;  %v16446_v16 = vld [vmem:[#allocation56_spill] sm:$0xff] }
0x1055   : > { %7456 = vmatprep.subr.mxu0 %v14841_v9  ;;  %7539 = vmatprep.subr.mxu1 %v6941_v11  ;;  %v6850_v9 = vsel %vm308_vm0, %v16427_v58, %v16426_v21  ;;  %v6866_v10 = vmul.f32 %v6856_v41, %v16421_v57  ;;  %v6846_v30 = vsel %vm308_vm0, %v16426_v21, %v16432_v27  ;;  %v16442_v41 = vld [vmem:[#allocation23_spill] sm:$0xff] }
0x1056   : > { %7457 = vmatpush1.msra.mxu0 %v6938_v60  ;;  %7540 = vmatpush1.msra.mxu1 %v6940_v38  ;;  %v15016_v29 = vpop.permute.xlu1 %7612  ;;  %v15018_v4 = vpop.permute.xlu0 %7620  ;;  %v6851_v38 = vsel %vm308_vm0, %v16430_v7, %v16429_v33  ;;  %v16431_v60 = vld [vmem:[#allocation21_spill] sm:$0xff]  ;;  %v6842_v0 = vsel %vm308_vm0, %v16432_v27, %v16433_v62  ;;  %v6859_v43 = vmul.f32 %v6850_v9, %v16423_v45  ;;  %v16447_v33 = vld [vmem:[#allocation83_spill] sm:$0xff] }
0x1057   : > { %7458 = vmatprep.subr.mxu0 %v6871_v59  ;;  %7541 = vmatprep.subr.mxu1 %v6873_v14  ;;  %v6855_v8 = vsel %vm308_vm0, %v16431_v60, %v16430_v7  ;;  %v6854_v63 = vsel %vm308_vm0, %v16433_v62, %v16427_v58  ;;  %v6863_v26 = vmul.f32 %v6851_v38, %v16423_v45  ;;  %v16439_v45 = vld [vmem:[#allocation25_spill] sm:$0xff]  ;;  %v16448_v38 = vld [vmem:[#allocation84_spill] sm:$0xff] }
0x1058   : > { %7459 = vmatpush1.msra.mxu0 %v6870_v12  ;;  %7542 = vmatpush1.msra.mxu1 %v6872_v48  ;;  %v6865_v37 = vmul.f32 %v16435_v52, %v16422_v40  ;;  %v6864_v3 = vmul.f32 %v16436_v55, %v16420_v54  ;;  %v6862_v50 = vmul.f32 %v6855_v8, %v16421_v57  ;;  %v16443_v58 = vld [vmem:[#allocation57_spill] sm:$0xff] }
0x1059   : > { %7460 = vmatprep.subr.mxu0 %v6867_v15  ;;  %7543 = vmatprep.subr.mxu1 %v6869_v6  ;;  %v6861_v53 = vmul.f32 %v6842_v0, %v16422_v40  ;;  %v6773_v1 = vsel %vm239_vm1, %v16438_v49, %v16437_v5  ;;  %v6860_v12 = vmul.f32 %v6846_v30, %v16420_v54  ;;  %v8287_v40 = vld [vmem:[%s15413_s3 + $0x150] sm:$0xff]  ;;  %v16444_v54 = vld [vmem:[#allocation43_spill] sm:$0xff] }
0x105a   : > { %7334 = vmatprep.mubr.f32.mxu0 %v16434_v28  ;;  %7417 = vmatprep.mubr.f32.mxu1 %v16434_v28  ;;  %v6753_v31 = vpop.permute.xlu1 %6752  ;;  %v6761_v11 = vpop.permute.xlu0 %6760  ;;  %v6858_v14 = vmul.f32 %v6854_v63, %v16421_v57  ;;  %v6772_v13 = vsel %vm239_vm1, %v16441_v18, %v16440_v47  ;;  %v16445_v57 = vld [vmem:[#allocation17_spill] sm:$0xff]  ;;  %v6791_v6 = vmul.f32 %v6773_v1, %v16446_v16  ;;  %v8288_v63 = vld [vmem:[%s15413_s3 + $0x158] sm:$0xff] }
0x105b   : > { %7461 = vmatpush1.msra.mxu0 %v6866_v10  ;;  %7544 = vmatpush1.msra.mxu1 %v6868_v61  ;;  %v6765_v44 = vsel %vm239_vm1, %v6753_v31, %v6761_v11  ;;  %v6769_v42 = vsel %vm239_vm1, %v16437_v5, %v6753_v31  ;;  %v6777_v24 = vsel %vm239_vm1, %v6761_v11, %v16438_v49  ;;  %v16450_v62 = vld [vmem:[#allocation69_spill] sm:$0xff]  ;;  %v16454_v5 = vld [vmem:[#allocation16_spill] sm:$0xff]  ;;  %v16455_v49 = vld [vmem:[#allocation27_spill] sm:$0xff] }
0x105c   : > { %8290 = vmatmul.mubr.msk.f32.gmra.mxu0 %vm1896_vm8, %v8286_v23  ;;  %8294 = vmatmul.mubr.msk.f32.gmra.mxu1 %vm1896_vm8, %v8286_v23  ;;  %v6793_v59 = vmul.f32 %v6765_v44, %v16439_v45  ;;  %v6792_v21 = vmul.f32 %v6769_v42, %v16442_v41  ;;  %v6790_v9 = vmul.f32 %v6777_v24, %v16443_v58  ;;  %v16449_v23 = vld [vmem:[#allocation85_spill] sm:$0xff] }
0x105d   : > { %7462 = vmatprep.subr.mxu0 %v6863_v26  ;;  %7545 = vmatprep.subr.mxu1 %v6865_v37  ;;  %v6770_v15 = vsel %vm239_vm1, %v16445_v57, %v16444_v54  ;;  %v6768_v7 = vsel %vm239_vm1, %v16440_v47, %v16447_v33  ;;  %v6776_v60 = vsel %vm239_vm1, %v16448_v38, %v16441_v18  ;;  %v16451_v0 = vld [vmem:[#allocation65_spill] sm:$0xff]  ;;  %v16452_v26 = vld [vmem:[#allocation34_spill] sm:$0xff] }
0x105e   : > { %7463 = vmatpush1.msra.mxu0 %v6862_v50  ;;  %7546 = vmatpush1.msra.mxu1 %v6864_v3  ;;  %v15076_v32 = vpop.permute.xlu1 %7628  ;;  %v15078_v48 = vpop.permute.xlu0 %7636  ;;  %v6787_v10 = vmul.f32 %v6772_v13, %v16446_v16  ;;  %v6789_v27 = vmul.f32 %v16449_v23, %v16439_v45  ;;  %v6779_v30 = vmul.f32 %v6770_v15, %v16446_v16  ;;  %v16453_v37 = vld [vmem:[#allocation66_spill] sm:$0xff] }
0x105f   : > { %7464 = vmatprep.subr.mxu0 %v6859_v43  ;;  %7547 = vmatprep.subr.mxu1 %v6861_v53  ;;  %v7808_v31 = vsel %vm894_vm7, %v16451_v0, %v16450_v62  ;;  %v6788_v11 = vmul.f32 %v6768_v7, %v16442_v41  ;;  %v6786_v43 = vmul.f32 %v6776_v60, %v16443_v58  ;;  %v16456_v53 = vld [vmem:[#allocation64_spill] sm:$0xff]  ;;  %v16459_v47 = vld [vmem:[#allocation98_spill] sm:$0xff]  ;;  %v16462_v7 = vld [vmem:[#allocation73_spill] sm:$0xff] }
0x1060   : > { %7338 = vmatprep.mubr.f32.mxu0 %v16434_v28  ;;  %7421 = vmatprep.mubr.f32.mxu1 %v16434_v28  ;;  %v6766_v52 = vsel %vm239_vm1, %v16444_v54, %v16452_v26  ;;  %v6762_v55 = vsel %vm239_vm1, %v16452_v26, %v16453_v37  ;;  %v6774_v3 = vsel %vm239_vm1, %v16453_v37, %v16445_v57  ;;  %v16460_v57 = vld [vmem:[#allocation11_spill] sm:$0xff]  ;;  %v16463_v38 = vld [vmem:[#allocation42_spill] sm:$0xff] }
0x1061   : > { %7465 = vmatpush1.msra.mxu0 %v6858_v14  ;;  %7548 = vmatpush1.msra.mxu1 %v6860_v12  ;;  %v6783_v42 = vmul.f32 %v16454_v5, %v16446_v16  ;;  %v6784_v24 = vmul.f32 %v16455_v49, %v16442_v41  ;;  %v6785_v1 = vmul.f32 %v16456_v53, %v16439_v45  ;;  %v16457_v12 = vld [vmem:[#allocation31_spill] sm:$0xff]  ;;  %v16461_v16 = vld [vmem:[#allocation45_spill] sm:$0xff]  ;;  %v16466_v23 = vld [vmem:[#allocation86_spill] sm:$0xff] }
0x1062   : > { %8291 = vmatmul.mubr.msk.f32.gmra.mxu0 %vm1896_vm8, %v8287_v40  ;;  %8295 = vmatmul.mubr.msk.f32.gmra.mxu1 %vm1896_vm8, %v8287_v40  ;;  %v7791_v8 = vpop.permute.xlu1 %7790  ;;  %v7799_v61 = vpop.permute.xlu0 %7798  ;;  %v6782_v14 = vmul.f32 %v16457_v12, %v16443_v58  ;;  %v6780_v13 = vmul.f32 %v6766_v52, %v16442_v41  ;;  %v6778_v54 = vmul.f32 %v6774_v3, %v16443_v58  ;;  %v16464_v58 = vld [vmem:[#allocation19_spill] sm:$0xff]  ;;  %v16471_v53 = vld [vmem:[#allocation88_spill] sm:$0xff]  ;;  %v16472_v12 = vld [vmem:[#allocation102_spill] sm:$0xff] }
0x1063   : > { %7466 = vmatprep.subr.mxu0 %v6791_v6  ;;  %7549 = vmatprep.subr.mxu1 %v6793_v59  ;;  %v16458_v59 = vld [vmem:[#allocation99_spill] sm:$0xff]  ;;  %v7815_v18 = vsel %vm894_vm7, %v7799_v61, %v16459_v47  ;;  %v7804_v15 = vsel %vm894_vm7, %v16450_v62, %v16460_v57  ;;  %v7800_v6 = vsel %vm894_vm7, %v16460_v57, %v16461_v16  ;;  %v16474_v47 = vld [vmem:[#allocation50_spill] sm:$0xff] }
0x1064   : > { %7467 = vmatpush1.msra.mxu0 %v6790_v9  ;;  %7550 = vmatpush1.msra.mxu1 %v6792_v21  ;;  %v7807_v40 = vsel %vm894_vm7, %v16458_v59, %v7791_v8  ;;  %v7803_v21 = vsel %vm894_vm7, %v7791_v8, %v7799_v61  ;;  %v6781_v9 = vmul.f32 %v6762_v55, %v16439_v45  ;;  %v16465_v8 = vld [vmem:[#allocation14_spill] sm:$0xff]  ;;  %v16467_v62 = vld [vmem:[#allocation87_spill] sm:$0xff]  ;;  %v16470_v55 = vld [vmem:[#allocation100_spill] sm:$0xff] }
0x1065   : > { %7468 = vmatprep.subr.mxu0 %v6787_v10  ;;  %7551 = vmatprep.subr.mxu1 %v6789_v27  ;;  %v7810_v45 = vsel %vm894_vm7, %v16463_v38, %v16462_v7  ;;  %v7829_v60 = vmul.f32 %v16464_v58, %v7807_v40  ;;  %v7831_v61 = vmul.f32 %v16465_v8, %v7815_v18  ;;  %v8281_v10 = vld [vmem:[%s15413_s3 + $0x120] sm:$0xff]  ;;  %v16473_v59 = vld [vmem:[#allocation101_spill] sm:$0xff] }
0x1066   : > { %7342 = vmatprep.mubr.f32.mxu0 %v16434_v28  ;;  %7425 = vmatprep.mubr.f32.mxu1 %v16434_v28  ;;  %v15136_v50 = vpop.permute.xlu1 %7610  ;;  %v15138_v44 = vpop.permute.xlu0 %7618  ;;  %v7806_v27 = vsel %vm894_vm7, %v16462_v7, %v16466_v23  ;;  %v7812_v52 = vsel %vm894_vm7, %v16461_v16, %v16451_v0  ;;  %v7817_v5 = vmul.f32 %v16464_v58, %v7804_v15  ;;  %v16477_v15 = vld [vmem:[#allocation37_spill] sm:$0xff]  ;;  %v16483_v23 = vld [vmem:[#allocation90_spill] sm:$0xff] }
0x1067   : > { %7469 = vmatpush1.msra.mxu0 %v6786_v43  ;;  %7552 = vmatpush1.msra.mxu1 %v6788_v11  ;;  %v7814_v11 = vsel %vm894_vm7, %v16467_v62, %v16463_v38  ;;  %v16468_v43 = vld [vmem:[#allocation12_spill] sm:$0xff]  ;;  %v7821_v18 = vmul.f32 %v16464_v58, %v16474_v47  ;;  %v7731_v7 = vsel %vm805_vm6, %v16473_v59, %v16472_v12  ;;  %v16478_v38 = vld [vmem:[#allocation26_spill] sm:$0xff] }
0x1068   : > { %8292 = vmatmul.mubr.msk.f32.gmra.mxu0 %vm1896_vm8, %v8288_v63  ;;  %8296 = vmatmul.mubr.msk.f32.gmra.mxu1 %vm1896_vm8, %v8288_v63  ;;  %v7830_v63 = vmul.f32 %v16468_v43, %v7803_v21  ;;  %v7818_v37 = vmul.f32 %v16468_v43, %v7800_v6  ;;  %v7827_v0 = vmul.f32 %v16465_v8, %v7814_v11 }
0x1069   : > { %7470 = vmatprep.subr.mxu0 %v6783_v42  ;;  %7553 = vmatprep.subr.mxu1 %v6785_v1  ;;  %v7825_v42 = vmul.f32 %v16464_v58, %v7806_v27  ;;  %v7826_v1 = vmul.f32 %v16468_v43, %v16471_v53  ;;  %v7822_v16 = vmul.f32 %v16468_v43, %v16477_v15  ;;  %v16480_v58 = vld [vmem:[#allocation89_spill] sm:$0xff] }
0x106a   : > { %7471 = vmatpush1.msra.mxu0 %v6782_v14  ;;  %7554 = vmatpush1.msra.mxu1 %v6784_v24  ;;  %v7711_v41 = vpop.permute.xlu1 %7710  ;;  %v7719_v33 = vpop.permute.xlu0 %7718  ;;  %v7819_v6 = vmul.f32 %v16465_v8, %v7812_v52  ;;  %v16484_v27 = vld [vmem:[#allocation9_spill] sm:$0xff]  ;;  %v7728_v53 = vsel %vm805_vm6, %v14819_v51, %v14823_v35 }
0x106b   : > { %7472 = vmatprep.subr.mxu0 %v6779_v30  ;;  %7555 = vmatprep.subr.mxu1 %v6781_v9  ;;  %v16469_v30 = vld [vmem:[#allocation40_spill] sm:$0xff]  ;;  %v7727_v14 = vsel %vm805_vm6, %v16472_v12, %v7711_v41  ;;  %v7735_v40 = vsel %vm805_vm6, %v7719_v33, %v16473_v59  ;;  %v7723_v9 = vsel %vm805_vm6, %v7711_v41, %v7719_v33  ;;  %v8283_v15 = vld [vmem:[%s15413_s3 + $0x130] sm:$0xff] }
0x106c   : > { %7473 = vmatpush1.msra.mxu0 %v6778_v54  ;;  %7506 = vmatprep.mubr.f32.mxu0 %v16434_v28  ;;  %v7816_v26 = vmul.f32 %v16469_v30, %v7808_v31  ;;  %v7828_v3 = vmul.f32 %v16469_v30, %v16470_v55  ;;  %v7824_v31 = vmul.f32 %v16469_v30, %v7810_v45  ;;  %v16476_v54 = vld [vmem:[#allocation63_spill] sm:$0xff]  ;;  %v16479_v41 = vld [vmem:[#allocation52_spill] sm:$0xff] }
0x106d   : > { %7556 = vmatpush1.msra.mxu1 %v6780_v13  ;;  %7589 = vmatprep.mubr.f32.mxu1 %v16434_v28  ;;  %v16475_v13 = vld [vmem:[#allocation41_spill] sm:$0xff]  ;;  %v7820_v57 = vmul.f32 %v16469_v30, %v16476_v54  ;;  %v7749_v45 = vmul.f32 %v7727_v14, %v16478_v38  ;;  %v7751_v33 = vmul.f32 %v7735_v40, %v16479_v41  ;;  %v16485_v30 = vld [vmem:[#allocation22_spill] sm:$0xff]  ;;  %v16488_v54 = vld [vmem:[#allocation51_spill] sm:$0xff] }
0x106e   : > { %8297 = vmatmul.mubr.msk.f32.vlgmr.msra.gmra.mxu0 %vm1896_vm8, %v8281_v10  ;;  %8301 = vmatmul.mubr.msk.f32.vlgmr.msra.gmra.mxu1 %vm1896_vm8, %v8281_v10  ;;  %v15203_v49 = vpop.permute.xlu1 %7626  ;;  %v15205_v24 = vpop.permute.xlu0 %7634  ;;  %v7823_v21 = vmul.f32 %v16465_v8, %v16475_v13  ;;  %v16482_v10 = vld [vmem:[#allocation74_spill] sm:$0xff]  ;;  %v7750_v62 = vmul.f32 %v7723_v9, %v16484_v27  ;;  %v7748_v52 = vmul.f32 %v7731_v7, %v16485_v30 }
0x106f   : > { %7921 = vmatprep.subr.mxu0 %v7829_v60  ;;  %8004 = vmatprep.subr.mxu1 %v7831_v61  ;;  %v16481_v60 = vld [vmem:[#allocation75_spill] sm:$0xff]  ;;  %v7734_v8 = vsel %vm805_vm6, %v16483_v23, %v16482_v10  ;;  %v7742_v59 = vmul.f32 %v14801_v46, %v16484_v27  ;;  %v7646_v13 = vsel %vm716_vm5, %v15018_v4, %v15076_v32 }
0x1070   : > { %7922 = vmatpush1.msra.mxu0 %v7828_v3  ;;  %8005 = vmatpush1.msra.mxu1 %v7830_v63  ;;  %v7726_v61 = vsel %vm805_vm6, %v16481_v60, %v16480_v58  ;;  %v7730_v63 = vsel %vm805_vm6, %v16482_v10, %v16481_v60  ;;  %v7747_v3 = vmul.f32 %v7734_v8, %v16479_v41 }
0x1071   : > { %7923 = vmatprep.subr.mxu0 %v7825_v42  ;;  %8006 = vmatprep.subr.mxu1 %v7827_v0  ;;  %v7745_v55 = vmul.f32 %v7726_v61, %v16478_v38  ;;  %v7740_v0 = vmul.f32 %v14778_v56, %v16485_v30  ;;  %v7642_v58 = vsel %vm716_vm5, %v15076_v32, %v15078_v48 }
0x1072   : > { %7924 = vmatpush1.msra.mxu0 %v7824_v31  ;;  %8007 = vmatpush1.msra.mxu1 %v7826_v1  ;;  %v7631_v11 = vpop.permute.xlu1 %7630  ;;  %v7639_v43 = vpop.permute.xlu0 %7638  ;;  %v7733_v31 = vsel %vm805_vm6, %v14791_v39, %v14768_v25  ;;  %v7724_v25 = vsel %vm805_vm6, %v14823_v35, %v14899_v22  ;;  %v7732_v39 = vsel %vm805_vm6, %v14901_v2, %v14819_v51 }
0x1073   : > { %7925 = vmatprep.subr.mxu0 %v7821_v18  ;;  %8008 = vmatprep.subr.mxu1 %v7823_v21  ;;  %v7743_v56 = vmul.f32 %v7733_v31, %v16479_v41  ;;  %v7720_v1 = vsel %vm805_vm6, %v14899_v22, %v14901_v2  ;;  %v7647_v40 = vsel %vm716_vm5, %v14968_v17, %v7631_v11  ;;  %v16487_v21 = vld [vmem:[#allocation62_spill] sm:$0xff] }
0x1074   : > { %7926 = vmatpush1.msra.mxu0 %v7820_v57  ;;  %8009 = vmatpush1.msra.mxu1 %v7822_v16  ;;  %v7655_v51 = vsel %vm716_vm5, %v7639_v43, %v14966_v19  ;;  %v7737_v35 = vmul.f32 %v7724_v25, %v16478_v38  ;;  %v7739_v22 = vmul.f32 %v7732_v39, %v16479_v41 }
0x1075   : > { %7927 = vmatprep.subr.mxu0 %v7817_v5  ;;  %8010 = vmatprep.subr.mxu1 %v7819_v6  ;;  %v7725_v5 = vsel %vm805_vm6, %v14770_v36, %v14789_v34  ;;  %v8282_v36 = vld [vmem:[%s15413_s3 + $0x128] sm:$0xff]  ;;  %v7643_v46 = vsel %vm716_vm5, %v7631_v11, %v7639_v43  ;;  %v7736_v2 = vmul.f32 %v7728_v53, %v16485_v30 }
0x1076   : > { %7928 = vmatpush1.msra.mxu0 %v7816_v26  ;;  %8011 = vmatpush1.msra.mxu1 %v7818_v37  ;;  %v7744_v26 = vmul.f32 %v7730_v63, %v16485_v30  ;;  %v16486_v37 = vld [vmem:[#allocation91_spill] sm:$0xff]  ;;  %v7741_v34 = vmul.f32 %v7725_v5, %v16478_v38  ;;  %v7609_v12 = vpop.permute.xlu1 %7608  ;;  %v7617_v14 = vpop.permute.xlu0 %7616  ;;  %v7738_v47 = vmul.f32 %v7720_v1, %v16484_v27  ;;  %v8308_v5 = vld [vmem:[%s15413_s3 + $0x178] sm:$0xff] }
0x1077   : > { %7929 = vmatprep.subr.mxu0 %v7749_v45  ;;  %8012 = vmatprep.subr.mxu1 %v7751_v33  ;;  %v7746_v42 = vmul.f32 %v16486_v37, %v16484_v27  ;;  %v7651_v18 = vsel %vm716_vm5, %v14966_v19, %v14968_v17  ;;  %v7669_v9 = vmul.f32 %v7647_v40, %v16487_v21  ;;  %v16489_v17 = vld [vmem:[#allocation55_spill] sm:$0xff]  ;;  %v16490_v45 = vld [vmem:[#allocation61_spill] sm:$0xff]  ;;  %v8284_v27 = vld [vmem:[%s15413_s3 + $0x138] sm:$0xff] }
0x1078   : > { %7930 = vmatpush1.msra.mxu0 %v7748_v52  ;;  %8013 = vmatpush1.msra.mxu1 %v7750_v62  ;;  %v7671_v57 = vmul.f32 %v7655_v51, %v16488_v54  ;;  %v7654_v19 = vsel %vm716_vm5, %v15078_v48, %v15016_v29  ;;  %v7670_v16 = vmul.f32 %v7643_v46, %v16489_v17  ;;  %v8305_v52 = vld [vmem:[%s15413_s3 + $0x160] sm:$0xff] }
0x1079   : > { %7931 = vmatprep.subr.mxu0 %v7745_v55  ;;  %8014 = vmatprep.subr.mxu1 %v7747_v3  ;;  %v7650_v6 = vsel %vm716_vm5, %v15016_v29, %v15018_v4  ;;  %v7668_v41 = vmul.f32 %v7651_v18, %v16490_v45  ;;  %v7665_v33 = vmul.f32 %v7646_v13, %v16487_v21  ;;  %v8306_v55 = vld [vmem:[%s15413_s3 + $0x168] sm:$0xff]  ;;  %v8307_v3 = vld [vmem:[%s15413_s3 + $0x170] sm:$0xff] }
0x107a   : > { %7512 = vmatprep.mubr.f32.mxu0 %v16434_v28  ;;  %7595 = vmatprep.mubr.f32.mxu1 %v16434_v28  ;;  %v7625_v7 = vpop.permute.xlu1 %7624  ;;  %v7633_v38 = vpop.permute.xlu0 %7632  ;;  %v7667_v60 = vmul.f32 %v7654_v19, %v16488_v54  ;;  %v7645_v29 = vsel %vm716_vm5, %v15138_v44, %v15203_v49  ;;  %v7653_v4 = vsel %vm716_vm5, %v15205_v24, %v15136_v50 }
0x107b   : > { %7932 = vmatpush1.msra.mxu0 %v7744_v26  ;;  %8015 = vmatpush1.msra.mxu1 %v7746_v42  ;;  %v7664_v32 = vmul.f32 %v7650_v6, %v16490_v45  ;;  %v7644_v48 = vsel %vm716_vm5, %v7617_v14, %v7625_v7  ;;  %v7652_v61 = vsel %vm716_vm5, %v7633_v38, %v7609_v12 }
0x107c   : > { %8298 = vmatmul.mubr.msk.f32.gmra.mxu0 %vm1896_vm8, %v8282_v36  ;;  %8302 = vmatmul.mubr.msk.f32.gmra.mxu1 %vm1896_vm8, %v8282_v36  ;;  %v7666_v10 = vmul.f32 %v7642_v58, %v16489_v17  ;;  %v7649_v23 = vsel %vm716_vm5, %v15136_v50, %v15138_v44  ;;  %v7641_v8 = vsel %vm716_vm5, %v15203_v49, %v15205_v24 }
0x107d   : > { %7933 = vmatprep.subr.mxu0 %v7741_v34  ;;  %8016 = vmatprep.subr.mxu1 %v7743_v56  ;;  %v7661_v62 = vmul.f32 %v7645_v29, %v16487_v21  ;;  %v7663_v11 = vmul.f32 %v7653_v4, %v16488_v54  ;;  %v7640_v50 = vsel %vm716_vm5, %v7625_v7, %v7633_v38 }
0x107e   : > { %7934 = vmatpush1.msra.mxu0 %v7740_v0  ;;  %8017 = vmatpush1.msra.mxu1 %v7742_v59  ;;  %v7648_v44 = vsel %vm716_vm5, %v7609_v12, %v7617_v14  ;;  %v7657_v49 = vmul.f32 %v7644_v48, %v16487_v21  ;;  %v7659_v24 = vmul.f32 %v7652_v61, %v16488_v54 }
0x107f   : > { %7935 = vmatprep.subr.mxu0 %v7737_v35  ;;  %8018 = vmatprep.subr.mxu1 %v7739_v22  ;;  %v7660_v43 = vmul.f32 %v7649_v23, %v16490_v45  ;;  %v7662_v63 = vmul.f32 %v7641_v8, %v16489_v17  ;;  %v7658_v30 = vmul.f32 %v7640_v50, %v16489_v17  ;;  %v16491_v8 = vld [vmem:[#allocation3_spill] sm:$0xff] }
0x1080   : > { %7516 = vmatprep.mubr.f32.mxu0 %v16434_v28  ;;  %7599 = vmatprep.mubr.f32.mxu1 %v16434_v28  ;;  %v7656_v20 = vmul.f32 %v7648_v44, %v16490_v45 }
0x1081   : > { %7936 = vmatpush1.msra.mxu0 %v7736_v2  ;;  %8019 = vmatpush1.msra.mxu1 %v7738_v47 }
0x1082   : > { %8299 = vmatmul.mubr.msk.f32.gmra.mxu0 %vm1896_vm8, %v8283_v15  ;;  %8303 = vmatmul.mubr.msk.f32.gmra.mxu1 %vm1896_vm8, %v8283_v15 }
0x1083   : > { %7937 = vmatprep.subr.mxu0 %v7669_v9  ;;  %8020 = vmatprep.subr.mxu1 %v7671_v57 }
0x1084   : > { %7938 = vmatpush1.msra.mxu0 %v7668_v41  ;;  %8021 = vmatpush1.msra.mxu1 %v7670_v16  ;;  %v8652_v16 = vmov 1983009808  }
0x1085   : > { %7939 = vmatprep.subr.mxu0 %v7665_v33  ;;  %8022 = vmatprep.subr.mxu1 %v7667_v60  ;;  %v8098_v6 = vunpack.c.l.s4 %v8652_v16 }
0x1086   : > { %7520 = vmatprep.mubr.f32.mxu0 %v16434_v28  ;;  %7603 = vmatprep.mubr.f32.mxu1 %v16434_v28 }
0x1087   : > { %7940 = vmatpush1.msra.mxu0 %v7664_v32  ;;  %8023 = vmatpush1.msra.mxu1 %v7666_v10  ;;  %v8099_v33 = vunpack.c.0.s8 %v8098_v6  ;;  %v8085_v32 = vpop.permute.xlu1 %8084 }
0x1088   : > { %8300 = vmatmul.mubr.msk.f32.gmra.mxu0 %vm1896_vm8, %v8284_v27  ;;  %8304 = vmatmul.mubr.msk.f32.gmra.mxu1 %vm1896_vm8, %v8284_v27 }
0x1089   : > { %7941 = vmatprep.subr.mxu0 %v7661_v62  ;;  %8024 = vmatprep.subr.mxu1 %v7663_v11  ;;  %v8102_v27 = vsub.s32 %v8099_v33, %v16491_v8 }
0x108a   : > { %7942 = vmatpush1.msra.mxu0 %v7660_v43  ;;  %8025 = vmatpush1.msra.mxu1 %v7662_v63 }
0x108b   : > { %7943 = vmatprep.subr.mxu0 %v7657_v49  ;;  %8026 = vmatprep.subr.mxu1 %v7659_v24 }
0x108c   : > { %7944 = vmatpush1.msra.mxu0 %v7656_v20  ;;  %7977 = vmatprep.mubr.f32.mxu0 %v16434_v28 }
0x108d   : > { %8027 = vmatpush1.msra.mxu1 %v7658_v30  ;;  %8060 = vmatprep.mubr.f32.mxu1 %v16434_v28 }
0x108e   : > { %8309 = vmatmul.mubr.msk.f32.vlgmr.msra.gmra.mxu0 %vm1896_vm8, %v8305_v52  ;;  %8313 = vmatmul.mubr.msk.f32.vlgmr.msra.gmra.mxu1 %vm1896_vm8, %v8305_v52 }
0x108f   : > { %7983 = vmatprep.mubr.f32.mxu0 %v16434_v28  ;;  %8066 = vmatprep.mubr.f32.mxu1 %v16434_v28 }
0x1092   : > { %8310 = vmatmul.mubr.msk.f32.gmra.mxu0 %vm1896_vm8, %v8306_v55  ;;  %8314 = vmatmul.mubr.msk.f32.gmra.mxu1 %vm1896_vm8, %v8306_v55 }
0x1093   : > { %7987 = vmatprep.mubr.f32.mxu0 %v16434_v28  ;;  %8070 = vmatprep.mubr.f32.mxu1 %v16434_v28 }
0x1096   : > { %8311 = vmatmul.mubr.msk.f32.gmra.mxu0 %vm1896_vm8, %v8307_v3  ;;  %8315 = vmatmul.mubr.msk.f32.gmra.mxu1 %vm1896_vm8, %v8307_v3 }
0x1097   : > { %7991 = vmatprep.mubr.f32.mxu0 %v16434_v28  ;;  %8074 = vmatprep.mubr.f32.mxu1 %v16434_v28 }
0x109a   : > { %8312 = vmatmul.mubr.msk.f32.gmra.mxu0 %vm1896_vm8, %v8308_v5  ;;  %8316 = vmatmul.mubr.msk.f32.gmra.mxu1 %vm1896_vm8, %v8308_v5 }
0x110f   : > { %v7330_v31 = vpop.f32.mrf.mxu0  ;;  %v7413_v26 = vpop.f32.mrf.mxu1 }
0x1111   : > { %v7332_v37 = vpop.f32.mrf.mxu0  ;;  %v7415_v42 = vpop.f32.mrf.mxu1 }
0x111c   : > { %v7336_v0 = vpop.f32.mrf.mxu0  ;;  %v7419_v36 = vpop.f32.mrf.mxu1 }
0x111e   : > { %v7337_v34 = vpop.f32.mrf.mxu0  ;;  %v7420_v25 = vpop.f32.mrf.mxu1 }
0x1122   : > { %v7340_v39 = vpop.f32.mrf.mxu0  ;;  %v7423_v56 = vpop.f32.mrf.mxu1 }
0x1124   : > { %v7341_v53 = vpop.f32.mrf.mxu0  ;;  %v7424_v28 = vpop.f32.mrf.mxu1 }
0x1128   : > { %v7344_v1 = vpop.f32.mrf.mxu0  ;;  %v7427_v12 = vpop.f32.mrf.mxu1 }
0x112a   : > { %v7345_v14 = vpop.f32.mrf.mxu0  ;;  %v7428_v59 = vpop.f32.mrf.mxu1 }
0x112e   : > { %v7508_v40 = vpop.f32.mrf.mxu0  ;;  %v7591_v51 = vpop.f32.mrf.mxu1 }
0x112f   : > { %v7509_v7 = vadd.f32 %v7508_v40, %v7330_v31  ;;  %v7592_v38 = vadd.f32 %v7591_v51, %v7413_v26 }
0x1130   : > { %v7510_v35 = vpop.f32.mrf.mxu0  ;;  %v7593_v22 = vpop.f32.mrf.mxu1 }
0x1131   : > { %v7511_v58 = vadd.f32 %v7510_v35, %v7332_v37  ;;  %v7594_v60 = vadd.f32 %v7593_v22, %v7415_v42 }
0x113c   : > { %v7514_v46 = vpop.f32.mrf.mxu0  ;;  %v7597_v2 = vpop.f32.mrf.mxu1 }
0x113e   : > { %v7515_v47 = vpop.f32.mrf.mxu0  ;;  %v7598_v18 = vpop.f32.mrf.mxu1 }
0x1142   : > { %v7518_v13 = vpop.f32.mrf.mxu0  ;;  %v7601_v21 = vpop.f32.mrf.mxu1 }
0x1144   : > { %v7519_v9 = vpop.f32.mrf.mxu0  ;;  %v7602_v54 = vpop.f32.mrf.mxu1 }
0x1148   : > { %v7522_v57 = vpop.f32.mrf.mxu0  ;;  %v7605_v15 = vpop.f32.mrf.mxu1 }
0x114a   : > { %v7523_v19 = vpop.f32.mrf.mxu0  ;;  %v7606_v17 = vpop.f32.mrf.mxu1 }
0x114e   : > { %v7979_v45 = vpop.f32.mrf.mxu0  ;;  %v8062_v41 = vpop.f32.mrf.mxu1 }
0x114f   : > { %v8079_v29 = vadd.f32 %v7979_v45, %v7509_v7  ;;  %v8081_v4 = vadd.f32 %v8062_v41, %v7592_v38 }
0x1150   : > { %v7981_v48 = vpop.f32.mrf.mxu0  ;;  %v8064_v61 = vpop.f32.mrf.mxu1 }
0x1151   : > { %v8080_v10 = vadd.f32 %v7981_v48, %v7511_v58  ;;  %v8082_v23 = vadd.f32 %v8064_v61, %v7594_v60  ;;  %v8087_v50 = vadd.f32 %v8085_v32, %v8079_v29  ;;  %v8089_v44 = vadd.f32 %v8085_v32, %v8081_v4 }
0x1152   : > { %v7985_v62 = vpop.f32.mrf.mxu0  ;;  %v8068_v11 = vpop.f32.mrf.mxu1 }
0x1153   : > { %v8088_v49 = vadd.f32 %v8085_v32, %v8080_v10  ;;  %v8090_v24 = vadd.f32 %v8085_v32, %v8082_v23 }
0x1154   : > { %v7986_v43 = vpop.f32.mrf.mxu0  ;;  %v8069_v63 = vpop.f32.mrf.mxu1 }
0x1155   : > { %v8095_v30 = vcombine.low %v8087_v50, %v8088_v49  ;;  %v8096_v20 = vcombine.low %v8089_v44, %v8090_v24 }
0x1156   : > { %v7989_v52 = vpop.f32.mrf.mxu0  ;;  %v8072_v55 = vpop.f32.mrf.mxu1 }
0x1157   : > { %v8103_v3 = vrot.slane %v8095_v30, %v8102_v27  ;;  %v8110_v5 = vrot.slane %v8096_v20, %v8102_v27 }
0x1158   : > { %v7990_v31 = vpop.f32.mrf.mxu0  ;;  %v8073_v26 = vpop.f32.mrf.mxu1 }
0x1159   : > { %v8111_v37 = vcombine.low %v8103_v3, %v8110_v5 }
0x115a   : > { %v7993_v42 = vpop.f32.mrf.mxu0  ;;  %v8076_v0 = vpop.f32.mrf.mxu1 }
0x115b   : > { %8113 = vst [vmem:[%s194_s28] sm:$0xff] %v8111_v37 }
0x115c   : > { %v7994_v36 = vpop.f32.mrf.mxu0  ;;  %v8077_v34 = vpop.f32.mrf.mxu1 }
0x115d PF: > { %s14_s15 = sadd.s32 1, %s8619_s15  }
0x115e   : > { %p11_p4 = scmp.ge.s32.totalorder %s14_s15, 4  }
0x1160   :  { %13 = sbr.rel (!%p11_p4) target bundleno = 1 (0x1), region = 77 }

</bundles_post_ra>
